<compile_context>
chip_gen: v5e
topology: v5e:2x2
jax: 0.10.0
libtpu: 0.0.40
codegen_flags: <defaults>
</compile_context>

<pallas_src>
import functools

import jax
import jax.numpy as jnp
from jax.experimental import pallas as pl
from jax.experimental.pallas import tpu as pltpu


def _round_up(x, m):
    return (x + m - 1) // m * m


def _encoder_lstm_kernel(emb_ref, *rest, num_layers, seq_len, batch_pad,
                         hidden_pad, chunk, unroll):
    Bp, Hp, S, L, Tc = batch_pad, hidden_pad, seq_len, num_layers, chunk
    w_refs = rest[:3 * L]
    hn_ref, cn_ref = rest[3 * L], rest[3 * L + 1]
    gx_scr = rest[3 * L + 2]                       # (2, Tc*Bp, 4Hp) f32 double buffer
    act_scr = rest[3 * L + 3] if L > 1 else None   # (S*Bp, Hp) bf16 inter-layer stream
    n_chunks = (S + Tc - 1) // Tc

    for layer in range(L):
        wih_ref = w_refs[3 * layer + 0]
        whh_ref = w_refs[3 * layer + 1]
        b_ref = w_refs[3 * layer + 2]
        cdt = whh_ref.dtype
        write_act = layer < L - 1          # last layer's per-step outputs are unused

        def gx_compute(ck, slot, _wih=wih_ref, _b=b_ref, _layer=layer):
            # Time-independent input projection for one chunk: one MXU-shaped
            # (tc*Bp, D) @ (D, 4Hp) matmul, bias folded in.
            t0 = ck * Tc
            tc = min(Tc, S - t0)
            if _layer == 0:
                x_in = emb_ref[t0 * Bp:(t0 + tc) * Bp, :]      # bf16
            else:
                x_in = act_scr[t0 * Bp:(t0 + tc) * Bp, :]      # bf16
            dst = gx_scr.at[slot]
            dst[0:tc * Bp, :] = (
                jnp.dot(x_in, _wih[...], preferred_element_type=jnp.float32)
                + _b[...])

        gx_compute(0, 0)                             # prime slot 0
        h = jnp.zeros((Bp, Hp), cdt)                 # bf16 carry (MXU operand dtype)
        c = jnp.zeros((Bp, Hp), jnp.float32)         # cell state stays f32

        for ck in range(n_chunks):
            slot = ck % 2
            # Issue chunk k+1's input-projection matmul before consuming chunk k.
            if ck + 1 < n_chunks:
                gx_compute(ck + 1, 1 - slot)
            t0 = ck * Tc
            tc = min(Tc, S - t0)
            gx_view = gx_scr.at[slot]

            def step(t, carry, _gx=gx_view, _t0=t0, _whh=whh_ref, _wa=write_act):
                h, c = carry                                   # (Bp,Hp) bf16 / f32
                off = pl.multiple_of(t * Bp, Bp)
                gates = _gx[pl.ds(off, Bp), :] + jnp.dot(
                    h, _whh[...], preferred_element_type=jnp.float32)  # (Bp,4Hp) f32
                # Gate order i, f, g, o; each gate is a lane-aligned slab.
                # sigmoid(x) = 0.5*tanh(0.5*x) + 0.5 : one EUP op per gate.
                i_g = 0.5 * jnp.tanh(0.5 * gates[:, 0 * Hp:1 * Hp]) + 0.5
                f_g = 0.5 * jnp.tanh(0.5 * gates[:, 1 * Hp:2 * Hp]) + 0.5
                g_g = jnp.tanh(gates[:, 2 * Hp:3 * Hp])
                o_g = 0.5 * jnp.tanh(0.5 * gates[:, 3 * Hp:4 * Hp]) + 0.5
                c_new = f_g * c + i_g * g_g
                h_new = (o_g * jnp.tanh(c_new)).astype(h.dtype)
                if _wa:
                    aoff = pl.multiple_of((_t0 + t) * Bp, Bp)
                    act_scr[pl.ds(aoff, Bp), :] = h_new
                return h_new, c_new

            h, c = jax.lax.fori_loop(0, tc, step, (h, c),
                                     unroll=max(1, min(unroll, tc)))

        # Final-state writes happen exactly once per layer.
        hn_ref[layer] = h.astype(jnp.float32)
        cn_ref[layer] = c


def _fused_encoder_lstm(emb2d, w_ih, w_hh, bias, *, seq_len, batch_pad,
                        hidden_pad, num_layers):
    """emb2d: (S*Bp, Ep) bf16; per-layer padded weights; returns h_n, c_n (L,Bp,Hp) f32."""
    SB, _ = emb2d.shape
    Bp, Hp, L, S = batch_pad, hidden_pad, num_layers, seq_len
    act_dtype = w_ih[0].dtype

    def nbytes(a):
        return a.size * a.dtype.itemsize

    # ---- per-generation VMEM budget (v5e/v6e: 128 MiB, v7x: 64 MiB per TC) ----
    try:
        vmem_cap = int(pltpu.get_tpu_info().vmem_capacity_bytes)
    except Exception:
        vmem_cap = 64 * 1024 * 1024          # conservative fallback (fits all gens)
    budget = (vmem_cap * 3) // 4

    fixed = nbytes(emb2d)
    for layer in range(L):
        fixed += nbytes(w_ih[layer]) + nbytes(w_hh[layer]) + nbytes(bias[layer])
    fixed += 2 * L * Bp * Hp * 4                                   # h_n, c_n (f32)
    if L > 1:
        fixed += SB * Hp * jnp.dtype(act_dtype).itemsize           # bf16 act stream

    gx_row_bytes = Bp * 4 * Hp * 4            # one timestep of gates_x (f32)
    avail = max(budget - fixed, 2 * gx_row_bytes)
    Tc = int(max(1, min(S, avail // (2 * gx_row_bytes))))          # chunk length

    need = fixed + 2 * Tc * gx_row_bytes
    vmem_limit = int(min(vmem_cap, max(2 * need + (4 << 20), 32 << 20)))

    unroll = S if S <= 16 else 4              # partial unroll for long sequences

    kernel = functools.partial(
        _encoder_lstm_kernel, num_layers=L, seq_len=S, batch_pad=Bp,
        hidden_pad=Hp, chunk=Tc, unroll=unroll)

    in_arrays = [emb2d]
    for layer in range(L):
        in_arrays += [w_ih[layer], w_hh[layer], bias[layer]]

    out_shape = (
        jax.ShapeDtypeStruct((L, Bp, Hp), jnp.float32),   # h_n
        jax.ShapeDtypeStruct((L, Bp, Hp), jnp.float32),   # c_n
    )
    scratch_shapes = [pltpu.VMEM((2, Tc * Bp, 4 * Hp), jnp.float32)]  # gx chunks
    if L > 1:
        scratch_shapes.append(pltpu.VMEM((SB, Hp), act_dtype))        # act stream

    # Gridless call: all inputs single-buffered whole-array VMEM residents; the
    # time/layer/chunk loops all live inside the kernel.
    # TODO(synk): on v7x, split the (padded) batch across the two TensorCores via a
    # leading "parallel" grid axis when batch_pad >= 32.
    return pl.pallas_call(
        kernel,
        out_shape=out_shape,
        scratch_shapes=scratch_shapes,
        compiler_params=pltpu.CompilerParams(vmem_limit_bytes=vmem_limit),
    )(*in_arrays)


class EncoderLSTMPallas:
    def __init__(self, input_size, embedding_size, hidden_size, num_layers, p,
                 key, param_dtype=jnp.bfloat16):
        self.input_size = input_size
        self.embedding_size = embedding_size
        self.hidden_size = hidden_size
        self.num_layers = num_layers
        self.p = p                       # dropout prob; identity at inference
        self.param_dtype = param_dtype
        # TODO(synk): training-mode dropout (after embedding / between LSTM layers)
        # is not applied — inference semantics only.

        self.Hp = _round_up(hidden_size, 128)     # lane-aligned hidden
        self.Ep = _round_up(embedding_size, 128)
        # Batch sublane pad: 16 for packed (bf16) activations, 8 for f32.
        self._bsub = 16 if jnp.dtype(param_dtype).itemsize < 4 else 8
        # TODO(synk): when hidden_size % 128 != 0, a packed 4H-lane gate layout
        # would avoid the 4x lane waste of per-gate Hp padding.

        keys = jax.random.split(key, 1 + 4 * num_layers)
        self.embedding = jax.random.normal(
            keys[0], (input_size, embedding_size), jnp.float32)

        bound = 1.0 / float(hidden_size) ** 0.5
        H, Hp = hidden_size, self.Hp
        self.w_ih, self.w_hh, self.bias = [], [], []
        for layer in range(num_layers):
            d_in = embedding_size if layer == 0 else hidden_size
            d_in_pad = self.Ep if layer == 0 else Hp
            k_wih, k_whh, k_bih, k_bhh = keys[1 + 4 * layer: 1 + 4 * (layer + 1)]
            # PyTorch stores (4H, d_in)/(4H, H); we keep the transpose, gate order
            # i, f, g, o, and combine b_ih + b_hh.
            w_ih = jax.random.uniform(k_wih, (d_in, 4 * H), jnp.float32, -bound, bound)
            w_hh = jax.random.uniform(k_whh, (H, 4 * H), jnp.float32, -bound, bound)
            b_ih = jax.random.uniform(k_bih, (4 * H,), jnp.float32, -bound, bound)
            b_hh = jax.random.uniform(k_bhh, (4 * H,), jnp.float32, -bound, bound)
            b = b_ih + b_hh

            # Pad so each gate occupies its own lane-aligned, Hp-wide slab; padded
            # rows/cols/bias entries are zero so padding never affects real outputs.
            w_ih_p = jnp.zeros((d_in_pad, 4 * Hp), jnp.float32)
            w_hh_p = jnp.zeros((Hp, 4 * Hp), jnp.float32)
            b_p = jnp.zeros((1, 4 * Hp), jnp.float32)
            for g in range(4):
                w_ih_p = w_ih_p.at[:d_in, g * Hp:g * Hp + H].set(
                    w_ih[:, g * H:(g + 1) * H])
                w_hh_p = w_hh_p.at[:H, g * Hp:g * Hp + H].set(
                    w_hh[:, g * H:(g + 1) * H])
                b_p = b_p.at[0, g * Hp:g * Hp + H].set(b[g * H:(g + 1) * H])

            self.w_ih.append(w_ih_p.astype(param_dtype))   # bf16 weights (MXU)
            self.w_hh.append(w_hh_p.astype(param_dtype))
            self.bias.append(b_p)                           # bias stays f32

    def __call__(self, x):
        # x: (seq_len, batch) int32 token indices (PyTorch LSTM seq-first).
        S, B = x.shape
        Bp = _round_up(B, self._bsub)
        # Dropout = identity (inference).  jnp.pad avoids an extra zeros+scatter pass.
        # TODO(synk): fuse the embedding gather into the kernel (scalar-prefetch token
        # ids + pl.Element row gather) to skip the padded HBM materialization.
        emb = jnp.take(self.embedding, x, axis=0).astype(self.param_dtype)   # (S,B,E)
        emb_p = jnp.pad(emb, ((0, 0), (0, Bp - B), (0, self.Ep - self.embedding_size)))
        emb2d = emb_p.reshape(S * Bp, self.Ep)      # lane/sublane-aligned 2-D stream

        h_n, c_n = _fused_encoder_lstm(
            emb2d, self.w_ih, self.w_hh, self.bias,
            seq_len=S, batch_pad=Bp, hidden_pad=self.Hp,
            num_layers=self.num_layers)

        hidden_state = h_n[:, :B, :self.hidden_size]   # (num_layers, B, H)
        cell_state = c_n[:, :B, :self.hidden_size]
        return hidden_state, cell_state


def _reference_forward(model, x):
    """Pure-JAX reference with the same padded bf16 params and bf16 h / f32 c carries."""
    S, B = x.shape
    Bp = _round_up(B, model._bsub)
    Hp, H = model.Hp, model.hidden_size
    hi = jax.lax.Precision.HIGHEST
    emb = jnp.take(model.embedding, x, axis=0)
    xin = jnp.pad(emb, ((0, 0), (0, Bp - B), (0, model.Ep - model.embedding_size)))
    xin = xin.astype(model.param_dtype).astype(jnp.float32)
    h_list, c_list = [], []
    for layer in range(model.num_layers):
        wih = model.w_ih[layer].astype(jnp.float32)
        whh = model.w_hh[layer].astype(jnp.float32)
        b = model.bias[layer]
        h = jnp.zeros((Bp, Hp), jnp.float32)
        c = jnp.zeros((Bp, Hp), jnp.float32)
        outs = []
        for t in range(S):
            g_all = (jnp.dot(xin[t], wih, precision=hi)
                     + jnp.dot(h, whh, precision=hi) + b)
            i_g = jax.nn.sigmoid(g_all[:, 0 * Hp:1 * Hp])
            f_g = jax.nn.sigmoid(g_all[:, 1 * Hp:2 * Hp])
            g_g = jnp.tanh(g_all[:, 2 * Hp:3 * Hp])
            o_g = jax.nn.sigmoid(g_all[:, 3 * Hp:4 * Hp])
            c = f_g * c + i_g * g_g
            # Kernel carries h in bf16 (c stays f32): mirror that rounding.
            h = (o_g * jnp.tanh(c)).astype(model.param_dtype).astype(jnp.float32)
            outs.append(h)
        xin = jnp.stack(outs, 0)     # already bf16-rounded, as in the bf16 act stream
        h_list.append(h)
        c_list.append(c)
    hn = jnp.stack(h_list, 0)[:, :B, :H]
    cn = jnp.stack(c_list, 0)[:, :B, :H]
    return hn, cn


if __name__ == "__main__":
    # Small shapes consistent with the module's forward.
    input_size = 50        # vocab
    embedding_size = 32
    hidden_size = 32
    num_layers = 2
    p = 0.1
    seq_len = 8
    batch = 4

    key = jax.random.PRNGKey(0)
    k_params, k_tokens = jax.random.split(key)

    model = EncoderLSTMPallas(input_size, embedding_size, hidden_size,
                              num_layers, p, k_params)
    x = jax.random.randint(k_tokens, (seq_len, batch), 0, input_size,
                           dtype=jnp.int32)

    hidden_state, cell_state = model(x)
    jax.block_until_ready((hidden_state, cell_state))

    assert hidden_state.shape == (num_layers, batch, hidden_size)
    assert cell_state.shape == (num_layers, batch, hidden_size)

    # Sanity check against a pure-JAX reference (same parameters, same precision plan).
    hn_ref, cn_ref = _reference_forward(model, x)
    err = max(float(jnp.max(jnp.abs(hidden_state - hn_ref))),
              float(jnp.max(jnp.abs(cell_state - cn_ref))))
    assert err < 1e-2, f"numerical mismatch vs reference: max abs err {err}"

    print("KERNEL_OK")
</pallas_src>

<mosaic_0001>
module attributes {stable_mosaic.version = 11 : i64} {
  func.func @_encoder_lstm_kernel(%arg0: memref<128x128xbf16, #tpu.memory_space<vmem>>, %arg1: memref<128x512xbf16, #tpu.memory_space<vmem>>, %arg2: memref<128x512xbf16, #tpu.memory_space<vmem>>, %arg3: memref<1x512xf32, #tpu.memory_space<vmem>>, %arg4: memref<128x512xbf16, #tpu.memory_space<vmem>>, %arg5: memref<128x512xbf16, #tpu.memory_space<vmem>>, %arg6: memref<1x512xf32, #tpu.memory_space<vmem>>, %arg7: memref<2x16x128xf32, #tpu.memory_space<vmem>>, %arg8: memref<2x16x128xf32, #tpu.memory_space<vmem>>, %arg9: memref<2x128x512xf32, #tpu.memory_space<vmem>>, %arg10: memref<128x128xbf16, #tpu.memory_space<vmem>>) attributes {dimension_semantics = [], scalar_prefetch = 0 : i64, scratch_operands = 2 : i64, tpu.core_type = #tpu.core_type<tc>} {
    %c0 = arith.constant 0 : index
    %c0_0 = arith.constant 0 : index
    %0 = vector.load %arg0[%c0, %c0_0] : memref<128x128xbf16, #tpu.memory_space<vmem>>, vector<128x128xbf16>
    %c0_1 = arith.constant 0 : index
    %c0_2 = arith.constant 0 : index
    %1 = vector.load %arg1[%c0_1, %c0_2] : memref<128x512xbf16, #tpu.memory_space<vmem>>, vector<128x512xbf16>
    %cst = arith.constant dense<0.000000e+00> : vector<128x512xf32>
    %2 = tpu.matmul %0, %1, %cst {dimension_numbers = #tpu.dot_dimension_numbers<[1], [0], [0], [1], [0, 0, 1, 1], [], []>} : vector<128x128xbf16>, vector<128x512xbf16>, vector<128x512xf32> -> vector<128x512xf32>
    %c0_3 = arith.constant 0 : index
    %c0_4 = arith.constant 0 : index
    %3 = vector.load %arg3[%c0_3, %c0_4] : memref<1x512xf32, #tpu.memory_space<vmem>>, vector<1x512xf32>
    %4 = vector.broadcast %3 : vector<1x512xf32> to vector<128x512xf32>
    %5 = arith.addf %2, %4 : vector<128x512xf32>
    %c0_i32 = arith.constant 0 : i32
    %c0_i32_5 = arith.constant 0 : i32
    %c0_i32_6 = arith.constant 0 : i32
    %6 = tpu.memref_slice %arg9[%c0_i32, %c0_i32_5, %c0_i32_6] : memref<2x128x512xf32, #tpu.memory_space<vmem>> -> memref<1x128x512xf32, #tpu.memory_space<vmem>>
    %7 = tpu.memref_squeeze %6 : memref<1x128x512xf32, #tpu.memory_space<vmem>> -> memref<128x512xf32, #tpu.memory_space<vmem>>
    %c0_7 = arith.constant 0 : index
    %c0_8 = arith.constant 0 : index
    %8 = vector.load %7[%c0_7, %c0_8] : memref<128x512xf32, #tpu.memory_space<vmem>>, vector<128x512xf32>
    tpu.vector_store %7[%c0_7, %c0_8], %5 {strides = array<i32>} : memref<128x512xf32, #tpu.memory_space<vmem>>, vector<128x512xf32>,
    %cst_9 = arith.constant 0.000000e+00 : bf16
    %9 = vector.broadcast %cst_9 : bf16 to vector<16x128xbf16>
    %cst_10 = arith.constant 0.000000e+00 : f32
    %10 = vector.broadcast %cst_10 : f32 to vector<16x128xf32>
    %c0_i32_11 = arith.constant 0 : i32
    %c0_i32_12 = arith.constant 0 : i32
    %c16_i32 = arith.constant 16 : i32
    %11 = arith.muli %c0_i32_12, %c16_i32 : i32
    %12 = tpu.assume_multiple %11, 16 : i32
    %c0_i32_13 = arith.constant 0 : i32
    %c0_i32_14 = arith.constant 0 : i32
    %13 = tpu.memref_slice %arg9[%c0_i32_11, %c0_i32_13, %c0_i32_14] : memref<2x128x512xf32, #tpu.memory_space<vmem>> -> memref<1x128x512xf32, #tpu.memory_space<vmem>>
    %14 = tpu.memref_squeeze %13 : memref<1x128x512xf32, #tpu.memory_space<vmem>> -> memref<128x512xf32, #tpu.memory_space<vmem>>
    %15 = arith.index_cast %12 : i32 to index
    %c0_15 = arith.constant 0 : index
    %16 = vector.load %14[%15, %c0_15] : memref<128x512xf32, #tpu.memory_space<vmem>>, vector<16x512xf32>
    %c0_16 = arith.constant 0 : index
    %c0_17 = arith.constant 0 : index
    %17 = vector.load %arg2[%c0_16, %c0_17] : memref<128x512xbf16, #tpu.memory_space<vmem>>, vector<128x512xbf16>
    %cst_18 = arith.constant dense<0.000000e+00> : vector<16x512xf32>
    %18 = tpu.matmul %9, %17, %cst_18 {dimension_numbers = #tpu.dot_dimension_numbers<[1], [0], [0], [1], [0, 0, 1, 1], [], []>} : vector<16x128xbf16>, vector<128x512xbf16>, vector<16x512xf32> -> vector<16x512xf32>
    %19 = arith.addf %16, %18 : vector<16x512xf32>
    %20 = vector.extract_strided_slice %19 {offsets = [0, 0], sizes = [16, 128], strides = [1, 1]} : vector<16x512xf32> to vector<16x128xf32>
    %cst_19 = arith.constant 5.000000e-01 : f32
    %21 = vector.broadcast %cst_19 : f32 to vector<16x128xf32>
    %22 = arith.mulf %21, %20 : vector<16x128xf32>
    %23 = math.tanh %22 : vector<16x128xf32>
    %cst_20 = arith.constant 5.000000e-01 : f32
    %24 = vector.broadcast %cst_20 : f32 to vector<16x128xf32>
    %25 = arith.mulf %24, %23 : vector<16x128xf32>
    %cst_21 = arith.constant 5.000000e-01 : f32
    %26 = vector.broadcast %cst_21 : f32 to vector<16x128xf32>
    %27 = arith.addf %25, %26 : vector<16x128xf32>
    %28 = vector.extract_strided_slice %19 {offsets = [0, 128], sizes = [16, 128], strides = [1, 1]} : vector<16x512xf32> to vector<16x128xf32>
    %cst_22 = arith.constant 5.000000e-01 : f32
    %29 = vector.broadcast %cst_22 : f32 to vector<16x128xf32>
    %30 = arith.mulf %29, %28 : vector<16x128xf32>
    %31 = math.tanh %30 : vector<16x128xf32>
    %cst_23 = arith.constant 5.000000e-01 : f32
    %32 = vector.broadcast %cst_23 : f32 to vector<16x128xf32>
    %33 = arith.mulf %32, %31 : vector<16x128xf32>
    %cst_24 = arith.constant 5.000000e-01 : f32
    %34 = vector.broadcast %cst_24 : f32 to vector<16x128xf32>
    %35 = arith.addf %33, %34 : vector<16x128xf32>
    %36 = vector.extract_strided_slice %19 {offsets = [0, 256], sizes = [16, 128], strides = [1, 1]} : vector<16x512xf32> to vector<16x128xf32>
    %37 = math.tanh %36 : vector<16x128xf32>
    %38 = vector.extract_strided_slice %19 {offsets = [0, 384], sizes = [16, 128], strides = [1, 1]} : vector<16x512xf32> to vector<16x128xf32>
    %cst_25 = arith.constant 5.000000e-01 : f32
    %39 = vector.broadcast %cst_25 : f32 to vector<16x128xf32>
    %40 = arith.mulf %39, %38 : vector<16x128xf32>
    %41 = math.tanh %40 : vector<16x128xf32>
    %cst_26 = arith.constant 5.000000e-01 : f32
    %42 = vector.broadcast %cst_26 : f32 to vector<16x128xf32>
    %43 = arith.mulf %42, %41 : vector<16x128xf32>
    %cst_27 = arith.constant 5.000000e-01 : f32
    %44 = vector.broadcast %cst_27 : f32 to vector<16x128xf32>
    %45 = arith.addf %43, %44 : vector<16x128xf32>
    %46 = arith.mulf %35, %10 : vector<16x128xf32>
    %47 = arith.mulf %27, %37 : vector<16x128xf32>
    %48 = arith.addf %46, %47 : vector<16x128xf32>
    %49 = math.tanh %48 : vector<16x128xf32>
    %50 = arith.mulf %45, %49 : vector<16x128xf32>
    %51 = arith.truncf %50 : vector<16x128xf32> to vector<16x128xbf16>
    %c0_i32_28 = arith.constant 0 : i32
    %52 = arith.addi %c0_i32_28, %c0_i32_12 : i32
    %c16_i32_29 = arith.constant 16 : i32
    %53 = arith.muli %52, %c16_i32_29 : i32
    %54 = tpu.assume_multiple %53, 16 : i32
    %55 = arith.index_cast %54 : i32 to index
    %c0_30 = arith.constant 0 : index
    %56 = vector.load %arg10[%55, %c0_30] : memref<128x128xbf16, #tpu.memory_space<vmem>>, vector<16x128xbf16>
    tpu.vector_store %arg10[%55, %c0_30], %51 {strides = array<i32>} : memref<128x128xbf16, #tpu.memory_space<vmem>>, vector<16x128xbf16>,
    %c1_i32 = arith.constant 1 : i32
    %c16_i32_31 = arith.constant 16 : i32
    %57 = arith.muli %c1_i32, %c16_i32_31 : i32
    %58 = tpu.assume_multiple %57, 16 : i32
    %c0_i32_32 = arith.constant 0 : i32
    %c0_i32_33 = arith.constant 0 : i32
    %59 = tpu.memref_slice %arg9[%c0_i32_11, %c0_i32_32, %c0_i32_33] : memref<2x128x512xf32, #tpu.memory_space<vmem>> -> memref<1x128x512xf32, #tpu.memory_space<vmem>>
    %60 = tpu.memref_squeeze %59 : memref<1x128x512xf32, #tpu.memory_space<vmem>> -> memref<128x512xf32, #tpu.memory_space<vmem>>
    %61 = arith.index_cast %58 : i32 to index
    %c0_34 = arith.constant 0 : index
    %62 = vector.load %60[%61, %c0_34] : memref<128x512xf32, #tpu.memory_space<vmem>>, vector<16x512xf32>
    %c0_35 = arith.constant 0 : index
    %c0_36 = arith.constant 0 : index
    %63 = vector.load %arg2[%c0_35, %c0_36] : memref<128x512xbf16, #tpu.memory_space<vmem>>, vector<128x512xbf16>
    %cst_37 = arith.constant dense<0.000000e+00> : vector<16x512xf32>
    %64 = tpu.matmul %51, %63, %cst_37 {dimension_numbers = #tpu.dot_dimension_numbers<[1], [0], [0], [1], [0, 0, 1, 1], [], []>} : vector<16x128xbf16>, vector<128x512xbf16>, vector<16x512xf32> -> vector<16x512xf32>
    %65 = arith.addf %62, %64 : vector<16x512xf32>
    %66 = vector.extract_strided_slice %65 {offsets = [0, 0], sizes = [16, 128], strides = [1, 1]} : vector<16x512xf32> to vector<16x128xf32>
    %cst_38 = arith.constant 5.000000e-01 : f32
    %67 = vector.broadcast %cst_38 : f32 to vector<16x128xf32>
    %68 = arith.mulf %67, %66 : vector<16x128xf32>
    %69 = math.tanh %68 : vector<16x128xf32>
    %cst_39 = arith.constant 5.000000e-01 : f32
    %70 = vector.broadcast %cst_39 : f32 to vector<16x128xf32>
    %71 = arith.mulf %70, %69 : vector<16x128xf32>
    %cst_40 = arith.constant 5.000000e-01 : f32
    %72 = vector.broadcast %cst_40 : f32 to vector<16x128xf32>
    %73 = arith.addf %71, %72 : vector<16x128xf32>
    %74 = vector.extract_strided_slice %65 {offsets = [0, 128], sizes = [16, 128], strides = [1, 1]} : vector<16x512xf32> to vector<16x128xf32>
    %cst_41 = arith.constant 5.000000e-01 : f32
    %75 = vector.broadcast %cst_41 : f32 to vector<16x128xf32>
    %76 = arith.mulf %75, %74 : vector<16x128xf32>
    %77 = math.tanh %76 : vector<16x128xf32>
    %cst_42 = arith.constant 5.000000e-01 : f32
    %78 = vector.broadcast %cst_42 : f32 to vector<16x128xf32>
    %79 = arith.mulf %78, %77 : vector<16x128xf32>
    %cst_43 = arith.constant 5.000000e-01 : f32
    %80 = vector.broadcast %cst_43 : f32 to vector<16x128xf32>
    %81 = arith.addf %79, %80 : vector<16x128xf32>
    %82 = vector.extract_strided_slice %65 {offsets = [0, 256], sizes = [16, 128], strides = [1, 1]} : vector<16x512xf32> to vector<16x128xf32>
    %83 = math.tanh %82 : vector<16x128xf32>
    %84 = vector.extract_strided_slice %65 {offsets = [0, 384], sizes = [16, 128], strides = [1, 1]} : vector<16x512xf32> to vector<16x128xf32>
    %cst_44 = arith.constant 5.000000e-01 : f32
    %85 = vector.broadcast %cst_44 : f32 to vector<16x128xf32>
    %86 = arith.mulf %85, %84 : vector<16x128xf32>
    %87 = math.tanh %86 : vector<16x128xf32>
    %cst_45 = arith.constant 5.000000e-01 : f32
    %88 = vector.broadcast %cst_45 : f32 to vector<16x128xf32>
    %89 = arith.mulf %88, %87 : vector<16x128xf32>
    %cst_46 = arith.constant 5.000000e-01 : f32
    %90 = vector.broadcast %cst_46 : f32 to vector<16x128xf32>
    %91 = arith.addf %89, %90 : vector<16x128xf32>
    %92 = arith.mulf %81, %48 : vector<16x128xf32>
    %93 = arith.mulf %73, %83 : vector<16x128xf32>
    %94 = arith.addf %92, %93 : vector<16x128xf32>
    %95 = math.tanh %94 : vector<16x128xf32>
    %96 = arith.mulf %91, %95 : vector<16x128xf32>
    %97 = arith.truncf %96 : vector<16x128xf32> to vector<16x128xbf16>
    %c0_i32_47 = arith.constant 0 : i32
    %98 = arith.addi %c0_i32_47, %c1_i32 : i32
    %c16_i32_48 = arith.constant 16 : i32
    %99 = arith.muli %98, %c16_i32_48 : i32
    %100 = tpu.assume_multiple %99, 16 : i32
    %101 = arith.index_cast %100 : i32 to index
    %c0_49 = arith.constant 0 : index
    %102 = vector.load %arg10[%101, %c0_49] : memref<128x128xbf16, #tpu.memory_space<vmem>>, vector<16x128xbf16>
    tpu.vector_store %arg10[%101, %c0_49], %97 {strides = array<i32>} : memref<128x128xbf16, #tpu.memory_space<vmem>>, vector<16x128xbf16>,
    %c2_i32 = arith.constant 2 : i32
    %c16_i32_50 = arith.constant 16 : i32
    %103 = arith.muli %c2_i32, %c16_i32_50 : i32
    %104 = tpu.assume_multiple %103, 16 : i32
    %c0_i32_51 = arith.constant 0 : i32
    %c0_i32_52 = arith.constant 0 : i32
    %105 = tpu.memref_slice %arg9[%c0_i32_11, %c0_i32_51, %c0_i32_52] : memref<2x128x512xf32, #tpu.memory_space<vmem>> -> memref<1x128x512xf32, #tpu.memory_space<vmem>>
    %106 = tpu.memref_squeeze %105 : memref<1x128x512xf32, #tpu.memory_space<vmem>> -> memref<128x512xf32, #tpu.memory_space<vmem>>
    %107 = arith.index_cast %104 : i32 to index
    %c0_53 = arith.constant 0 : index
    %108 = vector.load %106[%107, %c0_53] : memref<128x512xf32, #tpu.memory_space<vmem>>, vector<16x512xf32>
    %c0_54 = arith.constant 0 : index
    %c0_55 = arith.constant 0 : index
    %109 = vector.load %arg2[%c0_54, %c0_55] : memref<128x512xbf16, #tpu.memory_space<vmem>>, vector<128x512xbf16>
    %cst_56 = arith.constant dense<0.000000e+00> : vector<16x512xf32>
    %110 = tpu.matmul %97, %109, %cst_56 {dimension_numbers = #tpu.dot_dimension_numbers<[1], [0], [0], [1], [0, 0, 1, 1], [], []>} : vector<16x128xbf16>, vector<128x512xbf16>, vector<16x512xf32> -> vector<16x512xf32>
    %111 = arith.addf %108, %110 : vector<16x512xf32>
    %112 = vector.extract_strided_slice %111 {offsets = [0, 0], sizes = [16, 128], strides = [1, 1]} : vector<16x512xf32> to vector<16x128xf32>
    %cst_57 = arith.constant 5.000000e-01 : f32
    %113 = vector.broadcast %cst_57 : f32 to vector<16x128xf32>
    %114 = arith.mulf %113, %112 : vector<16x128xf32>
    %115 = math.tanh %114 : vector<16x128xf32>
    %cst_58 = arith.constant 5.000000e-01 : f32
    %116 = vector.broadcast %cst_58 : f32 to vector<16x128xf32>
    %117 = arith.mulf %116, %115 : vector<16x128xf32>
    %cst_59 = arith.constant 5.000000e-01 : f32
    %118 = vector.broadcast %cst_59 : f32 to vector<16x128xf32>
    %119 = arith.addf %117, %118 : vector<16x128xf32>
    %120 = vector.extract_strided_slice %111 {offsets = [0, 128], sizes = [16, 128], strides = [1, 1]} : vector<16x512xf32> to vector<16x128xf32>
    %cst_60 = arith.constant 5.000000e-01 : f32
    %121 = vector.broadcast %cst_60 : f32 to vector<16x128xf32>
    %122 = arith.mulf %121, %120 : vector<16x128xf32>
    %123 = math.tanh %122 : vector<16x128xf32>
    %cst_61 = arith.constant 5.000000e-01 : f32
    %124 = vector.broadcast %cst_61 : f32 to vector<16x128xf32>
    %125 = arith.mulf %124, %123 : vector<16x128xf32>
    %cst_62 = arith.constant 5.000000e-01 : f32
    %126 = vector.broadcast %cst_62 : f32 to vector<16x128xf32>
    %127 = arith.addf %125, %126 : vector<16x128xf32>
    %128 = vector.extract_strided_slice %111 {offsets = [0, 256], sizes = [16, 128], strides = [1, 1]} : vector<16x512xf32> to vector<16x128xf32>
    %129 = math.tanh %128 : vector<16x128xf32>
    %130 = vector.extract_strided_slice %111 {offsets = [0, 384], sizes = [16, 128], strides = [1, 1]} : vector<16x512xf32> to vector<16x128xf32>
    %cst_63 = arith.constant 5.000000e-01 : f32
    %131 = vector.broadcast %cst_63 : f32 to vector<16x128xf32>
    %132 = arith.mulf %131, %130 : vector<16x128xf32>
    %133 = math.tanh %132 : vector<16x128xf32>
    %cst_64 = arith.constant 5.000000e-01 : f32
    %134 = vector.broadcast %cst_64 : f32 to vector<16x128xf32>
    %135 = arith.mulf %134, %133 : vector<16x128xf32>
    %cst_65 = arith.constant 5.000000e-01 : f32
    %136 = vector.broadcast %cst_65 : f32 to vector<16x128xf32>
    %137 = arith.addf %135, %136 : vector<16x128xf32>
    %138 = arith.mulf %127, %94 : vector<16x128xf32>
    %139 = arith.mulf %119, %129 : vector<16x128xf32>
    %140 = arith.addf %138, %139 : vector<16x128xf32>
    %141 = math.tanh %140 : vector<16x128xf32>
    %142 = arith.mulf %137, %141 : vector<16x128xf32>
    %143 = arith.truncf %142 : vector<16x128xf32> to vector<16x128xbf16>
    %c0_i32_66 = arith.constant 0 : i32
    %144 = arith.addi %c0_i32_66, %c2_i32 : i32
    %c16_i32_67 = arith.constant 16 : i32
    %145 = arith.muli %144, %c16_i32_67 : i32
    %146 = tpu.assume_multiple %145, 16 : i32
    %147 = arith.index_cast %146 : i32 to index
    %c0_68 = arith.constant 0 : index
    %148 = vector.load %arg10[%147, %c0_68] : memref<128x128xbf16, #tpu.memory_space<vmem>>, vector<16x128xbf16>
    tpu.vector_store %arg10[%147, %c0_68], %143 {strides = array<i32>} : memref<128x128xbf16, #tpu.memory_space<vmem>>, vector<16x128xbf16>,
    %c3_i32 = arith.constant 3 : i32
    %c16_i32_69 = arith.constant 16 : i32
    %149 = arith.muli %c3_i32, %c16_i32_69 : i32
    %150 = tpu.assume_multiple %149, 16 : i32
    %c0_i32_70 = arith.constant 0 : i32
    %c0_i32_71 = arith.constant 0 : i32
    %151 = tpu.memref_slice %arg9[%c0_i32_11, %c0_i32_70, %c0_i32_71] : memref<2x128x512xf32, #tpu.memory_space<vmem>> -> memref<1x128x512xf32, #tpu.memory_space<vmem>>
    %152 = tpu.memref_squeeze %151 : memref<1x128x512xf32, #tpu.memory_space<vmem>> -> memref<128x512xf32, #tpu.memory_space<vmem>>
    %153 = arith.index_cast %150 : i32 to index
    %c0_72 = arith.constant 0 : index
    %154 = vector.load %152[%153, %c0_72] : memref<128x512xf32, #tpu.memory_space<vmem>>, vector<16x512xf32>
    %c0_73 = arith.constant 0 : index
    %c0_74 = arith.constant 0 : index
    %155 = vector.load %arg2[%c0_73, %c0_74] : memref<128x512xbf16, #tpu.memory_space<vmem>>, vector<128x512xbf16>
    %cst_75 = arith.constant dense<0.000000e+00> : vector<16x512xf32>
    %156 = tpu.matmul %143, %155, %cst_75 {dimension_numbers = #tpu.dot_dimension_numbers<[1], [0], [0], [1], [0, 0, 1, 1], [], []>} : vector<16x128xbf16>, vector<128x512xbf16>, vector<16x512xf32> -> vector<16x512xf32>
    %157 = arith.addf %154, %156 : vector<16x512xf32>
    %158 = vector.extract_strided_slice %157 {offsets = [0, 0], sizes = [16, 128], strides = [1, 1]} : vector<16x512xf32> to vector<16x128xf32>
    %cst_76 = arith.constant 5.000000e-01 : f32
    %159 = vector.broadcast %cst_76 : f32 to vector<16x128xf32>
    %160 = arith.mulf %159, %158 : vector<16x128xf32>
    %161 = math.tanh %160 : vector<16x128xf32>
    %cst_77 = arith.constant 5.000000e-01 : f32
    %162 = vector.broadcast %cst_77 : f32 to vector<16x128xf32>
    %163 = arith.mulf %162, %161 : vector<16x128xf32>
    %cst_78 = arith.constant 5.000000e-01 : f32
    %164 = vector.broadcast %cst_78 : f32 to vector<16x128xf32>
    %165 = arith.addf %163, %164 : vector<16x128xf32>
    %166 = vector.extract_strided_slice %157 {offsets = [0, 128], sizes = [16, 128], strides = [1, 1]} : vector<16x512xf32> to vector<16x128xf32>
    %cst_79 = arith.constant 5.000000e-01 : f32
    %167 = vector.broadcast %cst_79 : f32 to vector<16x128xf32>
    %168 = arith.mulf %167, %166 : vector<16x128xf32>
    %169 = math.tanh %168 : vector<16x128xf32>
    %cst_80 = arith.constant 5.000000e-01 : f32
    %170 = vector.broadcast %cst_80 : f32 to vector<16x128xf32>
    %171 = arith.mulf %170, %169 : vector<16x128xf32>
    %cst_81 = arith.constant 5.000000e-01 : f32
    %172 = vector.broadcast %cst_81 : f32 to vector<16x128xf32>
    %173 = arith.addf %171, %172 : vector<16x128xf32>
    %174 = vector.extract_strided_slice %157 {offsets = [0, 256], sizes = [16, 128], strides = [1, 1]} : vector<16x512xf32> to vector<16x128xf32>
    %175 = math.tanh %174 : vector<16x128xf32>
    %176 = vector.extract_strided_slice %157 {offsets = [0, 384], sizes = [16, 128], strides = [1, 1]} : vector<16x512xf32> to vector<16x128xf32>
    %cst_82 = arith.constant 5.000000e-01 : f32
    %177 = vector.broadcast %cst_82 : f32 to vector<16x128xf32>
    %178 = arith.mulf %177, %176 : vector<16x128xf32>
    %179 = math.tanh %178 : vector<16x128xf32>
    %cst_83 = arith.constant 5.000000e-01 : f32
    %180 = vector.broadcast %cst_83 : f32 to vector<16x128xf32>
    %181 = arith.mulf %180, %179 : vector<16x128xf32>
    %cst_84 = arith.constant 5.000000e-01 : f32
    %182 = vector.broadcast %cst_84 : f32 to vector<16x128xf32>
    %183 = arith.addf %181, %182 : vector<16x128xf32>
    %184 = arith.mulf %173, %140 : vector<16x128xf32>
    %185 = arith.mulf %165, %175 : vector<16x128xf32>
    %186 = arith.addf %184, %185 : vector<16x128xf32>
    %187 = math.tanh %186 : vector<16x128xf32>
    %188 = arith.mulf %183, %187 : vector<16x128xf32>
    %189 = arith.truncf %188 : vector<16x128xf32> to vector<16x128xbf16>
    %c0_i32_85 = arith.constant 0 : i32
    %190 = arith.addi %c0_i32_85, %c3_i32 : i32
    %c16_i32_86 = arith.constant 16 : i32
    %191 = arith.muli %190, %c16_i32_86 : i32
    %192 = tpu.assume_multiple %191, 16 : i32
    %193 = arith.index_cast %192 : i32 to index
    %c0_87 = arith.constant 0 : index
    %194 = vector.load %arg10[%193, %c0_87] : memref<128x128xbf16, #tpu.memory_space<vmem>>, vector<16x128xbf16>
    tpu.vector_store %arg10[%193, %c0_87], %189 {strides = array<i32>} : memref<128x128xbf16, #tpu.memory_space<vmem>>, vector<16x128xbf16>,
    %c4_i32 = arith.constant 4 : i32
    %c16_i32_88 = arith.constant 16 : i32
    %195 = arith.muli %c4_i32, %c16_i32_88 : i32
    %196 = tpu.assume_multiple %195, 16 : i32
    %c0_i32_89 = arith.constant 0 : i32
    %c0_i32_90 = arith.constant 0 : i32
    %197 = tpu.memref_slice %arg9[%c0_i32_11, %c0_i32_89, %c0_i32_90] : memref<2x128x512xf32, #tpu.memory_space<vmem>> -> memref<1x128x512xf32, #tpu.memory_space<vmem>>
    %198 = tpu.memref_squeeze %197 : memref<1x128x512xf32, #tpu.memory_space<vmem>> -> memref<128x512xf32, #tpu.memory_space<vmem>>
    %199 = arith.index_cast %196 : i32 to index
    %c0_91 = arith.constant 0 : index
    %200 = vector.load %198[%199, %c0_91] : memref<128x512xf32, #tpu.memory_space<vmem>>, vector<16x512xf32>
    %c0_92 = arith.constant 0 : index
    %c0_93 = arith.constant 0 : index
    %201 = vector.load %arg2[%c0_92, %c0_93] : memref<128x512xbf16, #tpu.memory_space<vmem>>, vector<128x512xbf16>
    %cst_94 = arith.constant dense<0.000000e+00> : vector<16x512xf32>
    %202 = tpu.matmul %189, %201, %cst_94 {dimension_numbers = #tpu.dot_dimension_numbers<[1], [0], [0], [1], [0, 0, 1, 1], [], []>} : vector<16x128xbf16>, vector<128x512xbf16>, vector<16x512xf32> -> vector<16x512xf32>
    %203 = arith.addf %200, %202 : vector<16x512xf32>
    %204 = vector.extract_strided_slice %203 {offsets = [0, 0], sizes = [16, 128], strides = [1, 1]} : vector<16x512xf32> to vector<16x128xf32>
    %cst_95 = arith.constant 5.000000e-01 : f32
    %205 = vector.broadcast %cst_95 : f32 to vector<16x128xf32>
    %206 = arith.mulf %205, %204 : vector<16x128xf32>
    %207 = math.tanh %206 : vector<16x128xf32>
    %cst_96 = arith.constant 5.000000e-01 : f32
    %208 = vector.broadcast %cst_96 : f32 to vector<16x128xf32>
    %209 = arith.mulf %208, %207 : vector<16x128xf32>
    %cst_97 = arith.constant 5.000000e-01 : f32
    %210 = vector.broadcast %cst_97 : f32 to vector<16x128xf32>
    %211 = arith.addf %209, %210 : vector<16x128xf32>
    %212 = vector.extract_strided_slice %203 {offsets = [0, 128], sizes = [16, 128], strides = [1, 1]} : vector<16x512xf32> to vector<16x128xf32>
    %cst_98 = arith.constant 5.000000e-01 : f32
    %213 = vector.broadcast %cst_98 : f32 to vector<16x128xf32>
    %214 = arith.mulf %213, %212 : vector<16x128xf32>
    %215 = math.tanh %214 : vector<16x128xf32>
    %cst_99 = arith.constant 5.000000e-01 : f32
    %216 = vector.broadcast %cst_99 : f32 to vector<16x128xf32>
    %217 = arith.mulf %216, %215 : vector<16x128xf32>
    %cst_100 = arith.constant 5.000000e-01 : f32
    %218 = vector.broadcast %cst_100 : f32 to vector<16x128xf32>
    %219 = arith.addf %217, %218 : vector<16x128xf32>
    %220 = vector.extract_strided_slice %203 {offsets = [0, 256], sizes = [16, 128], strides = [1, 1]} : vector<16x512xf32> to vector<16x128xf32>
    %221 = math.tanh %220 : vector<16x128xf32>
    %222 = vector.extract_strided_slice %203 {offsets = [0, 384], sizes = [16, 128], strides = [1, 1]} : vector<16x512xf32> to vector<16x128xf32>
    %cst_101 = arith.constant 5.000000e-01 : f32
    %223 = vector.broadcast %cst_101 : f32 to vector<16x128xf32>
    %224 = arith.mulf %223, %222 : vector<16x128xf32>
    %225 = math.tanh %224 : vector<16x128xf32>
    %cst_102 = arith.constant 5.000000e-01 : f32
    %226 = vector.broadcast %cst_102 : f32 to vector<16x128xf32>
    %227 = arith.mulf %226, %225 : vector<16x128xf32>
    %cst_103 = arith.constant 5.000000e-01 : f32
    %228 = vector.broadcast %cst_103 : f32 to vector<16x128xf32>
    %229 = arith.addf %227, %228 : vector<16x128xf32>
    %230 = arith.mulf %219, %186 : vector<16x128xf32>
    %231 = arith.mulf %211, %221 : vector<16x128xf32>
    %232 = arith.addf %230, %231 : vector<16x128xf32>
    %233 = math.tanh %232 : vector<16x128xf32>
    %234 = arith.mulf %229, %233 : vector<16x128xf32>
    %235 = arith.truncf %234 : vector<16x128xf32> to vector<16x128xbf16>
    %c0_i32_104 = arith.constant 0 : i32
    %236 = arith.addi %c0_i32_104, %c4_i32 : i32
    %c16_i32_105 = arith.constant 16 : i32
    %237 = arith.muli %236, %c16_i32_105 : i32
    %238 = tpu.assume_multiple %237, 16 : i32
    %239 = arith.index_cast %238 : i32 to index
    %c0_106 = arith.constant 0 : index
    %240 = vector.load %arg10[%239, %c0_106] : memref<128x128xbf16, #tpu.memory_space<vmem>>, vector<16x128xbf16>
    tpu.vector_store %arg10[%239, %c0_106], %235 {strides = array<i32>} : memref<128x128xbf16, #tpu.memory_space<vmem>>, vector<16x128xbf16>,
    %c5_i32 = arith.constant 5 : i32
    %c16_i32_107 = arith.constant 16 : i32
    %241 = arith.muli %c5_i32, %c16_i32_107 : i32
    %242 = tpu.assume_multiple %241, 16 : i32
    %c0_i32_108 = arith.constant 0 : i32
    %c0_i32_109 = arith.constant 0 : i32
    %243 = tpu.memref_slice %arg9[%c0_i32_11, %c0_i32_108, %c0_i32_109] : memref<2x128x512xf32, #tpu.memory_space<vmem>> -> memref<1x128x512xf32, #tpu.memory_space<vmem>>
    %244 = tpu.memref_squeeze %243 : memref<1x128x512xf32, #tpu.memory_space<vmem>> -> memref<128x512xf32, #tpu.memory_space<vmem>>
    %245 = arith.index_cast %242 : i32 to index
    %c0_110 = arith.constant 0 : index
    %246 = vector.load %244[%245, %c0_110] : memref<128x512xf32, #tpu.memory_space<vmem>>, vector<16x512xf32>
    %c0_111 = arith.constant 0 : index
    %c0_112 = arith.constant 0 : index
    %247 = vector.load %arg2[%c0_111, %c0_112] : memref<128x512xbf16, #tpu.memory_space<vmem>>, vector<128x512xbf16>
    %cst_113 = arith.constant dense<0.000000e+00> : vector<16x512xf32>
    %248 = tpu.matmul %235, %247, %cst_113 {dimension_numbers = #tpu.dot_dimension_numbers<[1], [0], [0], [1], [0, 0, 1, 1], [], []>} : vector<16x128xbf16>, vector<128x512xbf16>, vector<16x512xf32> -> vector<16x512xf32>
    %249 = arith.addf %246, %248 : vector<16x512xf32>
    %250 = vector.extract_strided_slice %249 {offsets = [0, 0], sizes = [16, 128], strides = [1, 1]} : vector<16x512xf32> to vector<16x128xf32>
    %cst_114 = arith.constant 5.000000e-01 : f32
    %251 = vector.broadcast %cst_114 : f32 to vector<16x128xf32>
    %252 = arith.mulf %251, %250 : vector<16x128xf32>
    %253 = math.tanh %252 : vector<16x128xf32>
    %cst_115 = arith.constant 5.000000e-01 : f32
    %254 = vector.broadcast %cst_115 : f32 to vector<16x128xf32>
    %255 = arith.mulf %254, %253 : vector<16x128xf32>
    %cst_116 = arith.constant 5.000000e-01 : f32
    %256 = vector.broadcast %cst_116 : f32 to vector<16x128xf32>
    %257 = arith.addf %255, %256 : vector<16x128xf32>
    %258 = vector.extract_strided_slice %249 {offsets = [0, 128], sizes = [16, 128], strides = [1, 1]} : vector<16x512xf32> to vector<16x128xf32>
    %cst_117 = arith.constant 5.000000e-01 : f32
    %259 = vector.broadcast %cst_117 : f32 to vector<16x128xf32>
    %260 = arith.mulf %259, %258 : vector<16x128xf32>
    %261 = math.tanh %260 : vector<16x128xf32>
    %cst_118 = arith.constant 5.000000e-01 : f32
    %262 = vector.broadcast %cst_118 : f32 to vector<16x128xf32>
    %263 = arith.mulf %262, %261 : vector<16x128xf32>
    %cst_119 = arith.constant 5.000000e-01 : f32
    %264 = vector.broadcast %cst_119 : f32 to vector<16x128xf32>
    %265 = arith.addf %263, %264 : vector<16x128xf32>
    %266 = vector.extract_strided_slice %249 {offsets = [0, 256], sizes = [16, 128], strides = [1, 1]} : vector<16x512xf32> to vector<16x128xf32>
    %267 = math.tanh %266 : vector<16x128xf32>
    %268 = vector.extract_strided_slice %249 {offsets = [0, 384], sizes = [16, 128], strides = [1, 1]} : vector<16x512xf32> to vector<16x128xf32>
    %cst_120 = arith.constant 5.000000e-01 : f32
    %269 = vector.broadcast %cst_120 : f32 to vector<16x128xf32>
    %270 = arith.mulf %269, %268 : vector<16x128xf32>
    %271 = math.tanh %270 : vector<16x128xf32>
    %cst_121 = arith.constant 5.000000e-01 : f32
    %272 = vector.broadcast %cst_121 : f32 to vector<16x128xf32>
    %273 = arith.mulf %272, %271 : vector<16x128xf32>
    %cst_122 = arith.constant 5.000000e-01 : f32
    %274 = vector.broadcast %cst_122 : f32 to vector<16x128xf32>
    %275 = arith.addf %273, %274 : vector<16x128xf32>
    %276 = arith.mulf %265, %232 : vector<16x128xf32>
    %277 = arith.mulf %257, %267 : vector<16x128xf32>
    %278 = arith.addf %276, %277 : vector<16x128xf32>
    %279 = math.tanh %278 : vector<16x128xf32>
    %280 = arith.mulf %275, %279 : vector<16x128xf32>
    %281 = arith.truncf %280 : vector<16x128xf32> to vector<16x128xbf16>
    %c0_i32_123 = arith.constant 0 : i32
    %282 = arith.addi %c0_i32_123, %c5_i32 : i32
    %c16_i32_124 = arith.constant 16 : i32
    %283 = arith.muli %282, %c16_i32_124 : i32
    %284 = tpu.assume_multiple %283, 16 : i32
    %285 = arith.index_cast %284 : i32 to index
    %c0_125 = arith.constant 0 : index
    %286 = vector.load %arg10[%285, %c0_125] : memref<128x128xbf16, #tpu.memory_space<vmem>>, vector<16x128xbf16>
    tpu.vector_store %arg10[%285, %c0_125], %281 {strides = array<i32>} : memref<128x128xbf16, #tpu.memory_space<vmem>>, vector<16x128xbf16>,
    %c6_i32 = arith.constant 6 : i32
    %c16_i32_126 = arith.constant 16 : i32
    %287 = arith.muli %c6_i32, %c16_i32_126 : i32
    %288 = tpu.assume_multiple %287, 16 : i32
    %c0_i32_127 = arith.constant 0 : i32
    %c0_i32_128 = arith.constant 0 : i32
    %289 = tpu.memref_slice %arg9[%c0_i32_11, %c0_i32_127, %c0_i32_128] : memref<2x128x512xf32, #tpu.memory_space<vmem>> -> memref<1x128x512xf32, #tpu.memory_space<vmem>>
    %290 = tpu.memref_squeeze %289 : memref<1x128x512xf32, #tpu.memory_space<vmem>> -> memref<128x512xf32, #tpu.memory_space<vmem>>
    %291 = arith.index_cast %288 : i32 to index
    %c0_129 = arith.constant 0 : index
    %292 = vector.load %290[%291, %c0_129] : memref<128x512xf32, #tpu.memory_space<vmem>>, vector<16x512xf32>
    %c0_130 = arith.constant 0 : index
    %c0_131 = arith.constant 0 : index
    %293 = vector.load %arg2[%c0_130, %c0_131] : memref<128x512xbf16, #tpu.memory_space<vmem>>, vector<128x512xbf16>
    %cst_132 = arith.constant dense<0.000000e+00> : vector<16x512xf32>
    %294 = tpu.matmul %281, %293, %cst_132 {dimension_numbers = #tpu.dot_dimension_numbers<[1], [0], [0], [1], [0, 0, 1, 1], [], []>} : vector<16x128xbf16>, vector<128x512xbf16>, vector<16x512xf32> -> vector<16x512xf32>
    %295 = arith.addf %292, %294 : vector<16x512xf32>
    %296 = vector.extract_strided_slice %295 {offsets = [0, 0], sizes = [16, 128], strides = [1, 1]} : vector<16x512xf32> to vector<16x128xf32>
    %cst_133 = arith.constant 5.000000e-01 : f32
    %297 = vector.broadcast %cst_133 : f32 to vector<16x128xf32>
    %298 = arith.mulf %297, %296 : vector<16x128xf32>
    %299 = math.tanh %298 : vector<16x128xf32>
    %cst_134 = arith.constant 5.000000e-01 : f32
    %300 = vector.broadcast %cst_134 : f32 to vector<16x128xf32>
    %301 = arith.mulf %300, %299 : vector<16x128xf32>
    %cst_135 = arith.constant 5.000000e-01 : f32
    %302 = vector.broadcast %cst_135 : f32 to vector<16x128xf32>
    %303 = arith.addf %301, %302 : vector<16x128xf32>
    %304 = vector.extract_strided_slice %295 {offsets = [0, 128], sizes = [16, 128], strides = [1, 1]} : vector<16x512xf32> to vector<16x128xf32>
    %cst_136 = arith.constant 5.000000e-01 : f32
    %305 = vector.broadcast %cst_136 : f32 to vector<16x128xf32>
    %306 = arith.mulf %305, %304 : vector<16x128xf32>
    %307 = math.tanh %306 : vector<16x128xf32>
    %cst_137 = arith.constant 5.000000e-01 : f32
    %308 = vector.broadcast %cst_137 : f32 to vector<16x128xf32>
    %309 = arith.mulf %308, %307 : vector<16x128xf32>
    %cst_138 = arith.constant 5.000000e-01 : f32
    %310 = vector.broadcast %cst_138 : f32 to vector<16x128xf32>
    %311 = arith.addf %309, %310 : vector<16x128xf32>
    %312 = vector.extract_strided_slice %295 {offsets = [0, 256], sizes = [16, 128], strides = [1, 1]} : vector<16x512xf32> to vector<16x128xf32>
    %313 = math.tanh %312 : vector<16x128xf32>
    %314 = vector.extract_strided_slice %295 {offsets = [0, 384], sizes = [16, 128], strides = [1, 1]} : vector<16x512xf32> to vector<16x128xf32>
    %cst_139 = arith.constant 5.000000e-01 : f32
    %315 = vector.broadcast %cst_139 : f32 to vector<16x128xf32>
    %316 = arith.mulf %315, %314 : vector<16x128xf32>
    %317 = math.tanh %316 : vector<16x128xf32>
    %cst_140 = arith.constant 5.000000e-01 : f32
    %318 = vector.broadcast %cst_140 : f32 to vector<16x128xf32>
    %319 = arith.mulf %318, %317 : vector<16x128xf32>
    %cst_141 = arith.constant 5.000000e-01 : f32
    %320 = vector.broadcast %cst_141 : f32 to vector<16x128xf32>
    %321 = arith.addf %319, %320 : vector<16x128xf32>
    %322 = arith.mulf %311, %278 : vector<16x128xf32>
    %323 = arith.mulf %303, %313 : vector<16x128xf32>
    %324 = arith.addf %322, %323 : vector<16x128xf32>
    %325 = math.tanh %324 : vector<16x128xf32>
    %326 = arith.mulf %321, %325 : vector<16x128xf32>
    %327 = arith.truncf %326 : vector<16x128xf32> to vector<16x128xbf16>
    %c0_i32_142 = arith.constant 0 : i32
    %328 = arith.addi %c0_i32_142, %c6_i32 : i32
    %c16_i32_143 = arith.constant 16 : i32
    %329 = arith.muli %328, %c16_i32_143 : i32
    %330 = tpu.assume_multiple %329, 16 : i32
    %331 = arith.index_cast %330 : i32 to index
    %c0_144 = arith.constant 0 : index
    %332 = vector.load %arg10[%331, %c0_144] : memref<128x128xbf16, #tpu.memory_space<vmem>>, vector<16x128xbf16>
    tpu.vector_store %arg10[%331, %c0_144], %327 {strides = array<i32>} : memref<128x128xbf16, #tpu.memory_space<vmem>>, vector<16x128xbf16>,
    %c7_i32 = arith.constant 7 : i32
    %c16_i32_145 = arith.constant 16 : i32
    %333 = arith.muli %c7_i32, %c16_i32_145 : i32
    %334 = tpu.assume_multiple %333, 16 : i32
    %c0_i32_146 = arith.constant 0 : i32
    %c0_i32_147 = arith.constant 0 : i32
    %335 = tpu.memref_slice %arg9[%c0_i32_11, %c0_i32_146, %c0_i32_147] : memref<2x128x512xf32, #tpu.memory_space<vmem>> -> memref<1x128x512xf32, #tpu.memory_space<vmem>>
    %336 = tpu.memref_squeeze %335 : memref<1x128x512xf32, #tpu.memory_space<vmem>> -> memref<128x512xf32, #tpu.memory_space<vmem>>
    %337 = arith.index_cast %334 : i32 to index
    %c0_148 = arith.constant 0 : index
    %338 = vector.load %336[%337, %c0_148] : memref<128x512xf32, #tpu.memory_space<vmem>>, vector<16x512xf32>
    %c0_149 = arith.constant 0 : index
    %c0_150 = arith.constant 0 : index
    %339 = vector.load %arg2[%c0_149, %c0_150] : memref<128x512xbf16, #tpu.memory_space<vmem>>, vector<128x512xbf16>
    %cst_151 = arith.constant dense<0.000000e+00> : vector<16x512xf32>
    %340 = tpu.matmul %327, %339, %cst_151 {dimension_numbers = #tpu.dot_dimension_numbers<[1], [0], [0], [1], [0, 0, 1, 1], [], []>} : vector<16x128xbf16>, vector<128x512xbf16>, vector<16x512xf32> -> vector<16x512xf32>
    %341 = arith.addf %338, %340 : vector<16x512xf32>
    %342 = vector.extract_strided_slice %341 {offsets = [0, 0], sizes = [16, 128], strides = [1, 1]} : vector<16x512xf32> to vector<16x128xf32>
    %cst_152 = arith.constant 5.000000e-01 : f32
    %343 = vector.broadcast %cst_152 : f32 to vector<16x128xf32>
    %344 = arith.mulf %343, %342 : vector<16x128xf32>
    %345 = math.tanh %344 : vector<16x128xf32>
    %cst_153 = arith.constant 5.000000e-01 : f32
    %346 = vector.broadcast %cst_153 : f32 to vector<16x128xf32>
    %347 = arith.mulf %346, %345 : vector<16x128xf32>
    %cst_154 = arith.constant 5.000000e-01 : f32
    %348 = vector.broadcast %cst_154 : f32 to vector<16x128xf32>
    %349 = arith.addf %347, %348 : vector<16x128xf32>
    %350 = vector.extract_strided_slice %341 {offsets = [0, 128], sizes = [16, 128], strides = [1, 1]} : vector<16x512xf32> to vector<16x128xf32>
    %cst_155 = arith.constant 5.000000e-01 : f32
    %351 = vector.broadcast %cst_155 : f32 to vector<16x128xf32>
    %352 = arith.mulf %351, %350 : vector<16x128xf32>
    %353 = math.tanh %352 : vector<16x128xf32>
    %cst_156 = arith.constant 5.000000e-01 : f32
    %354 = vector.broadcast %cst_156 : f32 to vector<16x128xf32>
    %355 = arith.mulf %354, %353 : vector<16x128xf32>
    %cst_157 = arith.constant 5.000000e-01 : f32
    %356 = vector.broadcast %cst_157 : f32 to vector<16x128xf32>
    %357 = arith.addf %355, %356 : vector<16x128xf32>
    %358 = vector.extract_strided_slice %341 {offsets = [0, 256], sizes = [16, 128], strides = [1, 1]} : vector<16x512xf32> to vector<16x128xf32>
    %359 = math.tanh %358 : vector<16x128xf32>
    %360 = vector.extract_strided_slice %341 {offsets = [0, 384], sizes = [16, 128], strides = [1, 1]} : vector<16x512xf32> to vector<16x128xf32>
    %cst_158 = arith.constant 5.000000e-01 : f32
    %361 = vector.broadcast %cst_158 : f32 to vector<16x128xf32>
    %362 = arith.mulf %361, %360 : vector<16x128xf32>
    %363 = math.tanh %362 : vector<16x128xf32>
    %cst_159 = arith.constant 5.000000e-01 : f32
    %364 = vector.broadcast %cst_159 : f32 to vector<16x128xf32>
    %365 = arith.mulf %364, %363 : vector<16x128xf32>
    %cst_160 = arith.constant 5.000000e-01 : f32
    %366 = vector.broadcast %cst_160 : f32 to vector<16x128xf32>
    %367 = arith.addf %365, %366 : vector<16x128xf32>
    %368 = arith.mulf %357, %324 : vector<16x128xf32>
    %369 = arith.mulf %349, %359 : vector<16x128xf32>
    %370 = arith.addf %368, %369 : vector<16x128xf32>
    %371 = math.tanh %370 : vector<16x128xf32>
    %372 = arith.mulf %367, %371 : vector<16x128xf32>
    %373 = arith.truncf %372 : vector<16x128xf32> to vector<16x128xbf16>
    %c0_i32_161 = arith.constant 0 : i32
    %374 = arith.addi %c0_i32_161, %c7_i32 : i32
    %c16_i32_162 = arith.constant 16 : i32
    %375 = arith.muli %374, %c16_i32_162 : i32
    %376 = tpu.assume_multiple %375, 16 : i32
    %377 = arith.index_cast %376 : i32 to index
    %c0_163 = arith.constant 0 : index
    %378 = vector.load %arg10[%377, %c0_163] : memref<128x128xbf16, #tpu.memory_space<vmem>>, vector<16x128xbf16>
    tpu.vector_store %arg10[%377, %c0_163], %373 {strides = array<i32>} : memref<128x128xbf16, #tpu.memory_space<vmem>>, vector<16x128xbf16>,
    %c8_i32 = arith.constant 8 : i32
    %379 = arith.extf %373 : vector<16x128xbf16> to vector<16x128xf32>
    %c0_164 = arith.constant 0 : index
    %c0_165 = arith.constant 0 : index
    %c0_166 = arith.constant 0 : index
    %380 = vector.load %arg7[%c0_164, %c0_165, %c0_166] : memref<2x16x128xf32, #tpu.memory_space<vmem>>, vector<1x16x128xf32>
    %381 = vector.shape_cast %380 : vector<1x16x128xf32> to vector<16x128xf32>
    %382 = vector.shape_cast %379 : vector<16x128xf32> to vector<1x16x128xf32>
    tpu.vector_store %arg7[%c0_164, %c0_165, %c0_166], %382 {strides = array<i32>} : memref<2x16x128xf32, #tpu.memory_space<vmem>>, vector<1x16x128xf32>,
    %c0_167 = arith.constant 0 : index
    %c0_168 = arith.constant 0 : index
    %c0_169 = arith.constant 0 : index
    %383 = vector.load %arg8[%c0_167, %c0_168, %c0_169] : memref<2x16x128xf32, #tpu.memory_space<vmem>>, vector<1x16x128xf32>
    %384 = vector.shape_cast %383 : vector<1x16x128xf32> to vector<16x128xf32>
    %385 = vector.shape_cast %370 : vector<16x128xf32> to vector<1x16x128xf32>
    tpu.vector_store %arg8[%c0_167, %c0_168, %c0_169], %385 {strides = array<i32>} : memref<2x16x128xf32, #tpu.memory_space<vmem>>, vector<1x16x128xf32>,
    %c0_170 = arith.constant 0 : index
    %c0_171 = arith.constant 0 : index
    %386 = vector.load %arg10[%c0_170, %c0_171] : memref<128x128xbf16, #tpu.memory_space<vmem>>, vector<128x128xbf16>
    %c0_172 = arith.constant 0 : index
    %c0_173 = arith.constant 0 : index
    %387 = vector.load %arg4[%c0_172, %c0_173] : memref<128x512xbf16, #tpu.memory_space<vmem>>, vector<128x512xbf16>
    %cst_174 = arith.constant dense<0.000000e+00> : vector<128x512xf32>
    %388 = tpu.matmul %386, %387, %cst_174 {dimension_numbers = #tpu.dot_dimension_numbers<[1], [0], [0], [1], [0, 0, 1, 1], [], []>} : vector<128x128xbf16>, vector<128x512xbf16>, vector<128x512xf32> -> vector<128x512xf32>
    %c0_175 = arith.constant 0 : index
    %c0_176 = arith.constant 0 : index
    %389 = vector.load %arg6[%c0_175, %c0_176] : memref<1x512xf32, #tpu.memory_space<vmem>>, vector<1x512xf32>
    %390 = vector.broadcast %389 : vector<1x512xf32> to vector<128x512xf32>
    %391 = arith.addf %388, %390 : vector<128x512xf32>
    %c0_i32_177 = arith.constant 0 : i32
    %c0_i32_178 = arith.constant 0 : i32
    %c0_i32_179 = arith.constant 0 : i32
    %392 = tpu.memref_slice %arg9[%c0_i32_177, %c0_i32_178, %c0_i32_179] : memref<2x128x512xf32, #tpu.memory_space<vmem>> -> memref<1x128x512xf32, #tpu.memory_space<vmem>>
    %393 = tpu.memref_squeeze %392 : memref<1x128x512xf32, #tpu.memory_space<vmem>> -> memref<128x512xf32, #tpu.memory_space<vmem>>
    %c0_180 = arith.constant 0 : index
    %c0_181 = arith.constant 0 : index
    %394 = vector.load %393[%c0_180, %c0_181] : memref<128x512xf32, #tpu.memory_space<vmem>>, vector<128x512xf32>
    tpu.vector_store %393[%c0_180, %c0_181], %391 {strides = array<i32>} : memref<128x512xf32, #tpu.memory_space<vmem>>, vector<128x512xf32>,
    %cst_182 = arith.constant 0.000000e+00 : bf16
    %395 = vector.broadcast %cst_182 : bf16 to vector<16x128xbf16>
    %cst_183 = arith.constant 0.000000e+00 : f32
    %396 = vector.broadcast %cst_183 : f32 to vector<16x128xf32>
    %c0_i32_184 = arith.constant 0 : i32
    %c0_i32_185 = arith.constant 0 : i32
    %c16_i32_186 = arith.constant 16 : i32
    %397 = arith.muli %c0_i32_185, %c16_i32_186 : i32
    %398 = tpu.assume_multiple %397, 16 : i32
    %c0_i32_187 = arith.constant 0 : i32
    %c0_i32_188 = arith.constant 0 : i32
    %399 = tpu.memref_slice %arg9[%c0_i32_184, %c0_i32_187, %c0_i32_188] : memref<2x128x512xf32, #tpu.memory_space<vmem>> -> memref<1x128x512xf32, #tpu.memory_space<vmem>>
    %400 = tpu.memref_squeeze %399 : memref<1x128x512xf32, #tpu.memory_space<vmem>> -> memref<128x512xf32, #tpu.memory_space<vmem>>
    %401 = arith.index_cast %398 : i32 to index
    %c0_189 = arith.constant 0 : index
    %402 = vector.load %400[%401, %c0_189] : memref<128x512xf32, #tpu.memory_space<vmem>>, vector<16x512xf32>
    %c0_190 = arith.constant 0 : index
    %c0_191 = arith.constant 0 : index
    %403 = vector.load %arg5[%c0_190, %c0_191] : memref<128x512xbf16, #tpu.memory_space<vmem>>, vector<128x512xbf16>
    %cst_192 = arith.constant dense<0.000000e+00> : vector<16x512xf32>
    %404 = tpu.matmul %395, %403, %cst_192 {dimension_numbers = #tpu.dot_dimension_numbers<[1], [0], [0], [1], [0, 0, 1, 1], [], []>} : vector<16x128xbf16>, vector<128x512xbf16>, vector<16x512xf32> -> vector<16x512xf32>
    %405 = arith.addf %402, %404 : vector<16x512xf32>
    %406 = vector.extract_strided_slice %405 {offsets = [0, 0], sizes = [16, 128], strides = [1, 1]} : vector<16x512xf32> to vector<16x128xf32>
    %cst_193 = arith.constant 5.000000e-01 : f32
    %407 = vector.broadcast %cst_193 : f32 to vector<16x128xf32>
    %408 = arith.mulf %407, %406 : vector<16x128xf32>
    %409 = math.tanh %408 : vector<16x128xf32>
    %cst_194 = arith.constant 5.000000e-01 : f32
    %410 = vector.broadcast %cst_194 : f32 to vector<16x128xf32>
    %411 = arith.mulf %410, %409 : vector<16x128xf32>
    %cst_195 = arith.constant 5.000000e-01 : f32
    %412 = vector.broadcast %cst_195 : f32 to vector<16x128xf32>
    %413 = arith.addf %411, %412 : vector<16x128xf32>
    %414 = vector.extract_strided_slice %405 {offsets = [0, 128], sizes = [16, 128], strides = [1, 1]} : vector<16x512xf32> to vector<16x128xf32>
    %cst_196 = arith.constant 5.000000e-01 : f32
    %415 = vector.broadcast %cst_196 : f32 to vector<16x128xf32>
    %416 = arith.mulf %415, %414 : vector<16x128xf32>
    %417 = math.tanh %416 : vector<16x128xf32>
    %cst_197 = arith.constant 5.000000e-01 : f32
    %418 = vector.broadcast %cst_197 : f32 to vector<16x128xf32>
    %419 = arith.mulf %418, %417 : vector<16x128xf32>
    %cst_198 = arith.constant 5.000000e-01 : f32
    %420 = vector.broadcast %cst_198 : f32 to vector<16x128xf32>
    %421 = arith.addf %419, %420 : vector<16x128xf32>
    %422 = vector.extract_strided_slice %405 {offsets = [0, 256], sizes = [16, 128], strides = [1, 1]} : vector<16x512xf32> to vector<16x128xf32>
    %423 = math.tanh %422 : vector<16x128xf32>
    %424 = vector.extract_strided_slice %405 {offsets = [0, 384], sizes = [16, 128], strides = [1, 1]} : vector<16x512xf32> to vector<16x128xf32>
    %cst_199 = arith.constant 5.000000e-01 : f32
    %425 = vector.broadcast %cst_199 : f32 to vector<16x128xf32>
    %426 = arith.mulf %425, %424 : vector<16x128xf32>
    %427 = math.tanh %426 : vector<16x128xf32>
    %cst_200 = arith.constant 5.000000e-01 : f32
    %428 = vector.broadcast %cst_200 : f32 to vector<16x128xf32>
    %429 = arith.mulf %428, %427 : vector<16x128xf32>
    %cst_201 = arith.constant 5.000000e-01 : f32
    %430 = vector.broadcast %cst_201 : f32 to vector<16x128xf32>
    %431 = arith.addf %429, %430 : vector<16x128xf32>
    %432 = arith.mulf %421, %396 : vector<16x128xf32>
    %433 = arith.mulf %413, %423 : vector<16x128xf32>
    %434 = arith.addf %432, %433 : vector<16x128xf32>
    %435 = math.tanh %434 : vector<16x128xf32>
    %436 = arith.mulf %431, %435 : vector<16x128xf32>
    %437 = arith.truncf %436 : vector<16x128xf32> to vector<16x128xbf16>
    %c1_i32_202 = arith.constant 1 : i32
    %c16_i32_203 = arith.constant 16 : i32
    %438 = arith.muli %c1_i32_202, %c16_i32_203 : i32
    %439 = tpu.assume_multiple %438, 16 : i32
    %c0_i32_204 = arith.constant 0 : i32
    %c0_i32_205 = arith.constant 0 : i32
    %440 = tpu.memref_slice %arg9[%c0_i32_184, %c0_i32_204, %c0_i32_205] : memref<2x128x512xf32, #tpu.memory_space<vmem>> -> memref<1x128x512xf32, #tpu.memory_space<vmem>>
    %441 = tpu.memref_squeeze %440 : memref<1x128x512xf32, #tpu.memory_space<vmem>> -> memref<128x512xf32, #tpu.memory_space<vmem>>
    %442 = arith.index_cast %439 : i32 to index
    %c0_206 = arith.constant 0 : index
    %443 = vector.load %441[%442, %c0_206] : memref<128x512xf32, #tpu.memory_space<vmem>>, vector<16x512xf32>
    %c0_207 = arith.constant 0 : index
    %c0_208 = arith.constant 0 : index
    %444 = vector.load %arg5[%c0_207, %c0_208] : memref<128x512xbf16, #tpu.memory_space<vmem>>, vector<128x512xbf16>
    %cst_209 = arith.constant dense<0.000000e+00> : vector<16x512xf32>
    %445 = tpu.matmul %437, %444, %cst_209 {dimension_numbers = #tpu.dot_dimension_numbers<[1], [0], [0], [1], [0, 0, 1, 1], [], []>} : vector<16x128xbf16>, vector<128x512xbf16>, vector<16x512xf32> -> vector<16x512xf32>
    %446 = arith.addf %443, %445 : vector<16x512xf32>
    %447 = vector.extract_strided_slice %446 {offsets = [0, 0], sizes = [16, 128], strides = [1, 1]} : vector<16x512xf32> to vector<16x128xf32>
    %cst_210 = arith.constant 5.000000e-01 : f32
    %448 = vector.broadcast %cst_210 : f32 to vector<16x128xf32>
    %449 = arith.mulf %448, %447 : vector<16x128xf32>
    %450 = math.tanh %449 : vector<16x128xf32>
    %cst_211 = arith.constant 5.000000e-01 : f32
    %451 = vector.broadcast %cst_211 : f32 to vector<16x128xf32>
    %452 = arith.mulf %451, %450 : vector<16x128xf32>
    %cst_212 = arith.constant 5.000000e-01 : f32
    %453 = vector.broadcast %cst_212 : f32 to vector<16x128xf32>
    %454 = arith.addf %452, %453 : vector<16x128xf32>
    %455 = vector.extract_strided_slice %446 {offsets = [0, 128], sizes = [16, 128], strides = [1, 1]} : vector<16x512xf32> to vector<16x128xf32>
    %cst_213 = arith.constant 5.000000e-01 : f32
    %456 = vector.broadcast %cst_213 : f32 to vector<16x128xf32>
    %457 = arith.mulf %456, %455 : vector<16x128xf32>
    %458 = math.tanh %457 : vector<16x128xf32>
    %cst_214 = arith.constant 5.000000e-01 : f32
    %459 = vector.broadcast %cst_214 : f32 to vector<16x128xf32>
    %460 = arith.mulf %459, %458 : vector<16x128xf32>
    %cst_215 = arith.constant 5.000000e-01 : f32
    %461 = vector.broadcast %cst_215 : f32 to vector<16x128xf32>
    %462 = arith.addf %460, %461 : vector<16x128xf32>
    %463 = vector.extract_strided_slice %446 {offsets = [0, 256], sizes = [16, 128], strides = [1, 1]} : vector<16x512xf32> to vector<16x128xf32>
    %464 = math.tanh %463 : vector<16x128xf32>
    %465 = vector.extract_strided_slice %446 {offsets = [0, 384], sizes = [16, 128], strides = [1, 1]} : vector<16x512xf32> to vector<16x128xf32>
    %cst_216 = arith.constant 5.000000e-01 : f32
    %466 = vector.broadcast %cst_216 : f32 to vector<16x128xf32>
    %467 = arith.mulf %466, %465 : vector<16x128xf32>
    %468 = math.tanh %467 : vector<16x128xf32>
    %cst_217 = arith.constant 5.000000e-01 : f32
    %469 = vector.broadcast %cst_217 : f32 to vector<16x128xf32>
    %470 = arith.mulf %469, %468 : vector<16x128xf32>
    %cst_218 = arith.constant 5.000000e-01 : f32
    %471 = vector.broadcast %cst_218 : f32 to vector<16x128xf32>
    %472 = arith.addf %470, %471 : vector<16x128xf32>
    %473 = arith.mulf %462, %434 : vector<16x128xf32>
    %474 = arith.mulf %454, %464 : vector<16x128xf32>
    %475 = arith.addf %473, %474 : vector<16x128xf32>
    %476 = math.tanh %475 : vector<16x128xf32>
    %477 = arith.mulf %472, %476 : vector<16x128xf32>
    %478 = arith.truncf %477 : vector<16x128xf32> to vector<16x128xbf16>
    %c2_i32_219 = arith.constant 2 : i32
    %c16_i32_220 = arith.constant 16 : i32
    %479 = arith.muli %c2_i32_219, %c16_i32_220 : i32
    %480 = tpu.assume_multiple %479, 16 : i32
    %c0_i32_221 = arith.constant 0 : i32
    %c0_i32_222 = arith.constant 0 : i32
    %481 = tpu.memref_slice %arg9[%c0_i32_184, %c0_i32_221, %c0_i32_222] : memref<2x128x512xf32, #tpu.memory_space<vmem>> -> memref<1x128x512xf32, #tpu.memory_space<vmem>>
    %482 = tpu.memref_squeeze %481 : memref<1x128x512xf32, #tpu.memory_space<vmem>> -> memref<128x512xf32, #tpu.memory_space<vmem>>
    %483 = arith.index_cast %480 : i32 to index
    %c0_223 = arith.constant 0 : index
    %484 = vector.load %482[%483, %c0_223] : memref<128x512xf32, #tpu.memory_space<vmem>>, vector<16x512xf32>
    %c0_224 = arith.constant 0 : index
    %c0_225 = arith.constant 0 : index
    %485 = vector.load %arg5[%c0_224, %c0_225] : memref<128x512xbf16, #tpu.memory_space<vmem>>, vector<128x512xbf16>
    %cst_226 = arith.constant dense<0.000000e+00> : vector<16x512xf32>
    %486 = tpu.matmul %478, %485, %cst_226 {dimension_numbers = #tpu.dot_dimension_numbers<[1], [0], [0], [1], [0, 0, 1, 1], [], []>} : vector<16x128xbf16>, vector<128x512xbf16>, vector<16x512xf32> -> vector<16x512xf32>
    %487 = arith.addf %484, %486 : vector<16x512xf32>
    %488 = vector.extract_strided_slice %487 {offsets = [0, 0], sizes = [16, 128], strides = [1, 1]} : vector<16x512xf32> to vector<16x128xf32>
    %cst_227 = arith.constant 5.000000e-01 : f32
    %489 = vector.broadcast %cst_227 : f32 to vector<16x128xf32>
    %490 = arith.mulf %489, %488 : vector<16x128xf32>
    %491 = math.tanh %490 : vector<16x128xf32>
    %cst_228 = arith.constant 5.000000e-01 : f32
    %492 = vector.broadcast %cst_228 : f32 to vector<16x128xf32>
    %493 = arith.mulf %492, %491 : vector<16x128xf32>
    %cst_229 = arith.constant 5.000000e-01 : f32
    %494 = vector.broadcast %cst_229 : f32 to vector<16x128xf32>
    %495 = arith.addf %493, %494 : vector<16x128xf32>
    %496 = vector.extract_strided_slice %487 {offsets = [0, 128], sizes = [16, 128], strides = [1, 1]} : vector<16x512xf32> to vector<16x128xf32>
    %cst_230 = arith.constant 5.000000e-01 : f32
    %497 = vector.broadcast %cst_230 : f32 to vector<16x128xf32>
    %498 = arith.mulf %497, %496 : vector<16x128xf32>
    %499 = math.tanh %498 : vector<16x128xf32>
    %cst_231 = arith.constant 5.000000e-01 : f32
    %500 = vector.broadcast %cst_231 : f32 to vector<16x128xf32>
    %501 = arith.mulf %500, %499 : vector<16x128xf32>
    %cst_232 = arith.constant 5.000000e-01 : f32
    %502 = vector.broadcast %cst_232 : f32 to vector<16x128xf32>
    %503 = arith.addf %501, %502 : vector<16x128xf32>
    %504 = vector.extract_strided_slice %487 {offsets = [0, 256], sizes = [16, 128], strides = [1, 1]} : vector<16x512xf32> to vector<16x128xf32>
    %505 = math.tanh %504 : vector<16x128xf32>
    %506 = vector.extract_strided_slice %487 {offsets = [0, 384], sizes = [16, 128], strides = [1, 1]} : vector<16x512xf32> to vector<16x128xf32>
    %cst_233 = arith.constant 5.000000e-01 : f32
    %507 = vector.broadcast %cst_233 : f32 to vector<16x128xf32>
    %508 = arith.mulf %507, %506 : vector<16x128xf32>
    %509 = math.tanh %508 : vector<16x128xf32>
    %cst_234 = arith.constant 5.000000e-01 : f32
    %510 = vector.broadcast %cst_234 : f32 to vector<16x128xf32>
    %511 = arith.mulf %510, %509 : vector<16x128xf32>
    %cst_235 = arith.constant 5.000000e-01 : f32
    %512 = vector.broadcast %cst_235 : f32 to vector<16x128xf32>
    %513 = arith.addf %511, %512 : vector<16x128xf32>
    %514 = arith.mulf %503, %475 : vector<16x128xf32>
    %515 = arith.mulf %495, %505 : vector<16x128xf32>
    %516 = arith.addf %514, %515 : vector<16x128xf32>
    %517 = math.tanh %516 : vector<16x128xf32>
    %518 = arith.mulf %513, %517 : vector<16x128xf32>
    %519 = arith.truncf %518 : vector<16x128xf32> to vector<16x128xbf16>
    %c3_i32_236 = arith.constant 3 : i32
    %c16_i32_237 = arith.constant 16 : i32
    %520 = arith.muli %c3_i32_236, %c16_i32_237 : i32
    %521 = tpu.assume_multiple %520, 16 : i32
    %c0_i32_238 = arith.constant 0 : i32
    %c0_i32_239 = arith.constant 0 : i32
    %522 = tpu.memref_slice %arg9[%c0_i32_184, %c0_i32_238, %c0_i32_239] : memref<2x128x512xf32, #tpu.memory_space<vmem>> -> memref<1x128x512xf32, #tpu.memory_space<vmem>>
    %523 = tpu.memref_squeeze %522 : memref<1x128x512xf32, #tpu.memory_space<vmem>> -> memref<128x512xf32, #tpu.memory_space<vmem>>
    %524 = arith.index_cast %521 : i32 to index
    %c0_240 = arith.constant 0 : index
    %525 = vector.load %523[%524, %c0_240] : memref<128x512xf32, #tpu.memory_space<vmem>>, vector<16x512xf32>
    %c0_241 = arith.constant 0 : index
    %c0_242 = arith.constant 0 : index
    %526 = vector.load %arg5[%c0_241, %c0_242] : memref<128x512xbf16, #tpu.memory_space<vmem>>, vector<128x512xbf16>
    %cst_243 = arith.constant dense<0.000000e+00> : vector<16x512xf32>
    %527 = tpu.matmul %519, %526, %cst_243 {dimension_numbers = #tpu.dot_dimension_numbers<[1], [0], [0], [1], [0, 0, 1, 1], [], []>} : vector<16x128xbf16>, vector<128x512xbf16>, vector<16x512xf32> -> vector<16x512xf32>
    %528 = arith.addf %525, %527 : vector<16x512xf32>
    %529 = vector.extract_strided_slice %528 {offsets = [0, 0], sizes = [16, 128], strides = [1, 1]} : vector<16x512xf32> to vector<16x128xf32>
    %cst_244 = arith.constant 5.000000e-01 : f32
    %530 = vector.broadcast %cst_244 : f32 to vector<16x128xf32>
    %531 = arith.mulf %530, %529 : vector<16x128xf32>
    %532 = math.tanh %531 : vector<16x128xf32>
    %cst_245 = arith.constant 5.000000e-01 : f32
    %533 = vector.broadcast %cst_245 : f32 to vector<16x128xf32>
    %534 = arith.mulf %533, %532 : vector<16x128xf32>
    %cst_246 = arith.constant 5.000000e-01 : f32
    %535 = vector.broadcast %cst_246 : f32 to vector<16x128xf32>
    %536 = arith.addf %534, %535 : vector<16x128xf32>
    %537 = vector.extract_strided_slice %528 {offsets = [0, 128], sizes = [16, 128], strides = [1, 1]} : vector<16x512xf32> to vector<16x128xf32>
    %cst_247 = arith.constant 5.000000e-01 : f32
    %538 = vector.broadcast %cst_247 : f32 to vector<16x128xf32>
    %539 = arith.mulf %538, %537 : vector<16x128xf32>
    %540 = math.tanh %539 : vector<16x128xf32>
    %cst_248 = arith.constant 5.000000e-01 : f32
    %541 = vector.broadcast %cst_248 : f32 to vector<16x128xf32>
    %542 = arith.mulf %541, %540 : vector<16x128xf32>
    %cst_249 = arith.constant 5.000000e-01 : f32
    %543 = vector.broadcast %cst_249 : f32 to vector<16x128xf32>
    %544 = arith.addf %542, %543 : vector<16x128xf32>
    %545 = vector.extract_strided_slice %528 {offsets = [0, 256], sizes = [16, 128], strides = [1, 1]} : vector<16x512xf32> to vector<16x128xf32>
    %546 = math.tanh %545 : vector<16x128xf32>
    %547 = vector.extract_strided_slice %528 {offsets = [0, 384], sizes = [16, 128], strides = [1, 1]} : vector<16x512xf32> to vector<16x128xf32>
    %cst_250 = arith.constant 5.000000e-01 : f32
    %548 = vector.broadcast %cst_250 : f32 to vector<16x128xf32>
    %549 = arith.mulf %548, %547 : vector<16x128xf32>
    %550 = math.tanh %549 : vector<16x128xf32>
    %cst_251 = arith.constant 5.000000e-01 : f32
    %551 = vector.broadcast %cst_251 : f32 to vector<16x128xf32>
    %552 = arith.mulf %551, %550 : vector<16x128xf32>
    %cst_252 = arith.constant 5.000000e-01 : f32
    %553 = vector.broadcast %cst_252 : f32 to vector<16x128xf32>
    %554 = arith.addf %552, %553 : vector<16x128xf32>
    %555 = arith.mulf %544, %516 : vector<16x128xf32>
    %556 = arith.mulf %536, %546 : vector<16x128xf32>
    %557 = arith.addf %555, %556 : vector<16x128xf32>
    %558 = math.tanh %557 : vector<16x128xf32>
    %559 = arith.mulf %554, %558 : vector<16x128xf32>
    %560 = arith.truncf %559 : vector<16x128xf32> to vector<16x128xbf16>
    %c4_i32_253 = arith.constant 4 : i32
    %c16_i32_254 = arith.constant 16 : i32
    %561 = arith.muli %c4_i32_253, %c16_i32_254 : i32
    %562 = tpu.assume_multiple %561, 16 : i32
    %c0_i32_255 = arith.constant 0 : i32
    %c0_i32_256 = arith.constant 0 : i32
    %563 = tpu.memref_slice %arg9[%c0_i32_184, %c0_i32_255, %c0_i32_256] : memref<2x128x512xf32, #tpu.memory_space<vmem>> -> memref<1x128x512xf32, #tpu.memory_space<vmem>>
    %564 = tpu.memref_squeeze %563 : memref<1x128x512xf32, #tpu.memory_space<vmem>> -> memref<128x512xf32, #tpu.memory_space<vmem>>
    %565 = arith.index_cast %562 : i32 to index
    %c0_257 = arith.constant 0 : index
    %566 = vector.load %564[%565, %c0_257] : memref<128x512xf32, #tpu.memory_space<vmem>>, vector<16x512xf32>
    %c0_258 = arith.constant 0 : index
    %c0_259 = arith.constant 0 : index
    %567 = vector.load %arg5[%c0_258, %c0_259] : memref<128x512xbf16, #tpu.memory_space<vmem>>, vector<128x512xbf16>
    %cst_260 = arith.constant dense<0.000000e+00> : vector<16x512xf32>
    %568 = tpu.matmul %560, %567, %cst_260 {dimension_numbers = #tpu.dot_dimension_numbers<[1], [0], [0], [1], [0, 0, 1, 1], [], []>} : vector<16x128xbf16>, vector<128x512xbf16>, vector<16x512xf32> -> vector<16x512xf32>
    %569 = arith.addf %566, %568 : vector<16x512xf32>
    %570 = vector.extract_strided_slice %569 {offsets = [0, 0], sizes = [16, 128], strides = [1, 1]} : vector<16x512xf32> to vector<16x128xf32>
    %cst_261 = arith.constant 5.000000e-01 : f32
    %571 = vector.broadcast %cst_261 : f32 to vector<16x128xf32>
    %572 = arith.mulf %571, %570 : vector<16x128xf32>
    %573 = math.tanh %572 : vector<16x128xf32>
    %cst_262 = arith.constant 5.000000e-01 : f32
    %574 = vector.broadcast %cst_262 : f32 to vector<16x128xf32>
    %575 = arith.mulf %574, %573 : vector<16x128xf32>
    %cst_263 = arith.constant 5.000000e-01 : f32
    %576 = vector.broadcast %cst_263 : f32 to vector<16x128xf32>
    %577 = arith.addf %575, %576 : vector<16x128xf32>
    %578 = vector.extract_strided_slice %569 {offsets = [0, 128], sizes = [16, 128], strides = [1, 1]} : vector<16x512xf32> to vector<16x128xf32>
    %cst_264 = arith.constant 5.000000e-01 : f32
    %579 = vector.broadcast %cst_264 : f32 to vector<16x128xf32>
    %580 = arith.mulf %579, %578 : vector<16x128xf32>
    %581 = math.tanh %580 : vector<16x128xf32>
    %cst_265 = arith.constant 5.000000e-01 : f32
    %582 = vector.broadcast %cst_265 : f32 to vector<16x128xf32>
    %583 = arith.mulf %582, %581 : vector<16x128xf32>
    %cst_266 = arith.constant 5.000000e-01 : f32
    %584 = vector.broadcast %cst_266 : f32 to vector<16x128xf32>
    %585 = arith.addf %583, %584 : vector<16x128xf32>
    %586 = vector.extract_strided_slice %569 {offsets = [0, 256], sizes = [16, 128], strides = [1, 1]} : vector<16x512xf32> to vector<16x128xf32>
    %587 = math.tanh %586 : vector<16x128xf32>
    %588 = vector.extract_strided_slice %569 {offsets = [0, 384], sizes = [16, 128], strides = [1, 1]} : vector<16x512xf32> to vector<16x128xf32>
    %cst_267 = arith.constant 5.000000e-01 : f32
    %589 = vector.broadcast %cst_267 : f32 to vector<16x128xf32>
    %590 = arith.mulf %589, %588 : vector<16x128xf32>
    %591 = math.tanh %590 : vector<16x128xf32>
    %cst_268 = arith.constant 5.000000e-01 : f32
    %592 = vector.broadcast %cst_268 : f32 to vector<16x128xf32>
    %593 = arith.mulf %592, %591 : vector<16x128xf32>
    %cst_269 = arith.constant 5.000000e-01 : f32
    %594 = vector.broadcast %cst_269 : f32 to vector<16x128xf32>
    %595 = arith.addf %593, %594 : vector<16x128xf32>
    %596 = arith.mulf %585, %557 : vector<16x128xf32>
    %597 = arith.mulf %577, %587 : vector<16x128xf32>
    %598 = arith.addf %596, %597 : vector<16x128xf32>
    %599 = math.tanh %598 : vector<16x128xf32>
    %600 = arith.mulf %595, %599 : vector<16x128xf32>
    %601 = arith.truncf %600 : vector<16x128xf32> to vector<16x128xbf16>
    %c5_i32_270 = arith.constant 5 : i32
    %c16_i32_271 = arith.constant 16 : i32
    %602 = arith.muli %c5_i32_270, %c16_i32_271 : i32
    %603 = tpu.assume_multiple %602, 16 : i32
    %c0_i32_272 = arith.constant 0 : i32
    %c0_i32_273 = arith.constant 0 : i32
    %604 = tpu.memref_slice %arg9[%c0_i32_184, %c0_i32_272, %c0_i32_273] : memref<2x128x512xf32, #tpu.memory_space<vmem>> -> memref<1x128x512xf32, #tpu.memory_space<vmem>>
    %605 = tpu.memref_squeeze %604 : memref<1x128x512xf32, #tpu.memory_space<vmem>> -> memref<128x512xf32, #tpu.memory_space<vmem>>
    %606 = arith.index_cast %603 : i32 to index
    %c0_274 = arith.constant 0 : index
    %607 = vector.load %605[%606, %c0_274] : memref<128x512xf32, #tpu.memory_space<vmem>>, vector<16x512xf32>
    %c0_275 = arith.constant 0 : index
    %c0_276 = arith.constant 0 : index
    %608 = vector.load %arg5[%c0_275, %c0_276] : memref<128x512xbf16, #tpu.memory_space<vmem>>, vector<128x512xbf16>
    %cst_277 = arith.constant dense<0.000000e+00> : vector<16x512xf32>
    %609 = tpu.matmul %601, %608, %cst_277 {dimension_numbers = #tpu.dot_dimension_numbers<[1], [0], [0], [1], [0, 0, 1, 1], [], []>} : vector<16x128xbf16>, vector<128x512xbf16>, vector<16x512xf32> -> vector<16x512xf32>
    %610 = arith.addf %607, %609 : vector<16x512xf32>
    %611 = vector.extract_strided_slice %610 {offsets = [0, 0], sizes = [16, 128], strides = [1, 1]} : vector<16x512xf32> to vector<16x128xf32>
    %cst_278 = arith.constant 5.000000e-01 : f32
    %612 = vector.broadcast %cst_278 : f32 to vector<16x128xf32>
    %613 = arith.mulf %612, %611 : vector<16x128xf32>
    %614 = math.tanh %613 : vector<16x128xf32>
    %cst_279 = arith.constant 5.000000e-01 : f32
    %615 = vector.broadcast %cst_279 : f32 to vector<16x128xf32>
    %616 = arith.mulf %615, %614 : vector<16x128xf32>
    %cst_280 = arith.constant 5.000000e-01 : f32
    %617 = vector.broadcast %cst_280 : f32 to vector<16x128xf32>
    %618 = arith.addf %616, %617 : vector<16x128xf32>
    %619 = vector.extract_strided_slice %610 {offsets = [0, 128], sizes = [16, 128], strides = [1, 1]} : vector<16x512xf32> to vector<16x128xf32>
    %cst_281 = arith.constant 5.000000e-01 : f32
    %620 = vector.broadcast %cst_281 : f32 to vector<16x128xf32>
    %621 = arith.mulf %620, %619 : vector<16x128xf32>
    %622 = math.tanh %621 : vector<16x128xf32>
    %cst_282 = arith.constant 5.000000e-01 : f32
    %623 = vector.broadcast %cst_282 : f32 to vector<16x128xf32>
    %624 = arith.mulf %623, %622 : vector<16x128xf32>
    %cst_283 = arith.constant 5.000000e-01 : f32
    %625 = vector.broadcast %cst_283 : f32 to vector<16x128xf32>
    %626 = arith.addf %624, %625 : vector<16x128xf32>
    %627 = vector.extract_strided_slice %610 {offsets = [0, 256], sizes = [16, 128], strides = [1, 1]} : vector<16x512xf32> to vector<16x128xf32>
    %628 = math.tanh %627 : vector<16x128xf32>
    %629 = vector.extract_strided_slice %610 {offsets = [0, 384], sizes = [16, 128], strides = [1, 1]} : vector<16x512xf32> to vector<16x128xf32>
    %cst_284 = arith.constant 5.000000e-01 : f32
    %630 = vector.broadcast %cst_284 : f32 to vector<16x128xf32>
    %631 = arith.mulf %630, %629 : vector<16x128xf32>
    %632 = math.tanh %631 : vector<16x128xf32>
    %cst_285 = arith.constant 5.000000e-01 : f32
    %633 = vector.broadcast %cst_285 : f32 to vector<16x128xf32>
    %634 = arith.mulf %633, %632 : vector<16x128xf32>
    %cst_286 = arith.constant 5.000000e-01 : f32
    %635 = vector.broadcast %cst_286 : f32 to vector<16x128xf32>
    %636 = arith.addf %634, %635 : vector<16x128xf32>
    %637 = arith.mulf %626, %598 : vector<16x128xf32>
    %638 = arith.mulf %618, %628 : vector<16x128xf32>
    %639 = arith.addf %637, %638 : vector<16x128xf32>
    %640 = math.tanh %639 : vector<16x128xf32>
    %641 = arith.mulf %636, %640 : vector<16x128xf32>
    %642 = arith.truncf %641 : vector<16x128xf32> to vector<16x128xbf16>
    %c6_i32_287 = arith.constant 6 : i32
    %c16_i32_288 = arith.constant 16 : i32
    %643 = arith.muli %c6_i32_287, %c16_i32_288 : i32
    %644 = tpu.assume_multiple %643, 16 : i32
    %c0_i32_289 = arith.constant 0 : i32
    %c0_i32_290 = arith.constant 0 : i32
    %645 = tpu.memref_slice %arg9[%c0_i32_184, %c0_i32_289, %c0_i32_290] : memref<2x128x512xf32, #tpu.memory_space<vmem>> -> memref<1x128x512xf32, #tpu.memory_space<vmem>>
    %646 = tpu.memref_squeeze %645 : memref<1x128x512xf32, #tpu.memory_space<vmem>> -> memref<128x512xf32, #tpu.memory_space<vmem>>
    %647 = arith.index_cast %644 : i32 to index
    %c0_291 = arith.constant 0 : index
    %648 = vector.load %646[%647, %c0_291] : memref<128x512xf32, #tpu.memory_space<vmem>>, vector<16x512xf32>
    %c0_292 = arith.constant 0 : index
    %c0_293 = arith.constant 0 : index
    %649 = vector.load %arg5[%c0_292, %c0_293] : memref<128x512xbf16, #tpu.memory_space<vmem>>, vector<128x512xbf16>
    %cst_294 = arith.constant dense<0.000000e+00> : vector<16x512xf32>
    %650 = tpu.matmul %642, %649, %cst_294 {dimension_numbers = #tpu.dot_dimension_numbers<[1], [0], [0], [1], [0, 0, 1, 1], [], []>} : vector<16x128xbf16>, vector<128x512xbf16>, vector<16x512xf32> -> vector<16x512xf32>
    %651 = arith.addf %648, %650 : vector<16x512xf32>
    %652 = vector.extract_strided_slice %651 {offsets = [0, 0], sizes = [16, 128], strides = [1, 1]} : vector<16x512xf32> to vector<16x128xf32>
    %cst_295 = arith.constant 5.000000e-01 : f32
    %653 = vector.broadcast %cst_295 : f32 to vector<16x128xf32>
    %654 = arith.mulf %653, %652 : vector<16x128xf32>
    %655 = math.tanh %654 : vector<16x128xf32>
    %cst_296 = arith.constant 5.000000e-01 : f32
    %656 = vector.broadcast %cst_296 : f32 to vector<16x128xf32>
    %657 = arith.mulf %656, %655 : vector<16x128xf32>
    %cst_297 = arith.constant 5.000000e-01 : f32
    %658 = vector.broadcast %cst_297 : f32 to vector<16x128xf32>
    %659 = arith.addf %657, %658 : vector<16x128xf32>
    %660 = vector.extract_strided_slice %651 {offsets = [0, 128], sizes = [16, 128], strides = [1, 1]} : vector<16x512xf32> to vector<16x128xf32>
    %cst_298 = arith.constant 5.000000e-01 : f32
    %661 = vector.broadcast %cst_298 : f32 to vector<16x128xf32>
    %662 = arith.mulf %661, %660 : vector<16x128xf32>
    %663 = math.tanh %662 : vector<16x128xf32>
    %cst_299 = arith.constant 5.000000e-01 : f32
    %664 = vector.broadcast %cst_299 : f32 to vector<16x128xf32>
    %665 = arith.mulf %664, %663 : vector<16x128xf32>
    %cst_300 = arith.constant 5.000000e-01 : f32
    %666 = vector.broadcast %cst_300 : f32 to vector<16x128xf32>
    %667 = arith.addf %665, %666 : vector<16x128xf32>
    %668 = vector.extract_strided_slice %651 {offsets = [0, 256], sizes = [16, 128], strides = [1, 1]} : vector<16x512xf32> to vector<16x128xf32>
    %669 = math.tanh %668 : vector<16x128xf32>
    %670 = vector.extract_strided_slice %651 {offsets = [0, 384], sizes = [16, 128], strides = [1, 1]} : vector<16x512xf32> to vector<16x128xf32>
    %cst_301 = arith.constant 5.000000e-01 : f32
    %671 = vector.broadcast %cst_301 : f32 to vector<16x128xf32>
    %672 = arith.mulf %671, %670 : vector<16x128xf32>
    %673 = math.tanh %672 : vector<16x128xf32>
    %cst_302 = arith.constant 5.000000e-01 : f32
    %674 = vector.broadcast %cst_302 : f32 to vector<16x128xf32>
    %675 = arith.mulf %674, %673 : vector<16x128xf32>
    %cst_303 = arith.constant 5.000000e-01 : f32
    %676 = vector.broadcast %cst_303 : f32 to vector<16x128xf32>
    %677 = arith.addf %675, %676 : vector<16x128xf32>
    %678 = arith.mulf %667, %639 : vector<16x128xf32>
    %679 = arith.mulf %659, %669 : vector<16x128xf32>
    %680 = arith.addf %678, %679 : vector<16x128xf32>
    %681 = math.tanh %680 : vector<16x128xf32>
    %682 = arith.mulf %677, %681 : vector<16x128xf32>
    %683 = arith.truncf %682 : vector<16x128xf32> to vector<16x128xbf16>
    %c7_i32_304 = arith.constant 7 : i32
    %c16_i32_305 = arith.constant 16 : i32
    %684 = arith.muli %c7_i32_304, %c16_i32_305 : i32
    %685 = tpu.assume_multiple %684, 16 : i32
    %c0_i32_306 = arith.constant 0 : i32
    %c0_i32_307 = arith.constant 0 : i32
    %686 = tpu.memref_slice %arg9[%c0_i32_184, %c0_i32_306, %c0_i32_307] : memref<2x128x512xf32, #tpu.memory_space<vmem>> -> memref<1x128x512xf32, #tpu.memory_space<vmem>>
    %687 = tpu.memref_squeeze %686 : memref<1x128x512xf32, #tpu.memory_space<vmem>> -> memref<128x512xf32, #tpu.memory_space<vmem>>
    %688 = arith.index_cast %685 : i32 to index
    %c0_308 = arith.constant 0 : index
    %689 = vector.load %687[%688, %c0_308] : memref<128x512xf32, #tpu.memory_space<vmem>>, vector<16x512xf32>
    %c0_309 = arith.constant 0 : index
    %c0_310 = arith.constant 0 : index
    %690 = vector.load %arg5[%c0_309, %c0_310] : memref<128x512xbf16, #tpu.memory_space<vmem>>, vector<128x512xbf16>
    %cst_311 = arith.constant dense<0.000000e+00> : vector<16x512xf32>
    %691 = tpu.matmul %683, %690, %cst_311 {dimension_numbers = #tpu.dot_dimension_numbers<[1], [0], [0], [1], [0, 0, 1, 1], [], []>} : vector<16x128xbf16>, vector<128x512xbf16>, vector<16x512xf32> -> vector<16x512xf32>
    %692 = arith.addf %689, %691 : vector<16x512xf32>
    %693 = vector.extract_strided_slice %692 {offsets = [0, 0], sizes = [16, 128], strides = [1, 1]} : vector<16x512xf32> to vector<16x128xf32>
    %cst_312 = arith.constant 5.000000e-01 : f32
    %694 = vector.broadcast %cst_312 : f32 to vector<16x128xf32>
    %695 = arith.mulf %694, %693 : vector<16x128xf32>
    %696 = math.tanh %695 : vector<16x128xf32>
    %cst_313 = arith.constant 5.000000e-01 : f32
    %697 = vector.broadcast %cst_313 : f32 to vector<16x128xf32>
    %698 = arith.mulf %697, %696 : vector<16x128xf32>
    %cst_314 = arith.constant 5.000000e-01 : f32
    %699 = vector.broadcast %cst_314 : f32 to vector<16x128xf32>
    %700 = arith.addf %698, %699 : vector<16x128xf32>
    %701 = vector.extract_strided_slice %692 {offsets = [0, 128], sizes = [16, 128], strides = [1, 1]} : vector<16x512xf32> to vector<16x128xf32>
    %cst_315 = arith.constant 5.000000e-01 : f32
    %702 = vector.broadcast %cst_315 : f32 to vector<16x128xf32>
    %703 = arith.mulf %702, %701 : vector<16x128xf32>
    %704 = math.tanh %703 : vector<16x128xf32>
    %cst_316 = arith.constant 5.000000e-01 : f32
    %705 = vector.broadcast %cst_316 : f32 to vector<16x128xf32>
    %706 = arith.mulf %705, %704 : vector<16x128xf32>
    %cst_317 = arith.constant 5.000000e-01 : f32
    %707 = vector.broadcast %cst_317 : f32 to vector<16x128xf32>
    %708 = arith.addf %706, %707 : vector<16x128xf32>
    %709 = vector.extract_strided_slice %692 {offsets = [0, 256], sizes = [16, 128], strides = [1, 1]} : vector<16x512xf32> to vector<16x128xf32>
    %710 = math.tanh %709 : vector<16x128xf32>
    %711 = vector.extract_strided_slice %692 {offsets = [0, 384], sizes = [16, 128], strides = [1, 1]} : vector<16x512xf32> to vector<16x128xf32>
    %cst_318 = arith.constant 5.000000e-01 : f32
    %712 = vector.broadcast %cst_318 : f32 to vector<16x128xf32>
    %713 = arith.mulf %712, %711 : vector<16x128xf32>
    %714 = math.tanh %713 : vector<16x128xf32>
    %cst_319 = arith.constant 5.000000e-01 : f32
    %715 = vector.broadcast %cst_319 : f32 to vector<16x128xf32>
    %716 = arith.mulf %715, %714 : vector<16x128xf32>
    %cst_320 = arith.constant 5.000000e-01 : f32
    %717 = vector.broadcast %cst_320 : f32 to vector<16x128xf32>
    %718 = arith.addf %716, %717 : vector<16x128xf32>
    %719 = arith.mulf %708, %680 : vector<16x128xf32>
    %720 = arith.mulf %700, %710 : vector<16x128xf32>
    %721 = arith.addf %719, %720 : vector<16x128xf32>
    %722 = math.tanh %721 : vector<16x128xf32>
    %723 = arith.mulf %718, %722 : vector<16x128xf32>
    %724 = arith.truncf %723 : vector<16x128xf32> to vector<16x128xbf16>
    %c8_i32_321 = arith.constant 8 : i32
    %725 = arith.extf %724 : vector<16x128xbf16> to vector<16x128xf32>
    %c1 = arith.constant 1 : index
    %c0_322 = arith.constant 0 : index
    %c0_323 = arith.constant 0 : index
    %726 = vector.load %arg7[%c1, %c0_322, %c0_323] : memref<2x16x128xf32, #tpu.memory_space<vmem>>, vector<1x16x128xf32>
    %727 = vector.shape_cast %726 : vector<1x16x128xf32> to vector<16x128xf32>
    %728 = vector.shape_cast %725 : vector<16x128xf32> to vector<1x16x128xf32>
    tpu.vector_store %arg7[%c1, %c0_322, %c0_323], %728 {strides = array<i32>} : memref<2x16x128xf32, #tpu.memory_space<vmem>>, vector<1x16x128xf32>,
    %c1_324 = arith.constant 1 : index
    %c0_325 = arith.constant 0 : index
    %c0_326 = arith.constant 0 : index
    %729 = vector.load %arg8[%c1_324, %c0_325, %c0_326] : memref<2x16x128xf32, #tpu.memory_space<vmem>>, vector<1x16x128xf32>
    %730 = vector.shape_cast %729 : vector<1x16x128xf32> to vector<16x128xf32>
    %731 = vector.shape_cast %721 : vector<16x128xf32> to vector<1x16x128xf32>
    tpu.vector_store %arg8[%c1_324, %c0_325, %c0_326], %731 {strides = array<i32>} : memref<2x16x128xf32, #tpu.memory_space<vmem>>, vector<1x16x128xf32>,
    return
  }
}

</mosaic_0001>

<bundles_post_ra>
// kernel: tpu_custom_call.1
= control target key start
LH: loop header
LB: loop body
LE: loop exit
PB: predicated region body
PF: predicated region fallthrough
CT: control target
= control target key end

     0   :  { %14 = vsyncpa [#allocation5], 0  ;;  %s8298_s0 = inlined_call_operand.hbm [shape: bf16[128,128], index: 0, kind: input, shape index: {}]   ;;  %s8299_s1 = inlined_call_operand.hbm [shape: bf16[128,512], index: 1, kind: input, shape index: {}]   ;;  %s8300_s2 = inlined_call_operand.hbm [shape: bf16[128,512], index: 2, kind: input, shape index: {}]   ;;  %s8301_s3 = inlined_call_operand.hbm [shape: f32[1,512], index: 3, kind: input, shape index: {}]   ;;  %s8302_s4 = inlined_call_operand.hbm [shape: bf16[128,512], index: 4, kind: input, shape index: {}]   ;;  %s8303_s5 = inlined_call_operand.hbm [shape: bf16[128,512], index: 5, kind: input, shape index: {}]   ;;  %s8304_s6 = inlined_call_operand.vmem [shape: f32[1,512], index: 6, kind: input, shape index: {}]   ;;  %s8305_s7 = inlined_call_operand.hbm [shape: f32[2,16,128], index: 7, kind: output, shape index: {0}]   ;;  %s8306_s8 = inlined_call_operand.hbm [shape: f32[2,16,128], index: 8, kind: output, shape index: {1}]  }
   0x1   :  { %15 = vsyncpa [#allocation8], 0 }
   0x2   :  { %16 = vsyncpa [#allocation11], 0 }
   0x3   :  { %17 = vsyncpa [#allocation14], 0 }
   0x4   :  { %18 = vsyncpa [#allocation6], 0  ;;  %s37_s29 = sshll.u32 %s8299_s1, 4  ;;  %s38_s29 = int_to_ptr.hbm [resolvable:$true] %s37_s29 }
   0x5   :  { %19 = vsyncpa [#allocation17], 0  ;;  %s7225_s30 = smov [#allocation7]   ;;  %s64_s12 = sshll.u32 %s8301_s3, 4  ;;  %s65_s12 = int_to_ptr.hbm [resolvable:$true] %s64_s12 }
   0x6   :  { %s39_s9 = sshll.u32 %s7225_s30, 4  ;;  %s7226_s13 = smov 256   ;;  %s40_s9 = int_to_ptr.vmem [resolvable:$true] %s39_s9 }
   0x7   :  { %s7227_s14 = smov 16   ;;  %s7228_s15 = smov [#allocation10]  }
   0x8   :  { %45 = dma.hbm_to_vmem [thread:$0]  %s38_s29, 4096, %s40_s9, [#allocation8], %s7226_s13, %s7226_s13, %s7227_s14  }
   0x9   :  { %s66_s16 = sshll.u32 %s7228_s15, 4  ;;  %s24_s18 = sshll.u32 %s8298_s0, 4  ;;  %s67_s16 = int_to_ptr.vmem [resolvable:$true] %s66_s16  ;;  %s25_s18 = int_to_ptr.hbm [resolvable:$true] %s24_s18 }
   0xa   :  { %69 = dma.hbm_to_vmem [thread:$0]  %s65_s12, 64, %s67_s16, [#allocation11]  }
   0xb   :  { %s7229_s19 = smov [#allocation4]   ;;  %s50_s22 = sshll.u32 %s8300_s2, 4  ;;  %s51_s22 = int_to_ptr.hbm [resolvable:$true] %s50_s22 }
   0xc   :  { %s26_s20 = sshll.u32 %s7229_s19, 4  ;;  %s7230_s23 = smov 64   ;;  %s27_s20 = int_to_ptr.vmem [resolvable:$true] %s26_s20 }
   0xd   :  { %s7231_s24 = smov 4   ;;  %s7232_s25 = smov [#allocation9]  }
   0xe   :  { %32 = dma.hbm_to_vmem [thread:$0]  %s25_s18, 1024, %s27_s20, [#allocation5], %s7230_s23, %s7230_s23, %s7231_s24  }
   0xf   :  { %s52_s26 = sshll.u32 %s7232_s25, 4  ;;  %s74_s0 = sshll.u32 %s8302_s4, 4  ;;  %s53_s26 = int_to_ptr.vmem [resolvable:$true] %s52_s26  ;;  %s75_s0 = int_to_ptr.hbm [resolvable:$true] %s74_s0 }
  0x10   :  { %58 = dma.hbm_to_vmem [thread:$0]  %s51_s22, 4096, %s53_s26, [#allocation8], %s7226_s13, %s7226_s13, %s7227_s14  }
  0x11   :  { %s87_s2 = sshll.u32 %s8303_s5, 4  ;;  %s7233_s9 = smov [#allocation12]   ;;  %s88_s2 = int_to_ptr.hbm [resolvable:$true] %s87_s2 }
  0x12   :  { %s76_s10 = sshll.u32 %s7233_s9, 4  ;;  %s7234_s11 = smov [#allocation13]   ;;  %s77_s10 = int_to_ptr.vmem [resolvable:$true] %s76_s10 }
  0x13   :  { %82 = dma.hbm_to_vmem [thread:$0]  %s75_s0, 4096, %s77_s10, [#allocation11], %s7226_s13, %s7226_s13, %s7227_s14  }
  0x14   :  { %s89_s4 = sshll.u32 %s7234_s11, 4  ;;  %s90_s4 = int_to_ptr.vmem [resolvable:$true] %s89_s4 }
  0x15   :  { %95 = dma.hbm_to_vmem [thread:$0]  %s88_s2, 4096, %s90_s4, [#allocation14], %s7226_s13, %s7226_s13, %s7227_s14  }
  0x16   :  { %7213 = dma.done.wait [#allocation5], 1024  }
  0x17   :  { %7214 = vsyncadd [#allocation5], 4294966272 }
  0x18   :  { %7215 = dma.done.wait [#allocation8], 8192  }
  0x19   :  { %7216 = vsyncadd [#allocation8], 4294959104 }
  0x1a   :  { %7217 = dma.done.wait [#allocation11], 4160  }
  0x1b   :  { %7218 = vsyncadd [#allocation11], 4294963136 }
  0x1c   :  { %7219 = dma.done.wait [#allocation14], 4096  }
  0x1d   :  { %7220 = vsyncadd [#allocation14], 4294963200  ;;  %v4952_v0 = vld [vmem:[#allocation7 + $0xe0] sm:$0xf]  ;;  %v6316_v1 = vld [vmem:[#allocation7 + $0xec] sm:$0xf0] }
  0x1e   :  { %v6314_v2 = vld [vmem:[#allocation7 + $0xe4] sm:$0xf]  ;;  %v4953_v3 = vor.u32 %v6316_v1, %v4952_v0  ;;  %v4954_v4 = vld [vmem:[#allocation7 + $0xf0] sm:$0xf0]  ;;  %v4960_v5 = vld [vmem:[#allocation7 + $0xe8] sm:$0xf] }
  0x1f   :  { %v6317_v6 = vld [vmem:[#allocation7 + $0xf4] sm:$0xf0]  ;;  %v4957_v7 = vor.u32 %v6314_v2, %v4954_v4  ;;  %v6315_v9 = vld [vmem:[#allocation7 + $0xec] sm:$0xf]  ;;  %v4962_v10 = vld [vmem:[#allocation7 + $0xf8] sm:$0xf0] }
  0x20   :  { %v4961_v8 = vor.u32 %v6317_v6, %v4960_v5  ;;  %v4936_v11 = vld [vmem:[#allocation7 + $0xc0] sm:$0xf]  ;;  %389 = vmatpush.bf16.msra.mxu0 %v4953_v3  ;;  %v4965_v12 = vor.u32 %v6315_v9, %v4962_v10  ;;  %v6312_v13 = vld [vmem:[#allocation7 + $0xcc] sm:$0xf0]  ;;  %v6310_v14 = vld [vmem:[#allocation7 + $0xc4] sm:$0xf] }
  0x21   :  { %v4938_v15 = vld [vmem:[#allocation7 + $0xd0] sm:$0xf0]  ;;  %438 = vmatpush.bf16.msra.mxu1 %v4957_v7  ;;  %v4937_v16 = vor.u32 %v6312_v13, %v4936_v11  ;;  %v4944_v18 = vld [vmem:[#allocation7 + $0xc8] sm:$0xf]  ;;  %v6313_v19 = vld [vmem:[#allocation7 + $0xd4] sm:$0xf0] }
  0x22   :  { %487 = vmatpush.bf16.msra.mxu2 %v4961_v8  ;;  %v4941_v17 = vor.u32 %v6310_v14, %v4938_v15  ;;  %v6311_v20 = vld [vmem:[#allocation7 + $0xcc] sm:$0xf]  ;;  %536 = vmatpush.bf16.msra.mxu3 %v4965_v12  ;;  %v4945_v21 = vor.u32 %v6313_v19, %v4944_v18  ;;  %v4946_v22 = vld [vmem:[#allocation7 + $0xd8] sm:$0xf0]  ;;  %v4920_v23 = vld [vmem:[#allocation7 + $0xa0] sm:$0xf] }
  0x23   :  { %v6308_v24 = vld [vmem:[#allocation7 + $0xac] sm:$0xf0]  ;;  %v4949_v25 = vor.u32 %v6311_v20, %v4946_v22  ;;  %v6306_v26 = vld [vmem:[#allocation7 + $0xa4] sm:$0xf]  ;;  %v4922_v27 = vld [vmem:[#allocation7 + $0xb0] sm:$0xf0] }
  0x24   :  { %v4928_v28 = vld [vmem:[#allocation7 + $0xa8] sm:$0xf]  ;;  %390 = vmatpush.bf16.msra.mxu0 %v4937_v16  ;;  %v4921_v29 = vor.u32 %v6308_v24, %v4920_v23  ;;  %v6309_v30 = vld [vmem:[#allocation7 + $0xb4] sm:$0xf0]  ;;  %v6307_v31 = vld [vmem:[#allocation7 + $0xac] sm:$0xf]  ;;  %v4925_v33 = vor.u32 %v6306_v26, %v4922_v27 }
  0x25   :  { %v4930_v32 = vld [vmem:[#allocation7 + $0xb8] sm:$0xf0]  ;;  %439 = vmatpush.bf16.msra.mxu1 %v4941_v17  ;;  %v4929_v34 = vor.u32 %v6309_v30, %v4928_v28  ;;  %v4904_v35 = vld [vmem:[#allocation7 + $0x80] sm:$0xf]  ;;  %v6304_v36 = vld [vmem:[#allocation7 + $0x8c] sm:$0xf0] }
  0x26   :  { %488 = vmatpush.bf16.msra.mxu2 %v4945_v21  ;;  %v6302_v37 = vld [vmem:[#allocation7 + $0x84] sm:$0xf]  ;;  %537 = vmatpush.bf16.msra.mxu3 %v4949_v25  ;;  %v4933_v38 = vor.u32 %v6307_v31, %v4930_v32  ;;  %v4906_v39 = vld [vmem:[#allocation7 + $0x90] sm:$0xf0]  ;;  %v4912_v40 = vld [vmem:[#allocation7 + $0x88] sm:$0xf]  ;;  %v4905_v44 = vor.u32 %v6304_v36, %v4904_v35 }
  0x27   :  { %v6305_v41 = vld [vmem:[#allocation7 + $0x94] sm:$0xf0]  ;;  %v6303_v42 = vld [vmem:[#allocation7 + $0x8c] sm:$0xf]  ;;  %v4914_v43 = vld [vmem:[#allocation7 + $0x98] sm:$0xf0]  ;;  %v4909_v45 = vor.u32 %v6302_v37, %v4906_v39 }
  0x28   :  { %391 = vmatpush.bf16.msra.mxu0 %v4921_v29  ;;  %v4913_v46 = vor.u32 %v6305_v41, %v4912_v40  ;;  %v4888_v47 = vld [vmem:[#allocation7 + $0x60] sm:$0xf]  ;;  %v6300_v48 = vld [vmem:[#allocation7 + $0x6c] sm:$0xf0]  ;;  %v6298_v49 = vld [vmem:[#allocation7 + $0x64] sm:$0xf]  ;;  %v4917_v50 = vor.u32 %v6303_v42, %v4914_v43 }
  0x29   :  { %440 = vmatpush.bf16.msra.mxu1 %v4925_v33  ;;  %v4890_v51 = vld [vmem:[#allocation7 + $0x70] sm:$0xf0]  ;;  %v4896_v52 = vld [vmem:[#allocation7 + $0x68] sm:$0xf]  ;;  %v6301_v53 = vld [vmem:[#allocation7 + $0x74] sm:$0xf0]  ;;  %v4889_v56 = vor.u32 %v6300_v48, %v4888_v47 }
  0x2a   :  { %489 = vmatpush.bf16.msra.mxu2 %v4929_v34  ;;  %538 = vmatpush.bf16.msra.mxu3 %v4933_v38  ;;  %v6299_v54 = vld [vmem:[#allocation7 + $0x6c] sm:$0xf]  ;;  %v4898_v55 = vld [vmem:[#allocation7 + $0x78] sm:$0xf0]  ;;  %v4893_v57 = vor.u32 %v6298_v49, %v4890_v51  ;;  %v4897_v58 = vor.u32 %v6301_v53, %v4896_v52  ;;  %v4872_v59 = vld [vmem:[#allocation7 + $0x40] sm:$0xf] }
  0x2b   :  { %v6296_v60 = vld [vmem:[#allocation7 + $0x4c] sm:$0xf0]  ;;  %v6294_v61 = vld [vmem:[#allocation7 + $0x44] sm:$0xf]  ;;  %v4901_v62 = vor.u32 %v6299_v54, %v4898_v55  ;;  %v4874_v63 = vld [vmem:[#allocation7 + $0x50] sm:$0xf0] }
  0x2c   :  { %392 = vmatpush.bf16.msra.mxu0 %v4905_v44  ;;  %v4880_v0 = vld [vmem:[#allocation7 + $0x48] sm:$0xf]  ;;  %v6297_v1 = vld [vmem:[#allocation7 + $0x54] sm:$0xf0]  ;;  %v6295_v2 = vld [vmem:[#allocation7 + $0x4c] sm:$0xf]  ;;  %v4873_v4 = vor.u32 %v6296_v60, %v4872_v59  ;;  %v4877_v5 = vor.u32 %v6294_v61, %v4874_v63 }
  0x2d   :  { %441 = vmatpush.bf16.msra.mxu1 %v4909_v45  ;;  %v4882_v3 = vld [vmem:[#allocation7 + $0x58] sm:$0xf0]  ;;  %v4881_v6 = vor.u32 %v6297_v1, %v4880_v0  ;;  %v4856_v7 = vld [vmem:[#allocation7 + $0x20] sm:$0xf]  ;;  %v6292_v8 = vld [vmem:[#allocation7 + $0x2c] sm:$0xf0] }
  0x2e   :  { %490 = vmatpush.bf16.msra.mxu2 %v4913_v46  ;;  %539 = vmatpush.bf16.msra.mxu3 %v4917_v50  ;;  %v6290_v9 = vld [vmem:[#allocation7 + $0x24] sm:$0xf]  ;;  %v4885_v10 = vor.u32 %v6295_v2, %v4882_v3  ;;  %v4858_v11 = vld [vmem:[#allocation7 + $0x30] sm:$0xf0]  ;;  %v4864_v12 = vld [vmem:[#allocation7 + $0x28] sm:$0xf]  ;;  %v4857_v16 = vor.u32 %v6292_v8, %v4856_v7 }
  0x2f   :  { %v6293_v13 = vld [vmem:[#allocation7 + $0x34] sm:$0xf0]  ;;  %v6291_v14 = vld [vmem:[#allocation7 + $0x2c] sm:$0xf]  ;;  %v4866_v15 = vld [vmem:[#allocation7 + $0x38] sm:$0xf0]  ;;  %v4861_v18 = vor.u32 %v6290_v9, %v4858_v11 }
  0x30   :  { %393 = vmatpush.bf16.msra.mxu0 %v4889_v56  ;;  %v4840_v17 = vld [vmem:[#allocation7] sm:$0xf]  ;;  %v4865_v19 = vor.u32 %v6293_v13, %v4864_v12  ;;  %v6288_v20 = vld [vmem:[#allocation7 + $0xc] sm:$0xf0]  ;;  %v6286_v21 = vld [vmem:[#allocation7 + $0x4] sm:$0xf]  ;;  %v4869_v23 = vor.u32 %v6291_v14, %v4866_v15 }
  0x31   :  { %442 = vmatpush.bf16.msra.mxu1 %v4893_v57  ;;  %v4842_v22 = vld [vmem:[#allocation7 + $0x10] sm:$0xf0]  ;;  %v4848_v24 = vld [vmem:[#allocation7 + $0x8] sm:$0xf]  ;;  %v6289_v25 = vld [vmem:[#allocation7 + $0x14] sm:$0xf0]  ;;  %v4841_v30 = vor.u32 %v6288_v20, %v4840_v17 }
  0x32   :  { %491 = vmatpush.bf16.msra.mxu2 %v4897_v58  ;;  %540 = vmatpush.bf16.msra.mxu3 %v4901_v62  ;;  %v6287_v26 = vld [vmem:[#allocation7 + $0xc] sm:$0xf]  ;;  %v4850_v27 = vld [vmem:[#allocation7 + $0x18] sm:$0xf0]  ;;  %v5080_v28 = vld [vmem:[#allocation9 + $0xe0] sm:$0xf]  ;;  %v4845_v33 = vor.u32 %v6286_v21, %v4842_v22  ;;  %v4849_v34 = vor.u32 %v6289_v25, %v4848_v24 }
  0x33   :  { %v6348_v29 = vld [vmem:[#allocation9 + $0xec] sm:$0xf0]  ;;  %v6346_v31 = vld [vmem:[#allocation9 + $0xe4] sm:$0xf]  ;;  %v5082_v32 = vld [vmem:[#allocation9 + $0xf0] sm:$0xf0]  ;;  %v4853_v36 = vor.u32 %v6287_v26, %v4850_v27 }
  0x34   :  { %394 = vmatpush.bf16.msra.mxu0 %v4873_v4  ;;  %v6278_v35 = vld [vmem:[#allocation4] sm:$0xff]  ;;  %v5081_v37 = vor.u32 %v6348_v29, %v5080_v28  ;;  %v5088_v38 = vld [vmem:[#allocation9 + $0xe8] sm:$0xf]  ;;  %v6349_v39 = vld [vmem:[#allocation9 + $0xf4] sm:$0xf0]  ;;  %v5085_v41 = vor.u32 %v6346_v31, %v5082_v32  ;;  %s4778_s16 = sshll.u32 %s8306_s8, 4  ;;  %s4779_s16 = int_to_ptr.hbm [resolvable:$true] %s4778_s16 }
  0x35   :  { %443 = vmatpush.bf16.msra.mxu1 %v4877_v5  ;;  %v6347_v40 = vld [vmem:[#allocation9 + $0xec] sm:$0xf]  ;;  %v5090_v42 = vld [vmem:[#allocation9 + $0xf8] sm:$0xf0]  ;;  %v5064_v43 = vld [vmem:[#allocation9 + $0xc0] sm:$0xf]  ;;  %v5089_v47 = vor.u32 %v6349_v39, %v5088_v38 }
  0x36   :  { %492 = vmatpush.bf16.msra.mxu2 %v4881_v6  ;;  %541 = vmatpush.bf16.msra.mxu3 %v4885_v10  ;;  %v6344_v44 = vld [vmem:[#allocation9 + $0xcc] sm:$0xf0]  ;;  %v6342_v45 = vld [vmem:[#allocation9 + $0xc4] sm:$0xf]  ;;  %v5066_v46 = vld [vmem:[#allocation9 + $0xd0] sm:$0xf0]  ;;  %v5093_v48 = vor.u32 %v6347_v40, %v5090_v42 }
  0x37   :  { %v5065_v49 = vor.u32 %v6344_v44, %v5064_v43  ;;  %v5072_v50 = vld [vmem:[#allocation9 + $0xc8] sm:$0xf]  ;;  %v6345_v51 = vld [vmem:[#allocation9 + $0xd4] sm:$0xf0]  ;;  %v5069_v52 = vor.u32 %v6342_v45, %v5066_v46  ;;  %v6343_v53 = vld [vmem:[#allocation9 + $0xcc] sm:$0xf] }
  0x38   :  { %395 = vmatpush.bf16.msra.mxu0 %v4857_v16  ;;  %v5074_v54 = vld [vmem:[#allocation9 + $0xd8] sm:$0xf0]  ;;  %v5073_v55 = vor.u32 %v6345_v51, %v5072_v50  ;;  %v5048_v56 = vld [vmem:[#allocation9 + $0xa0] sm:$0xf]  ;;  %v6340_v57 = vld [vmem:[#allocation9 + $0xac] sm:$0xf0] }
  0x39   :  { %444 = vmatpush.bf16.msra.mxu1 %v4861_v18  ;;  %v6338_v58 = vld [vmem:[#allocation9 + $0xa4] sm:$0xf]  ;;  %v5077_v59 = vor.u32 %v6343_v53, %v5074_v54  ;;  %v5049_v60 = vor.u32 %v6340_v57, %v5048_v56  ;;  %v5050_v61 = vld [vmem:[#allocation9 + $0xb0] sm:$0xf0]  ;;  %v5056_v62 = vld [vmem:[#allocation9 + $0xa8] sm:$0xf] }
  0x3a   :  { %493 = vmatpush.bf16.msra.mxu2 %v4865_v19  ;;  %542 = vmatpush.bf16.msra.mxu3 %v4869_v23  ;;  %v6341_v63 = vld [vmem:[#allocation9 + $0xb4] sm:$0xf0]  ;;  %v5053_v0 = vor.u32 %v6338_v58, %v5050_v61  ;;  %v6339_v1 = vld [vmem:[#allocation9 + $0xac] sm:$0xf]  ;;  %v5058_v2 = vld [vmem:[#allocation9 + $0xb8] sm:$0xf0] }
  0x3b   :  { %v5057_v3 = vor.u32 %v6341_v63, %v5056_v62  ;;  %v5061_v4 = vor.u32 %v6339_v1, %v5058_v2  ;;  %v6279_v5 = vld [vmem:[#allocation4 + $0x8] sm:$0xff]  ;;  %v5032_v6 = vld [vmem:[#allocation9 + $0x80] sm:$0xf]  ;;  %v6336_v7 = vld [vmem:[#allocation9 + $0x8c] sm:$0xf0]  ;;  %s7237_s17 = smov 128  }
  0x3c   :  { %396 = vmatpush.bf16.msra.mxu0 %v4841_v30  ;;  %v6334_v8 = vld [vmem:[#allocation9 + $0x84] sm:$0xf]  ;;  %v5033_v9 = vor.u32 %v6336_v7, %v5032_v6  ;;  %v5034_v10 = vld [vmem:[#allocation9 + $0x90] sm:$0xf0]  ;;  %v5040_v11 = vld [vmem:[#allocation9 + $0x88] sm:$0xf] }
  0x3d   :  { %445 = vmatpush.bf16.msra.mxu1 %v4845_v33  ;;  %v6337_v12 = vld [vmem:[#allocation9 + $0x94] sm:$0xf0]  ;;  %v5037_v13 = vor.u32 %v6334_v8, %v5034_v10  ;;  %v6335_v15 = vld [vmem:[#allocation9 + $0x8c] sm:$0xf]  ;;  %v5042_v16 = vld [vmem:[#allocation9 + $0x98] sm:$0xf0] }
  0x3e   :  { %494 = vmatpush.bf16.msra.mxu2 %v4849_v34  ;;  %543 = vmatpush.bf16.msra.mxu3 %v4853_v36  ;;  %v5041_v14 = vor.u32 %v6337_v12, %v5040_v11  ;;  %v5045_v17 = vor.u32 %v6335_v15, %v5042_v16  ;;  %v6280_v18 = vld [vmem:[#allocation4 + $0x10] sm:$0xff]  ;;  %v5016_v19 = vld [vmem:[#allocation9 + $0x60] sm:$0xf]  ;;  %v6330_v21 = vld [vmem:[#allocation9 + $0x64] sm:$0xf]  ;;  %v8307_v10 = vmov 0  }
  0x3f   :  { %397 = vmatmul.bf16.vlgmr.msra.gmra.mxu0 %v6278_v35  ;;  %v6332_v20 = vld [vmem:[#allocation9 + $0x6c] sm:$0xf0]  ;;  %v5018_v23 = vld [vmem:[#allocation9 + $0x70] sm:$0xf0]  ;;  %v5024_v24 = vld [vmem:[#allocation9 + $0x68] sm:$0xf] }
  0x40   :  { %852 = vmatpush.bf16.msrb.mxu0 %v5081_v37  ;;  %446 = vmatmul.bf16.vlgmr.msra.gmra.mxu1 %v6278_v35  ;;  %v5017_v22 = vor.u32 %v6332_v20, %v5016_v19  ;;  %v6333_v25 = vld [vmem:[#allocation9 + $0x74] sm:$0xf0]  ;;  %v5021_v26 = vor.u32 %v6330_v21, %v5018_v23  ;;  %v6331_v28 = vld [vmem:[#allocation9 + $0x6c] sm:$0xf]  ;;  %v5026_v29 = vld [vmem:[#allocation9 + $0x78] sm:$0xf0] }
  0x41   :  { %866 = vmatpush.bf16.msrb.mxu1 %v5085_v41  ;;  %495 = vmatmul.bf16.vlgmr.msra.gmra.mxu2 %v6278_v35  ;;  %v5025_v27 = vor.u32 %v6333_v25, %v5024_v24  ;;  %v5029_v30 = vor.u32 %v6331_v28, %v5026_v29  ;;  %v6281_v31 = vld [vmem:[#allocation4 + $0x18] sm:$0xff]  ;;  %v5000_v32 = vld [vmem:[#allocation9 + $0x40] sm:$0xf]  ;;  %v6328_v33 = vld [vmem:[#allocation9 + $0x4c] sm:$0xf0]  ;;  %s7238_s1 = smov 8  }
  0x42   :  { %544 = vmatmul.bf16.vlgmr.msra.gmra.mxu3 %v6278_v35  ;;  %880 = vmatpush.bf16.msrb.mxu2 %v5089_v47  ;;  %v6326_v34 = vld [vmem:[#allocation9 + $0x44] sm:$0xf]  ;;  %v5001_v35 = vor.u32 %v6328_v33, %v5000_v32  ;;  %v5002_v36 = vld [vmem:[#allocation9 + $0x50] sm:$0xf0]  ;;  %v5008_v37 = vld [vmem:[#allocation9 + $0x48] sm:$0xf] }
  0x43   :  { %894 = vmatpush.bf16.msrb.mxu3 %v5093_v48  ;;  %v6329_v38 = vld [vmem:[#allocation9 + $0x54] sm:$0xf0]  ;;  %v5005_v39 = vor.u32 %v6326_v34, %v5002_v36  ;;  %v6327_v41 = vld [vmem:[#allocation9 + $0x4c] sm:$0xf]  ;;  %v5010_v42 = vld [vmem:[#allocation9 + $0x58] sm:$0xf0] }
  0x44   :  { %853 = vmatpush.bf16.msrb.mxu0 %v5065_v49  ;;  %v5009_v40 = vor.u32 %v6329_v38, %v5008_v37  ;;  %v5013_v43 = vor.u32 %v6327_v41, %v5010_v42  ;;  %v6282_v44 = vld [vmem:[#allocation4 + $0x20] sm:$0xff]  ;;  %v6324_v46 = vld [vmem:[#allocation9 + $0x2c] sm:$0xf0]  ;;  %v4986_v49 = vld [vmem:[#allocation9 + $0x30] sm:$0xf0]  ;;  %s7239_s8 = smov [#allocation15]  }
  0x45   :  { %867 = vmatpush.bf16.msrb.mxu1 %v5069_v52  ;;  %v4984_v45 = vld [vmem:[#allocation9 + $0x20] sm:$0xf]  ;;  %v6322_v47 = vld [vmem:[#allocation9 + $0x24] sm:$0xf]  ;;  %v4992_v50 = vld [vmem:[#allocation9 + $0x28] sm:$0xf] }
  0x46   :  { %881 = vmatpush.bf16.msrb.mxu2 %v5073_v55  ;;  %v4985_v48 = vor.u32 %v6324_v46, %v4984_v45  ;;  %v6325_v51 = vld [vmem:[#allocation9 + $0x34] sm:$0xf0]  ;;  %v4989_v52 = vor.u32 %v6322_v47, %v4986_v49  ;;  %v6323_v54 = vld [vmem:[#allocation9 + $0x2c] sm:$0xf]  ;;  %v4994_v55 = vld [vmem:[#allocation9 + $0x38] sm:$0xf0] }
  0x47   :  { %895 = vmatpush.bf16.msrb.mxu3 %v5077_v59  ;;  %v4993_v53 = vor.u32 %v6325_v51, %v4992_v50  ;;  %v4997_v56 = vor.u32 %v6323_v54, %v4994_v55  ;;  %v6283_v57 = vld [vmem:[#allocation4 + $0x28] sm:$0xff]  ;;  %v4968_v58 = vld [vmem:[#allocation9] sm:$0xf]  ;;  %v6320_v59 = vld [vmem:[#allocation9 + $0xc] sm:$0xf0]  ;;  %s4763_s18 = sshll.u32 %s7239_s8, 4  ;;  %s4764_s18 = int_to_ptr.vmem [resolvable:$true] %s4763_s18 }
  0x48   :  { %854 = vmatpush.bf16.msrb.mxu0 %v5049_v60  ;;  %v6318_v60 = vld [vmem:[#allocation9 + $0x4] sm:$0xf]  ;;  %v4969_v61 = vor.u32 %v6320_v59, %v4968_v58  ;;  %v4970_v62 = vld [vmem:[#allocation9 + $0x10] sm:$0xf0]  ;;  %v4976_v63 = vld [vmem:[#allocation9 + $0x8] sm:$0xf] }
  0x49   :  { %868 = vmatpush.bf16.msrb.mxu1 %v5053_v0  ;;  %v6321_v0 = vld [vmem:[#allocation9 + $0x14] sm:$0xf0]  ;;  %v4973_v1 = vor.u32 %v6318_v60, %v4970_v62  ;;  %v6284_v6 = vld [vmem:[#allocation4 + $0x30] sm:$0xff]  ;;  %s4765_s3 = sshll.u32 %s8305_s7, 4  ;;  %s4766_s3 = int_to_ptr.hbm [resolvable:$true] %s4765_s3 }
  0x4a   :  { %882 = vmatpush.bf16.msrb.mxu2 %v5057_v3  ;;  %v4977_v2 = vor.u32 %v6321_v0, %v4976_v63  ;;  %v6319_v3 = vld [vmem:[#allocation9 + $0xc] sm:$0xf]  ;;  %v6285_v7 = vld [vmem:[#allocation4 + $0x38] sm:$0xff]  ;;  %v5208_v63 = vld [vmem:[#allocation9 + $0xe0] sm:$0xf] }
  0x4b   :  { %896 = vmatpush.bf16.msrb.mxu3 %v5061_v4  ;;  %v4978_v4 = vld [vmem:[#allocation9 + $0x18] sm:$0xf0]  ;;  %v6380_v0 = vld [vmem:[#allocation9 + $0xec] sm:$0xf0] }
  0x4c   :  { %855 = vmatpush.bf16.msrb.mxu0 %v5033_v9 }
  0x4d   :  { %869 = vmatpush.bf16.msrb.mxu1 %v5037_v13 }
  0x4e   :  { %883 = vmatpush.bf16.msrb.mxu2 %v5041_v14 }
  0x4f   :  { %402 = vmatmul.bf16.gmra.mxu0 %v6279_v5  ;;  %897 = vmatpush.bf16.msrb.mxu3 %v5045_v17 }
  0x50   :  { %451 = vmatmul.bf16.gmra.mxu1 %v6279_v5  ;;  %856 = vmatpush.bf16.msrb.mxu0 %v5017_v22 }
  0x51   :  { %500 = vmatmul.bf16.gmra.mxu2 %v6279_v5  ;;  %870 = vmatpush.bf16.msrb.mxu1 %v5021_v26 }
  0x52   :  { %549 = vmatmul.bf16.gmra.mxu3 %v6279_v5  ;;  %884 = vmatpush.bf16.msrb.mxu2 %v5025_v27  ;;  %v4981_v5 = vor.u32 %v6319_v3, %v4978_v4  ;;  %v5210_v3 = vld [vmem:[#allocation9 + $0xf0] sm:$0xf0]  ;;  %v5216_v4 = vld [vmem:[#allocation9 + $0xe8] sm:$0xf] }
  0x53   :  { %898 = vmatpush.bf16.msrb.mxu3 %v5029_v30 }
  0x54   :  { %857 = vmatpush.bf16.msrb.mxu0 %v5001_v35 }
  0x55   :  { %871 = vmatpush.bf16.msrb.mxu1 %v5005_v39 }
  0x56   :  { %885 = vmatpush.bf16.msrb.mxu2 %v5009_v40 }
  0x57   :  { %899 = vmatpush.bf16.msrb.mxu3 %v5013_v43 }
  0x58   :  { %858 = vmatpush.bf16.msrb.mxu0 %v4985_v48 }
  0x59   :  { %872 = vmatpush.bf16.msrb.mxu1 %v4989_v52 }
  0x5a   :  { %886 = vmatpush.bf16.msrb.mxu2 %v4993_v53 }
  0x5b   :  { %900 = vmatpush.bf16.msrb.mxu3 %v4997_v56 }
  0x5c   :  { %859 = vmatpush.bf16.msrb.mxu0 %v4969_v61 }
  0x5d   :  { %873 = vmatpush.bf16.msrb.mxu1 %v4973_v1  ;;  %v6378_v1 = vld [vmem:[#allocation9 + $0xe4] sm:$0xf] }
  0x5e   :  { %887 = vmatpush.bf16.msrb.mxu2 %v4977_v2  ;;  %v5209_v2 = vor.u32 %v6380_v0, %v5208_v63  ;;  %v6376_v63 = vld [vmem:[#allocation9 + $0xcc] sm:$0xf0]  ;;  %v6374_v0 = vld [vmem:[#allocation9 + $0xc4] sm:$0xf] }
  0x5f   :  { %407 = vmatmul.bf16.gmra.mxu0 %v6280_v18  ;;  %901 = vmatpush.bf16.msrb.mxu3 %v4981_v5  ;;  %v6381_v5 = vld [vmem:[#allocation9 + $0xf4] sm:$0xf0] }
  0x60   :  { %456 = vmatmul.bf16.gmra.mxu1 %v6280_v18  ;;  %1165 = vmatpush.bf16.msra.mxu0 %v5209_v2 }
  0x61   :  { %505 = vmatmul.bf16.gmra.mxu2 %v6280_v18 }
  0x62   :  { %554 = vmatmul.bf16.gmra.mxu3 %v6280_v18 }
  0x6f   :  { %412 = vmatmul.bf16.gmra.mxu0 %v6281_v31 }
  0x70   :  { %461 = vmatmul.bf16.gmra.mxu1 %v6281_v31 }
  0x71   :  { %510 = vmatmul.bf16.gmra.mxu2 %v6281_v31 }
  0x72   :  { %559 = vmatmul.bf16.gmra.mxu3 %v6281_v31 }
  0x7f   :  { %417 = vmatmul.bf16.gmra.mxu0 %v6282_v44 }
  0x80   :  { %466 = vmatmul.bf16.gmra.mxu1 %v6282_v44 }
  0x81   :  { %515 = vmatmul.bf16.gmra.mxu2 %v6282_v44 }
  0x82   :  { %564 = vmatmul.bf16.gmra.mxu3 %v6282_v44 }
  0x8f   :  { %422 = vmatmul.bf16.gmra.mxu0 %v6283_v57 }
  0x90   :  { %471 = vmatmul.bf16.gmra.mxu1 %v6283_v57 }
  0x91   :  { %520 = vmatmul.bf16.gmra.mxu2 %v6283_v57 }
  0x92   :  { %569 = vmatmul.bf16.gmra.mxu3 %v6283_v57 }
  0x9f   :  { %427 = vmatmul.bf16.gmra.mxu0 %v6284_v6 }
  0xa0   :  { %476 = vmatmul.bf16.gmra.mxu1 %v6284_v6 }
  0xa1   :  { %525 = vmatmul.bf16.gmra.mxu2 %v6284_v6 }
  0xa2   :  { %574 = vmatmul.bf16.gmra.mxu3 %v6284_v6  ;;  %v5213_v6 = vor.u32 %v6378_v1, %v5210_v3  ;;  %v5194_v3 = vld [vmem:[#allocation9 + $0xd0] sm:$0xf0] }
  0xa3   :  { %v5197_v2 = vor.u32 %v6374_v0, %v5194_v3  ;;  %v7435_v0 = vld [vmem:[#allocation10] sm:$0xf] }
  0xa4   :  { %1179 = vmatpush.bf16.msra.mxu1 %v5213_v6 }
  0xa8   :  { %1180 = vmatpush.bf16.msra.mxu1 %v5197_v2  ;;  %v6366_v2 = vld [vmem:[#allocation9 + $0x84] sm:$0xf] }
  0xaf   :  { %432 = vmatmul.bf16.gmra.mxu0 %v6285_v7 }
  0xb0   :  { %481 = vmatmul.bf16.gmra.mxu1 %v6285_v7 }
  0xb1   :  { %530 = vmatmul.bf16.gmra.mxu2 %v6285_v7 }
  0xb2   :  { %579 = vmatmul.bf16.gmra.mxu3 %v6285_v7  ;;  %v5217_v7 = vor.u32 %v6381_v5, %v5216_v4  ;;  %v5200_v4 = vld [vmem:[#allocation9 + $0xc8] sm:$0xf]  ;;  %v6377_v5 = vld [vmem:[#allocation9 + $0xd4] sm:$0xf0] }
  0xb4   :  { %1193 = vmatpush.bf16.msra.mxu2 %v5217_v7  ;;  %v5176_v7 = vld [vmem:[#allocation9 + $0xa0] sm:$0xf] }
  0xbc   :  { %v7315_v8 = vpop.f32.mrf.mxu0 }
  0xbd   :  { %v7317_v9 = vpop.f32.mrf.mxu1 }
  0xbf   :  { %860 = vmatmul.bf16.vlgmr.msrb.gmra.mxu0 %v8307_v10 }
  0xc0   :  { %874 = vmatmul.bf16.vlgmr.msrb.gmra.mxu1 %v8307_v10 }
  0xc1   :  { %888 = vmatmul.bf16.vlgmr.msrb.gmra.mxu2 %v8307_v10 }
  0xc2   :  { %902 = vmatmul.bf16.vlgmr.msrb.gmra.mxu3 %v8307_v10  ;;  %v6379_v10 = vld [vmem:[#allocation9 + $0xec] sm:$0xf] }
  0xc4   :  { %v7323_v11 = vpop.f32.mrf.mxu2  ;;  %v7327_v13 = vpop.f32.mrf.mxu0 }
  0xc5   :  { %v7325_v12 = vpop.f32.mrf.mxu3  ;;  %v7329_v14 = vpop.f32.mrf.mxu1 }
  0xcc   :  { %v7331_v15 = vpop.f32.mrf.mxu2  ;;  %v7335_v17 = vpop.f32.mrf.mxu0 }
  0xcd   :  { %v7333_v16 = vpop.f32.mrf.mxu3  ;;  %v7337_v18 = vpop.f32.mrf.mxu1 }
  0xd4   :  { %v7339_v19 = vpop.f32.mrf.mxu2  ;;  %v7343_v21 = vpop.f32.mrf.mxu0 }
  0xd5   :  { %v7341_v20 = vpop.f32.mrf.mxu3  ;;  %v7345_v22 = vpop.f32.mrf.mxu1 }
  0xdc   :  { %v7347_v23 = vpop.f32.mrf.mxu2  ;;  %v7351_v25 = vpop.f32.mrf.mxu0 }
  0xdd   :  { %v7349_v24 = vpop.f32.mrf.mxu3  ;;  %v7353_v26 = vpop.f32.mrf.mxu1 }
  0xe4   :  { %v7355_v27 = vpop.f32.mrf.mxu2  ;;  %v7359_v29 = vpop.f32.mrf.mxu0 }
  0xe5   :  { %v7357_v28 = vpop.f32.mrf.mxu3  ;;  %v7361_v30 = vpop.f32.mrf.mxu1 }
  0xec   :  { %v7363_v31 = vpop.f32.mrf.mxu2  ;;  %v7367_v33 = vpop.f32.mrf.mxu0 }
  0xed   :  { %v7365_v32 = vpop.f32.mrf.mxu3  ;;  %v7369_v34 = vpop.f32.mrf.mxu1 }
  0xf4   :  { %v7371_v35 = vpop.f32.mrf.mxu2  ;;  %v7375_v37 = vpop.f32.mrf.mxu0 }
  0xf5   :  { %v7373_v36 = vpop.f32.mrf.mxu3  ;;  %v7377_v38 = vpop.f32.mrf.mxu1 }
  0xfc   :  { %v7379_v39 = vpop.f32.mrf.mxu2  ;;  %v7383_v41 = vpop.f32.mrf.mxu0 }
  0xfd   :  { %v7381_v40 = vpop.f32.mrf.mxu3  ;;  %v7385_v42 = vpop.f32.mrf.mxu1 }
 0x104   :  { %v7387_v43 = vpop.f32.mrf.mxu2  ;;  %v7391_v45 = vpop.f32.mrf.mxu0 }
 0x105   :  { %v7389_v44 = vpop.f32.mrf.mxu3  ;;  %v7393_v46 = vpop.f32.mrf.mxu1 }
 0x10c   :  { %v7395_v47 = vpop.f32.mrf.mxu2  ;;  %v7399_v49 = vpop.f32.mrf.mxu0 }
 0x10d   :  { %v7397_v48 = vpop.f32.mrf.mxu3  ;;  %8312 = vst [vmem:[#allocation25_spill] sm:$0xff] %v7399_v49  ;;  %v7401_v50 = vpop.f32.mrf.mxu1 }
 0x10e   :  { %8311 = vst [vmem:[#allocation24_spill] sm:$0xff] %v7397_v48 }
 0x10f   :  { %8313 = vst [vmem:[#allocation26_spill] sm:$0xff] %v7401_v50  ;;  %v6354_v50 = vld [vmem:[#allocation9 + $0x24] sm:$0xf] }
 0x114   :  { %v7403_v51 = vpop.f32.mrf.mxu2  ;;  %v7407_v53 = vpop.f32.mrf.mxu0 }
 0x115   :  { %8314 = vst [vmem:[#allocation27_spill] sm:$0xff] %v7403_v51  ;;  %v7405_v52 = vpop.f32.mrf.mxu3  ;;  %v7409_v54 = vpop.f32.mrf.mxu1 }
 0x116   :  { %8315 = vst [vmem:[#allocation28_spill] sm:$0xff] %v7405_v52  ;;  %v5186_v52 = vld [vmem:[#allocation9 + $0xb8] sm:$0xf0] }
 0x117   :  { %8316 = vst [vmem:[#allocation29_spill] sm:$0xff] %v7407_v53  ;;  %v6371_v53 = vld [vmem:[#allocation9 + $0xac] sm:$0xf] }
 0x118   :  { %8317 = vst [vmem:[#allocation30_spill] sm:$0xff] %v7409_v54  ;;  %v5184_v54 = vld [vmem:[#allocation9 + $0xa8] sm:$0xf] }
 0x11c   :  { %v7411_v55 = vpop.f32.mrf.mxu2  ;;  %v7415_v57 = vpop.f32.mrf.mxu0 }
 0x11d   :  { %8318 = vst [vmem:[#allocation31_spill] sm:$0xff] %v7411_v55  ;;  %v7413_v56 = vpop.f32.mrf.mxu3  ;;  %v7417_v58 = vpop.f32.mrf.mxu1  ;;  %v5178_v55 = vld [vmem:[#allocation9 + $0xb0] sm:$0xf0] }
 0x11e   :  { %8319 = vst [vmem:[#allocation32_spill] sm:$0xff] %v7413_v56 }
 0x11f   :  { %8320 = vst [vmem:[#allocation33_spill] sm:$0xff] %v7415_v57  ;;  %v5218_v57 = vld [vmem:[#allocation9 + $0xf8] sm:$0xf0] }
 0x120   :  { %8321 = vst [vmem:[#allocation34_spill] sm:$0xff] %v7417_v58  ;;  %v5221_v58 = vor.u32 %v6379_v10, %v5218_v57  ;;  %v5201_v10 = vor.u32 %v6377_v5, %v5200_v4  ;;  %v6375_v57 = vld [vmem:[#allocation9 + $0xcc] sm:$0xf]  ;;  %v6368_v5 = vld [vmem:[#allocation9 + $0x8c] sm:$0xf0] }
 0x122   :  { %1207 = vmatpush.bf16.msra.mxu3 %v5221_v58  ;;  %1194 = vmatpush.bf16.msra.mxu2 %v5201_v10  ;;  %v6370_v58 = vld [vmem:[#allocation9 + $0xa4] sm:$0xf] }
 0x124   :  { %v7419_v59 = vpop.f32.mrf.mxu2  ;;  %v7423_v61 = vpop.f32.mrf.mxu0 }
 0x125   :  { %8322 = vst [vmem:[#allocation35_spill] sm:$0xff] %v7419_v59  ;;  %v7421_v60 = vpop.f32.mrf.mxu3  ;;  %v7425_v62 = vpop.f32.mrf.mxu1 }
 0x126   :  { %8323 = vst [vmem:[#allocation36_spill] sm:$0xff] %v7421_v60  ;;  %v5192_v60 = vld [vmem:[#allocation9 + $0xc0] sm:$0xf] }
 0x127   :  { %8324 = vst [vmem:[#allocation37_spill] sm:$0xff] %v7423_v61  ;;  %v5193_v1 = vor.u32 %v6376_v63, %v5192_v60  ;;  %v5181_v60 = vor.u32 %v6370_v58, %v5178_v55  ;;  %v5162_v55 = vld [vmem:[#allocation9 + $0x90] sm:$0xf0]  ;;  %v7449_v58 = vperm.slane %v7435_v0, 1 }
 0x128   :  { %8325 = vst [vmem:[#allocation38_spill] sm:$0xff] %v7425_v62 }
 0x129   :  { %1166 = vmatpush.bf16.msra.mxu0 %v5193_v1  ;;  %1181 = vmatpush.bf16.msra.mxu1 %v5181_v60 }
 0x12c   :  { %v7427_v59 = vpop.f32.mrf.mxu2  ;;  %v7431_v62 = vpop.f32.mrf.mxu0 }
 0x12d   :  { %8326 = vst [vmem:[#allocation39_spill] sm:$0xff] %v7427_v59  ;;  %v7429_v61 = vpop.f32.mrf.mxu3  ;;  %v7433_v56 = vpop.f32.mrf.mxu1  ;;  %v5202_v59 = vld [vmem:[#allocation9 + $0xd8] sm:$0xf0] }
 0x12e   :  { %8327 = vst [vmem:[#allocation40_spill] sm:$0xff] %v7429_v61  ;;  %v5205_v6 = vor.u32 %v6375_v57, %v5202_v59  ;;  %v5189_v59 = vor.u32 %v6371_v53, %v5186_v52  ;;  %v6369_v57 = vld [vmem:[#allocation9 + $0x94] sm:$0xf0]  ;;  %v5170_v52 = vld [vmem:[#allocation9 + $0x98] sm:$0xf0]  ;;  %v7446_v53 = vperm.slane %v7435_v0, 0 }
 0x12f   :  { %8328 = vst [vmem:[#allocation41_spill] sm:$0xff] %v7431_v62  ;;  %v6372_v62 = vld [vmem:[#allocation9 + $0xac] sm:$0xf0] }
 0x130   :  { %8329 = vst [vmem:[#allocation42_spill] sm:$0xff] %v7433_v56  ;;  %1208 = vmatpush.bf16.msra.mxu3 %v5205_v6  ;;  %v5177_v61 = vor.u32 %v6372_v62, %v5176_v7  ;;  %v6373_v56 = vld [vmem:[#allocation9 + $0xb4] sm:$0xf0]  ;;  %v5160_v62 = vld [vmem:[#allocation9 + $0x80] sm:$0xf]  ;;  %v5165_v6 = vor.u32 %v6366_v2, %v5162_v55 }
 0x131   :  { %v5185_v63 = vor.u32 %v6373_v56, %v5184_v54  ;;  %v5161_v54 = vor.u32 %v6368_v5, %v5160_v62  ;;  %v5168_v56 = vld [vmem:[#allocation9 + $0x88] sm:$0xf]  ;;  %v6362_v62 = vld [vmem:[#allocation9 + $0x64] sm:$0xf]  ;;  %v6365_v55 = vld [vmem:[#allocation9 + $0x74] sm:$0xf0] }
 0x132   :  { %1167 = vmatpush.bf16.msra.mxu0 %v5177_v61  ;;  %v5169_v7 = vor.u32 %v6369_v57, %v5168_v56  ;;  %v6367_v61 = vld [vmem:[#allocation9 + $0x8c] sm:$0xf]  ;;  %1182 = vmatpush.bf16.msra.mxu1 %v5165_v6  ;;  %v5152_v2 = vld [vmem:[#allocation9 + $0x68] sm:$0xf]  ;;  %v448_v6 = vadd.f32 %v7317_v9, %v7449_v58 }
 0x133   :  { %1195 = vmatpush.bf16.msra.mxu2 %v5185_v63  ;;  %v5173_v60 = vor.u32 %v6367_v61, %v5170_v52  ;;  %v5144_v63 = vld [vmem:[#allocation9 + $0x60] sm:$0xf]  ;;  %v5153_v57 = vor.u32 %v6365_v55, %v5152_v2  ;;  %v5136_v2 = vld [vmem:[#allocation9 + $0x48] sm:$0xf]  ;;  %v6361_v55 = vld [vmem:[#allocation9 + $0x54] sm:$0xf0] }
 0x134   :  { %v7437_v3 = vpop.f32.mrf.mxu2  ;;  %v7441_v4 = vpop.f32.mrf.mxu0  ;;  %1209 = vmatpush.bf16.msra.mxu3 %v5189_v59  ;;  %v6364_v59 = vld [vmem:[#allocation9 + $0x6c] sm:$0xf0]  ;;  %v5128_v52 = vld [vmem:[#allocation9 + $0x40] sm:$0xf] }
 0x135   :  { %8330 = vst [vmem:[#allocation43_spill] sm:$0xff] %v7437_v3  ;;  %v7439_v1 = vpop.f32.mrf.mxu3  ;;  %v7443_v10 = vpop.f32.mrf.mxu1  ;;  %v5145_v5 = vor.u32 %v6364_v59, %v5144_v63  ;;  %v399_v3 = vadd.f32 %v7315_v8, %v7446_v53  ;;  %v5130_v8 = vld [vmem:[#allocation9 + $0x50] sm:$0xf0] }
 0x136   :  { %8331 = vst [vmem:[#allocation44_spill] sm:$0xff] %v7439_v1  ;;  %1168 = vmatpush.bf16.msra.mxu0 %v5161_v54  ;;  %v5154_v1 = vld [vmem:[#allocation9 + $0x78] sm:$0xf0] }
 0x137   :  { %8332 = vst [vmem:[#allocation45_spill] sm:$0xff] %v7441_v4  ;;  %1196 = vmatpush.bf16.msra.mxu2 %v5169_v7  ;;  %v6363_v4 = vld [vmem:[#allocation9 + $0x6c] sm:$0xf] }
 0x138   :  { %8333 = vst [vmem:[#allocation46_spill] sm:$0xff] %v7443_v10  ;;  %1210 = vmatpush.bf16.msra.mxu3 %v5173_v60  ;;  %v5146_v10 = vld [vmem:[#allocation9 + $0x70] sm:$0xf0]  ;;  %v5157_v54 = vor.u32 %v6363_v4, %v5154_v1  ;;  %v6358_v60 = vld [vmem:[#allocation9 + $0x44] sm:$0xf]  ;;  %v7460_v1 = vperm.slane %v7435_v0, 2 }
 0x139   :  { %v5149_v56 = vor.u32 %v6362_v62, %v5146_v10  ;;  %v6360_v10 = vld [vmem:[#allocation9 + $0x4c] sm:$0xf0]  ;;  %v5133_v9 = vor.u32 %v6358_v60, %v5130_v8  ;;  %v5120_v60 = vld [vmem:[#allocation9 + $0x28] sm:$0xf]  ;;  %v6357_v8 = vld [vmem:[#allocation9 + $0x34] sm:$0xf0] }
 0x13a   :  { %1169 = vmatpush.bf16.msra.mxu0 %v5145_v5  ;;  %v5129_v62 = vor.u32 %v6360_v10, %v5128_v52  ;;  %v5137_v5 = vor.u32 %v6361_v55, %v5136_v2  ;;  %v6356_v52 = vld [vmem:[#allocation9 + $0x2c] sm:$0xf0]  ;;  %v5121_v55 = vor.u32 %v6357_v8, %v5120_v60  ;;  %v6353_v60 = vld [vmem:[#allocation9 + $0x14] sm:$0xf0] }
 0x13b   :  { %1183 = vmatpush.bf16.msra.mxu1 %v5149_v56  ;;  %1197 = vmatpush.bf16.msra.mxu2 %v5153_v57  ;;  %v7463_v56 = vperm.slane %v7435_v0, 3 }
 0x13c   :  { %v7453_v51 = vpop.f32.mrf.mxu2  ;;  %v861_v61 = vpop.f32.mrf.mxu0  ;;  %1211 = vmatpush.bf16.msra.mxu3 %v5157_v54  ;;  %v5112_v54 = vld [vmem:[#allocation9 + $0x20] sm:$0xf] }
 0x13d   :  { %8334 = vst [vmem:[#allocation47_spill] sm:$0xff] %v7453_v51  ;;  %v7457_v7 = vpop.f32.mrf.mxu3  ;;  %v908_v63 = vadd.f32 %v861_v61, %v399_v3  ;;  %v875_v59 = vpop.f32.mrf.mxu1  ;;  %v5138_v51 = vld [vmem:[#allocation9 + $0x58] sm:$0xf0]  ;;  %v5113_v10 = vor.u32 %v6356_v52, %v5112_v54 }
 0x13e   :  { %8335 = vst [vmem:[#allocation48_spill] sm:$0xff] %v7457_v7  ;;  %v909_v4 = vadd.f32 %v875_v59, %v448_v6  ;;  %v6359_v7 = vld [vmem:[#allocation9 + $0x4c] sm:$0xf]  ;;  %1170 = vmatpush.bf16.msra.mxu0 %v5129_v62  ;;  %v5114_v6 = vld [vmem:[#allocation9 + $0x30] sm:$0xf0]  ;;  %v497_v59 = vadd.f32 %v7323_v11, %v7460_v1 }
 0x13f   :  { %v916_v57 = vmul.f32 0.5, %v908_v63  ;;  %v5141_v3 = vor.u32 %v6359_v7, %v5138_v51  ;;  %1184 = vmatpush.bf16.msra.mxu1 %v5133_v9  ;;  %1198 = vmatpush.bf16.msra.mxu2 %v5137_v5  ;;  %v5117_v0 = vor.u32 %v6354_v50, %v5114_v6  ;;  %v6355_v63 = vld [vmem:[#allocation9 + $0x2c] sm:$0xf]  ;;  %v5122_v62 = vld [vmem:[#allocation9 + $0x38] sm:$0xf0]  ;;  %v546_v51 = vadd.f32 %v7325_v12, %v7463_v56 }
 0x140   :  { %v924_v61 = vmul.f32 0.5, %v909_v4  ;;  %v401_v7 = vadd.f32 %v7327_v13, %v7446_v53  ;;  %v5125_v4 = vor.u32 %v6355_v63, %v5122_v62  ;;  %v450_v9 = vadd.f32 %v7329_v14, %v7449_v58  ;;  %v5096_v50 = vld [vmem:[#allocation9] sm:$0xf]  ;;  %v5098_v6 = vld [vmem:[#allocation9 + $0x10] sm:$0xf0] }
 0x141   :  { %6701 = vtanh.f32 %v916_v57  ;;  %1212 = vmatpush.bf16.msra.mxu3 %v5141_v3  ;;  %v6352_v3 = vld [vmem:[#allocation9 + $0xc] sm:$0xf0]  ;;  %v5106_v62 = vld [vmem:[#allocation9 + $0x18] sm:$0xf0] }
 0x142   :  { %6703 = vtanh.f32 %v924_v61  ;;  %1171 = vmatpush.bf16.msra.mxu0 %v5113_v10  ;;  %v6350_v61 = vld [vmem:[#allocation9 + $0x4] sm:$0xf]  ;;  %v5097_v13 = vor.u32 %v6352_v3, %v5096_v50  ;;  %v5104_v10 = vld [vmem:[#allocation9 + $0x8] sm:$0xf] }
 0x143   :  { %1185 = vmatpush.bf16.msra.mxu1 %v5117_v0  ;;  %1199 = vmatpush.bf16.msra.mxu2 %v5121_v55  ;;  %v5101_v63 = vor.u32 %v6350_v61, %v5098_v6  ;;  %v5105_v14 = vor.u32 %v6353_v60, %v5104_v10 }
 0x144   :  { %v889_v2 = vpop.f32.mrf.mxu2  ;;  %v863_v57 = vpop.f32.mrf.mxu0 }
 0x145   :  { %v910_v5 = vadd.f32 %v889_v2, %v497_v59  ;;  %v903_v11 = vpop.f32.mrf.mxu3  ;;  %v912_v52 = vadd.f32 %v863_v57, %v401_v7  ;;  %v877_v12 = vpop.f32.mrf.mxu1  ;;  %1213 = vmatpush.bf16.msra.mxu3 %v5125_v4  ;;  %v6351_v59 = vld [vmem:[#allocation9 + $0xc] sm:$0xf] }
 0x146   :  { %v911_v54 = vadd.f32 %v903_v11, %v546_v51  ;;  %v913_v8 = vadd.f32 %v877_v12, %v450_v9  ;;  %1172 = vmatpush.bf16.msra.mxu0 %v5097_v13  ;;  %v5109_v49 = vor.u32 %v6351_v59, %v5106_v62  ;;  %v548_v11 = vadd.f32 %v7333_v16, %v7463_v56 }
 0x147   :  { %6705 = vtanh.f32 %v910_v5  ;;  %v6702_v2 = vpop.eup %6701  ;;  %v917_v0 = vmul.f32 0.5, %v912_v52  ;;  %1186 = vmatpush.bf16.msra.mxu1 %v5101_v63  ;;  %1200 = vmatpush.bf16.msra.mxu2 %v5105_v14  ;;  %v499_v5 = vadd.f32 %v7331_v15, %v7460_v1 }
 0x148   :  { %v6704_v48 = vpop.eup %6703  ;;  %v920_v51 = vmul.f32 0.5, %v6702_v2  ;;  %v925_v7 = vmul.f32 0.5, %v913_v8  ;;  %v934_v4 = vmul.f32 0.5, %v911_v54 }
 0x149   :  { %v928_v55 = vmul.f32 0.5, %v6704_v48  ;;  %1214 = vmatpush.bf16.msra.mxu3 %v5109_v49  ;;  %6707 = vtanh.f32 %v917_v0 }
 0x14a   :  { %v922_v9 = vadd.f32 0.5, %v920_v51  ;;  %6709 = vtanh.f32 %v925_v7 }
 0x14b   :  { %v930_v57 = vadd.f32 0.5, %v928_v55  ;;  %6711 = vtanh.f32 %v934_v4 }
 0x14c   :  { %v891_v50 = vpop.f32.mrf.mxu2 }
 0x14d   :  { %v6706_v3 = vpop.eup %6705  ;;  %v914_v61 = vadd.f32 %v891_v50, %v499_v5  ;;  %v905_v52 = vpop.f32.mrf.mxu3  ;;  %v942_v12 = vmul.f32 0.0, %v930_v57 }
 0x14e   :  { %v944_v13 = vmul.f32 %v6706_v3, %v922_v9  ;;  %v915_v48 = vadd.f32 %v905_v52, %v548_v11 }
 0x14f   :  { %6713 = vtanh.f32 %v914_v61  ;;  %v6708_v15 = vpop.eup %6707 }
 0x150   :  { %v7477_v49 = vadd.f32 %v944_v13, %v942_v12  ;;  %v935_v54 = vmul.f32 0.5, %v915_v48  ;;  %v6710_v6 = vpop.eup %6709  ;;  %v921_v10 = vmul.f32 0.5, %v6708_v15  ;;  %v5336_v48 = vld [vmem:[#allocation9 + $0xe0] sm:$0xf]  ;;  %v6410_v15 = vld [vmem:[#allocation9 + $0xe4] sm:$0xf] }
 0x151   :  { %v929_v60 = vmul.f32 0.5, %v6710_v6  ;;  %v6712_v16 = vpop.eup %6711 }
 0x152   :  { %6715 = vtanh.f32 %v935_v54  ;;  %v923_v8 = vadd.f32 0.5, %v921_v10  ;;  %v938_v2 = vmul.f32 0.5, %v6712_v16  ;;  %v6412_v54 = vld [vmem:[#allocation9 + $0xec] sm:$0xf0]  ;;  %v5338_v10 = vld [vmem:[#allocation9 + $0xf0] sm:$0xf0] }
 0x153   :  { %6717 = vtanh.f32 %v7477_v49  ;;  %v931_v14 = vadd.f32 0.5, %v929_v60  ;;  %v5337_v6 = vor.u32 %v6412_v54, %v5336_v48  ;;  %v5344_v60 = vld [vmem:[#allocation9 + $0xe8] sm:$0xf]  ;;  %v6413_v16 = vld [vmem:[#allocation9 + $0xf4] sm:$0xf0] }
 0x154   :  { %v940_v55 = vadd.f32 0.5, %v938_v2  ;;  %v5320_v2 = vld [vmem:[#allocation9 + $0xc0] sm:$0xf]  ;;  %v5306_v54 = vld [vmem:[#allocation9 + $0xb0] sm:$0xf0] }
 0x155   :  { %v6714_v63 = vpop.eup %6713  ;;  %v943_v62 = vmul.f32 0.0, %v931_v14  ;;  %v6411_v14 = vld [vmem:[#allocation9 + $0xec] sm:$0xf]  ;;  %1479 = vmatpush.bf16.msrb.mxu0 %v5337_v6  ;;  %v6405_v6 = vld [vmem:[#allocation9 + $0xb4] sm:$0xf0] }
 0x156   :  { %v945_v59 = vmul.f32 %v6714_v63, %v923_v8  ;;  %v5341_v8 = vor.u32 %v6410_v15, %v5338_v10  ;;  %v5345_v63 = vor.u32 %v6413_v16, %v5344_v60  ;;  %v5312_v15 = vld [vmem:[#allocation9 + $0xa8] sm:$0xf]  ;;  %v6403_v16 = vld [vmem:[#allocation9 + $0xac] sm:$0xf] }
 0x157   :  { %v5313_v60 = vor.u32 %v6405_v6, %v5312_v15  ;;  %v6395_v6 = vld [vmem:[#allocation9 + $0x6c] sm:$0xf] }
 0x158   :  { %v6716_v0 = vpop.eup %6715  ;;  %v7480_v51 = vadd.f32 %v945_v59, %v943_v62  ;;  %v5346_v59 = vld [vmem:[#allocation9 + $0xf8] sm:$0xf0]  ;;  %1493 = vmatpush.bf16.msrb.mxu1 %v5341_v8  ;;  %1507 = vmatpush.bf16.msrb.mxu2 %v5345_v63 }
 0x159   :  { %v6718_v7 = vpop.eup %6717  ;;  %v939_v4 = vmul.f32 0.5, %v6716_v0  ;;  %v5349_v62 = vor.u32 %v6411_v14, %v5346_v59  ;;  %v6408_v0 = vld [vmem:[#allocation9 + $0xcc] sm:$0xf0]  ;;  %v5314_v8 = vld [vmem:[#allocation9 + $0xb8] sm:$0xf0] }
 0x15a   :  { %6719 = vtanh.f32 %v7480_v51  ;;  %v950_v5 = vmul.f32 %v6718_v7, %v940_v55  ;;  %v6406_v7 = vld [vmem:[#allocation9 + $0xc4] sm:$0xf]  ;;  %v5321_v55 = vor.u32 %v6408_v0, %v5320_v2  ;;  %v5317_v63 = vor.u32 %v6403_v16, %v5314_v8  ;;  %v5288_v14 = vld [vmem:[#allocation9 + $0x80] sm:$0xf]  ;;  %v6400_v59 = vld [vmem:[#allocation9 + $0x8c] sm:$0xf0] }
 0x15b   :  { %v941_v9 = vadd.f32 0.5, %v939_v4  ;;  %1521 = vmatpush.bf16.msrb.mxu3 %v5349_v62  ;;  %v5322_v4 = vld [vmem:[#allocation9 + $0xd0] sm:$0xf0]  ;;  %v6398_v62 = vld [vmem:[#allocation9 + $0x84] sm:$0xf]  ;;  %v5289_v2 = vor.u32 %v6400_v59, %v5288_v14  ;;  %v404_v14 = vadd.f32 %v7335_v17, %v7446_v53  ;;  %v453_v59 = vadd.f32 %v7337_v18, %v7449_v58 }
 0x15c   :  { %v952_v57 = vpack.c.bf16 %v950_v5, %v950_v5  ;;  %1480 = vmatpush.bf16.msrb.mxu0 %v5321_v55  ;;  %v5290_v0 = vld [vmem:[#allocation9 + $0x90] sm:$0xf0]  ;;  %v6401_v55 = vld [vmem:[#allocation9 + $0x94] sm:$0xf0]  ;;  %v5256_v16 = vld [vmem:[#allocation9 + $0x40] sm:$0xf] }
 0x15d   :  { %v6392_v8 = vld [vmem:[#allocation9 + $0x4c] sm:$0xf0]  ;;  %v5240_v17 = vld [vmem:[#allocation9 + $0x20] sm:$0xf]  ;;  %v6386_v18 = vld [vmem:[#allocation9 + $0x24] sm:$0xf] }
 0x15e   :  { %v1001_v52 = vunpack.c.l.b16 %v952_v57 }
 0x160   :  { %v6720_v11 = vpop.eup %6719 }
 0x161   :  { %v951_v50 = vmul.f32 %v6720_v11, %v941_v9  ;;  %v6409_v9 = vld [vmem:[#allocation9 + $0xd4] sm:$0xf0]  ;;  %v5325_v11 = vor.u32 %v6406_v7, %v5322_v4  ;;  %v5296_v7 = vld [vmem:[#allocation9 + $0x88] sm:$0xf]  ;;  %v5293_v4 = vor.u32 %v6398_v62, %v5290_v0  ;;  %v5257_v62 = vor.u32 %v6392_v8, %v5256_v16  ;;  %v5250_v16 = vld [vmem:[#allocation9 + $0x38] sm:$0xf0] }
 0x162   :  { %v5264_v0 = vld [vmem:[#allocation9 + $0x48] sm:$0xf] }
 0x163   :  { %v953_v3 = vpack.c.bf16 %v951_v50, %v951_v50  ;;  %v6649_v61 = vpack.c.bf16 %v951_v50, %v950_v5  ;;  %v5328_v5 = vld [vmem:[#allocation9 + $0xc8] sm:$0xf]  ;;  %v6407_v50 = vld [vmem:[#allocation9 + $0xcc] sm:$0xf]  ;;  %1494 = vmatpush.bf16.msrb.mxu1 %v5325_v11  ;;  %v5298_v11 = vld [vmem:[#allocation9 + $0x98] sm:$0xf0] }
 0x164   :  { %v5329_v57 = vor.u32 %v6409_v9, %v5328_v5  ;;  %v5297_v5 = vor.u32 %v6401_v55, %v5296_v7  ;;  %v6399_v9 = vld [vmem:[#allocation9 + $0x8c] sm:$0xf]  ;;  %v6393_v7 = vld [vmem:[#allocation9 + $0x54] sm:$0xf0] }
 0x165   :  { %6650 = vst [vmem:[#allocation3 + $0x30] sm:$0xff] %v6649_v61   ;;  %v1002_v12 = vunpack.c.l.b16 %v953_v3  ;;  %v5330_v3 = vld [vmem:[#allocation9 + $0xd8] sm:$0xf0] }
 0x166   :  { %v5333_v61 = vor.u32 %v6407_v50, %v5330_v3  ;;  %1508 = vmatpush.bf16.msrb.mxu2 %v5329_v57  ;;  %v5301_v57 = vor.u32 %v6399_v9, %v5298_v11  ;;  %v5272_v50 = vld [vmem:[#allocation9 + $0x60] sm:$0xf]  ;;  %v6396_v3 = vld [vmem:[#allocation9 + $0x6c] sm:$0xf0]  ;;  %v5265_v9 = vor.u32 %v6393_v7, %v5264_v0  ;;  %v6391_v11 = vld [vmem:[#allocation9 + $0x4c] sm:$0xf]  ;;  %v406_v7 = vadd.f32 %v7343_v21, %v7446_v53 }
 0x167   :  { %v1003_v13 = vpack.c.b16 %v1002_v12, %v1001_v52  ;;  %v5304_v52 = vld [vmem:[#allocation9 + $0xa0] sm:$0xf]  ;;  %v6404_v12 = vld [vmem:[#allocation9 + $0xac] sm:$0xf0]  ;;  %v6382_v0 = vld [vmem:[#allocation9 + $0x4] sm:$0xf] }
 0x168   :  { %1522 = vmatpush.bf16.msrb.mxu3 %v5333_v61  ;;  %v5305_v48 = vor.u32 %v6404_v12, %v5304_v52  ;;  %v6394_v61 = vld [vmem:[#allocation9 + $0x64] sm:$0xf]  ;;  %v5273_v52 = vor.u32 %v6396_v3, %v5272_v50  ;;  %v5274_v12 = vld [vmem:[#allocation9 + $0x70] sm:$0xf0] }
 0x169   :  { %1173 = vmatmul.bf16.vlgmr.msra.gmra.mxu0 %v1003_v13  ;;  %1187 = vmatmul.bf16.vlgmr.msra.gmra.mxu1 %v1003_v13 }
 0x16a   :  { %1201 = vmatmul.bf16.vlgmr.msra.gmra.mxu2 %v1003_v13  ;;  %1215 = vmatmul.bf16.vlgmr.msra.gmra.mxu3 %v1003_v13  ;;  %v6402_v13 = vld [vmem:[#allocation9 + $0xa4] sm:$0xf] }
 0x16b   :  { %v5309_v10 = vor.u32 %v6402_v13, %v5306_v54  ;;  %1481 = vmatpush.bf16.msrb.mxu0 %v5305_v48  ;;  %1509 = vmatpush.bf16.msrb.mxu2 %v5313_v60  ;;  %v5280_v13 = vld [vmem:[#allocation9 + $0x68] sm:$0xf]  ;;  %v6397_v48 = vld [vmem:[#allocation9 + $0x74] sm:$0xf0]  ;;  %v5277_v54 = vor.u32 %v6394_v61, %v5274_v12 }
 0x16c   :  { %1523 = vmatpush.bf16.msrb.mxu3 %v5317_v63  ;;  %v5281_v15 = vor.u32 %v6397_v48, %v5280_v13  ;;  %v6390_v63 = vld [vmem:[#allocation9 + $0x44] sm:$0xf] }
 0x16d   :  { %1495 = vmatpush.bf16.msrb.mxu1 %v5309_v10  ;;  %v5282_v10 = vld [vmem:[#allocation9 + $0x78] sm:$0xf0] }
 0x16e   :  { %v5285_v60 = vor.u32 %v6395_v6, %v5282_v10  ;;  %v6389_v10 = vld [vmem:[#allocation9 + $0x34] sm:$0xf0] }
 0x16f   :  { %1482 = vmatpush.bf16.msrb.mxu0 %v5289_v2  ;;  %1510 = vmatpush.bf16.msrb.mxu2 %v5297_v5  ;;  %v5258_v2 = vld [vmem:[#allocation9 + $0x50] sm:$0xf0] }
 0x170   :  { %1524 = vmatpush.bf16.msrb.mxu3 %v5301_v57  ;;  %v5261_v5 = vor.u32 %v6390_v63, %v5258_v2  ;;  %v5266_v57 = vld [vmem:[#allocation9 + $0x58] sm:$0xf0]  ;;  %v6384_v2 = vld [vmem:[#allocation9 + $0xc] sm:$0xf0] }
 0x171   :  { %1496 = vmatpush.bf16.msrb.mxu1 %v5293_v4  ;;  %v5269_v61 = vor.u32 %v6391_v11, %v5266_v57  ;;  %v5232_v11 = vld [vmem:[#allocation9 + $0x8] sm:$0xf]  ;;  %v6385_v57 = vld [vmem:[#allocation9 + $0x14] sm:$0xf0] }
 0x173   :  { %1483 = vmatpush.bf16.msrb.mxu0 %v5273_v52  ;;  %1511 = vmatpush.bf16.msrb.mxu2 %v5281_v15  ;;  %v6388_v52 = vld [vmem:[#allocation9 + $0x2c] sm:$0xf0]  ;;  %v5248_v15 = vld [vmem:[#allocation9 + $0x28] sm:$0xf] }
 0x174   :  { %1525 = vmatpush.bf16.msrb.mxu3 %v5285_v60  ;;  %v5241_v48 = vor.u32 %v6388_v52, %v5240_v17  ;;  %v6387_v60 = vld [vmem:[#allocation9 + $0x2c] sm:$0xf]  ;;  %v5249_v8 = vor.u32 %v6389_v10, %v5248_v15  ;;  %v5233_v17 = vor.u32 %v6385_v57, %v5232_v11 }
 0x175   :  { %1497 = vmatpush.bf16.msrb.mxu1 %v5277_v54  ;;  %v5242_v54 = vld [vmem:[#allocation9 + $0x30] sm:$0xf0]  ;;  %v5253_v63 = vor.u32 %v6387_v60, %v5250_v16  ;;  %v6383_v52 = vld [vmem:[#allocation9 + $0xc] sm:$0xf] }
 0x176   :  { %v5245_v6 = vor.u32 %v6386_v18, %v5242_v54  ;;  %v5234_v18 = vld [vmem:[#allocation9 + $0x18] sm:$0xf0] }
 0x177   :  { %1484 = vmatpush.bf16.msrb.mxu0 %v5257_v62  ;;  %1512 = vmatpush.bf16.msrb.mxu2 %v5265_v9  ;;  %v5224_v62 = vld [vmem:[#allocation9] sm:$0xf] }
 0x178   :  { %1526 = vmatpush.bf16.msrb.mxu3 %v5269_v61  ;;  %v5225_v9 = vor.u32 %v6384_v2, %v5224_v62 }
 0x179   :  { %1498 = vmatpush.bf16.msrb.mxu1 %v5261_v5 }
 0x17b   :  { %1485 = vmatpush.bf16.msrb.mxu0 %v5241_v48  ;;  %1513 = vmatpush.bf16.msrb.mxu2 %v5249_v8  ;;  %v504_v8 = vadd.f32 %v7347_v23, %v7460_v1 }
 0x17c   :  { %1527 = vmatpush.bf16.msrb.mxu3 %v5253_v63  ;;  %v553_v63 = vadd.f32 %v7349_v24, %v7463_v56 }
 0x17d   :  { %1499 = vmatpush.bf16.msrb.mxu1 %v5245_v6 }
 0x17f   :  { %1486 = vmatpush.bf16.msrb.mxu0 %v5225_v9  ;;  %1514 = vmatpush.bf16.msrb.mxu2 %v5233_v17 }
 0x1e6   :  { %v1174_v55 = vpop.f32.mrf.mxu0  ;;  %v1188_v4 = vpop.f32.mrf.mxu1 }
 0x1e7   :  { %v1221_v50 = vadd.f32 %v1174_v55, %v404_v14  ;;  %v1222_v3 = vadd.f32 %v1188_v4, %v453_v59  ;;  %v502_v14 = vadd.f32 %v7339_v19, %v7460_v1  ;;  %v551_v59 = vadd.f32 %v7341_v20, %v7463_v56  ;;  %v5226_v19 = vld [vmem:[#allocation9 + $0x10] sm:$0xf0] }
 0x1e8   :  { %v455_v55 = vadd.f32 %v7345_v22, %v7449_v58  ;;  %v5229_v61 = vor.u32 %v6382_v0, %v5226_v19  ;;  %v5237_v22 = vor.u32 %v6383_v52, %v5234_v18 }
 0x1e9   :  { %v1229_v12 = vmul.f32 0.5, %v1221_v50  ;;  %v1237_v13 = vmul.f32 0.5, %v1222_v3 }
 0x1ea   :  { %1500 = vmatpush.bf16.msrb.mxu1 %v5229_v61  ;;  %1528 = vmatpush.bf16.msrb.mxu3 %v5237_v22 }
 0x1eb   :  { %6721 = vtanh.f32 %v1229_v12 }
 0x1ec   :  { %6723 = vtanh.f32 %v1237_v13 }
 0x1ed   :  { %v1202_v4 = vpop.f32.mrf.mxu2  ;;  %v1216_v5 = vpop.f32.mrf.mxu3 }
 0x1ee   :  { %v1223_v20 = vadd.f32 %v1202_v4, %v502_v14  ;;  %v1176_v50 = vpop.f32.mrf.mxu0  ;;  %v1190_v3 = vpop.f32.mrf.mxu1  ;;  %v1224_v12 = vadd.f32 %v1216_v5, %v551_v59 }
 0x1ef   :  { %v1225_v21 = vadd.f32 %v1176_v50, %v406_v7  ;;  %v1226_v13 = vadd.f32 %v1190_v3, %v455_v55 }
 0x1f0   :  { %6725 = vtanh.f32 %v1223_v20  ;;  %v1247_v16 = vmul.f32 0.5, %v1224_v12 }
 0x1f1   :  { %v6722_v48 = vpop.eup %6721  ;;  %v1230_v54 = vmul.f32 0.5, %v1225_v21  ;;  %v1238_v15 = vmul.f32 0.5, %v1226_v13 }
 0x1f2   :  { %v6724_v6 = vpop.eup %6723  ;;  %v1233_v10 = vmul.f32 0.5, %v6722_v48 }
 0x1f3   :  { %v1241_v60 = vmul.f32 0.5, %v6724_v6  ;;  %6727 = vtanh.f32 %v1230_v54 }
 0x1f4   :  { %v1235_v14 = vadd.f32 0.5, %v1233_v10  ;;  %6729 = vtanh.f32 %v1238_v15 }
 0x1f5   :  { %v1243_v59 = vadd.f32 0.5, %v1241_v60  ;;  %v1204_v62 = vpop.f32.mrf.mxu2  ;;  %v1218_v2 = vpop.f32.mrf.mxu3  ;;  %6731 = vtanh.f32 %v1247_v16 }
 0x1f6   :  { %v6726_v0 = vpop.eup %6725  ;;  %v1227_v7 = vadd.f32 %v1204_v62, %v504_v8  ;;  %v1228_v55 = vadd.f32 %v1218_v2, %v553_v63  ;;  %v6442_v62 = vld [vmem:[#allocation9 + $0xe4] sm:$0xf] }
 0x1f7   :  { %v1255_v4 = vmul.f32 %v1243_v59, %v7477_v49  ;;  %v1257_v5 = vmul.f32 %v6726_v0, %v1235_v14  ;;  %v5464_v14 = vld [vmem:[#allocation9 + $0xe0] sm:$0xf]  ;;  %v6444_v59 = vld [vmem:[#allocation9 + $0xec] sm:$0xf0]  ;;  %v5466_v0 = vld [vmem:[#allocation9 + $0xf0] sm:$0xf0] }
 0x1f8   :  { %6733 = vtanh.f32 %v1227_v7  ;;  %v1248_v9 = vmul.f32 0.5, %v1228_v55  ;;  %v5465_v2 = vor.u32 %v6444_v59, %v5464_v14  ;;  %v5472_v7 = vld [vmem:[#allocation9 + $0xe8] sm:$0xf]  ;;  %v6445_v55 = vld [vmem:[#allocation9 + $0xf4] sm:$0xf0] }
 0x1f9   :  { %v6728_v19 = vpop.eup %6727  ;;  %v7500_v11 = vadd.f32 %v1257_v5, %v1255_v4  ;;  %v5469_v4 = vor.u32 %v6442_v62, %v5466_v0  ;;  %v5473_v5 = vor.u32 %v6445_v55, %v5472_v7  ;;  %v5416_v59 = vld [vmem:[#allocation9 + $0x80] sm:$0xf]  ;;  %v6432_v62 = vld [vmem:[#allocation9 + $0x8c] sm:$0xf0]  ;;  %v5418_v7 = vld [vmem:[#allocation9 + $0x90] sm:$0xf0] }
 0x1fa   :  { %v6730_v23 = vpop.eup %6729  ;;  %v1234_v57 = vmul.f32 0.5, %v6728_v19  ;;  %6735 = vtanh.f32 %v1248_v9  ;;  %v6443_v9 = vld [vmem:[#allocation9 + $0xec] sm:$0xf]  ;;  %v5474_v19 = vld [vmem:[#allocation9 + $0xf8] sm:$0xf0]  ;;  %1793 = vmatpush.bf16.msra.mxu0 %v5465_v2  ;;  %v5417_v0 = vor.u32 %v6432_v62, %v5416_v59 }
 0x1fb   :  { %v1242_v24 = vmul.f32 0.5, %v6730_v23  ;;  %v6732_v50 = vpop.eup %6731  ;;  %6737 = vtanh.f32 %v7500_v11  ;;  %v5477_v23 = vor.u32 %v6443_v9, %v5474_v19  ;;  %1807 = vmatpush.bf16.msra.mxu1 %v5469_v4  ;;  %1821 = vmatpush.bf16.msra.mxu2 %v5473_v5  ;;  %v6430_v2 = vld [vmem:[#allocation9 + $0x84] sm:$0xf]  ;;  %v5424_v55 = vld [vmem:[#allocation9 + $0x88] sm:$0xf] }
 0x1fc   :  { %v1236_v20 = vadd.f32 0.5, %v1234_v57  ;;  %v1251_v52 = vmul.f32 0.5, %v6732_v50  ;;  %v5448_v57 = vld [vmem:[#allocation9 + $0xc0] sm:$0xf]  ;;  %v6433_v4 = vld [vmem:[#allocation9 + $0x94] sm:$0xf0]  ;;  %v5421_v5 = vor.u32 %v6430_v2, %v5418_v7 }
 0x1fd   :  { %v1244_v3 = vadd.f32 0.5, %v1242_v24  ;;  %v6440_v24 = vld [vmem:[#allocation9 + $0xcc] sm:$0xf0]  ;;  %1835 = vmatpush.bf16.msra.mxu3 %v5477_v23  ;;  %v5425_v9 = vor.u32 %v6433_v4, %v5424_v55  ;;  %v6431_v19 = vld [vmem:[#allocation9 + $0x8c] sm:$0xf] }
 0x1fe   :  { %v6734_v61 = vpop.eup %6733  ;;  %v1253_v13 = vadd.f32 0.5, %v1251_v52  ;;  %v5449_v50 = vor.u32 %v6440_v24, %v5448_v57  ;;  %v5426_v23 = vld [vmem:[#allocation9 + $0x98] sm:$0xf0]  ;;  %v5400_v24 = vld [vmem:[#allocation9 + $0x60] sm:$0xf] }
 0x1ff   :  { %v1256_v17 = vmul.f32 %v1244_v3, %v7480_v51  ;;  %v1258_v49 = vmul.f32 %v6734_v61, %v1236_v20  ;;  %v6438_v20 = vld [vmem:[#allocation9 + $0xc4] sm:$0xf]  ;;  %v5450_v3 = vld [vmem:[#allocation9 + $0xd0] sm:$0xf0]  ;;  %v5456_v61 = vld [vmem:[#allocation9 + $0xc8] sm:$0xf]  ;;  %v5429_v57 = vor.u32 %v6431_v19, %v5426_v23 }
 0x200   :  { %v6736_v18 = vpop.eup %6735  ;;  %1794 = vmatpush.bf16.msra.mxu0 %v5449_v50  ;;  %v6426_v50 = vld [vmem:[#allocation9 + $0x64] sm:$0xf]  ;;  %v6423_v2 = vld [vmem:[#allocation9 + $0x4c] sm:$0xf] }
 0x201   :  { %v7504_v12 = vadd.f32 %v1258_v49, %v1256_v17  ;;  %v6738_v21 = vpop.eup %6737  ;;  %v1252_v22 = vmul.f32 0.5, %v6736_v18  ;;  %v6441_v17 = vld [vmem:[#allocation9 + $0xd4] sm:$0xf0]  ;;  %v5453_v49 = vor.u32 %v6438_v20, %v5450_v3  ;;  %v6439_v18 = vld [vmem:[#allocation9 + $0xcc] sm:$0xf] }
 0x202   :  { %v1263_v48 = vmul.f32 %v6738_v21, %v1253_v13  ;;  %v5457_v52 = vor.u32 %v6441_v17, %v5456_v61  ;;  %v5458_v21 = vld [vmem:[#allocation9 + $0xd8] sm:$0xf0]  ;;  %v6428_v20 = vld [vmem:[#allocation9 + $0x6c] sm:$0xf0]  ;;  %v5402_v61 = vld [vmem:[#allocation9 + $0x70] sm:$0xf0] }
 0x203   :  { %6739 = vtanh.f32 %v7504_v12  ;;  %v1254_v54 = vadd.f32 0.5, %v1252_v22  ;;  %v5461_v13 = vor.u32 %v6439_v18, %v5458_v21  ;;  %1808 = vmatpush.bf16.msra.mxu1 %v5453_v49  ;;  %v5432_v22 = vld [vmem:[#allocation9 + $0xa0] sm:$0xf]  ;;  %v5401_v3 = vor.u32 %v6428_v20, %v5400_v24  ;;  %v5408_v17 = vld [vmem:[#allocation9 + $0x68] sm:$0xf] }
 0x204   :  { %v1265_v6 = vpack.c.bf16 %v1263_v48, %v1263_v48  ;;  %1822 = vmatpush.bf16.msra.mxu2 %v5457_v52  ;;  %v6429_v49 = vld [vmem:[#allocation9 + $0x74] sm:$0xf0]  ;;  %v5405_v52 = vor.u32 %v6426_v50, %v5402_v61  ;;  %v6427_v21 = vld [vmem:[#allocation9 + $0x6c] sm:$0xf]  ;;  %v5376_v24 = vld [vmem:[#allocation9 + $0x28] sm:$0xf] }
 0x205   :  { %1836 = vmatpush.bf16.msra.mxu3 %v5461_v13  ;;  %v5409_v18 = vor.u32 %v6429_v49, %v5408_v17  ;;  %v5410_v13 = vld [vmem:[#allocation9 + $0x78] sm:$0xf0]  ;;  %v6421_v50 = vld [vmem:[#allocation9 + $0x34] sm:$0xf0] }
 0x206   :  { %v1315_v8 = vunpack.c.l.b16 %v1265_v6  ;;  %v5434_v6 = vld [vmem:[#allocation9 + $0xb0] sm:$0xf0]  ;;  %v5378_v61 = vld [vmem:[#allocation9 + $0x38] sm:$0xf0]  ;;  %v5377_v17 = vor.u32 %v6421_v50, %v5376_v24 }
 0x209   :  { %v6740_v15 = vpop.eup %6739 }
 0x20a   :  { %v1264_v10 = vmul.f32 %v6740_v15, %v1254_v54  ;;  %v6434_v54 = vld [vmem:[#allocation9 + $0xa4] sm:$0xf] }
 0x20c   :  { %v1266_v60 = vpack.c.bf16 %v1264_v10, %v1264_v10  ;;  %v6654_v16 = vpack.c.bf16 %v1264_v10, %v1263_v48  ;;  %v6436_v48 = vld [vmem:[#allocation9 + $0xac] sm:$0xf0]  ;;  %v5440_v10 = vld [vmem:[#allocation9 + $0xa8] sm:$0xf] }
 0x20d   :  { %v5433_v15 = vor.u32 %v6436_v48, %v5432_v22  ;;  %v5413_v22 = vor.u32 %v6427_v21, %v5410_v13  ;;  %v5384_v48 = vld [vmem:[#allocation9 + $0x40] sm:$0xf]  ;;  %v6416_v13 = vld [vmem:[#allocation9 + $0xc] sm:$0xf0] }
 0x20e   :  { %6655 = vst [vmem:[#allocation3] sm:$0xff] %v6654_v16   ;;  %v1316_v51 = vunpack.c.l.b16 %v1266_v60  ;;  %v6437_v60 = vld [vmem:[#allocation9 + $0xb4] sm:$0xf0]  ;;  %v5437_v16 = vor.u32 %v6434_v54, %v5434_v6  ;;  %v6424_v54 = vld [vmem:[#allocation9 + $0x4c] sm:$0xf0]  ;;  %v409_v6 = vadd.f32 %v7351_v25, %v7446_v53 }
 0x20f   :  { %1795 = vmatpush.bf16.msra.mxu0 %v5433_v15  ;;  %v6422_v15 = vld [vmem:[#allocation9 + $0x44] sm:$0xf]  ;;  %v5368_v25 = vld [vmem:[#allocation9 + $0x20] sm:$0xf] }
 0x210   :  { %v1317_v63 = vpack.c.b16 %v1316_v51, %v1315_v8  ;;  %v5441_v8 = vor.u32 %v6437_v60, %v5440_v10  ;;  %v6435_v51 = vld [vmem:[#allocation9 + $0xac] sm:$0xf]  ;;  %1809 = vmatpush.bf16.msra.mxu1 %v5437_v16  ;;  %v458_v10 = vadd.f32 %v7353_v26, %v7449_v58  ;;  %v5385_v60 = vor.u32 %v6424_v54, %v5384_v48  ;;  %v5386_v16 = vld [vmem:[#allocation9 + $0x50] sm:$0xf0]  ;;  %v6418_v26 = vld [vmem:[#allocation9 + $0x24] sm:$0xf] }
 0x211   :  { %v5389_v59 = vor.u32 %v6422_v15, %v5386_v16  ;;  %v5352_v21 = vld [vmem:[#allocation9] sm:$0xf]  ;;  %v411_v48 = vadd.f32 %v7359_v29, %v7446_v53  ;;  %v460_v54 = vadd.f32 %v7361_v30, %v7449_v58  ;;  %v6417_v16 = vld [vmem:[#allocation9 + $0x14] sm:$0xf0] }
 0x212   :  { %1487 = vmatmul.bf16.vlgmr.msrb.gmra.mxu0 %v1317_v63  ;;  %1501 = vmatmul.bf16.vlgmr.msrb.gmra.mxu1 %v1317_v63 }
 0x213   :  { %1515 = vmatmul.bf16.vlgmr.msrb.gmra.mxu2 %v1317_v63  ;;  %1529 = vmatmul.bf16.vlgmr.msrb.gmra.mxu3 %v1317_v63  ;;  %v5442_v63 = vld [vmem:[#allocation9 + $0xb8] sm:$0xf0] }
 0x214   :  { %v5445_v14 = vor.u32 %v6435_v51, %v5442_v63  ;;  %1823 = vmatpush.bf16.msra.mxu2 %v5441_v8  ;;  %1796 = vmatpush.bf16.msra.mxu0 %v5417_v0  ;;  %v5392_v8 = vld [vmem:[#allocation9 + $0x48] sm:$0xf]  ;;  %v6425_v51 = vld [vmem:[#allocation9 + $0x54] sm:$0xf0]  ;;  %v5394_v0 = vld [vmem:[#allocation9 + $0x58] sm:$0xf0] }
 0x215   :  { %1810 = vmatpush.bf16.msra.mxu1 %v5421_v5  ;;  %v5393_v62 = vor.u32 %v6425_v51, %v5392_v8  ;;  %v5397_v4 = vor.u32 %v6423_v2, %v5394_v0  ;;  %v6420_v5 = vld [vmem:[#allocation9 + $0x2c] sm:$0xf0] }
 0x216   :  { %1837 = vmatpush.bf16.msra.mxu3 %v5445_v14  ;;  %v5369_v23 = vor.u32 %v6420_v5, %v5368_v25 }
 0x218   :  { %1824 = vmatpush.bf16.msra.mxu2 %v5425_v9  ;;  %1797 = vmatpush.bf16.msra.mxu0 %v5401_v3  ;;  %v6419_v3 = vld [vmem:[#allocation9 + $0x2c] sm:$0xf] }
 0x219   :  { %1811 = vmatpush.bf16.msra.mxu1 %v5405_v52  ;;  %v5381_v49 = vor.u32 %v6419_v3, %v5378_v61  ;;  %v507_v52 = vadd.f32 %v7355_v27, %v7460_v1  ;;  %v5354_v27 = vld [vmem:[#allocation9 + $0x10] sm:$0xf0] }
 0x21a   :  { %1838 = vmatpush.bf16.msra.mxu3 %v5429_v57  ;;  %v5370_v57 = vld [vmem:[#allocation9 + $0x30] sm:$0xf0] }
 0x21b   :  { %v5373_v20 = vor.u32 %v6418_v26, %v5370_v57 }
 0x21c   :  { %1825 = vmatpush.bf16.msra.mxu2 %v5409_v18  ;;  %1798 = vmatpush.bf16.msra.mxu0 %v5385_v60  ;;  %v556_v18 = vadd.f32 %v7357_v28, %v7463_v56  ;;  %v5360_v60 = vld [vmem:[#allocation9 + $0x8] sm:$0xf] }
 0x21d   :  { %1812 = vmatpush.bf16.msra.mxu1 %v5389_v59  ;;  %v6415_v59 = vld [vmem:[#allocation9 + $0xc] sm:$0xf] }
 0x21e   :  { %1839 = vmatpush.bf16.msra.mxu3 %v5413_v22  ;;  %v6414_v22 = vld [vmem:[#allocation9 + $0x4] sm:$0xf] }
 0x220   :  { %1826 = vmatpush.bf16.msra.mxu2 %v5393_v62  ;;  %1799 = vmatpush.bf16.msra.mxu0 %v5369_v23  ;;  %v5362_v62 = vld [vmem:[#allocation9 + $0x18] sm:$0xf0]  ;;  %v558_v23 = vadd.f32 %v7365_v32, %v7463_v56 }
 0x221   :  { %1813 = vmatpush.bf16.msra.mxu1 %v5373_v20  ;;  %v5365_v30 = vor.u32 %v6415_v59, %v5362_v62 }
 0x222   :  { %1840 = vmatpush.bf16.msra.mxu3 %v5397_v4 }
 0x224   :  { %1827 = vmatpush.bf16.msra.mxu2 %v5377_v17 }
 0x226   :  { %1841 = vmatpush.bf16.msra.mxu3 %v5381_v49 }
 0x22a   :  { %1842 = vmatpush.bf16.msra.mxu3 %v5365_v30 }
 0x28f   :  { %v1488_v63 = vpop.f32.mrf.mxu0  ;;  %v1502_v14 = vpop.f32.mrf.mxu1 }
 0x290   :  { %v1535_v7 = vadd.f32 %v1488_v63, %v409_v6  ;;  %v1536_v55 = vadd.f32 %v1502_v14, %v458_v10  ;;  %v5353_v10 = vor.u32 %v6416_v13, %v5352_v21  ;;  %v5357_v63 = vor.u32 %v6414_v22, %v5354_v27 }
 0x291   :  { %v5361_v14 = vor.u32 %v6417_v16, %v5360_v60 }
 0x292   :  { %v1543_v9 = vmul.f32 0.5, %v1535_v7  ;;  %v1551_v19 = vmul.f32 0.5, %v1536_v55  ;;  %1800 = vmatpush.bf16.msra.mxu0 %v5353_v10  ;;  %1814 = vmatpush.bf16.msra.mxu1 %v5357_v63 }
 0x293   :  { %1828 = vmatpush.bf16.msra.mxu2 %v5361_v14 }
 0x294   :  { %6741 = vtanh.f32 %v1543_v9 }
 0x295   :  { %6743 = vtanh.f32 %v1551_v19  ;;  %v509_v19 = vadd.f32 %v7363_v31, %v7460_v1 }
 0x296   :  { %v1516_v15 = vpop.f32.mrf.mxu2  ;;  %v1530_v6 = vpop.f32.mrf.mxu3 }
 0x297   :  { %v1537_v28 = vadd.f32 %v1516_v15, %v507_v52  ;;  %v1490_v8 = vpop.f32.mrf.mxu0  ;;  %v1504_v51 = vpop.f32.mrf.mxu1  ;;  %v1538_v2 = vadd.f32 %v1530_v6, %v556_v18 }
 0x298   :  { %v1539_v29 = vadd.f32 %v1490_v8, %v411_v48  ;;  %v1540_v0 = vadd.f32 %v1504_v51, %v460_v54 }
 0x299   :  { %6745 = vtanh.f32 %v1537_v28  ;;  %v1561_v9 = vmul.f32 0.5, %v1538_v2 }
 0x29a   :  { %v6742_v7 = vpop.eup %6741  ;;  %v1544_v55 = vmul.f32 0.5, %v1539_v29  ;;  %v1552_v4 = vmul.f32 0.5, %v1540_v0 }
 0x29b   :  { %v6744_v25 = vpop.eup %6743  ;;  %v1547_v5 = vmul.f32 0.5, %v6742_v7 }
 0x29c   :  { %v1555_v26 = vmul.f32 0.5, %v6744_v25  ;;  %6747 = vtanh.f32 %v1544_v55  ;;  %v5592_v55 = vld [vmem:[#allocation9 + $0xe0] sm:$0xf]  ;;  %v6474_v25 = vld [vmem:[#allocation9 + $0xe4] sm:$0xf] }
 0x29d   :  { %v1549_v57 = vadd.f32 0.5, %v1547_v5  ;;  %6749 = vtanh.f32 %v1552_v4  ;;  %v6476_v4 = vld [vmem:[#allocation9 + $0xec] sm:$0xf0] }
 0x29e   :  { %v1557_v24 = vadd.f32 0.5, %v1555_v26  ;;  %v1518_v20 = vpop.f32.mrf.mxu2  ;;  %v1532_v50 = vpop.f32.mrf.mxu3  ;;  %6751 = vtanh.f32 %v1561_v9  ;;  %v5593_v5 = vor.u32 %v6476_v4, %v5592_v55  ;;  %v5594_v26 = vld [vmem:[#allocation9 + $0xf0] sm:$0xf0]  ;;  %v5600_v9 = vld [vmem:[#allocation9 + $0xe8] sm:$0xf] }
 0x29f   :  { %v6746_v3 = vpop.eup %6745  ;;  %v1541_v61 = vadd.f32 %v1518_v20, %v509_v19  ;;  %v1542_v17 = vadd.f32 %v1532_v50, %v558_v23  ;;  %v6477_v19 = vld [vmem:[#allocation9 + $0xf4] sm:$0xf0]  ;;  %v5597_v23 = vor.u32 %v6474_v25, %v5594_v26  ;;  %v5602_v20 = vld [vmem:[#allocation9 + $0xf8] sm:$0xf0]  ;;  %v6463_v25 = vld [vmem:[#allocation9 + $0x8c] sm:$0xf] }
 0x2a0   :  { %v1569_v49 = vmul.f32 %v1557_v24, %v7500_v11  ;;  %v1571_v52 = vmul.f32 %v6746_v3, %v1549_v57  ;;  %v5601_v57 = vor.u32 %v6477_v19, %v5600_v9  ;;  %v6475_v24 = vld [vmem:[#allocation9 + $0xec] sm:$0xf]  ;;  %2107 = vmatpush.bf16.msrb.mxu0 %v5593_v5  ;;  %v5576_v3 = vld [vmem:[#allocation9 + $0xc0] sm:$0xf]  ;;  %v5554_v5 = vld [vmem:[#allocation9 + $0x98] sm:$0xf0] }
 0x2a1   :  { %6753 = vtanh.f32 %v1541_v61  ;;  %v1562_v18 = vmul.f32 0.5, %v1542_v17  ;;  %v5605_v50 = vor.u32 %v6475_v24, %v5602_v20  ;;  %2121 = vmatpush.bf16.msrb.mxu1 %v5597_v23  ;;  %v6472_v61 = vld [vmem:[#allocation9 + $0xcc] sm:$0xf0]  ;;  %v6470_v17 = vld [vmem:[#allocation9 + $0xc4] sm:$0xf]  ;;  %v5557_v26 = vor.u32 %v6463_v25, %v5554_v5 }
 0x2a2   :  { %v6748_v21 = vpop.eup %6747  ;;  %v7524_v13 = vadd.f32 %v1571_v52, %v1569_v49  ;;  %2135 = vmatpush.bf16.msrb.mxu2 %v5601_v57  ;;  %v5577_v49 = vor.u32 %v6472_v61, %v5576_v3  ;;  %v5578_v52 = vld [vmem:[#allocation9 + $0xd0] sm:$0xf0]  ;;  %v5528_v9 = vld [vmem:[#allocation9 + $0x60] sm:$0xf]  ;;  %v6460_v19 = vld [vmem:[#allocation9 + $0x6c] sm:$0xf0] }
 0x2a3   :  { %v6750_v31 = vpop.eup %6749  ;;  %v1548_v22 = vmul.f32 0.5, %v6748_v21  ;;  %6755 = vtanh.f32 %v1562_v18  ;;  %2149 = vmatpush.bf16.msrb.mxu3 %v5605_v50  ;;  %v5584_v18 = vld [vmem:[#allocation9 + $0xc8] sm:$0xf]  ;;  %v6473_v21 = vld [vmem:[#allocation9 + $0xd4] sm:$0xf0]  ;;  %v5529_v57 = vor.u32 %v6460_v19, %v5528_v9  ;;  %v561_v9 = vadd.f32 %v7373_v36, %v7463_v56 }
 0x2a4   :  { %v1556_v32 = vmul.f32 0.5, %v6750_v31  ;;  %v6752_v54 = vpop.eup %6751  ;;  %6757 = vtanh.f32 %v7524_v13  ;;  %v5581_v31 = vor.u32 %v6470_v17, %v5578_v52  ;;  %2108 = vmatpush.bf16.msrb.mxu0 %v5577_v49  ;;  %v6458_v23 = vld [vmem:[#allocation9 + $0x64] sm:$0xf]  ;;  %v5530_v24 = vld [vmem:[#allocation9 + $0x70] sm:$0xf0] }
 0x2a5   :  { %v1550_v48 = vadd.f32 0.5, %v1548_v22  ;;  %v1565_v27 = vmul.f32 0.5, %v6752_v54  ;;  %v5585_v22 = vor.u32 %v6473_v21, %v5584_v18  ;;  %v5536_v20 = vld [vmem:[#allocation9 + $0x68] sm:$0xf]  ;;  %v6461_v50 = vld [vmem:[#allocation9 + $0x74] sm:$0xf0]  ;;  %v5533_v3 = vor.u32 %v6458_v23, %v5530_v24 }
 0x2a6   :  { %v1558_v15 = vadd.f32 0.5, %v1556_v32  ;;  %v6471_v32 = vld [vmem:[#allocation9 + $0xcc] sm:$0xf]  ;;  %2122 = vmatpush.bf16.msrb.mxu1 %v5581_v31  ;;  %v5537_v61 = vor.u32 %v6461_v50, %v5536_v20  ;;  %v5538_v49 = vld [vmem:[#allocation9 + $0x78] sm:$0xf0]  ;;  %v416_v24 = vadd.f32 %v7375_v37, %v7446_v53  ;;  %v465_v20 = vadd.f32 %v7377_v38, %v7449_v58 }
 0x2a7   :  { %v6754_v6 = vpop.eup %6753  ;;  %v1567_v8 = vadd.f32 0.5, %v1565_v27  ;;  %2136 = vmatpush.bf16.msrb.mxu2 %v5585_v22  ;;  %v5562_v27 = vld [vmem:[#allocation9 + $0xb0] sm:$0xf0]  ;;  %v6459_v17 = vld [vmem:[#allocation9 + $0x6c] sm:$0xf]  ;;  %v414_v22 = vadd.f32 %v7367_v33, %v7446_v53 }
 0x2a8   :  { %v1570_v10 = vmul.f32 %v1558_v15, %v7504_v12  ;;  %v1572_v11 = vmul.f32 %v6754_v6, %v1550_v48  ;;  %v5586_v48 = vld [vmem:[#allocation9 + $0xd8] sm:$0xf0]  ;;  %v5560_v15 = vld [vmem:[#allocation9 + $0xa0] sm:$0xf]  ;;  %v6468_v6 = vld [vmem:[#allocation9 + $0xac] sm:$0xf0]  ;;  %v5541_v52 = vor.u32 %v6459_v17, %v5538_v49 }
 0x2a9   :  { %v6756_v60 = vpop.eup %6755  ;;  %v5589_v54 = vor.u32 %v6471_v32, %v5586_v48  ;;  %v5512_v18 = vld [vmem:[#allocation9 + $0x40] sm:$0xf]  ;;  %v6456_v21 = vld [vmem:[#allocation9 + $0x4c] sm:$0xf0]  ;;  %v6454_v31 = vld [vmem:[#allocation9 + $0x44] sm:$0xf]  ;;  %v463_v32 = vadd.f32 %v7369_v34, %v7449_v58 }
 0x2aa   :  { %v7528_v16 = vadd.f32 %v1572_v11, %v1570_v10  ;;  %v6758_v28 = vpop.eup %6757  ;;  %v1566_v51 = vmul.f32 0.5, %v6756_v60  ;;  %v6466_v10 = vld [vmem:[#allocation9 + $0xa4] sm:$0xf]  ;;  %v5561_v11 = vor.u32 %v6468_v6, %v5560_v15  ;;  %v5568_v60 = vld [vmem:[#allocation9 + $0xa8] sm:$0xf]  ;;  %v5513_v48 = vor.u32 %v6456_v21, %v5512_v18 }
 0x2ab   :  { %v1577_v63 = vmul.f32 %v6758_v28, %v1567_v8  ;;  %2150 = vmatpush.bf16.msrb.mxu3 %v5589_v54  ;;  %v6469_v28 = vld [vmem:[#allocation9 + $0xb4] sm:$0xf0]  ;;  %v5565_v8 = vor.u32 %v6466_v10, %v5562_v27  ;;  %v5514_v54 = vld [vmem:[#allocation9 + $0x50] sm:$0xf0]  ;;  %v5520_v15 = vld [vmem:[#allocation9 + $0x48] sm:$0xf] }
 0x2ac   :  { %6759 = vtanh.f32 %v7528_v16  ;;  %v1568_v14 = vadd.f32 0.5, %v1566_v51  ;;  %v5569_v51 = vor.u32 %v6469_v28, %v5568_v60  ;;  %2109 = vmatpush.bf16.msrb.mxu0 %v5561_v11  ;;  %v6457_v6 = vld [vmem:[#allocation9 + $0x54] sm:$0xf0]  ;;  %v5517_v27 = vor.u32 %v6454_v31, %v5514_v54  ;;  %v6455_v28 = vld [vmem:[#allocation9 + $0x4c] sm:$0xf] }
 0x2ad   :  { %v1579_v62 = vpack.c.bf16 %v1577_v63, %v1577_v63  ;;  %2123 = vmatpush.bf16.msrb.mxu1 %v5565_v8  ;;  %v5521_v60 = vor.u32 %v6457_v6, %v5520_v15  ;;  %v5522_v8 = vld [vmem:[#allocation9 + $0x58] sm:$0xf0]  ;;  %v5496_v33 = vld [vmem:[#allocation9 + $0x20] sm:$0xf]  ;;  %v6450_v34 = vld [vmem:[#allocation9 + $0x24] sm:$0xf] }
 0x2ae   :  { %2137 = vmatpush.bf16.msrb.mxu2 %v5569_v51  ;;  %v5480_v19 = vld [vmem:[#allocation9] sm:$0xf]  ;;  %v6448_v23 = vld [vmem:[#allocation9 + $0xc] sm:$0xf0]  ;;  %v5488_v17 = vld [vmem:[#allocation9 + $0x8] sm:$0xf] }
 0x2af   :  { %v1629_v30 = vunpack.c.l.b16 %v1579_v62  ;;  %v5544_v62 = vld [vmem:[#allocation9 + $0x80] sm:$0xf]  ;;  %v6449_v49 = vld [vmem:[#allocation9 + $0x14] sm:$0xf0] }
 0x2b0   :  { %v5489_v31 = vor.u32 %v6449_v49, %v5488_v17 }
 0x2b2   :  { %v6760_v59 = vpop.eup %6759 }
 0x2b3   :  { %v1578_v2 = vmul.f32 %v6760_v59, %v1568_v14  ;;  %v5570_v14 = vld [vmem:[#allocation9 + $0xb8] sm:$0xf0] }
 0x2b5   :  { %v1580_v29 = vpack.c.bf16 %v1578_v2, %v1578_v2  ;;  %v6659_v0 = vpack.c.bf16 %v1578_v2, %v1577_v63  ;;  %v6467_v63 = vld [vmem:[#allocation9 + $0xac] sm:$0xf]  ;;  %v6464_v2 = vld [vmem:[#allocation9 + $0x8c] sm:$0xf0] }
 0x2b6   :  { %v5573_v59 = vor.u32 %v6467_v63, %v5570_v14  ;;  %v5525_v14 = vor.u32 %v6455_v28, %v5522_v8  ;;  %v514_v8 = vadd.f32 %v7379_v39, %v7460_v1 }
 0x2b7   :  { %6660 = vst [vmem:[#allocation3 + $0x18] sm:$0xff] %v6659_v0   ;;  %v1630_v12 = vunpack.c.l.b16 %v1580_v29  ;;  %v6462_v29 = vld [vmem:[#allocation9 + $0x84] sm:$0xf]  ;;  %v5545_v0 = vor.u32 %v6464_v2, %v5544_v62 }
 0x2b8   :  { %2151 = vmatpush.bf16.msrb.mxu3 %v5573_v59  ;;  %v6452_v59 = vld [vmem:[#allocation9 + $0x2c] sm:$0xf0] }
 0x2b9   :  { %v1631_v7 = vpack.c.b16 %v1630_v12, %v1629_v30  ;;  %v5546_v30 = vld [vmem:[#allocation9 + $0x90] sm:$0xf0]  ;;  %v5552_v12 = vld [vmem:[#allocation9 + $0x88] sm:$0xf]  ;;  %2110 = vmatpush.bf16.msrb.mxu0 %v5545_v0 }
 0x2ba   :  { %v5549_v55 = vor.u32 %v6462_v29, %v5546_v30  ;;  %v5497_v29 = vor.u32 %v6452_v59, %v5496_v33  ;;  %v5498_v0 = vld [vmem:[#allocation9 + $0x30] sm:$0xf0]  ;;  %v5504_v30 = vld [vmem:[#allocation9 + $0x28] sm:$0xf] }
 0x2bb   :  { %1801 = vmatmul.bf16.vlgmr.msra.gmra.mxu0 %v1631_v7  ;;  %1815 = vmatmul.bf16.vlgmr.msra.gmra.mxu1 %v1631_v7 }
 0x2bc   :  { %1829 = vmatmul.bf16.vlgmr.msra.gmra.mxu2 %v1631_v7  ;;  %1843 = vmatmul.bf16.vlgmr.msra.gmra.mxu3 %v1631_v7  ;;  %v6465_v7 = vld [vmem:[#allocation9 + $0x94] sm:$0xf0] }
 0x2bd   :  { %v5553_v4 = vor.u32 %v6465_v7, %v5552_v12  ;;  %2124 = vmatpush.bf16.msrb.mxu1 %v5549_v55  ;;  %2152 = vmatpush.bf16.msrb.mxu3 %v5557_v26  ;;  %v5501_v12 = vor.u32 %v6450_v34, %v5498_v0  ;;  %v6453_v7 = vld [vmem:[#allocation9 + $0x34] sm:$0xf0]  ;;  %v6451_v55 = vld [vmem:[#allocation9 + $0x2c] sm:$0xf]  ;;  %v512_v26 = vadd.f32 %v7371_v35, %v7460_v1  ;;  %v5482_v35 = vld [vmem:[#allocation9 + $0x10] sm:$0xf0] }
 0x2be   :  { %2111 = vmatpush.bf16.msrb.mxu0 %v5529_v57  ;;  %v5505_v25 = vor.u32 %v6453_v7, %v5504_v30  ;;  %v6446_v57 = vld [vmem:[#allocation9 + $0x4] sm:$0xf] }
 0x2bf   :  { %2138 = vmatpush.bf16.msrb.mxu2 %v5553_v4  ;;  %v5506_v4 = vld [vmem:[#allocation9 + $0x38] sm:$0xf0]  ;;  %v5485_v21 = vor.u32 %v6446_v57, %v5482_v35 }
 0x2c0   :  { %v5509_v5 = vor.u32 %v6451_v55, %v5506_v4 }
 0x2c1   :  { %2125 = vmatpush.bf16.msrb.mxu1 %v5533_v3  ;;  %2153 = vmatpush.bf16.msrb.mxu3 %v5541_v52 }
 0x2c2   :  { %2112 = vmatpush.bf16.msrb.mxu0 %v5513_v48 }
 0x2c3   :  { %2139 = vmatpush.bf16.msrb.mxu2 %v5537_v61  ;;  %v5481_v61 = vor.u32 %v6448_v23, %v5480_v19 }
 0x2c5   :  { %2126 = vmatpush.bf16.msrb.mxu1 %v5517_v27  ;;  %2154 = vmatpush.bf16.msrb.mxu3 %v5525_v14 }
 0x2c6   :  { %2113 = vmatpush.bf16.msrb.mxu0 %v5497_v29 }
 0x2c7   :  { %2140 = vmatpush.bf16.msrb.mxu2 %v5521_v60 }
 0x2c9   :  { %2127 = vmatpush.bf16.msrb.mxu1 %v5501_v12  ;;  %2155 = vmatpush.bf16.msrb.mxu3 %v5509_v5 }
 0x2ca   :  { %2114 = vmatpush.bf16.msrb.mxu0 %v5481_v61 }
 0x2cb   :  { %2141 = vmatpush.bf16.msrb.mxu2 %v5505_v25 }
 0x2cd   :  { %2128 = vmatpush.bf16.msrb.mxu1 %v5485_v21 }
 0x2cf   :  { %2142 = vmatpush.bf16.msrb.mxu2 %v5489_v31  ;;  %v5720_v31 = vld [vmem:[#allocation9 + $0xe0] sm:$0xf] }
 0x338   :  { %v1802_v10 = vpop.f32.mrf.mxu0  ;;  %v1816_v11 = vpop.f32.mrf.mxu1 }
 0x339   :  { %v1849_v51 = vadd.f32 %v1802_v10, %v414_v22  ;;  %v1850_v63 = vadd.f32 %v1816_v11, %v463_v32  ;;  %v6447_v22 = vld [vmem:[#allocation9 + $0xc] sm:$0xf]  ;;  %v5490_v32 = vld [vmem:[#allocation9 + $0x18] sm:$0xf0] }
 0x33a   :  { %v5493_v38 = vor.u32 %v6447_v22, %v5490_v32  ;;  %v6508_v22 = vld [vmem:[#allocation9 + $0xec] sm:$0xf0]  ;;  %v6506_v32 = vld [vmem:[#allocation9 + $0xe4] sm:$0xf] }
 0x33b   :  { %v1857_v62 = vmul.f32 0.5, %v1849_v51  ;;  %v1865_v2 = vmul.f32 0.5, %v1850_v63  ;;  %v563_v51 = vadd.f32 %v7381_v40, %v7463_v56 }
 0x33c   :  { %2156 = vmatpush.bf16.msrb.mxu3 %v5493_v38  ;;  %v6509_v38 = vld [vmem:[#allocation9 + $0xf4] sm:$0xf0] }
 0x33d   :  { %6761 = vtanh.f32 %v1857_v62 }
 0x33e   :  { %6763 = vtanh.f32 %v1865_v2 }
 0x33f   :  { %v1830_v50 = vpop.f32.mrf.mxu2  ;;  %v1844_v3 = vpop.f32.mrf.mxu3 }
 0x340   :  { %v1851_v36 = vadd.f32 %v1830_v50, %v512_v26  ;;  %v1804_v52 = vpop.f32.mrf.mxu0  ;;  %v1818_v18 = vpop.f32.mrf.mxu1  ;;  %v1852_v48 = vadd.f32 %v1844_v3, %v561_v9 }
 0x341   :  { %v1853_v37 = vadd.f32 %v1804_v52, %v416_v24  ;;  %v1854_v54 = vadd.f32 %v1818_v18, %v465_v20 }
 0x342   :  { %6765 = vtanh.f32 %v1851_v36  ;;  %v1875_v28 = vmul.f32 0.5, %v1852_v48  ;;  %v5721_v48 = vor.u32 %v6508_v22, %v5720_v31  ;;  %v5658_v22 = vld [vmem:[#allocation9 + $0x70] sm:$0xf0] }
 0x343   :  { %v6762_v15 = vpop.eup %6761  ;;  %v1858_v6 = vmul.f32 0.5, %v1853_v37  ;;  %v1866_v10 = vmul.f32 0.5, %v1854_v54  ;;  %v5722_v37 = vld [vmem:[#allocation9 + $0xf0] sm:$0xf0]  ;;  %v5728_v54 = vld [vmem:[#allocation9 + $0xe8] sm:$0xf] }
 0x344   :  { %v6764_v11 = vpop.eup %6763  ;;  %v1861_v27 = vmul.f32 0.5, %v6762_v15  ;;  %v5725_v15 = vor.u32 %v6506_v32, %v5722_v37  ;;  %2421 = vmatpush.bf16.msra.mxu0 %v5721_v48  ;;  %v5664_v32 = vld [vmem:[#allocation9 + $0x68] sm:$0xf]  ;;  %v6493_v48 = vld [vmem:[#allocation9 + $0x74] sm:$0xf0] }
 0x345   :  { %v1869_v60 = vmul.f32 0.5, %v6764_v11  ;;  %6767 = vtanh.f32 %v1858_v6  ;;  %v5729_v6 = vor.u32 %v6509_v38, %v5728_v54  ;;  %v5730_v11 = vld [vmem:[#allocation9 + $0xf8] sm:$0xf0]  ;;  %v5665_v54 = vor.u32 %v6493_v48, %v5664_v32  ;;  %v6491_v38 = vld [vmem:[#allocation9 + $0x6c] sm:$0xf] }
 0x346   :  { %v1863_v63 = vadd.f32 0.5, %v1861_v27  ;;  %6769 = vtanh.f32 %v1866_v10  ;;  %v6507_v10 = vld [vmem:[#allocation9 + $0xec] sm:$0xf]  ;;  %2435 = vmatpush.bf16.msra.mxu1 %v5725_v15  ;;  %v5666_v15 = vld [vmem:[#allocation9 + $0x78] sm:$0xf0] }
 0x347   :  { %v1871_v14 = vadd.f32 0.5, %v1869_v60  ;;  %v1832_v33 = vpop.f32.mrf.mxu2  ;;  %v1846_v59 = vpop.f32.mrf.mxu3  ;;  %6771 = vtanh.f32 %v1875_v28  ;;  %v5733_v27 = vor.u32 %v6507_v10, %v5730_v11  ;;  %2449 = vmatpush.bf16.msra.mxu2 %v5729_v6  ;;  %v5704_v60 = vld [vmem:[#allocation9 + $0xc0] sm:$0xf]  ;;  %v6504_v28 = vld [vmem:[#allocation9 + $0xcc] sm:$0xf0]  ;;  %v5669_v6 = vor.u32 %v6491_v38, %v5666_v15 }
 0x348   :  { %v6766_v34 = vpop.eup %6765  ;;  %v1855_v62 = vadd.f32 %v1832_v33, %v514_v8  ;;  %v1856_v2 = vadd.f32 %v1846_v59, %v563_v51  ;;  %v6502_v8 = vld [vmem:[#allocation9 + $0xc4] sm:$0xf]  ;;  %v5705_v51 = vor.u32 %v6504_v28, %v5704_v60  ;;  %v6505_v33 = vld [vmem:[#allocation9 + $0xd4] sm:$0xf0]  ;;  %v5640_v10 = vld [vmem:[#allocation9 + $0x40] sm:$0xf]  ;;  %v419_v60 = vadd.f32 %v7383_v41, %v7446_v53 }
 0x349   :  { %v1883_v29 = vmul.f32 %v1871_v14, %v7524_v13  ;;  %v1885_v0 = vmul.f32 %v6766_v34, %v1863_v63  ;;  %2463 = vmatpush.bf16.msra.mxu3 %v5733_v27  ;;  %v5706_v63 = vld [vmem:[#allocation9 + $0xd0] sm:$0xf0]  ;;  %v5712_v14 = vld [vmem:[#allocation9 + $0xc8] sm:$0xf]  ;;  %v6488_v11 = vld [vmem:[#allocation9 + $0x4c] sm:$0xf0]  ;;  %v468_v28 = vadd.f32 %v7385_v42, %v7449_v58 }
 0x34a   :  { %6773 = vtanh.f32 %v1855_v62  ;;  %v1876_v30 = vmul.f32 0.5, %v1856_v2  ;;  %v5709_v59 = vor.u32 %v6502_v8, %v5706_v63  ;;  %v5713_v34 = vor.u32 %v6505_v33, %v5712_v14  ;;  %v6503_v62 = vld [vmem:[#allocation9 + $0xcc] sm:$0xf]  ;;  %v5714_v2 = vld [vmem:[#allocation9 + $0xd8] sm:$0xf0]  ;;  %2422 = vmatpush.bf16.msra.mxu0 %v5705_v51 }
 0x34b   :  { %v6768_v12 = vpop.eup %6767  ;;  %v7548_v7 = vadd.f32 %v1885_v0, %v1883_v29  ;;  %v5717_v29 = vor.u32 %v6503_v62, %v5714_v2  ;;  %v5688_v0 = vld [vmem:[#allocation9 + $0xa0] sm:$0xf]  ;;  %v6486_v27 = vld [vmem:[#allocation9 + $0x44] sm:$0xf]  ;;  %v5641_v8 = vor.u32 %v6488_v11, %v5640_v10  ;;  %v5642_v51 = vld [vmem:[#allocation9 + $0x50] sm:$0xf0] }
 0x34c   :  { %v6770_v39 = vpop.eup %6769  ;;  %v1862_v55 = vmul.f32 0.5, %v6768_v12  ;;  %6775 = vtanh.f32 %v1876_v30  ;;  %2436 = vmatpush.bf16.msra.mxu1 %v5709_v59  ;;  %2450 = vmatpush.bf16.msra.mxu2 %v5713_v34  ;;  %v6500_v30 = vld [vmem:[#allocation9 + $0xac] sm:$0xf0]  ;;  %v6498_v12 = vld [vmem:[#allocation9 + $0xa4] sm:$0xf]  ;;  %v5645_v34 = vor.u32 %v6486_v27, %v5642_v51  ;;  %v519_v51 = vadd.f32 %v7395_v47, %v7460_v1 }
 0x34d   :  { %v1870_v40 = vmul.f32 0.5, %v6770_v39  ;;  %v6772_v25 = vpop.eup %6771  ;;  %6777 = vtanh.f32 %v7548_v7  ;;  %2464 = vmatpush.bf16.msra.mxu3 %v5717_v29  ;;  %v5689_v39 = vor.u32 %v6500_v30, %v5688_v0  ;;  %v5648_v63 = vld [vmem:[#allocation9 + $0x48] sm:$0xf]  ;;  %v6489_v14 = vld [vmem:[#allocation9 + $0x54] sm:$0xf0] }
 0x34e   :  { %v1864_v4 = vadd.f32 0.5, %v1862_v55  ;;  %v1879_v19 = vmul.f32 0.5, %v6772_v25  ;;  %v5690_v55 = vld [vmem:[#allocation9 + $0xb0] sm:$0xf0]  ;;  %v5649_v62 = vor.u32 %v6489_v14, %v5648_v63  ;;  %v6487_v2 = vld [vmem:[#allocation9 + $0x4c] sm:$0xf] }
 0x34f   :  { %v1872_v5 = vadd.f32 0.5, %v1870_v40  ;;  %v5696_v40 = vld [vmem:[#allocation9 + $0xa8] sm:$0xf]  ;;  %v5693_v25 = vor.u32 %v6498_v12, %v5690_v55  ;;  %2423 = vmatpush.bf16.msra.mxu0 %v5689_v39  ;;  %v5650_v29 = vld [vmem:[#allocation9 + $0x58] sm:$0xf0] }
 0x350   :  { %v6774_v26 = vpop.eup %6773  ;;  %v1881_v20 = vadd.f32 0.5, %v1879_v19  ;;  %v5672_v19 = vld [vmem:[#allocation9 + $0x80] sm:$0xf]  ;;  %v5653_v12 = vor.u32 %v6487_v2, %v5650_v29  ;;  %v6484_v39 = vld [vmem:[#allocation9 + $0x2c] sm:$0xf0]  ;;  %v8336_v63 = vld [vmem:[#allocation24_spill] sm:$0xff] }
 0x351   :  { %v1884_v9 = vmul.f32 %v1872_v5, %v7528_v16  ;;  %v1886_v13 = vmul.f32 %v6774_v26, %v1864_v4  ;;  %v6501_v4 = vld [vmem:[#allocation9 + $0xb4] sm:$0xf0]  ;;  %v6499_v26 = vld [vmem:[#allocation9 + $0xac] sm:$0xf]  ;;  %2437 = vmatpush.bf16.msra.mxu1 %v5693_v25  ;;  %v5624_v41 = vld [vmem:[#allocation9 + $0x20] sm:$0xf]  ;;  %v568_v14 = vadd.f32 %v8336_v63, %v7463_v56 }
 0x352   :  { %v6776_v23 = vpop.eup %6775  ;;  %v5697_v5 = vor.u32 %v6501_v4, %v5696_v40  ;;  %v6482_v42 = vld [vmem:[#allocation9 + $0x24] sm:$0xf]  ;;  %v5625_v4 = vor.u32 %v6484_v39, %v5624_v41  ;;  %v5626_v25 = vld [vmem:[#allocation9 + $0x30] sm:$0xf0]  ;;  %v6535_v63 = vld [vmem:[#allocation9 + $0xcc] sm:$0xf] }
 0x353   :  { %v7552_v57 = vadd.f32 %v1886_v13, %v1884_v9  ;;  %v6778_v24 = vpop.eup %6777  ;;  %v1880_v50 = vmul.f32 0.5, %v6776_v23  ;;  %v5698_v9 = vld [vmem:[#allocation9 + $0xb8] sm:$0xf0]  ;;  %v6496_v23 = vld [vmem:[#allocation9 + $0x8c] sm:$0xf0] }
 0x354   :  { %v1891_v3 = vmul.f32 %v6778_v24, %v1881_v20  ;;  %v5701_v13 = vor.u32 %v6499_v26, %v5698_v9  ;;  %2451 = vmatpush.bf16.msra.mxu2 %v5697_v5  ;;  %v6494_v24 = vld [vmem:[#allocation9 + $0x84] sm:$0xf]  ;;  %v5673_v20 = vor.u32 %v6496_v23, %v5672_v19  ;;  %v5632_v5 = vld [vmem:[#allocation9 + $0x28] sm:$0xf]  ;;  %v5629_v26 = vor.u32 %v6482_v42, %v5626_v25  ;;  %v6485_v9 = vld [vmem:[#allocation9 + $0x34] sm:$0xf0] }
 0x355   :  { %6779 = vtanh.f32 %v7552_v57  ;;  %v1882_v61 = vadd.f32 0.5, %v1880_v50  ;;  %v5674_v50 = vld [vmem:[#allocation9 + $0x90] sm:$0xf0]  ;;  %v5634_v19 = vld [vmem:[#allocation9 + $0x38] sm:$0xf0]  ;;  %v5633_v23 = vor.u32 %v6485_v9, %v5632_v5 }
 0x356   :  { %v1893_v17 = vpack.c.bf16 %v1891_v3, %v1891_v3  ;;  %2465 = vmatpush.bf16.msra.mxu3 %v5701_v13  ;;  %2424 = vmatpush.bf16.msra.mxu0 %v5673_v20  ;;  %v6483_v13 = vld [vmem:[#allocation9 + $0x2c] sm:$0xf]  ;;  %v517_v20 = vadd.f32 %v7387_v43, %v7460_v1  ;;  %v5610_v43 = vld [vmem:[#allocation9 + $0x10] sm:$0xf0] }
 0x358   :  { %v1943_v18 = vunpack.c.l.b16 %v1893_v17 }
 0x35b   :  { %v6780_v35 = vpop.eup %6779 }
 0x35c   :  { %v1892_v49 = vmul.f32 %v6780_v35, %v1882_v61  ;;  %v6497_v61 = vld [vmem:[#allocation9 + $0x94] sm:$0xf0]  ;;  %v5677_v35 = vor.u32 %v6494_v24, %v5674_v50  ;;  %v5637_v24 = vor.u32 %v6483_v13, %v5634_v19  ;;  %v566_v50 = vadd.f32 %v7389_v44, %v7463_v56 }
 0x35e   :  { %v1894_v36 = vpack.c.bf16 %v1892_v49, %v1892_v49  ;;  %v6664_v52 = vpack.c.bf16 %v1892_v49, %v1891_v3  ;;  %v5680_v3 = vld [vmem:[#allocation9 + $0x88] sm:$0xf]  ;;  %v6495_v49 = vld [vmem:[#allocation9 + $0x8c] sm:$0xf]  ;;  %2438 = vmatpush.bf16.msra.mxu1 %v5677_v35  ;;  %v6478_v35 = vld [vmem:[#allocation9 + $0x4] sm:$0xf] }
 0x35f   :  { %v5681_v17 = vor.u32 %v6497_v61, %v5680_v3  ;;  %v5608_v3 = vld [vmem:[#allocation9] sm:$0xf]  ;;  %v6480_v61 = vld [vmem:[#allocation9 + $0xc] sm:$0xf0]  ;;  %v5613_v32 = vor.u32 %v6478_v35, %v5610_v43 }
 0x360   :  { %6665 = vst [vmem:[#allocation3 + $0x10] sm:$0xff] %v6664_v52   ;;  %v1944_v16 = vunpack.c.l.b16 %v1894_v36  ;;  %v5682_v36 = vld [vmem:[#allocation9 + $0x98] sm:$0xf0] }
 0x361   :  { %v5685_v52 = vor.u32 %v6495_v49, %v5682_v36  ;;  %2452 = vmatpush.bf16.msra.mxu2 %v5681_v17  ;;  %v421_v17 = vadd.f32 %v7391_v45, %v7446_v53  ;;  %v470_v49 = vadd.f32 %v7393_v46, %v7449_v58 }
 0x362   :  { %v1945_v21 = vpack.c.b16 %v1944_v16, %v1943_v18  ;;  %v5656_v18 = vld [vmem:[#allocation9 + $0x60] sm:$0xf]  ;;  %v6492_v16 = vld [vmem:[#allocation9 + $0x6c] sm:$0xf0] }
 0x363   :  { %2466 = vmatpush.bf16.msra.mxu3 %v5685_v52  ;;  %v5657_v31 = vor.u32 %v6492_v16, %v5656_v18  ;;  %v5609_v18 = vor.u32 %v6480_v61, %v5608_v3  ;;  %v5616_v16 = vld [vmem:[#allocation9 + $0x8] sm:$0xf] }
 0x364   :  { %2115 = vmatmul.bf16.vlgmr.msrb.gmra.mxu0 %v1945_v21  ;;  %2129 = vmatmul.bf16.vlgmr.msrb.gmra.mxu1 %v1945_v21 }
 0x365   :  { %2143 = vmatmul.bf16.vlgmr.msrb.gmra.mxu2 %v1945_v21  ;;  %2157 = vmatmul.bf16.vlgmr.msrb.gmra.mxu3 %v1945_v21  ;;  %v6490_v21 = vld [vmem:[#allocation9 + $0x64] sm:$0xf] }
 0x366   :  { %v5661_v37 = vor.u32 %v6490_v21, %v5658_v22  ;;  %2425 = vmatpush.bf16.msra.mxu0 %v5657_v31  ;;  %2453 = vmatpush.bf16.msra.mxu2 %v5665_v54  ;;  %v6481_v21 = vld [vmem:[#allocation9 + $0x14] sm:$0xf0]  ;;  %v5618_v54 = vld [vmem:[#allocation9 + $0x18] sm:$0xf0] }
 0x367   :  { %2467 = vmatpush.bf16.msra.mxu3 %v5669_v6  ;;  %v5617_v48 = vor.u32 %v6481_v21, %v5616_v16  ;;  %v5848_v16 = vld [vmem:[#allocation9 + $0xe0] sm:$0xf]  ;;  %v6540_v21 = vld [vmem:[#allocation9 + $0xec] sm:$0xf0] }
 0x368   :  { %2439 = vmatpush.bf16.msra.mxu1 %v5661_v37  ;;  %v6479_v37 = vld [vmem:[#allocation9 + $0xc] sm:$0xf] }
 0x369   :  { %v5621_v46 = vor.u32 %v6479_v37, %v5618_v54 }
 0x36a   :  { %2426 = vmatpush.bf16.msra.mxu0 %v5641_v8  ;;  %2454 = vmatpush.bf16.msra.mxu2 %v5649_v62 }
 0x36b   :  { %2468 = vmatpush.bf16.msra.mxu3 %v5653_v12 }
 0x36c   :  { %2440 = vmatpush.bf16.msra.mxu1 %v5645_v34 }
 0x36e   :  { %2427 = vmatpush.bf16.msra.mxu0 %v5625_v4  ;;  %2455 = vmatpush.bf16.msra.mxu2 %v5633_v23 }
 0x36f   :  { %2469 = vmatpush.bf16.msra.mxu3 %v5637_v24 }
 0x370   :  { %2441 = vmatpush.bf16.msra.mxu1 %v5629_v26 }
 0x372   :  { %2428 = vmatpush.bf16.msra.mxu0 %v5609_v18  ;;  %2456 = vmatpush.bf16.msra.mxu2 %v5617_v48  ;;  %v6541_v48 = vld [vmem:[#allocation9 + $0xf4] sm:$0xf0] }
 0x373   :  { %2470 = vmatpush.bf16.msra.mxu3 %v5621_v46  ;;  %v5832_v46 = vld [vmem:[#allocation9 + $0xc0] sm:$0xf] }
 0x374   :  { %2442 = vmatpush.bf16.msra.mxu1 %v5613_v32  ;;  %v5856_v32 = vld [vmem:[#allocation9 + $0xe8] sm:$0xf] }
 0x375   :  { %v5857_v54 = vor.u32 %v6541_v48, %v5856_v32  ;;  %v8337_v32 = vld [vmem:[#allocation25_spill] sm:$0xff] }
 0x376   :  { %v424_v48 = vadd.f32 %v8337_v32, %v7446_v53 }
 0x377   :  { %2763 = vmatpush.bf16.msrb.mxu2 %v5857_v54 }
 0x3e1   :  { %v2116_v33 = vpop.f32.mrf.mxu0  ;;  %v2130_v59 = vpop.f32.mrf.mxu1 }
 0x3e2   :  { %v2163_v0 = vadd.f32 %v2116_v33, %v419_v60  ;;  %v2164_v30 = vadd.f32 %v2130_v59, %v468_v28 }
 0x3e4   :  { %v2171_v55 = vmul.f32 0.5, %v2163_v0  ;;  %v2179_v40 = vmul.f32 0.5, %v2164_v30 }
 0x3e6   :  { %6781 = vtanh.f32 %v2171_v55 }
 0x3e7   :  { %6783 = vtanh.f32 %v2179_v40 }
 0x3e8   :  { %v2144_v36 = vpop.f32.mrf.mxu2  ;;  %v2158_v52 = vpop.f32.mrf.mxu3 }
 0x3e9   :  { %v2165_v44 = vadd.f32 %v2144_v36, %v517_v20  ;;  %v2118_v31 = vpop.f32.mrf.mxu0  ;;  %v2132_v22 = vpop.f32.mrf.mxu1  ;;  %v2166_v38 = vadd.f32 %v2158_v52, %v566_v50 }
 0x3ea   :  { %v2167_v45 = vadd.f32 %v2118_v31, %v421_v17  ;;  %v2168_v15 = vadd.f32 %v2132_v22, %v470_v49  ;;  %v5849_v31 = vor.u32 %v6540_v21, %v5848_v16  ;;  %v5850_v22 = vld [vmem:[#allocation9 + $0xf0] sm:$0xf0]  ;;  %v5794_v16 = vld [vmem:[#allocation9 + $0x78] sm:$0xf0] }
 0x3eb   :  { %6785 = vtanh.f32 %v2165_v44  ;;  %v2189_v8 = vmul.f32 0.5, %v2166_v38  ;;  %v6538_v44 = vld [vmem:[#allocation9 + $0xe4] sm:$0xf]  ;;  %v6539_v38 = vld [vmem:[#allocation9 + $0xec] sm:$0xf] }
 0x3ec   :  { %v6782_v6 = vpop.eup %6781  ;;  %v2172_v10 = vmul.f32 0.5, %v2167_v45  ;;  %v2180_v11 = vmul.f32 0.5, %v2168_v15  ;;  %v5853_v37 = vor.u32 %v6538_v44, %v5850_v22  ;;  %v5858_v45 = vld [vmem:[#allocation9 + $0xf8] sm:$0xf0]  ;;  %2735 = vmatpush.bf16.msrb.mxu0 %v5849_v31  ;;  %v5768_v44 = vld [vmem:[#allocation9 + $0x40] sm:$0xf] }
 0x3ed   :  { %v6784_v27 = vpop.eup %6783  ;;  %v2175_v60 = vmul.f32 0.5, %v6782_v6  ;;  %v5861_v15 = vor.u32 %v6539_v38, %v5858_v45  ;;  %v6536_v6 = vld [vmem:[#allocation9 + $0xcc] sm:$0xf0]  ;;  %v6518_v22 = vld [vmem:[#allocation9 + $0x44] sm:$0xf] }
 0x3ee   :  { %v2183_v28 = vmul.f32 0.5, %v6784_v27  ;;  %6787 = vtanh.f32 %v2172_v10  ;;  %2749 = vmatpush.bf16.msrb.mxu1 %v5853_v37  ;;  %v6534_v10 = vld [vmem:[#allocation9 + $0xc4] sm:$0xf]  ;;  %v5834_v27 = vld [vmem:[#allocation9 + $0xd0] sm:$0xf0] }
 0x3ef   :  { %v2177_v33 = vadd.f32 0.5, %v2175_v60  ;;  %6789 = vtanh.f32 %v2180_v11  ;;  %2777 = vmatpush.bf16.msrb.mxu3 %v5861_v15  ;;  %v5833_v11 = vor.u32 %v6536_v6, %v5832_v46  ;;  %v5840_v60 = vld [vmem:[#allocation9 + $0xc8] sm:$0xf]  ;;  %v6520_v31 = vld [vmem:[#allocation9 + $0x4c] sm:$0xf0]  ;;  %v8338_v37 = vld [vmem:[#allocation26_spill] sm:$0xff] }
 0x3f0   :  { %v2185_v59 = vadd.f32 0.5, %v2183_v28  ;;  %v2146_v34 = vpop.f32.mrf.mxu2  ;;  %v2160_v62 = vpop.f32.mrf.mxu3  ;;  %6791 = vtanh.f32 %v2189_v8  ;;  %v6537_v28 = vld [vmem:[#allocation9 + $0xd4] sm:$0xf0]  ;;  %v5837_v8 = vor.u32 %v6534_v10, %v5834_v27  ;;  %v473_v54 = vadd.f32 %v8338_v37, %v7449_v58  ;;  %v5770_v45 = vld [vmem:[#allocation9 + $0x50] sm:$0xf0] }
 0x3f1   :  { %v6786_v2 = vpop.eup %6785  ;;  %v2169_v29 = vadd.f32 %v2146_v34, %v519_v51  ;;  %v2170_v0 = vadd.f32 %v2160_v62, %v568_v14  ;;  %v5841_v51 = vor.u32 %v6537_v28, %v5840_v60  ;;  %v5842_v14 = vld [vmem:[#allocation9 + $0xd8] sm:$0xf0]  ;;  %2736 = vmatpush.bf16.msrb.mxu0 %v5833_v11  ;;  %v6532_v34 = vld [vmem:[#allocation9 + $0xac] sm:$0xf0]  ;;  %v6530_v62 = vld [vmem:[#allocation9 + $0xa4] sm:$0xf]  ;;  %v5769_v38 = vor.u32 %v6520_v31, %v5768_v44 }
 0x3f2   :  { %v2197_v30 = vmul.f32 %v2185_v59, %v7548_v7  ;;  %v2199_v12 = vmul.f32 %v6786_v2, %v2177_v33  ;;  %v5845_v33 = vor.u32 %v6535_v63, %v5842_v14  ;;  %2750 = vmatpush.bf16.msrb.mxu1 %v5837_v8  ;;  %v5816_v59 = vld [vmem:[#allocation9 + $0xa0] sm:$0xf]  ;;  %v5776_v15 = vld [vmem:[#allocation9 + $0x48] sm:$0xf]  ;;  %v6521_v46 = vld [vmem:[#allocation9 + $0x54] sm:$0xf0]  ;;  %v5773_v11 = vor.u32 %v6518_v22, %v5770_v45 }
 0x3f3   :  { %6793 = vtanh.f32 %v2169_v29  ;;  %v2190_v41 = vmul.f32 0.5, %v2170_v0  ;;  %2764 = vmatpush.bf16.msrb.mxu2 %v5841_v51  ;;  %v5817_v2 = vor.u32 %v6532_v34, %v5816_v59  ;;  %v5818_v29 = vld [vmem:[#allocation9 + $0xb0] sm:$0xf0]  ;;  %v5824_v0 = vld [vmem:[#allocation9 + $0xa8] sm:$0xf]  ;;  %v5777_v27 = vor.u32 %v6521_v46, %v5776_v15  ;;  %v8343_v15 = vld [vmem:[#allocation31_spill] sm:$0xff] }
 0x3f4   :  { %v6788_v39 = vpop.eup %6787  ;;  %v7572_v42 = vadd.f32 %v2199_v12, %v2197_v30  ;;  %2778 = vmatpush.bf16.msrb.mxu3 %v5845_v33  ;;  %v6533_v30 = vld [vmem:[#allocation9 + $0xb4] sm:$0xf0]  ;;  %v5821_v12 = vor.u32 %v6530_v62, %v5818_v29  ;;  %v6519_v60 = vld [vmem:[#allocation9 + $0x4c] sm:$0xf]  ;;  %v5778_v28 = vld [vmem:[#allocation9 + $0x58] sm:$0xf0]  ;;  %v524_v46 = vadd.f32 %v8343_v15, %v7460_v1 }
 0x3f5   :  { %v6790_v47 = vpop.eup %6789  ;;  %v2176_v55 = vmul.f32 0.5, %v6788_v39  ;;  %6795 = vtanh.f32 %v2190_v41  ;;  %v5825_v41 = vor.u32 %v6533_v30, %v5824_v0  ;;  %v6531_v39 = vld [vmem:[#allocation9 + $0xac] sm:$0xf]  ;;  %2737 = vmatpush.bf16.msrb.mxu0 %v5817_v2  ;;  %v5781_v63 = vor.u32 %v6519_v60, %v5778_v28  ;;  %v5752_v14 = vld [vmem:[#allocation9 + $0x20] sm:$0xf]  ;;  %v8344_v60 = vld [vmem:[#allocation32_spill] sm:$0xff] }
 0x3f6   :  { %v2184_v40 = vmul.f32 0.5, %v6790_v47  ;;  %v6792_v25 = vpop.eup %6791  ;;  %6797 = vtanh.f32 %v7572_v42  ;;  %v5826_v47 = vld [vmem:[#allocation9 + $0xb8] sm:$0xf0]  ;;  %2751 = vmatpush.bf16.msrb.mxu1 %v5821_v12  ;;  %v6516_v33 = vld [vmem:[#allocation9 + $0x2c] sm:$0xf0]  ;;  %v573_v28 = vadd.f32 %v8344_v60, %v7463_v56 }
 0x3f7   :  { %v2178_v4 = vadd.f32 0.5, %v2176_v55  ;;  %v2193_v13 = vmul.f32 0.5, %v6792_v25  ;;  %v5829_v55 = vor.u32 %v6531_v39, %v5826_v47  ;;  %2765 = vmatpush.bf16.msrb.mxu2 %v5825_v41  ;;  %v6526_v25 = vld [vmem:[#allocation9 + $0x84] sm:$0xf]  ;;  %v5753_v2 = vor.u32 %v6516_v33, %v5752_v14  ;;  %v5754_v29 = vld [vmem:[#allocation9 + $0x30] sm:$0xf0] }
 0x3f8   :  { %v2186_v5 = vadd.f32 0.5, %v2184_v40  ;;  %v5800_v40 = vld [vmem:[#allocation9 + $0x80] sm:$0xf]  ;;  %v6514_v59 = vld [vmem:[#allocation9 + $0x24] sm:$0xf] }
 0x3f9   :  { %v6794_v26 = vpop.eup %6793  ;;  %v2195_v20 = vadd.f32 0.5, %v2193_v13  ;;  %2779 = vmatpush.bf16.msrb.mxu3 %v5829_v55  ;;  %v5760_v0 = vld [vmem:[#allocation9 + $0x28] sm:$0xf]  ;;  %v5757_v30 = vor.u32 %v6514_v59, %v5754_v29  ;;  %v6517_v12 = vld [vmem:[#allocation9 + $0x34] sm:$0xf0] }
 0x3fa   :  { %v2198_v9 = vmul.f32 %v2186_v5, %v7552_v57  ;;  %v2200_v7 = vmul.f32 %v6794_v26, %v2178_v4  ;;  %v6528_v4 = vld [vmem:[#allocation9 + $0x8c] sm:$0xf0]  ;;  %v5802_v26 = vld [vmem:[#allocation9 + $0x90] sm:$0xf0]  ;;  %v6515_v41 = vld [vmem:[#allocation9 + $0x2c] sm:$0xf]  ;;  %v5761_v47 = vor.u32 %v6517_v12, %v5760_v0 }
 0x3fb   :  { %v6796_v19 = vpop.eup %6795  ;;  %v5801_v5 = vor.u32 %v6528_v4, %v5800_v40  ;;  %v5805_v13 = vor.u32 %v6526_v25, %v5802_v26  ;;  %v5762_v39 = vld [vmem:[#allocation9 + $0x38] sm:$0xf0]  ;;  %v8340_v25 = vld [vmem:[#allocation28_spill] sm:$0xff]  ;;  %v5736_v26 = vld [vmem:[#allocation9] sm:$0xf] }
 0x3fc   :  { %v7576_v23 = vadd.f32 %v2200_v7, %v2198_v9  ;;  %v6798_v24 = vpop.eup %6797  ;;  %v2194_v50 = vmul.f32 0.5, %v6796_v19  ;;  %v5808_v9 = vld [vmem:[#allocation9 + $0x88] sm:$0xf]  ;;  %v6529_v7 = vld [vmem:[#allocation9 + $0x94] sm:$0xf0]  ;;  %v5765_v55 = vor.u32 %v6515_v41, %v5762_v39  ;;  %v8339_v40 = vld [vmem:[#allocation27_spill] sm:$0xff] }
 0x3fd   :  { %v2205_v3 = vmul.f32 %v6798_v24, %v2195_v20  ;;  %v5809_v19 = vor.u32 %v6529_v7, %v5808_v9  ;;  %v6527_v24 = vld [vmem:[#allocation9 + $0x8c] sm:$0xf]  ;;  %v5810_v20 = vld [vmem:[#allocation9 + $0x98] sm:$0xf0]  ;;  %2738 = vmatpush.bf16.msrb.mxu0 %v5801_v5  ;;  %2752 = vmatpush.bf16.msrb.mxu1 %v5805_v13  ;;  %v522_v4 = vadd.f32 %v8339_v40, %v7460_v1  ;;  %v6512_v9 = vld [vmem:[#allocation9 + $0xc] sm:$0xf0] }
 0x3fe   :  { %6799 = vtanh.f32 %v7576_v23  ;;  %v2196_v61 = vadd.f32 0.5, %v2194_v50  ;;  %v5813_v50 = vor.u32 %v6527_v24, %v5810_v20  ;;  %v571_v5 = vadd.f32 %v8340_v25, %v7463_v56  ;;  %v6510_v7 = vld [vmem:[#allocation9 + $0x4] sm:$0xf]  ;;  %v8341_v13 = vld [vmem:[#allocation29_spill] sm:$0xff]  ;;  %v8342_v24 = vld [vmem:[#allocation30_spill] sm:$0xff] }
 0x3ff   :  { %v2207_v17 = vpack.c.bf16 %v2205_v3, %v2205_v3  ;;  %2766 = vmatpush.bf16.msrb.mxu2 %v5809_v19  ;;  %v426_v19 = vadd.f32 %v8341_v13, %v7446_v53  ;;  %v475_v20 = vadd.f32 %v8342_v24, %v7449_v58  ;;  %v5978_v14 = vld [vmem:[#allocation9 + $0xf0] sm:$0xf0]  ;;  %v6573_v29 = vld [vmem:[#allocation9 + $0xf4] sm:$0xf0]  ;;  %v6571_v39 = vld [vmem:[#allocation9 + $0xec] sm:$0xf] }
 0x400   :  { %2780 = vmatpush.bf16.msrb.mxu3 %v5813_v50  ;;  %v5968_v15 = vld [vmem:[#allocation9 + $0xc8] sm:$0xf] }
 0x401   :  { %v2257_v18 = vunpack.c.l.b16 %v2207_v17 }
 0x404   :  { %v6800_v35 = vpop.eup %6799 }
 0x405   :  { %v2206_v49 = vmul.f32 %v6800_v35, %v2196_v61  ;;  %v6524_v61 = vld [vmem:[#allocation9 + $0x6c] sm:$0xf0]  ;;  %v6522_v35 = vld [vmem:[#allocation9 + $0x64] sm:$0xf] }
 0x407   :  { %v2208_v36 = vpack.c.bf16 %v2206_v49, %v2206_v49  ;;  %v6669_v52 = vpack.c.bf16 %v2206_v49, %v2205_v3  ;;  %v5784_v3 = vld [vmem:[#allocation9 + $0x60] sm:$0xf]  ;;  %v5786_v49 = vld [vmem:[#allocation9 + $0x70] sm:$0xf0] }
 0x408   :  { %v5785_v17 = vor.u32 %v6524_v61, %v5784_v3  ;;  %v5737_v61 = vor.u32 %v6512_v9, %v5736_v26 }
 0x409   :  { %6670 = vst [vmem:[#allocation3 + $0x8] sm:$0xff] %v6669_v52   ;;  %v2258_v57 = vunpack.c.l.b16 %v2208_v36  ;;  %v5792_v36 = vld [vmem:[#allocation9 + $0x68] sm:$0xf]  ;;  %v6525_v52 = vld [vmem:[#allocation9 + $0x74] sm:$0xf0] }
 0x40a   :  { %2739 = vmatpush.bf16.msrb.mxu0 %v5785_v17  ;;  %v5744_v17 = vld [vmem:[#allocation9 + $0x8] sm:$0xf] }
 0x40b   :  { %v2259_v43 = vpack.c.b16 %v2258_v57, %v2257_v18  ;;  %v5789_v18 = vor.u32 %v6522_v35, %v5786_v49  ;;  %v5793_v57 = vor.u32 %v6525_v52, %v5792_v36  ;;  %v5738_v35 = vld [vmem:[#allocation9 + $0x10] sm:$0xf0]  ;;  %v6513_v49 = vld [vmem:[#allocation9 + $0x14] sm:$0xf0] }
 0x40d   :  { %2429 = vmatmul.bf16.vlgmr.msra.gmra.mxu0 %v2259_v43  ;;  %2443 = vmatmul.bf16.vlgmr.msra.gmra.mxu1 %v2259_v43 }
 0x40e   :  { %2457 = vmatmul.bf16.vlgmr.msra.gmra.mxu2 %v2259_v43  ;;  %2471 = vmatmul.bf16.vlgmr.msra.gmra.mxu3 %v2259_v43  ;;  %v6523_v43 = vld [vmem:[#allocation9 + $0x6c] sm:$0xf] }
 0x40f   :  { %v5797_v21 = vor.u32 %v6523_v43, %v5794_v16  ;;  %2753 = vmatpush.bf16.msrb.mxu1 %v5789_v18  ;;  %2767 = vmatpush.bf16.msrb.mxu2 %v5793_v57  ;;  %v5741_v57 = vor.u32 %v6510_v7, %v5738_v35  ;;  %v5745_v43 = vor.u32 %v6513_v49, %v5744_v17  ;;  %v6511_v16 = vld [vmem:[#allocation9 + $0xc] sm:$0xf] }
 0x410   :  { %2740 = vmatpush.bf16.msrb.mxu0 %v5769_v38 }
 0x411   :  { %2781 = vmatpush.bf16.msrb.mxu3 %v5797_v21  ;;  %v5746_v21 = vld [vmem:[#allocation9 + $0x18] sm:$0xf0] }
 0x412   :  { %v5749_v32 = vor.u32 %v6511_v16, %v5746_v21 }
 0x413   :  { %2754 = vmatpush.bf16.msrb.mxu1 %v5773_v11  ;;  %2768 = vmatpush.bf16.msrb.mxu2 %v5777_v27  ;;  %v5976_v11 = vld [vmem:[#allocation9 + $0xe0] sm:$0xf]  ;;  %v6572_v27 = vld [vmem:[#allocation9 + $0xec] sm:$0xf0] }
 0x414   :  { %2741 = vmatpush.bf16.msrb.mxu0 %v5753_v2  ;;  %v5984_v2 = vld [vmem:[#allocation9 + $0xe8] sm:$0xf] }
 0x415   :  { %2782 = vmatpush.bf16.msrb.mxu3 %v5781_v63  ;;  %v6570_v63 = vld [vmem:[#allocation9 + $0xe4] sm:$0xf]  ;;  %v5985_v41 = vor.u32 %v6573_v29, %v5984_v2  ;;  %v6563_v2 = vld [vmem:[#allocation9 + $0xac] sm:$0xf]  ;;  %v5954_v29 = vld [vmem:[#allocation9 + $0xb8] sm:$0xf0] }
 0x417   :  { %2755 = vmatpush.bf16.msrb.mxu1 %v5757_v30  ;;  %2769 = vmatpush.bf16.msrb.mxu2 %v5761_v47  ;;  %v5986_v47 = vld [vmem:[#allocation9 + $0xf8] sm:$0xf0] }
 0x418   :  { %2742 = vmatpush.bf16.msrb.mxu0 %v5737_v61 }
 0x419   :  { %2783 = vmatpush.bf16.msrb.mxu3 %v5765_v55 }
 0x41b   :  { %2756 = vmatpush.bf16.msrb.mxu1 %v5741_v57  ;;  %2770 = vmatpush.bf16.msrb.mxu2 %v5745_v43 }
 0x41d   :  { %2784 = vmatpush.bf16.msrb.mxu3 %v5749_v32 }
 0x41f   :  { %3077 = vmatpush.bf16.msra.mxu2 %v5985_v41  ;;  %v6558_v41 = vld [vmem:[#allocation9 + $0x84] sm:$0xf] }
 0x48a   :  { %v2430_v6 = vpop.f32.mrf.mxu0  ;;  %v2444_v10 = vpop.f32.mrf.mxu1 }
 0x48b   :  { %v2477_v8 = vadd.f32 %v2430_v6, %v424_v48  ;;  %v2478_v51 = vadd.f32 %v2444_v10, %v473_v54 }
 0x48d   :  { %v2485_v34 = vmul.f32 0.5, %v2477_v8  ;;  %v2493_v62 = vmul.f32 0.5, %v2478_v51  ;;  %v5977_v51 = vor.u32 %v6572_v27, %v5976_v11  ;;  %v6567_v11 = vld [vmem:[#allocation9 + $0xcc] sm:$0xf]  ;;  %v5970_v27 = vld [vmem:[#allocation9 + $0xd8] sm:$0xf0] }
 0x48e   :  { %v5973_v60 = vor.u32 %v6567_v11, %v5970_v27 }
 0x48f   :  { %6801 = vtanh.f32 %v2485_v34  ;;  %3049 = vmatpush.bf16.msra.mxu0 %v5977_v51  ;;  %v6562_v51 = vld [vmem:[#allocation9 + $0xa4] sm:$0xf] }
 0x490   :  { %6803 = vtanh.f32 %v2493_v62  ;;  %v5981_v62 = vor.u32 %v6570_v63, %v5978_v14  ;;  %v5946_v14 = vld [vmem:[#allocation9 + $0xb0] sm:$0xf0] }
 0x491   :  { %v2458_v50 = vpop.f32.mrf.mxu2  ;;  %v2472_v3 = vpop.f32.mrf.mxu3 }
 0x492   :  { %v2479_v36 = vadd.f32 %v2458_v50, %v522_v4  ;;  %v2432_v52 = vpop.f32.mrf.mxu0  ;;  %v2446_v18 = vpop.f32.mrf.mxu1  ;;  %v2480_v44 = vadd.f32 %v2472_v3, %v571_v5  ;;  %3063 = vmatpush.bf16.msra.mxu1 %v5981_v62  ;;  %v5989_v4 = vor.u32 %v6571_v39, %v5986_v47  ;;  %v5930_v47 = vld [vmem:[#allocation9 + $0x90] sm:$0xf0] }
 0x493   :  { %v2481_v31 = vadd.f32 %v2432_v52, %v426_v19  ;;  %v2482_v22 = vadd.f32 %v2446_v18, %v475_v20 }
 0x494   :  { %6805 = vtanh.f32 %v2479_v36  ;;  %v2503_v10 = vmul.f32 0.5, %v2480_v44  ;;  %3091 = vmatpush.bf16.msra.mxu3 %v5989_v4  ;;  %v5933_v4 = vor.u32 %v6558_v41, %v5930_v47  ;;  %v6610_v47 = vld [vmem:[#allocation12 + $0xe4] sm:$0xf] }
 0x495   :  { %v6802_v48 = vpop.eup %6801  ;;  %v2486_v37 = vmul.f32 0.5, %v2481_v31  ;;  %v2494_v54 = vmul.f32 0.5, %v2482_v22 }
 0x496   :  { %v6804_v38 = vpop.eup %6803  ;;  %v2489_v45 = vmul.f32 0.5, %v6802_v48  ;;  %v5960_v48 = vld [vmem:[#allocation9 + $0xc0] sm:$0xf] }
 0x497   :  { %v2497_v6 = vmul.f32 0.5, %v6804_v38  ;;  %6807 = vtanh.f32 %v2486_v37  ;;  %v6568_v37 = vld [vmem:[#allocation9 + $0xcc] sm:$0xf0] }
 0x498   :  { %v2491_v8 = vadd.f32 0.5, %v2489_v45  ;;  %6809 = vtanh.f32 %v2494_v54  ;;  %v6566_v54 = vld [vmem:[#allocation9 + $0xc4] sm:$0xf]  ;;  %v5961_v38 = vor.u32 %v6568_v37, %v5960_v48  ;;  %v5962_v45 = vld [vmem:[#allocation9 + $0xd0] sm:$0xf0]  ;;  %3092 = vmatpush.bf16.msra.mxu3 %v5973_v60 }
 0x499   :  { %v2499_v33 = vadd.f32 0.5, %v2497_v6  ;;  %v2460_v59 = vpop.f32.mrf.mxu2  ;;  %v2474_v34 = vpop.f32.mrf.mxu3  ;;  %6811 = vtanh.f32 %v2503_v10  ;;  %v5965_v6 = vor.u32 %v6566_v54, %v5962_v45  ;;  %v5906_v48 = vld [vmem:[#allocation9 + $0x58] sm:$0xf0]  ;;  %v5880_v54 = vld [vmem:[#allocation9 + $0x20] sm:$0xf] }
 0x49a   :  { %v6806_v0 = vpop.eup %6805  ;;  %v2483_v30 = vadd.f32 %v2460_v59, %v524_v46  ;;  %v2484_v12 = vadd.f32 %v2474_v34, %v573_v28  ;;  %v6569_v46 = vld [vmem:[#allocation9 + $0xd4] sm:$0xf0]  ;;  %3050 = vmatpush.bf16.msra.mxu0 %v5961_v38  ;;  %v5944_v28 = vld [vmem:[#allocation9 + $0xa0] sm:$0xf]  ;;  %v5949_v34 = vor.u32 %v6562_v51, %v5946_v14  ;;  %v6548_v38 = vld [vmem:[#allocation9 + $0x2c] sm:$0xf0] }
 0x49b   :  { %v2511_v55 = vmul.f32 %v2499_v33, %v7572_v42  ;;  %v2513_v40 = vmul.f32 %v6806_v0, %v2491_v8  ;;  %v5969_v10 = vor.u32 %v6569_v46, %v5968_v15  ;;  %3064 = vmatpush.bf16.msra.mxu1 %v5965_v6  ;;  %v6564_v8 = vld [vmem:[#allocation9 + $0xac] sm:$0xf0]  ;;  %v5952_v33 = vld [vmem:[#allocation9 + $0xa8] sm:$0xf]  ;;  %v6565_v59 = vld [vmem:[#allocation9 + $0xb4] sm:$0xf0]  ;;  %v5957_v0 = vor.u32 %v6563_v2, %v5954_v29 }
 0x49c   :  { %6813 = vtanh.f32 %v2483_v30  ;;  %v2504_v25 = vmul.f32 0.5, %v2484_v12  ;;  %v5945_v63 = vor.u32 %v6564_v8, %v5944_v28  ;;  %v5953_v62 = vor.u32 %v6565_v59, %v5952_v33  ;;  %v5928_v30 = vld [vmem:[#allocation9 + $0x80] sm:$0xf]  ;;  %v6560_v12 = vld [vmem:[#allocation9 + $0x8c] sm:$0xf0] }
 0x49d   :  { %v6808_v5 = vpop.eup %6807  ;;  %v7596_v26 = vadd.f32 %v2513_v40, %v2511_v55  ;;  %3078 = vmatpush.bf16.msra.mxu2 %v5969_v10  ;;  %3093 = vmatpush.bf16.msra.mxu3 %v5957_v0  ;;  %v5929_v39 = vor.u32 %v6560_v12, %v5928_v30  ;;  %v5936_v55 = vld [vmem:[#allocation9 + $0x88] sm:$0xf]  ;;  %v6561_v40 = vld [vmem:[#allocation9 + $0x94] sm:$0xf0]  ;;  %v6546_v45 = vld [vmem:[#allocation9 + $0x24] sm:$0xf]  ;;  %v5881_v15 = vor.u32 %v6548_v38, %v5880_v54 }
 0x49e   :  { %v6810_v9 = vpop.eup %6809  ;;  %v2490_v7 = vmul.f32 0.5, %v6808_v5  ;;  %6815 = vtanh.f32 %v2504_v25  ;;  %3051 = vmatpush.bf16.msra.mxu0 %v5945_v63  ;;  %v5937_v25 = vor.u32 %v6561_v40, %v5936_v55  ;;  %v6559_v5 = vld [vmem:[#allocation9 + $0x8c] sm:$0xf]  ;;  %v5882_v46 = vld [vmem:[#allocation9 + $0x30] sm:$0xf0] }
 0x49f   :  { %v2498_v13 = vmul.f32 0.5, %v6810_v9  ;;  %v6812_v24 = vpop.eup %6811  ;;  %6817 = vtanh.f32 %v7596_v26  ;;  %3065 = vmatpush.bf16.msra.mxu1 %v5949_v34  ;;  %v5938_v9 = vld [vmem:[#allocation9 + $0x98] sm:$0xf0]  ;;  %v5888_v6 = vld [vmem:[#allocation9 + $0x28] sm:$0xf]  ;;  %v5885_v11 = vor.u32 %v6546_v45, %v5882_v46 }
 0x4a0   :  { %v2492_v19 = vadd.f32 0.5, %v2490_v7  ;;  %v2507_v61 = vmul.f32 0.5, %v6812_v24  ;;  %v5941_v7 = vor.u32 %v6559_v5, %v5938_v9  ;;  %v6554_v24 = vld [vmem:[#allocation9 + $0x64] sm:$0xf]  ;;  %v6549_v10 = vld [vmem:[#allocation9 + $0x34] sm:$0xf0] }
 0x4a1   :  { %v2500_v42 = vadd.f32 0.5, %v2498_v13  ;;  %3079 = vmatpush.bf16.msra.mxu2 %v5953_v62  ;;  %v5912_v13 = vld [vmem:[#allocation9 + $0x60] sm:$0xf]  ;;  %v5889_v27 = vor.u32 %v6549_v10, %v5888_v6  ;;  %v6547_v60 = vld [vmem:[#allocation9 + $0x2c] sm:$0xf] }
 0x4a2   :  { %v6814_v20 = vpop.eup %6813  ;;  %v2509_v36 = vadd.f32 0.5, %v2507_v61  ;;  %3052 = vmatpush.bf16.msra.mxu0 %v5929_v39  ;;  %3094 = vmatpush.bf16.msra.mxu3 %v5941_v7  ;;  %v5890_v28 = vld [vmem:[#allocation9 + $0x38] sm:$0xf0]  ;;  %v5864_v51 = vld [vmem:[#allocation9] sm:$0xf]  ;;  %v8345_v7 = vld [vmem:[#allocation33_spill] sm:$0xff] }
 0x4a3   :  { %v2512_v50 = vmul.f32 %v2500_v42, %v7576_v23  ;;  %v2514_v3 = vmul.f32 %v6814_v20, %v2492_v19  ;;  %3066 = vmatpush.bf16.msra.mxu1 %v5933_v4  ;;  %v6556_v19 = vld [vmem:[#allocation9 + $0x6c] sm:$0xf0]  ;;  %v5914_v20 = vld [vmem:[#allocation9 + $0x70] sm:$0xf0]  ;;  %v5893_v8 = vor.u32 %v6547_v60, %v5890_v28  ;;  %v6542_v14 = vld [vmem:[#allocation9 + $0x4] sm:$0xf] }
 0x4a4   :  { %v6816_v35 = vpop.eup %6815  ;;  %v5913_v42 = vor.u32 %v6556_v19, %v5912_v13  ;;  %v5917_v61 = vor.u32 %v6554_v24, %v5914_v20  ;;  %v6544_v63 = vld [vmem:[#allocation9 + $0xc] sm:$0xf0]  ;;  %v5866_v59 = vld [vmem:[#allocation9 + $0x10] sm:$0xf0]  ;;  %v5872_v34 = vld [vmem:[#allocation9 + $0x8] sm:$0xf]  ;;  %v429_v13 = vadd.f32 %v8345_v7, %v7446_v53 }
 0x4a5   :  { %v7600_v17 = vadd.f32 %v2514_v3, %v2512_v50  ;;  %v6818_v49 = vpop.eup %6817  ;;  %v2508_v52 = vmul.f32 0.5, %v6816_v35  ;;  %3080 = vmatpush.bf16.msra.mxu2 %v5937_v25  ;;  %v5920_v50 = vld [vmem:[#allocation9 + $0x68] sm:$0xf]  ;;  %v6557_v3 = vld [vmem:[#allocation9 + $0x74] sm:$0xf0]  ;;  %v5865_v33 = vor.u32 %v6544_v63, %v5864_v51  ;;  %v5869_v2 = vor.u32 %v6542_v14, %v5866_v59  ;;  %v8347_v51 = vld [vmem:[#allocation35_spill] sm:$0xff] }
 0x4a6   :  { %v2519_v18 = vmul.f32 %v6818_v49, %v2509_v36  ;;  %v5921_v35 = vor.u32 %v6557_v3, %v5920_v50  ;;  %v6555_v49 = vld [vmem:[#allocation9 + $0x6c] sm:$0xf]  ;;  %v5922_v36 = vld [vmem:[#allocation9 + $0x78] sm:$0xf0]  ;;  %3053 = vmatpush.bf16.msra.mxu0 %v5913_v42  ;;  %v6545_v62 = vld [vmem:[#allocation9 + $0x14] sm:$0xf0]  ;;  %v527_v63 = vadd.f32 %v8347_v51, %v7460_v1 }
 0x4a7   :  { %6819 = vtanh.f32 %v7600_v17  ;;  %v2510_v57 = vadd.f32 0.5, %v2508_v52  ;;  %v5925_v52 = vor.u32 %v6555_v49, %v5922_v36  ;;  %3067 = vmatpush.bf16.msra.mxu1 %v5917_v61  ;;  %v5873_v29 = vor.u32 %v6545_v62, %v5872_v34  ;;  %v6543_v0 = vld [vmem:[#allocation9 + $0xc] sm:$0xf]  ;;  %v5874_v30 = vld [vmem:[#allocation9 + $0x18] sm:$0xf0]  ;;  %v8346_v50 = vld [vmem:[#allocation34_spill] sm:$0xff] }
 0x4a8   :  { %v2521_v16 = vpack.c.bf16 %v2519_v18, %v2519_v18  ;;  %v6136_v12 = vld [vmem:[#allocation12 + $0xe0] sm:$0xf]  ;;  %v5877_v41 = vor.u32 %v6543_v0, %v5874_v30  ;;  %v6612_v39 = vld [vmem:[#allocation12 + $0xec] sm:$0xf0]  ;;  %v6138_v55 = vld [vmem:[#allocation12 + $0xf0] sm:$0xf0]  ;;  %v478_v3 = vadd.f32 %v8346_v50, %v7449_v58 }
 0x4a9   :  { %3081 = vmatpush.bf16.msra.mxu2 %v5921_v35  ;;  %3095 = vmatpush.bf16.msra.mxu3 %v5925_v52  ;;  %v6137_v40 = vor.u32 %v6612_v39, %v6136_v12  ;;  %v6141_v4 = vor.u32 %v6610_v47, %v6138_v55  ;;  %v6144_v25 = vld [vmem:[#allocation12 + $0xe8] sm:$0xf]  ;;  %v6613_v5 = vld [vmem:[#allocation12 + $0xf4] sm:$0xf0]  ;;  %v6611_v9 = vld [vmem:[#allocation12 + $0xec] sm:$0xf] }
 0x4aa   :  { %v2571_v22 = vunpack.c.l.b16 %v2521_v16  ;;  %v6145_v19 = vor.u32 %v6613_v5, %v6144_v25  ;;  %v6146_v24 = vld [vmem:[#allocation12 + $0xf8] sm:$0xf0]  ;;  %v6120_v42 = vld [vmem:[#allocation12 + $0xc0] sm:$0xf]  ;;  %v6608_v20 = vld [vmem:[#allocation12 + $0xcc] sm:$0xf0] }
 0x4ab   :  { %v6149_v61 = vor.u32 %v6611_v9, %v6146_v24  ;;  %v6121_v35 = vor.u32 %v6608_v20, %v6120_v42  ;;  %v6606_v49 = vld [vmem:[#allocation12 + $0xc4] sm:$0xf]  ;;  %v6122_v36 = vld [vmem:[#allocation12 + $0xd0] sm:$0xf0]  ;;  %v6128_v52 = vld [vmem:[#allocation12 + $0xc8] sm:$0xf] }
 0x4ac   :  { %v6602_v54 = vld [vmem:[#allocation12 + $0xa4] sm:$0xf]  ;;  %v6106_v46 = vld [vmem:[#allocation12 + $0xb0] sm:$0xf0]  ;;  %v6112_v6 = vld [vmem:[#allocation12 + $0xa8] sm:$0xf] }
 0x4ad   :  { %v6820_v43 = vpop.eup %6819  ;;  %v6109_v10 = vor.u32 %v6602_v54, %v6106_v46  ;;  %v6114_v60 = vld [vmem:[#allocation12 + $0xb8] sm:$0xf0]  ;;  %v8348_v14 = vld [vmem:[#allocation36_spill] sm:$0xff]  ;;  %v6600_v34 = vld [vmem:[#allocation12 + $0x8c] sm:$0xf0] }
 0x4ae   :  { %v2520_v21 = vmul.f32 %v6820_v43, %v2510_v57  ;;  %v6552_v57 = vld [vmem:[#allocation9 + $0x4c] sm:$0xf0]  ;;  %v6550_v43 = vld [vmem:[#allocation9 + $0x44] sm:$0xf]  ;;  %v6598_v62 = vld [vmem:[#allocation12 + $0x84] sm:$0xf] }
 0x4af   :  { %v6088_v59 = vld [vmem:[#allocation12 + $0x80] sm:$0xf]  ;;  %v8350_v0 = vld [vmem:[#allocation38_spill] sm:$0xff]  ;;  %v6096_v55 = vld [vmem:[#allocation12 + $0x88] sm:$0xf] }
 0x4b0   :  { %v2522_v44 = vpack.c.bf16 %v2520_v21, %v2520_v21  ;;  %v6674_v31 = vpack.c.bf16 %v2520_v21, %v2519_v18  ;;  %v5896_v18 = vld [vmem:[#allocation9 + $0x40] sm:$0xf]  ;;  %v5898_v21 = vld [vmem:[#allocation9 + $0x50] sm:$0xf0]  ;;  %v480_v30 = vadd.f32 %v8350_v0, %v7449_v58  ;;  %v6089_v39 = vor.u32 %v6600_v34, %v6088_v59  ;;  %v6090_v47 = vld [vmem:[#allocation12 + $0x90] sm:$0xf0] }
 0x4b1   :  { %v5897_v16 = vor.u32 %v6552_v57, %v5896_v18  ;;  %v6093_v9 = vor.u32 %v6598_v62, %v6090_v47  ;;  %v6082_v46 = vld [vmem:[#allocation12 + $0x78] sm:$0xf0]  ;;  %v6058_v59 = vld [vmem:[#allocation12 + $0x50] sm:$0xf0]  ;;  %v6064_v34 = vld [vmem:[#allocation12 + $0x48] sm:$0xf] }
 0x4b2   :  { %6675 = vst [vmem:[#allocation3 + $0x20] sm:$0xff] %v6674_v31   ;;  %v2572_v23 = vunpack.c.l.b16 %v2522_v44  ;;  %v5904_v44 = vld [vmem:[#allocation9 + $0x48] sm:$0xf]  ;;  %v6553_v31 = vld [vmem:[#allocation9 + $0x54] sm:$0xf0] }
 0x4b3   :  { %3054 = vmatpush.bf16.msra.mxu0 %v5897_v16  ;;  %v6609_v16 = vld [vmem:[#allocation12 + $0xd4] sm:$0xf0] }
 0x4b4   :  { %v2573_v32 = vpack.c.b16 %v2572_v23, %v2571_v22  ;;  %v5901_v22 = vor.u32 %v6550_v43, %v5898_v21  ;;  %v5905_v23 = vor.u32 %v6553_v31, %v5904_v44  ;;  %v6125_v43 = vor.u32 %v6606_v49, %v6122_v36  ;;  %v6607_v21 = vld [vmem:[#allocation12 + $0xcc] sm:$0xf]  ;;  %v6130_v44 = vld [vmem:[#allocation12 + $0xd8] sm:$0xf0]  ;;  %v6072_v49 = vld [vmem:[#allocation12 + $0x60] sm:$0xf] }
 0x4b5   :  { %v6596_v36 = vld [vmem:[#allocation12 + $0x6c] sm:$0xf0]  ;;  %v6593_v0 = vld [vmem:[#allocation12 + $0x54] sm:$0xf0] }
 0x4b6   :  { %2743 = vmatmul.bf16.vlgmr.msrb.gmra.mxu0 %v2573_v32  ;;  %2757 = vmatmul.bf16.vlgmr.msrb.gmra.mxu1 %v2573_v32 }
 0x4b7   :  { %2771 = vmatmul.bf16.vlgmr.msrb.gmra.mxu2 %v2573_v32  ;;  %2785 = vmatmul.bf16.vlgmr.msrb.gmra.mxu3 %v2573_v32  ;;  %v6551_v32 = vld [vmem:[#allocation9 + $0x4c] sm:$0xf] }
 0x4b8   :  { %v5909_v37 = vor.u32 %v6551_v32, %v5906_v48  ;;  %3068 = vmatpush.bf16.msra.mxu1 %v5901_v22  ;;  %3082 = vmatpush.bf16.msra.mxu2 %v5905_v23  ;;  %v6129_v23 = vor.u32 %v6609_v16, %v6128_v52  ;;  %v6133_v32 = vor.u32 %v6607_v21, %v6130_v44  ;;  %v6104_v48 = vld [vmem:[#allocation12 + $0xa0] sm:$0xf]  ;;  %v6594_v21 = vld [vmem:[#allocation12 + $0x64] sm:$0xf]  ;;  %v6074_v44 = vld [vmem:[#allocation12 + $0x70] sm:$0xf0] }
 0x4b9   :  { %3055 = vmatpush.bf16.msra.mxu0 %v5881_v15  ;;  %v6073_v16 = vor.u32 %v6596_v36, %v6072_v49  ;;  %v6024_v36 = vld [vmem:[#allocation12] sm:$0xf] }
 0x4ba   :  { %3096 = vmatpush.bf16.msra.mxu3 %v5909_v37  ;;  %v6604_v37 = vld [vmem:[#allocation12 + $0xac] sm:$0xf0] }
 0x4bb   :  { %v6105_v15 = vor.u32 %v6604_v37, %v6104_v48  ;;  %v6597_v48 = vld [vmem:[#allocation12 + $0x74] sm:$0xf0]  ;;  %v8352_v37 = vld [vmem:[#allocation40_spill] sm:$0xff] }
 0x4bc   :  { %3069 = vmatpush.bf16.msra.mxu1 %v5885_v11  ;;  %3083 = vmatpush.bf16.msra.mxu2 %v5889_v27  ;;  %v6605_v11 = vld [vmem:[#allocation12 + $0xb4] sm:$0xf0]  ;;  %v6603_v27 = vld [vmem:[#allocation12 + $0xac] sm:$0xf]  ;;  %v578_v54 = vadd.f32 %v8352_v37, %v7463_v56 }
 0x4bd   :  { %3056 = vmatpush.bf16.msra.mxu0 %v5865_v33  ;;  %v6113_v28 = vor.u32 %v6605_v11, %v6112_v6  ;;  %v576_v33 = vadd.f32 %v8348_v14, %v7463_v56 }
 0x4be   :  { %3097 = vmatpush.bf16.msra.mxu3 %v5893_v8  ;;  %v6117_v8 = vor.u32 %v6603_v27, %v6114_v60  ;;  %v6056_v60 = vld [vmem:[#allocation12 + $0x40] sm:$0xf] }
 0x4c0   :  { %3070 = vmatpush.bf16.msra.mxu1 %v5869_v2  ;;  %3084 = vmatpush.bf16.msra.mxu2 %v5873_v29  ;;  %v8349_v2 = vld [vmem:[#allocation37_spill] sm:$0xff] }
 0x4c1   :  { %3426 = vmatpush.bf16.msrb.mxu0 %v6137_v40  ;;  %v431_v29 = vadd.f32 %v8349_v2, %v7446_v53  ;;  %v6601_v40 = vld [vmem:[#allocation12 + $0x94] sm:$0xf0] }
 0x4c2   :  { %3098 = vmatpush.bf16.msra.mxu3 %v5877_v41  ;;  %v6097_v7 = vor.u32 %v6601_v40, %v6096_v55  ;;  %v6040_v55 = vld [vmem:[#allocation12 + $0x20] sm:$0xf]  ;;  %v6588_v40 = vld [vmem:[#allocation12 + $0x2c] sm:$0xf0] }
 0x4c4   :  { %3475 = vmatpush.bf16.msrb.mxu1 %v6141_v4  ;;  %3524 = vmatpush.bf16.msrb.mxu2 %v6145_v19  ;;  %v6098_v19 = vld [vmem:[#allocation12 + $0x98] sm:$0xf0] }
 0x4c5   :  { %3427 = vmatpush.bf16.msrb.mxu0 %v6121_v35 }
 0x4c6   :  { %3573 = vmatpush.bf16.msrb.mxu3 %v6149_v61 }
 0x4c8   :  { %3476 = vmatpush.bf16.msrb.mxu1 %v6125_v43  ;;  %3525 = vmatpush.bf16.msrb.mxu2 %v6129_v23  ;;  %v6077_v23 = vor.u32 %v6594_v21, %v6074_v44  ;;  %v6026_v21 = vld [vmem:[#allocation12 + $0x10] sm:$0xf0] }
 0x4c9   :  { %3428 = vmatpush.bf16.msrb.mxu0 %v6105_v15  ;;  %v6595_v15 = vld [vmem:[#allocation12 + $0x6c] sm:$0xf] }
 0x4ca   :  { %3574 = vmatpush.bf16.msrb.mxu3 %v6133_v32  ;;  %v6080_v32 = vld [vmem:[#allocation12 + $0x68] sm:$0xf]  ;;  %v6085_v27 = vor.u32 %v6595_v15, %v6082_v46 }
 0x4cc   :  { %3477 = vmatpush.bf16.msrb.mxu1 %v6109_v10  ;;  %3526 = vmatpush.bf16.msrb.mxu2 %v6113_v28  ;;  %v6592_v28 = vld [vmem:[#allocation12 + $0x4c] sm:$0xf0] }
 0x4cd   :  { %3429 = vmatpush.bf16.msrb.mxu0 %v6089_v39  ;;  %v6057_v14 = vor.u32 %v6592_v28, %v6056_v60  ;;  %v6065_v39 = vor.u32 %v6593_v0, %v6064_v34  ;;  %v6642_v0 = vld [vmem:[#allocation13 + $0xe4] sm:$0xf] }
 0x4ce   :  { %3575 = vmatpush.bf16.msrb.mxu3 %v6117_v8 }
 0x4d0   :  { %3478 = vmatpush.bf16.msrb.mxu1 %v6093_v9  ;;  %3527 = vmatpush.bf16.msrb.mxu2 %v6097_v7  ;;  %v6042_v9 = vld [vmem:[#allocation12 + $0x30] sm:$0xf0] }
 0x4d1   :  { %3430 = vmatpush.bf16.msrb.mxu0 %v6073_v16  ;;  %v6582_v16 = vld [vmem:[#allocation12 + $0x4] sm:$0xf] }
 0x4d4   :  { %3479 = vmatpush.bf16.msrb.mxu1 %v6077_v23  ;;  %v6585_v23 = vld [vmem:[#allocation12 + $0x14] sm:$0xf0] }
 0x4d5   :  { %3431 = vmatpush.bf16.msrb.mxu0 %v6057_v14 }
 0x533   :  { %v2744_v18 = vpop.f32.mrf.mxu0  ;;  %v2758_v57 = vpop.f32.mrf.mxu1 }
 0x534   :  { %v2791_v31 = vadd.f32 %v2744_v18, %v429_v13  ;;  %v2792_v22 = vadd.f32 %v2758_v57, %v478_v3  ;;  %v6599_v13 = vld [vmem:[#allocation12 + $0x8c] sm:$0xf]  ;;  %v8351_v18 = vld [vmem:[#allocation39_spill] sm:$0xff] }
 0x535   :  { %v6101_v50 = vor.u32 %v6599_v13, %v6098_v19  ;;  %v529_v57 = vadd.f32 %v8351_v18, %v7460_v1 }
 0x536   :  { %v2799_v38 = vmul.f32 0.5, %v2791_v31  ;;  %v2807_v45 = vmul.f32 0.5, %v2792_v22 }
 0x537   :  { %3576 = vmatpush.bf16.msrb.mxu3 %v6101_v50 }
 0x538   :  { %6821 = vtanh.f32 %v2799_v38 }
 0x539   :  { %6823 = vtanh.f32 %v2807_v45  ;;  %v6081_v45 = vor.u32 %v6597_v48, %v6080_v32  ;;  %v6583_v32 = vld [vmem:[#allocation12 + $0xc] sm:$0xf] }
 0x53a   :  { %v2772_v12 = vpop.f32.mrf.mxu2  ;;  %v2786_v41 = vpop.f32.mrf.mxu3 }
 0x53b   :  { %v2793_v4 = vadd.f32 %v2772_v12, %v527_v63  ;;  %v2746_v25 = vpop.f32.mrf.mxu0  ;;  %v2760_v5 = vpop.f32.mrf.mxu1  ;;  %v2794_v24 = vadd.f32 %v2786_v41, %v576_v33  ;;  %3528 = vmatpush.bf16.msrb.mxu2 %v6081_v45  ;;  %v6590_v33 = vld [vmem:[#allocation12 + $0x44] sm:$0xf]  ;;  %3577 = vmatpush.bf16.msrb.mxu3 %v6085_v27  ;;  %v6066_v12 = vld [vmem:[#allocation12 + $0x58] sm:$0xf0] }
 0x53c   :  { %v2795_v42 = vadd.f32 %v2746_v25, %v431_v29  ;;  %v2796_v20 = vadd.f32 %v2760_v5, %v480_v30  ;;  %v6061_v29 = vor.u32 %v6590_v33, %v6058_v59  ;;  %v6591_v30 = vld [vmem:[#allocation12 + $0x4c] sm:$0xf]  ;;  %v6041_v5 = vor.u32 %v6588_v40, %v6040_v55  ;;  %v6575_v40 = vld [vmem:[#allocation3] sm:$0xff] }
 0x53d   :  { %6825 = vtanh.f32 %v2793_v4  ;;  %v2817_v22 = vmul.f32 0.5, %v2794_v24  ;;  %v6069_v47 = vor.u32 %v6591_v30, %v6066_v12  ;;  %v6048_v24 = vld [vmem:[#allocation12 + $0x28] sm:$0xf]  ;;  %v6266_v12 = vld [vmem:[#allocation13 + $0xf0] sm:$0xf0] }
 0x53e   :  { %v6822_v3 = vpop.eup %6821  ;;  %v2800_v61 = vmul.f32 0.5, %v2795_v42  ;;  %v2808_v35 = vmul.f32 0.5, %v2796_v20  ;;  %3480 = vmatpush.bf16.msrb.mxu1 %v6061_v29  ;;  %v6589_v42 = vld [vmem:[#allocation12 + $0x34] sm:$0xf0]  ;;  %3432 = vmatpush.bf16.msrb.mxu0 %v6041_v5  ;;  %v6644_v29 = vld [vmem:[#allocation13 + $0xec] sm:$0xf0] }
 0x53f   :  { %v6824_v52 = vpop.eup %6823  ;;  %v2803_v43 = vmul.f32 0.5, %v6822_v3  ;;  %3529 = vmatpush.bf16.msrb.mxu2 %v6065_v39  ;;  %3578 = vmatpush.bf16.msrb.mxu3 %v6069_v47  ;;  %v6049_v50 = vor.u32 %v6589_v42, %v6048_v24  ;;  %v6587_v3 = vld [vmem:[#allocation12 + $0x2c] sm:$0xf]  ;;  %v6645_v39 = vld [vmem:[#allocation13 + $0xf4] sm:$0xf0]  ;;  %v7629_v47 = vor.u32 %v6642_v0, %v6266_v12 }
 0x540   :  { %v2811_v31 = vmul.f32 0.5, %v6824_v52  ;;  %6827 = vtanh.f32 %v2800_v61  ;;  %v6050_v61 = vld [vmem:[#allocation12 + $0x38] sm:$0xf0]  ;;  %v6584_v52 = vld [vmem:[#allocation12 + $0xc] sm:$0xf0] }
 0x541   :  { %v2805_v38 = vadd.f32 0.5, %v2803_v43  ;;  %6829 = vtanh.f32 %v2808_v35  ;;  %v6053_v49 = vor.u32 %v6587_v3, %v6050_v61  ;;  %v6025_v43 = vor.u32 %v6584_v52, %v6024_v36  ;;  %v6274_v5 = vld [vmem:[#allocation13 + $0xf8] sm:$0xf0]  ;;  %v6576_v61 = vld [vmem:[#allocation3 + $0x18] sm:$0xff]  ;;  %v6232_v36 = vld [vmem:[#allocation13 + $0xa0] sm:$0xf] }
 0x542   :  { %v2813_v6 = vadd.f32 0.5, %v2811_v31  ;;  %v2774_v10 = vpop.f32.mrf.mxu2  ;;  %v2788_v11 = vpop.f32.mrf.mxu3  ;;  %6831 = vtanh.f32 %v2817_v22  ;;  %v6029_v31 = vor.u32 %v6582_v16, %v6026_v21  ;;  %v6032_v22 = vld [vmem:[#allocation12 + $0x8] sm:$0xf]  ;;  %v6629_v0 = vld [vmem:[#allocation13 + $0x74] sm:$0xf0] }
 0x543   :  { %v6826_v8 = vpop.eup %6825  ;;  %v2797_v51 = vadd.f32 %v2774_v10, %v529_v57  ;;  %v2798_v63 = vadd.f32 %v2788_v11, %v578_v54  ;;  %3530 = vmatpush.bf16.msrb.mxu2 %v6049_v50  ;;  %3579 = vmatpush.bf16.msrb.mxu3 %v6053_v49  ;;  %v6033_v54 = vor.u32 %v6585_v23, %v6032_v22  ;;  %v6641_v50 = vld [vmem:[#allocation13 + $0xd4] sm:$0xf0]  ;;  %v6258_v49 = vld [vmem:[#allocation13 + $0xd8] sm:$0xf0]  ;;  %v6577_v23 = vld [vmem:[#allocation3 + $0x10] sm:$0xff] }
 0x544   :  { %v2825_v62 = vmul.f32 %v2813_v6, %v7596_v26  ;;  %v2827_v2 = vmul.f32 %v6826_v8, %v2805_v38  ;;  %v6586_v26 = vld [vmem:[#allocation12 + $0x24] sm:$0xf]  ;;  %v6034_v38 = vld [vmem:[#allocation12 + $0x18] sm:$0xf0]  ;;  %3433 = vmatpush.bf16.msrb.mxu0 %v6025_v43  ;;  %v6234_v43 = vld [vmem:[#allocation13 + $0xb0] sm:$0xf0] }
 0x545   :  { %6833 = vtanh.f32 %v2797_v51  ;;  %v2818_v41 = vmul.f32 0.5, %v2798_v63  ;;  %v6045_v19 = vor.u32 %v6586_v26, %v6042_v9  ;;  %v6037_v15 = vor.u32 %v6583_v32, %v6034_v38  ;;  %v6248_v26 = vld [vmem:[#allocation13 + $0xc0] sm:$0xf]  ;;  %v6635_v32 = vld [vmem:[#allocation13 + $0xac] sm:$0xf] }
 0x546   :  { %v6828_v4 = vpop.eup %6827  ;;  %v7620_v25 = vadd.f32 %v2827_v2, %v2825_v62  ;;  %v6574_v62 = vld [vmem:[#allocation3 + $0x30] sm:$0xff]  ;;  %v6264_v2 = vld [vmem:[#allocation13 + $0xe0] sm:$0xf] }
 0x547   :  { %v6830_v7 = vpop.eup %6829  ;;  %v2804_v13 = vmul.f32 0.5, %v6828_v4  ;;  %6835 = vtanh.f32 %v2818_v41  ;;  %3481 = vmatpush.bf16.msrb.mxu1 %v6045_v19  ;;  %3531 = vmatpush.bf16.msrb.mxu2 %v6033_v54  ;;  %v7627_v30 = vor.u32 %v6644_v29, %v6264_v2  ;;  %v6272_v41 = vld [vmem:[#allocation13 + $0xe8] sm:$0xf]  ;;  %v6643_v4 = vld [vmem:[#allocation13 + $0xec] sm:$0xf] }
 0x548   :  { %v2812_v20 = vmul.f32 0.5, %v6830_v7  ;;  %v6832_v18 = vpop.eup %6831  ;;  %6837 = vtanh.f32 %v7620_v25  ;;  %3580 = vmatpush.bf16.msrb.mxu3 %v6037_v15  ;;  %v7631_v55 = vor.u32 %v6645_v39, %v6272_v41  ;;  %v7636_v9 = vor.u32 %v6643_v4, %v6274_v5  ;;  %v6640_v7 = vld [vmem:[#allocation13 + $0xcc] sm:$0xf0]  ;;  %v6250_v19 = vld [vmem:[#allocation13 + $0xd0] sm:$0xf0]  ;;  %v8353_v39 = vld [vmem:[#allocation41_spill] sm:$0xff] }
 0x549   :  { %v2806_v35 = vadd.f32 0.5, %v2804_v13  ;;  %v2821_v45 = vmul.f32 0.5, %v6832_v18  ;;  %v6638_v13 = vld [vmem:[#allocation13 + $0xc4] sm:$0xf]  ;;  %v7638_v24 = vor.u32 %v6640_v7, %v6248_v26  ;;  %v6636_v18 = vld [vmem:[#allocation13 + $0xac] sm:$0xf0] }
 0x54a   :  { %v2814_v57 = vadd.f32 0.5, %v2812_v20  ;;  %v7640_v42 = vor.u32 %v6638_v13, %v6250_v19  ;;  %v6256_v20 = vld [vmem:[#allocation13 + $0xc8] sm:$0xf]  ;;  %v7650_v16 = vor.u32 %v6636_v18, %v6232_v36  ;;  %v6632_v38 = vld [vmem:[#allocation13 + $0x8c] sm:$0xf0]  ;;  %v8355_v36 = vld [vmem:[#allocation43_spill] sm:$0xff] }
 0x54b   :  { %v6834_v44 = vpop.eup %6833  ;;  %3482 = vmatpush.bf16.msrb.mxu1 %v6029_v31  ;;  %v2823_v11 = vadd.f32 0.5, %v2821_v45  ;;  %v7643_v3 = vor.u32 %v6641_v50, %v6256_v20  ;;  %v6637_v31 = vld [vmem:[#allocation13 + $0xb4] sm:$0xf0]  ;;  %v6630_v45 = vld [vmem:[#allocation13 + $0x84] sm:$0xf]  ;;  %v8354_v4 = vld [vmem:[#allocation42_spill] sm:$0xff]  ;;  %v532_v18 = vadd.f32 %v8355_v36, %v7460_v1 }
 0x54c   :  { %v2826_v48 = vmul.f32 %v2814_v57, %v7600_v17  ;;  %v2828_v37 = vmul.f32 %v6834_v44, %v2806_v35  ;;  %v6639_v35 = vld [vmem:[#allocation13 + $0xcc] sm:$0xf]  ;;  %v6634_v57 = vld [vmem:[#allocation13 + $0xa4] sm:$0xf]  ;;  %v6240_v44 = vld [vmem:[#allocation13 + $0xa8] sm:$0xf]  ;;  %v483_v5 = vadd.f32 %v8354_v4, %v7449_v58 }
 0x54d   :  { %v6836_v46 = vpop.eup %6835  ;;  %v7648_v52 = vor.u32 %v6639_v35, %v6258_v49  ;;  %v7652_v21 = vor.u32 %v6634_v57, %v6234_v43  ;;  %v7655_v22 = vor.u32 %v6637_v31, %v6240_v44  ;;  %v6218_v15 = vld [vmem:[#allocation13 + $0x90] sm:$0xf0]  ;;  %v6208_v29 = vld [vmem:[#allocation13 + $0x68] sm:$0xf]  ;;  %v6627_v20 = vld [vmem:[#allocation13 + $0x6c] sm:$0xf] }
 0x54e   :  { %v7624_v6 = vadd.f32 %v2828_v37, %v2826_v48  ;;  %v6838_v10 = vpop.eup %6837  ;;  %v2822_v27 = vmul.f32 0.5, %v6836_v46  ;;  %v6242_v48 = vld [vmem:[#allocation13 + $0xb8] sm:$0xf0]  ;;  %v6216_v37 = vld [vmem:[#allocation13 + $0x80] sm:$0xf]  ;;  %v7679_v41 = vor.u32 %v6629_v0, %v6208_v29  ;;  %v8357_v44 = vld [vmem:[#allocation45_spill] sm:$0xff] }
 0x54f   :  { %v2833_v60 = vmul.f32 %v6838_v10, %v2823_v11  ;;  %v7660_v54 = vor.u32 %v6635_v32, %v6242_v48  ;;  %v7662_v46 = vor.u32 %v6632_v38, %v6216_v37  ;;  %v7664_v10 = vor.u32 %v6630_v45, %v6218_v15  ;;  %v6224_v11 = vld [vmem:[#allocation13 + $0x88] sm:$0xf]  ;;  %v6202_v2 = vld [vmem:[#allocation13 + $0x70] sm:$0xf0]  ;;  %v6210_v50 = vld [vmem:[#allocation13 + $0x78] sm:$0xf0] }
 0x550   :  { %6839 = vtanh.f32 %v7624_v6  ;;  %v2824_v17 = vadd.f32 0.5, %v2822_v27  ;;  %v6633_v27 = vld [vmem:[#allocation13 + $0x94] sm:$0xf0]  ;;  %v7688_v49 = vor.u32 %v6627_v20, %v6210_v50  ;;  %v8356_v57 = vld [vmem:[#allocation44_spill] sm:$0xff]  ;;  %v436_v31 = vadd.f32 %v8357_v44, %v7446_v53 }
 0x551   :  { %v2835_v8 = vpack.c.bf16 %v2833_v60, %v2833_v60  ;;  %v581_v43 = vadd.f32 %v8356_v57, %v7463_v56  ;;  %v8359_v4 = vld [vmem:[#allocation47_spill] sm:$0xff]  ;;  %v8360_v20 = vld [vmem:[#allocation48_spill] sm:$0xff] }
 0x552   :  { %v583_v50 = vadd.f32 %v8360_v20, %v7463_v56  ;;  %v6168_v36 = vld [vmem:[#allocation13 + $0x20] sm:$0xf] }
 0x553   :  { %v2885_v33 = vunpack.c.l.b16 %v2835_v8  ;;  %v6226_v8 = vld [vmem:[#allocation13 + $0x98] sm:$0xf0] }
 0x556   :  { %v6840_v28 = vpop.eup %6839 }
 0x557   :  { %v2834_v51 = vmul.f32 %v6840_v28, %v2824_v17  ;;  %v6578_v17 = vld [vmem:[#allocation3 + $0x8] sm:$0xff]  ;;  %v6631_v28 = vld [vmem:[#allocation13 + $0x8c] sm:$0xf] }
 0x559   :  { %v2836_v63 = vpack.c.bf16 %v2834_v51, %v2834_v51  ;;  %v6679_v14 = vpack.c.bf16 %v2834_v51, %v2833_v60  ;;  %v7667_v60 = vor.u32 %v6633_v27, %v6224_v11  ;;  %v7672_v51 = vor.u32 %v6631_v28, %v6226_v8  ;;  %v6184_v8 = vld [vmem:[#allocation13 + $0x40] sm:$0xf] }
 0x55b   :  { %6680 = vst [vmem:[#allocation3 + $0x28] sm:$0xff] %v6679_v14   ;;  %v2886_v59 = vunpack.c.l.b16 %v2836_v63  ;;  %v6579_v63 = vld [vmem:[#allocation3 + $0x20] sm:$0xff] }
 0x55d   :  { %v2887_v34 = vpack.c.b16 %v2886_v59, %v2885_v33  ;;  %v6200_v33 = vld [vmem:[#allocation13 + $0x60] sm:$0xf]  ;;  %v6628_v59 = vld [vmem:[#allocation13 + $0x6c] sm:$0xf0] }
 0x55f   :  { %3057 = vmatmul.bf16.vlgmr.msra.gmra.mxu0 %v2887_v34  ;;  %3071 = vmatmul.bf16.vlgmr.msra.gmra.mxu1 %v2887_v34 }
 0x560   :  { %3085 = vmatmul.bf16.vlgmr.msra.gmra.mxu2 %v2887_v34  ;;  %3099 = vmatmul.bf16.vlgmr.msra.gmra.mxu3 %v2887_v34  ;;  %v6626_v34 = vld [vmem:[#allocation13 + $0x64] sm:$0xf] }
 0x561   :  { %3886 = vmatpush.bf16.msra.mxu0 %v7627_v30  ;;  %3900 = vmatpush.bf16.msra.mxu1 %v7629_v47  ;;  %v7677_v12 = vor.u32 %v6626_v34, %v6202_v2  ;;  %v6186_v2 = vld [vmem:[#allocation13 + $0x50] sm:$0xf0] }
 0x562   :  { %3914 = vmatpush.bf16.msra.mxu2 %v7631_v55  ;;  %3928 = vmatpush.bf16.msra.mxu3 %v7636_v9  ;;  %v6580_v14 = vld [vmem:[#allocation3 + $0x28] sm:$0xff] }
 0x565   :  { %3887 = vmatpush.bf16.msra.mxu0 %v7638_v24  ;;  %3901 = vmatpush.bf16.msra.mxu1 %v7640_v42 }
 0x566   :  { %3915 = vmatpush.bf16.msra.mxu2 %v7643_v3  ;;  %3929 = vmatpush.bf16.msra.mxu3 %v7648_v52 }
 0x569   :  { %3888 = vmatpush.bf16.msra.mxu0 %v7650_v16  ;;  %3902 = vmatpush.bf16.msra.mxu1 %v7652_v21 }
 0x56a   :  { %3916 = vmatpush.bf16.msra.mxu2 %v7655_v22  ;;  %3930 = vmatpush.bf16.msra.mxu3 %v7660_v54 }
 0x56d   :  { %3889 = vmatpush.bf16.msra.mxu0 %v7662_v46  ;;  %3903 = vmatpush.bf16.msra.mxu1 %v7664_v10 }
 0x56e   :  { %3917 = vmatpush.bf16.msra.mxu2 %v7667_v60  ;;  %3931 = vmatpush.bf16.msra.mxu3 %v7672_v51 }
 0x56f   :  { %3434 = vmatmul.bf16.vlgmr.msrb.gmra.mxu0 %v6574_v62  ;;  %3483 = vmatmul.bf16.vlgmr.msrb.gmra.mxu1 %v6574_v62 }
 0x570   :  { %3532 = vmatmul.bf16.vlgmr.msrb.gmra.mxu2 %v6574_v62  ;;  %3581 = vmatmul.bf16.vlgmr.msrb.gmra.mxu3 %v6574_v62  ;;  %v7675_v62 = vor.u32 %v6628_v59, %v6200_v33 }
 0x571   :  { %3904 = vmatpush.bf16.msra.mxu1 %v7677_v12 }
 0x572   :  { %3890 = vmatpush.bf16.msra.mxu0 %v7675_v62  ;;  %3918 = vmatpush.bf16.msra.mxu2 %v7679_v41 }
 0x573   :  { %3932 = vmatpush.bf16.msra.mxu3 %v7688_v49 }
 0x57f   :  { %3439 = vmatmul.bf16.gmra.mxu0 %v6575_v40  ;;  %3488 = vmatmul.bf16.gmra.mxu1 %v6575_v40 }
 0x580   :  { %3537 = vmatmul.bf16.gmra.mxu2 %v6575_v40  ;;  %3586 = vmatmul.bf16.gmra.mxu3 %v6575_v40  ;;  %v434_v40 = vadd.f32 %v8353_v39, %v7446_v53  ;;  %v6622_v53 = vld [vmem:[#allocation13 + $0x44] sm:$0xf]  ;;  %v6192_v39 = vld [vmem:[#allocation13 + $0x48] sm:$0xf] }
 0x581   :  { %v7701_v0 = vor.u32 %v6622_v53, %v6186_v2 }
 0x583   :  { %3905 = vmatpush.bf16.msra.mxu1 %v7701_v0 }
 0x58f   :  { %3444 = vmatmul.bf16.gmra.mxu0 %v6576_v61  ;;  %3493 = vmatmul.bf16.gmra.mxu1 %v6576_v61 }
 0x590   :  { %3542 = vmatmul.bf16.gmra.mxu2 %v6576_v61  ;;  %3591 = vmatmul.bf16.gmra.mxu3 %v6576_v61 }
 0x59f   :  { %3449 = vmatmul.bf16.gmra.mxu0 %v6577_v23  ;;  %3498 = vmatmul.bf16.gmra.mxu1 %v6577_v23 }
 0x5a0   :  { %3547 = vmatmul.bf16.gmra.mxu2 %v6577_v23  ;;  %3596 = vmatmul.bf16.gmra.mxu3 %v6577_v23  ;;  %v8358_v23 = vld [vmem:[#allocation46_spill] sm:$0xff] }
 0x5a1   :  { %v485_v32 = vadd.f32 %v8358_v23, %v7449_v58  ;;  %v6170_v23 = vld [vmem:[#allocation13 + $0x30] sm:$0xf0] }
 0x5af   :  { %3454 = vmatmul.bf16.gmra.mxu0 %v6578_v17  ;;  %3503 = vmatmul.bf16.gmra.mxu1 %v6578_v17 }
 0x5b0   :  { %3552 = vmatmul.bf16.gmra.mxu2 %v6578_v17  ;;  %3601 = vmatmul.bf16.gmra.mxu3 %v6578_v17 }
 0x5bf   :  { %3459 = vmatmul.bf16.gmra.mxu0 %v6579_v63  ;;  %3508 = vmatmul.bf16.gmra.mxu1 %v6579_v63 }
 0x5c0   :  { %3557 = vmatmul.bf16.gmra.mxu2 %v6579_v63  ;;  %3606 = vmatmul.bf16.gmra.mxu3 %v6579_v63  ;;  %v6624_v63 = vld [vmem:[#allocation13 + $0x4c] sm:$0xf0] }
 0x5c1   :  { %v7699_v34 = vor.u32 %v6624_v63, %v6184_v8 }
 0x5c3   :  { %3891 = vmatpush.bf16.msra.mxu0 %v7699_v34 }
 0x5cf   :  { %3464 = vmatmul.bf16.gmra.mxu0 %v6580_v14  ;;  %3513 = vmatmul.bf16.gmra.mxu1 %v6580_v14 }
 0x5d0   :  { %3562 = vmatmul.bf16.gmra.mxu2 %v6580_v14  ;;  %3611 = vmatmul.bf16.gmra.mxu3 %v6580_v14 }
 0x5dc   :  { %v3058_v26 = vpop.f32.mrf.mxu0  ;;  %v3072_v7 = vpop.f32.mrf.mxu1 }
 0x5dd   :  { %v3105_v13 = vadd.f32 %v3058_v26, %v434_v40  ;;  %v3106_v19 = vadd.f32 %v3072_v7, %v483_v5  ;;  %v6625_v40 = vld [vmem:[#allocation13 + $0x54] sm:$0xf0]  ;;  %v534_v5 = vadd.f32 %v8359_v4, %v7460_v1 }
 0x5de   :  { %v7706_v7 = vor.u32 %v6625_v40, %v6192_v39 }
 0x5df   :  { %v3113_v61 = vmul.f32 0.5, %v3105_v13  ;;  %v3121_v35 = vmul.f32 0.5, %v3106_v19  ;;  %v6623_v13 = vld [vmem:[#allocation13 + $0x4c] sm:$0xf]  ;;  %v6194_v19 = vld [vmem:[#allocation13 + $0x58] sm:$0xf0] }
 0x5e0   :  { %3919 = vmatpush.bf16.msra.mxu2 %v7706_v7 }
 0x5e1   :  { %6841 = vtanh.f32 %v3113_v61 }
 0x5e2   :  { %6843 = vtanh.f32 %v3121_v35  ;;  %v7711_v35 = vor.u32 %v6623_v13, %v6194_v19 }
 0x5e3   :  { %v3086_v48 = vpop.f32.mrf.mxu2  ;;  %v3100_v37 = vpop.f32.mrf.mxu3 }
 0x5e4   :  { %v3107_v38 = vadd.f32 %v3086_v48, %v532_v18  ;;  %v3108_v45 = vadd.f32 %v3100_v37, %v581_v43  ;;  %v3060_v15 = vpop.f32.mrf.mxu0  ;;  %v3074_v11 = vpop.f32.mrf.mxu1  ;;  %v6620_v18 = vld [vmem:[#allocation13 + $0x2c] sm:$0xf0]  ;;  %3933 = vmatpush.bf16.msra.mxu3 %v7711_v35 }
 0x5e5   :  { %v3109_v27 = vadd.f32 %v3060_v15, %v436_v31  ;;  %v3110_v17 = vadd.f32 %v3074_v11, %v485_v32  ;;  %v7714_v44 = vor.u32 %v6620_v18, %v6168_v36  ;;  %v6618_v31 = vld [vmem:[#allocation13 + $0x24] sm:$0xf]  ;;  %v6619_v15 = vld [vmem:[#allocation13 + $0x2c] sm:$0xf] }
 0x5e6   :  { %6845 = vtanh.f32 %v3107_v38  ;;  %v3131_v28 = vmul.f32 0.5, %v3108_v45  ;;  %v7717_v37 = vor.u32 %v6618_v31, %v6170_v23  ;;  %v6176_v38 = vld [vmem:[#allocation13 + $0x28] sm:$0xf]  ;;  %v6621_v45 = vld [vmem:[#allocation13 + $0x34] sm:$0xf0] }
 0x5e7   :  { %v6842_v14 = vpop.eup %6841  ;;  %v3114_v33 = vmul.f32 0.5, %v3109_v27  ;;  %v3122_v59 = vmul.f32 0.5, %v3110_v17  ;;  %3892 = vmatpush.bf16.msra.mxu0 %v7714_v44  ;;  %v6178_v17 = vld [vmem:[#allocation13 + $0x38] sm:$0xf0]  ;;  %v7722_v63 = vor.u32 %v6621_v45, %v6176_v38  ;;  %v6615_v18 = vld [vmem:[#allocation13 + $0xc] sm:$0xf] }
 0x5e8   :  { %v6844_v58 = vpop.eup %6843  ;;  %v3117_v29 = vmul.f32 0.5, %v6842_v14  ;;  %6847 = vtanh.f32 %v3131_v28  ;;  %3906 = vmatpush.bf16.msra.mxu1 %v7717_v37  ;;  %v7724_v14 = vor.u32 %v6619_v15, %v6178_v17 }
 0x5e9   :  { %v3125_v26 = vmul.f32 0.5, %v6844_v58  ;;  %6849 = vtanh.f32 %v3114_v33  ;;  %v6152_v33 = vld [vmem:[#allocation13] sm:$0xf]  ;;  %3920 = vmatpush.bf16.msra.mxu2 %v7722_v63 }
 0x5ea   :  { %v3119_v61 = vadd.f32 0.5, %v3117_v29  ;;  %6851 = vtanh.f32 %v3122_v59  ;;  %v6616_v59 = vld [vmem:[#allocation13 + $0xc] sm:$0xf0]  ;;  %v6154_v29 = vld [vmem:[#allocation13 + $0x10] sm:$0xf0]  ;;  %3934 = vmatpush.bf16.msra.mxu3 %v7724_v14 }
 0x5eb   :  { %v3127_v1 = vadd.f32 0.5, %v3125_v26  ;;  %v3088_v57 = vpop.f32.mrf.mxu2  ;;  %v3102_v43 = vpop.f32.mrf.mxu3  ;;  %v7726_v58 = vor.u32 %v6616_v59, %v6152_v33  ;;  %v6617_v26 = vld [vmem:[#allocation13 + $0x14] sm:$0xf0] }
 0x5ec   :  { %v6846_v32 = vpop.eup %6845  ;;  %v3111_v48 = vadd.f32 %v3088_v57, %v534_v5  ;;  %v3112_v56 = vadd.f32 %v3102_v43, %v583_v50  ;;  %v6160_v5 = vld [vmem:[#allocation13 + $0x8] sm:$0xf] }
 0x5ed   :  { %v3139_v11 = vmul.f32 %v3127_v1, %v7620_v25  ;;  %v3141_v27 = vmul.f32 %v6846_v32, %v3119_v61  ;;  %v6614_v25 = vld [vmem:[#allocation13 + $0x4] sm:$0xf]  ;;  %3893 = vmatpush.bf16.msra.mxu0 %v7726_v58  ;;  %v7733_v19 = vor.u32 %v6617_v26, %v6160_v5  ;;  %v6162_v1 = vld [vmem:[#allocation13 + $0x18] sm:$0xf0] }
 0x5ee   :  { %v6848_v28 = vpop.eup %6847  ;;  %6853 = vtanh.f32 %v3111_v48  ;;  %v3132_v8 = vmul.f32 0.5, %v3112_v56  ;;  %v7730_v4 = vor.u32 %v6614_v25, %v6154_v29  ;;  %v7741_v32 = vor.u32 %v6615_v18, %v6162_v1 }
 0x5ef   :  { %v6850_v53 = vpop.eup %6849  ;;  %v3143_v2 = vadd.f32 %v3141_v27, %v3139_v11  ;;  %v3135_v20 = vmul.f32 0.5, %v6848_v28  ;;  %3921 = vmatpush.bf16.msra.mxu2 %v7733_v19  ;;  %v7754_v28 = vpop.f32.mrf.mxu0 }
 0x5f0   :  { %v6852_v39 = vpop.eup %6851  ;;  %v3118_v40 = vmul.f32 0.5, %v6850_v53  ;;  %6855 = vtanh.f32 %v3132_v8  ;;  %3907 = vmatpush.bf16.msra.mxu1 %v7730_v4  ;;  %3935 = vmatpush.bf16.msra.mxu3 %v7741_v32  ;;  %v7756_v8 = vpop.f32.mrf.mxu1 }
 0x5f1   :  { %6857 = vtanh.f32 %v3143_v2  ;;  %3158 = vst [vmem:[#allocation16] sm:$0xff] %v3143_v2  ;;  %v3126_v13 = vmul.f32 0.5, %v6852_v39  ;;  %3995 = vmatpush.bf16.msrb.mxu0 %v7627_v30  ;;  %v3137_v23 = vadd.f32 0.5, %v3135_v20 }
 0x5f2   :  { %v3120_v50 = vadd.f32 0.5, %v3118_v40 }
 0x5f3   :  { %v3128_v61 = vadd.f32 0.5, %v3126_v13  ;;  %4023 = vmatpush.bf16.msrb.mxu2 %v7631_v55  ;;  %v7765_v2 = vpop.f32.mrf.mxu2  ;;  %v7767_v25 = vpop.f32.mrf.mxu3 }
 0x5f4   :  { %4009 = vmatpush.bf16.msrb.mxu1 %v7629_v47  ;;  %v6854_v36 = vpop.eup %6853  ;;  %4037 = vmatpush.bf16.msrb.mxu3 %v7636_v9 }
 0x5f5   :  { %v3140_v57 = vmul.f32 %v3128_v61, %v7624_v6  ;;  %v3142_v43 = vmul.f32 %v6854_v36, %v3120_v50  ;;  %3996 = vmatpush.bf16.msrb.mxu0 %v7638_v24  ;;  %v8362_v36 = vmov 0  }
 0x5f6   :  { %v6856_v31 = vpop.eup %6855 }
 0x5f7   :  { %v6858_v48 = vpop.eup %6857  ;;  %v3144_v56 = vadd.f32 %v3142_v43, %v3140_v57  ;;  %4024 = vmatpush.bf16.msrb.mxu2 %v7643_v3  ;;  %v3136_v45 = vmul.f32 0.5, %v6856_v31  ;;  %v7772_v29 = vpop.f32.mrf.mxu0 }
 0x5f8   :  { %4010 = vmatpush.bf16.msrb.mxu1 %v7640_v42  ;;  %v3147_v38 = vmul.f32 %v6858_v48, %v3137_v23  ;;  %4038 = vmatpush.bf16.msrb.mxu3 %v7648_v52  ;;  %v7774_v39 = vpop.f32.mrf.mxu1 }
 0x5f9   :  { %6859 = vtanh.f32 %v3144_v56  ;;  %3159 = vst [vmem:[#allocation16 + $0x8] sm:$0xff] %v3144_v56  ;;  %3997 = vmatpush.bf16.msrb.mxu0 %v7650_v16  ;;  %v3138_v11 = vadd.f32 0.5, %v3136_v45 }
 0x5fa   :  { %v3149_v6 = vpack.c.bf16 %v3147_v38, %v3147_v38 }
 0x5fb   :  { %4025 = vmatpush.bf16.msrb.mxu2 %v7655_v22  ;;  %v7782_v5 = vpop.f32.mrf.mxu2  ;;  %v7784_v26 = vpop.f32.mrf.mxu3 }
 0x5fc   :  { %4011 = vmatpush.bf16.msrb.mxu1 %v7652_v21  ;;  %v3154_v15 = vunpack.c.l.bf16 %v3149_v6  ;;  %4039 = vmatpush.bf16.msrb.mxu3 %v7660_v54 }
 0x5fd   :  { %3998 = vmatpush.bf16.msrb.mxu0 %v7662_v46 }
 0x5fe   :  { %3156 = vst [vmem:[#allocation15] sm:$0xff] %v3154_v15 }
 0x5ff   :  { %v6860_v27 = vpop.eup %6859  ;;  %4026 = vmatpush.bf16.msrb.mxu2 %v7667_v60  ;;  %v7788_v13 = vpop.f32.mrf.mxu0 }
 0x600   :  { %4012 = vmatpush.bf16.msrb.mxu1 %v7664_v10  ;;  %v3148_v17 = vmul.f32 %v6860_v27, %v3138_v11  ;;  %4040 = vmatpush.bf16.msrb.mxu3 %v7672_v51  ;;  %v7790_v20 = vpop.f32.mrf.mxu1 }
 0x601   :  { %3999 = vmatpush.bf16.msrb.mxu0 %v7675_v62 }
 0x602   :  { %v3150_v33 = vpack.c.bf16 %v3148_v17, %v3148_v17  ;;  %v6684_v59 = vpack.c.bf16 %v3148_v17, %v3147_v38 }
 0x603   :  { %4027 = vmatpush.bf16.msrb.mxu2 %v7679_v41  ;;  %v7793_v50 = vpop.f32.mrf.mxu2  ;;  %v7795_v61 = vpop.f32.mrf.mxu3 }
 0x604   :  { %4013 = vmatpush.bf16.msrb.mxu1 %v7677_v12  ;;  %6685 = vst [vmem:[#allocation3 + $0x38] sm:$0xff] %v6684_v59   ;;  %v3155_v53 = vunpack.c.l.bf16 %v3150_v33  ;;  %4041 = vmatpush.bf16.msrb.mxu3 %v7688_v49 }
 0x605   :  { %4000 = vmatpush.bf16.msrb.mxu0 %v7699_v34  ;;  %8361 = vst [vmem:[#allocation24_spill] sm:$0xff] %v7795_v61 }
 0x606   :  { %3157 = vst [vmem:[#allocation15 + $0x8] sm:$0xff] %v3155_v53 }
 0x607   :  { %4028 = vmatpush.bf16.msrb.mxu2 %v7706_v7  ;;  %v7799_v18 = vpop.f32.mrf.mxu0 }
 0x608   :  { %4014 = vmatpush.bf16.msrb.mxu1 %v7701_v0  ;;  %4042 = vmatpush.bf16.msrb.mxu3 %v7711_v35  ;;  %v7801_v1 = vpop.f32.mrf.mxu1 }
 0x609   :  { %4001 = vmatpush.bf16.msrb.mxu0 %v7714_v44 }
 0x60b   :  { %v6581_v40 = vld [vmem:[#allocation3 + $0x38] sm:$0xff]  ;;  %4029 = vmatpush.bf16.msrb.mxu2 %v7722_v63  ;;  %v7813_v57 = vpop.f32.mrf.mxu2  ;;  %v7815_v43 = vpop.f32.mrf.mxu3 }
 0x60c   :  { %4015 = vmatpush.bf16.msrb.mxu1 %v7717_v37  ;;  %3469 = vmatmul.bf16.gmra.mxu0 %v6581_v40  ;;  %8363 = vst [vmem:[#allocation25_spill] sm:$0xff] %v7813_v57 }
 0x60d   :  { %3518 = vmatmul.bf16.gmra.mxu1 %v6581_v40  ;;  %3567 = vmatmul.bf16.gmra.mxu2 %v6581_v40  ;;  %8364 = vst [vmem:[#allocation26_spill] sm:$0xff] %v7815_v43 }
 0x60e   :  { %3616 = vmatmul.bf16.gmra.mxu3 %v6581_v40  ;;  %4002 = vmatpush.bf16.msrb.mxu0 %v7726_v58 }
 0x60f   :  { %4043 = vmatpush.bf16.msrb.mxu3 %v7724_v14  ;;  %4030 = vmatpush.bf16.msrb.mxu2 %v7733_v19  ;;  %v7819_v31 = vpop.f32.mrf.mxu0 }
 0x610   :  { %4016 = vmatpush.bf16.msrb.mxu1 %v7730_v4  ;;  %8365 = vst [vmem:[#allocation27_spill] sm:$0xff] %v7819_v31  ;;  %v7821_v23 = vpop.f32.mrf.mxu1 }
 0x611   :  { %8366 = vst [vmem:[#allocation28_spill] sm:$0xff] %v7821_v23 }
 0x613   :  { %4044 = vmatpush.bf16.msrb.mxu3 %v7741_v32  ;;  %v7829_v48 = vpop.f32.mrf.mxu2  ;;  %v7831_v56 = vpop.f32.mrf.mxu3 }
 0x614   :  { %8367 = vst [vmem:[#allocation29_spill] sm:$0xff] %v7829_v48 }
 0x615   :  { %8368 = vst [vmem:[#allocation30_spill] sm:$0xff] %v7831_v56 }
 0x617   :  { %v7837_v38 = vpop.f32.mrf.mxu0 }
 0x618   :  { %8369 = vst [vmem:[#allocation31_spill] sm:$0xff] %v7837_v38  ;;  %v7839_v6 = vpop.f32.mrf.mxu1 }
 0x619   :  { %8370 = vst [vmem:[#allocation32_spill] sm:$0xff] %v7839_v6 }
 0x61b   :  { %v7849_v45 = vpop.f32.mrf.mxu2  ;;  %v7851_v15 = vpop.f32.mrf.mxu3 }
 0x61c   :  { %3894 = vmatmul.bf16.vlgmr.msra.gmra.mxu0 %v8362_v36  ;;  %8371 = vst [vmem:[#allocation33_spill] sm:$0xff] %v7849_v45 }
 0x61d   :  { %3908 = vmatmul.bf16.vlgmr.msra.gmra.mxu1 %v8362_v36  ;;  %3922 = vmatmul.bf16.vlgmr.msra.gmra.mxu2 %v8362_v36  ;;  %8372 = vst [vmem:[#allocation34_spill] sm:$0xff] %v7851_v15 }
 0x61e   :  { %3936 = vmatmul.bf16.vlgmr.msra.gmra.mxu3 %v8362_v36  ;;  %4104 = vmatpush.bf16.msra.mxu0 %v7627_v30 }
 0x61f   :  { %4118 = vmatpush.bf16.msra.mxu1 %v7629_v47  ;;  %4132 = vmatpush.bf16.msra.mxu2 %v7631_v55  ;;  %v7855_v11 = vpop.f32.mrf.mxu0 }
 0x620   :  { %4146 = vmatpush.bf16.msra.mxu3 %v7636_v9  ;;  %8373 = vst [vmem:[#allocation35_spill] sm:$0xff] %v7855_v11  ;;  %v7857_v27 = vpop.f32.mrf.mxu1 }
 0x621   :  { %8374 = vst [vmem:[#allocation36_spill] sm:$0xff] %v7857_v27 }
 0x622   :  { %4105 = vmatpush.bf16.msra.mxu0 %v7638_v24 }
 0x623   :  { %4119 = vmatpush.bf16.msra.mxu1 %v7640_v42  ;;  %4133 = vmatpush.bf16.msra.mxu2 %v7643_v3  ;;  %v7861_v17 = vpop.f32.mrf.mxu2  ;;  %v7863_v33 = vpop.f32.mrf.mxu3 }
 0x624   :  { %4147 = vmatpush.bf16.msra.mxu3 %v7648_v52  ;;  %8375 = vst [vmem:[#allocation37_spill] sm:$0xff] %v7861_v17 }
 0x625   :  { %8376 = vst [vmem:[#allocation38_spill] sm:$0xff] %v7863_v33 }
 0x626   :  { %4106 = vmatpush.bf16.msra.mxu0 %v7650_v16 }
 0x627   :  { %4120 = vmatpush.bf16.msra.mxu1 %v7652_v21  ;;  %4134 = vmatpush.bf16.msra.mxu2 %v7655_v22  ;;  %v7865_v59 = vpop.f32.mrf.mxu0 }
 0x628   :  { %4148 = vmatpush.bf16.msra.mxu3 %v7660_v54  ;;  %8377 = vst [vmem:[#allocation39_spill] sm:$0xff] %v7865_v59  ;;  %v7867_v53 = vpop.f32.mrf.mxu1 }
 0x629   :  { %8378 = vst [vmem:[#allocation40_spill] sm:$0xff] %v7867_v53 }
 0x62a   :  { %4107 = vmatpush.bf16.msra.mxu0 %v7662_v46 }
 0x62b   :  { %4121 = vmatpush.bf16.msra.mxu1 %v7664_v10  ;;  %4135 = vmatpush.bf16.msra.mxu2 %v7667_v60  ;;  %v7869_v40 = vpop.f32.mrf.mxu2  ;;  %v7871_v36 = vpop.f32.mrf.mxu3 }
 0x62c   :  { %4149 = vmatpush.bf16.msra.mxu3 %v7672_v51  ;;  %8379 = vst [vmem:[#allocation41_spill] sm:$0xff] %v7869_v40 }
 0x62d   :  { %8380 = vst [vmem:[#allocation42_spill] sm:$0xff] %v7871_v36 }
 0x62e   :  { %4108 = vmatpush.bf16.msra.mxu0 %v7675_v62 }
 0x62f   :  { %4122 = vmatpush.bf16.msra.mxu1 %v7677_v12  ;;  %4136 = vmatpush.bf16.msra.mxu2 %v7679_v41  ;;  %v7873_v15 = vpop.f32.mrf.mxu0 }
 0x630   :  { %4150 = vmatpush.bf16.msra.mxu3 %v7688_v49  ;;  %8381 = vst [vmem:[#allocation43_spill] sm:$0xff] %v7873_v15  ;;  %v7875_v11 = vpop.f32.mrf.mxu1 }
 0x631   :  { %8382 = vst [vmem:[#allocation44_spill] sm:$0xff] %v7875_v11 }
 0x632   :  { %4109 = vmatpush.bf16.msra.mxu0 %v7699_v34 }
 0x633   :  { %4123 = vmatpush.bf16.msra.mxu1 %v7701_v0  ;;  %4137 = vmatpush.bf16.msra.mxu2 %v7706_v7  ;;  %v7877_v27 = vpop.f32.mrf.mxu2  ;;  %v7879_v45 = vpop.f32.mrf.mxu3 }
 0x634   :  { %4151 = vmatpush.bf16.msra.mxu3 %v7711_v35  ;;  %8383 = vst [vmem:[#allocation45_spill] sm:$0xff] %v7877_v27 }
 0x635   :  { %8384 = vst [vmem:[#allocation46_spill] sm:$0xff] %v7879_v45 }
 0x636   :  { %4110 = vmatpush.bf16.msra.mxu0 %v7714_v44 }
 0x637   :  { %4124 = vmatpush.bf16.msra.mxu1 %v7717_v37  ;;  %4138 = vmatpush.bf16.msra.mxu2 %v7722_v63  ;;  %v7881_v56 = vpop.f32.mrf.mxu0 }
 0x638   :  { %4152 = vmatpush.bf16.msra.mxu3 %v7724_v14  ;;  %8385 = vst [vmem:[#allocation47_spill] sm:$0xff] %v7881_v56  ;;  %v7883_v17 = vpop.f32.mrf.mxu1 }
 0x639   :  { %8386 = vst [vmem:[#allocation48_spill] sm:$0xff] %v7883_v17 }
 0x63a   :  { %4111 = vmatpush.bf16.msra.mxu0 %v7726_v58 }
 0x63b   :  { %4125 = vmatpush.bf16.msra.mxu1 %v7730_v4  ;;  %4139 = vmatpush.bf16.msra.mxu2 %v7733_v19  ;;  %v7885_v33 = vpop.f32.mrf.mxu2  ;;  %v7887_v59 = vpop.f32.mrf.mxu3 }
 0x63c   :  { %4153 = vmatpush.bf16.msra.mxu3 %v7741_v32  ;;  %8387 = vst [vmem:[#allocation49_spill] sm:$0xff] %v7885_v33 }
 0x63d   :  { %8388 = vst [vmem:[#allocation50_spill] sm:$0xff] %v7887_v59 }
 0x63f   :  { %v7889_v53 = vpop.f32.mrf.mxu0 }
 0x640   :  { %8389 = vst [vmem:[#allocation51_spill] sm:$0xff] %v7889_v53  ;;  %v7891_v40 = vpop.f32.mrf.mxu1 }
 0x641   :  { %8390 = vst [vmem:[#allocation52_spill] sm:$0xff] %v7891_v40 }
 0x643   :  { %v7893_v36 = vpop.f32.mrf.mxu2  ;;  %v7895_v15 = vpop.f32.mrf.mxu3 }
 0x644   :  { %8391 = vst [vmem:[#allocation53_spill] sm:$0xff] %v7893_v36 }
 0x645   :  { %8392 = vst [vmem:[#allocation54_spill] sm:$0xff] %v7895_v15 }
 0x647   :  { %v7897_v11 = vpop.f32.mrf.mxu0 }
 0x648   :  { %8393 = vst [vmem:[#allocation55_spill] sm:$0xff] %v7897_v11  ;;  %v7899_v27 = vpop.f32.mrf.mxu1 }
 0x649   :  { %8394 = vst [vmem:[#allocation56_spill] sm:$0xff] %v7899_v27 }
 0x64b   :  { %v7901_v45 = vpop.f32.mrf.mxu2  ;;  %v7903_v56 = vpop.f32.mrf.mxu3 }
 0x64c   :  { %8395 = vst [vmem:[#allocation57_spill] sm:$0xff] %v7901_v45 }
 0x64d   :  { %8396 = vst [vmem:[#allocation58_spill] sm:$0xff] %v7903_v56 }
 0x64f   :  { %v7905_v17 = vpop.f32.mrf.mxu0 }
 0x650   :  { %8397 = vst [vmem:[#allocation59_spill] sm:$0xff] %v7905_v17  ;;  %v7907_v33 = vpop.f32.mrf.mxu1 }
 0x651   :  { %8398 = vst [vmem:[#allocation60_spill] sm:$0xff] %v7907_v33 }
 0x653   :  { %v7909_v59 = vpop.f32.mrf.mxu2  ;;  %v7911_v53 = vpop.f32.mrf.mxu3 }
 0x654   :  { %8399 = vst [vmem:[#allocation61_spill] sm:$0xff] %v7909_v59 }
 0x655   :  { %8400 = vst [vmem:[#allocation62_spill] sm:$0xff] %v7911_v53  ;;  %v3208_v53 = vld [vmem:[%s8304_s6] sm:$0xf]  ;;  %s7236_s6 = smov [#allocation16]  }
 0x656   :  { %v7948_v38 = vperm.slane %v3208_v53, 2  ;;  %s4776_s13 = sshll.u32 %s7236_s6, 4  ;;  %s4777_s13 = int_to_ptr.vmem [resolvable:$true] %s4776_s13 }
 0x657   :  { %v7913_v40 = vpop.f32.mrf.mxu0 }
 0x658   :  { %8401 = vst [vmem:[#allocation63_spill] sm:$0xff] %v7913_v40  ;;  %v7915_v36 = vpop.f32.mrf.mxu1  ;;  %v3534_v23 = vadd.f32 %v7765_v2, %v7948_v38 }
 0x659   :  { %8402 = vst [vmem:[#allocation64_spill] sm:$0xff] %v7915_v36  ;;  %v7936_v36 = vperm.slane %v3208_v53, 0 }
 0x65b   :  { %v7917_v15 = vpop.f32.mrf.mxu2  ;;  %v7919_v11 = vpop.f32.mrf.mxu3 }
 0x65c   :  { %8403 = vst [vmem:[#allocation65_spill] sm:$0xff] %v7917_v15  ;;  %v7938_v15 = vperm.slane %v3208_v53, 1 }
 0x65d   :  { %8404 = vst [vmem:[#allocation66_spill] sm:$0xff] %v7919_v11 }
 0x689   :  { %v7921_v27 = vpop.f32.mrf.mxu0 }
 0x68a   :  { %8405 = vst [vmem:[#allocation67_spill] sm:$0xff] %v7921_v27  ;;  %v7923_v45 = vpop.f32.mrf.mxu1  ;;  %v3436_v27 = vadd.f32 %v7754_v28, %v7936_v36  ;;  %v7952_v28 = vperm.slane %v3208_v53, 3 }
 0x68b   :  { %8406 = vst [vmem:[#allocation68_spill] sm:$0xff] %v7923_v45 }
 0x68c   :  { %8413 = vst [vmem:[#allocation75_spill] sm:$0xff] %v7952_v28 }
 0x690   :  { %v7925_v56 = vpop.f32.mrf.mxu2 }
 0x691   :  { %8407 = vst [vmem:[#allocation69_spill] sm:$0xff] %v7925_v56  ;;  %v7927_v17 = vpop.f32.mrf.mxu3  ;;  %v7932_v59 = vpop.f32.mrf.mxu0  ;;  %v3485_v56 = vadd.f32 %v7756_v8, %v7938_v15  ;;  %v3438_v8 = vadd.f32 %v7772_v29, %v7936_v36 }
 0x692   :  { %8408 = vst [vmem:[#allocation70_spill] sm:$0xff] %v7927_v17  ;;  %v7934_v40 = vpop.f32.mrf.mxu1 }
 0x693   :  { %8409 = vst [vmem:[#allocation71_spill] sm:$0xff] %v7932_v59 }
 0x694   :  { %8410 = vst [vmem:[#allocation72_spill] sm:$0xff] %v7934_v40 }
 0x698   :  { %v7944_v45 = vpop.f32.mrf.mxu2 }
 0x699   :  { %8411 = vst [vmem:[#allocation73_spill] sm:$0xff] %v7944_v45  ;;  %v7946_v17 = vpop.f32.mrf.mxu3  ;;  %v3895_v11 = vpop.f32.mrf.mxu0 }
 0x69a   :  { %8412 = vst [vmem:[#allocation74_spill] sm:$0xff] %v7946_v17  ;;  %v3909_v33 = vpop.f32.mrf.mxu1  ;;  %v3942_v6 = vadd.f32 %v3895_v11, %v3436_v27  ;;  %v3487_v17 = vadd.f32 %v7774_v39, %v7938_v15  ;;  %v3536_v39 = vadd.f32 %v7782_v5, %v7948_v38 }
 0x69b   :  { %v3943_v59 = vadd.f32 %v3909_v33, %v3485_v56 }
 0x69c   :  { %v3950_v40 = vmul.f32 0.5, %v3942_v6 }
 0x69d   :  { %v3958_v48 = vmul.f32 0.5, %v3943_v59 }
 0x69e   :  { %6861 = vtanh.f32 %v3950_v40  ;;  %v3583_v40 = vadd.f32 %v7767_v25, %v7952_v28 }
 0x69f   :  { %6863 = vtanh.f32 %v3958_v48 }
 0x6a0   :  { %v3923_v45 = vpop.f32.mrf.mxu2 }
 0x6a1   :  { %v3937_v11 = vpop.f32.mrf.mxu3  ;;  %v3944_v56 = vadd.f32 %v3923_v45, %v3534_v23  ;;  %v3897_v27 = vpop.f32.mrf.mxu0  ;;  %v3585_v23 = vadd.f32 %v7784_v26, %v7952_v28 }
 0x6a2   :  { %v3911_v33 = vpop.f32.mrf.mxu1  ;;  %v3946_v6 = vadd.f32 %v3897_v27, %v3438_v8  ;;  %v3945_v29 = vadd.f32 %v3937_v11, %v3583_v40 }
 0x6a3   :  { %v3947_v59 = vadd.f32 %v3911_v33, %v3487_v17  ;;  %6865 = vtanh.f32 %v3944_v56 }
 0x6a4   :  { %v6862_v2 = vpop.eup %6861  ;;  %v3951_v53 = vmul.f32 0.5, %v3946_v6  ;;  %v3968_v27 = vmul.f32 0.5, %v3945_v29 }
 0x6a5   :  { %v3959_v48 = vmul.f32 0.5, %v3947_v59  ;;  %v6864_v31 = vpop.eup %6863  ;;  %v3954_v43 = vmul.f32 0.5, %v6862_v2 }
 0x6a6   :  { %v3962_v57 = vmul.f32 0.5, %v6864_v31  ;;  %6867 = vtanh.f32 %v3951_v53 }
 0x6a7   :  { %v3956_v45 = vadd.f32 0.5, %v3954_v43  ;;  %6869 = vtanh.f32 %v3959_v48 }
 0x6a8   :  { %v3964_v17 = vadd.f32 0.5, %v3962_v57  ;;  %v3925_v8 = vpop.f32.mrf.mxu2 }
 0x6a9   :  { %v3939_v25 = vpop.f32.mrf.mxu3  ;;  %v6866_v56 = vpop.eup %6865  ;;  %v3948_v33 = vadd.f32 %v3925_v8, %v3536_v39 }
 0x6aa   :  { %v3949_v6 = vadd.f32 %v3939_v25, %v3585_v23  ;;  %v3976_v59 = vmul.f32 0.0, %v3964_v17  ;;  %v3978_v2 = vmul.f32 %v6866_v56, %v3956_v45 }
 0x6ab   :  { %6871 = vtanh.f32 %v3948_v33 }
 0x6ac   :  { %v3969_v31 = vmul.f32 0.5, %v3949_v6  ;;  %v6868_v11 = vpop.eup %6867  ;;  %v7964_v40 = vadd.f32 %v3978_v2, %v3976_v59  ;;  %6873 = vtanh.f32 %v3968_v27 }
 0x6ad   :  { %v6870_v5 = vpop.eup %6869  ;;  %v3955_v53 = vmul.f32 0.5, %v6868_v11 }
 0x6ae   :  { %v3963_v26 = vmul.f32 0.5, %v6870_v5  ;;  %6875 = vtanh.f32 %v3969_v31 }
 0x6af   :  { %v3957_v43 = vadd.f32 0.5, %v3955_v53  ;;  %6877 = vtanh.f32 %v7964_v40 }
 0x6b0   :  { %v3965_v57 = vadd.f32 0.5, %v3963_v26 }
 0x6b1   :  { %v6872_v48 = vpop.eup %6871 }
 0x6b2   :  { %v3977_v61 = vmul.f32 0.0, %v3965_v57  ;;  %v3979_v28 = vmul.f32 %v6872_v48, %v3957_v43  ;;  %v6874_v29 = vpop.eup %6873  ;;  %v3539_v43 = vadd.f32 %v7793_v50, %v7948_v38  ;;  %v3443_v57 = vadd.f32 %v7799_v18, %v7936_v36 }
 0x6b3   :  { %v3972_v45 = vmul.f32 0.5, %v6874_v29 }
 0x6b4   :  { %v6876_v39 = vpop.eup %6875  ;;  %v7967_v23 = vadd.f32 %v3979_v28, %v3977_v61  ;;  %v3441_v61 = vadd.f32 %v7788_v13, %v7936_v36  ;;  %v3490_v28 = vadd.f32 %v7790_v20, %v7938_v15  ;;  %v3492_v13 = vadd.f32 %v7801_v1, %v7938_v15  ;;  %v8416_v1 = vld [vmem:[#allocation25_spill] sm:$0xff] }
 0x6b5   :  { %v3973_v17 = vmul.f32 0.5, %v6876_v39  ;;  %v6878_v8 = vpop.eup %6877  ;;  %v3974_v25 = vadd.f32 0.5, %v3972_v45 }
 0x6b6   :  { %6879 = vtanh.f32 %v7967_v23 }
 0x6b7   :  { %v3975_v56 = vadd.f32 0.5, %v3973_v17  ;;  %v3984_v33 = vmul.f32 %v6878_v8, %v3974_v25  ;;  %v8414_v25 = vld [vmem:[#allocation75_spill] sm:$0xff] }
 0x6bc   :  { %v6880_v27 = vpop.eup %6879 }
 0x6bd   :  { %v3985_v6 = vmul.f32 %v6880_v27, %v3975_v56  ;;  %v8415_v56 = vld [vmem:[#allocation24_spill] sm:$0xff] }
 0x6be   :  { %v3588_v27 = vadd.f32 %v8415_v56, %v8414_v25 }
 0x6bf   :  { %v3986_v59 = vpack.c.bf16 %v3985_v6, %v3984_v33 }
 0x6c1   :  { %4003 = vmatmul.bf16.vlgmr.msrb.gmra.mxu0 %v3986_v59  ;;  %4017 = vmatmul.bf16.vlgmr.msrb.gmra.mxu1 %v3986_v59 }
 0x6c2   :  { %4031 = vmatmul.bf16.vlgmr.msrb.gmra.mxu2 %v3986_v59  ;;  %4045 = vmatmul.bf16.vlgmr.msrb.gmra.mxu3 %v3986_v59 }
 0x6c3   :  { %4213 = vmatpush.bf16.msrb.mxu0 %v7627_v30  ;;  %4227 = vmatpush.bf16.msrb.mxu1 %v7629_v47 }
 0x6c4   :  { %4241 = vmatpush.bf16.msrb.mxu2 %v7631_v55  ;;  %4255 = vmatpush.bf16.msrb.mxu3 %v7636_v9 }
 0x6c7   :  { %4214 = vmatpush.bf16.msrb.mxu0 %v7638_v24  ;;  %4228 = vmatpush.bf16.msrb.mxu1 %v7640_v42 }
 0x6c8   :  { %4242 = vmatpush.bf16.msrb.mxu2 %v7643_v3  ;;  %4256 = vmatpush.bf16.msrb.mxu3 %v7648_v52 }
 0x6cb   :  { %4215 = vmatpush.bf16.msrb.mxu0 %v7650_v16  ;;  %4229 = vmatpush.bf16.msrb.mxu1 %v7652_v21 }
 0x6cc   :  { %4243 = vmatpush.bf16.msrb.mxu2 %v7655_v22  ;;  %4257 = vmatpush.bf16.msrb.mxu3 %v7660_v54 }
 0x6cf   :  { %4216 = vmatpush.bf16.msrb.mxu0 %v7662_v46  ;;  %4230 = vmatpush.bf16.msrb.mxu1 %v7664_v10 }
 0x6d0   :  { %4244 = vmatpush.bf16.msrb.mxu2 %v7667_v60  ;;  %4258 = vmatpush.bf16.msrb.mxu3 %v7672_v51 }
 0x6d3   :  { %4217 = vmatpush.bf16.msrb.mxu0 %v7675_v62  ;;  %4231 = vmatpush.bf16.msrb.mxu1 %v7677_v12 }
 0x6d4   :  { %4245 = vmatpush.bf16.msrb.mxu2 %v7679_v41  ;;  %4259 = vmatpush.bf16.msrb.mxu3 %v7688_v49 }
 0x6d7   :  { %4218 = vmatpush.bf16.msrb.mxu0 %v7699_v34  ;;  %4232 = vmatpush.bf16.msrb.mxu1 %v7701_v0 }
 0x6d8   :  { %4246 = vmatpush.bf16.msrb.mxu2 %v7706_v7  ;;  %4260 = vmatpush.bf16.msrb.mxu3 %v7711_v35 }
 0x6db   :  { %4219 = vmatpush.bf16.msrb.mxu0 %v7714_v44  ;;  %4233 = vmatpush.bf16.msrb.mxu1 %v7717_v37 }
 0x6dc   :  { %4247 = vmatpush.bf16.msrb.mxu2 %v7722_v63  ;;  %4261 = vmatpush.bf16.msrb.mxu3 %v7724_v14 }
 0x6df   :  { %4220 = vmatpush.bf16.msrb.mxu0 %v7726_v58  ;;  %4234 = vmatpush.bf16.msrb.mxu1 %v7730_v4 }
 0x6e0   :  { %4248 = vmatpush.bf16.msrb.mxu2 %v7733_v19  ;;  %4262 = vmatpush.bf16.msrb.mxu3 %v7741_v32 }
 0x73e   :  { %v4004_v2 = vpop.f32.mrf.mxu0  ;;  %v4018_v31 = vpop.f32.mrf.mxu1 }
 0x73f   :  { %v4051_v11 = vadd.f32 %v4004_v2, %v3441_v61  ;;  %v4052_v5 = vadd.f32 %v4018_v31, %v3490_v28  ;;  %v3541_v2 = vadd.f32 %v8416_v1, %v7948_v38  ;;  %v8417_v31 = vld [vmem:[#allocation26_spill] sm:$0xff] }
 0x741   :  { %v4059_v53 = vmul.f32 0.5, %v4051_v11  ;;  %v4067_v26 = vmul.f32 0.5, %v4052_v5  ;;  %v3590_v11 = vadd.f32 %v8417_v31, %v8414_v25 }
 0x743   :  { %6881 = vtanh.f32 %v4059_v53 }
 0x744   :  { %6883 = vtanh.f32 %v4067_v26 }
 0x745   :  { %v4032_v48 = vpop.f32.mrf.mxu2  ;;  %v4046_v29 = vpop.f32.mrf.mxu3 }
 0x746   :  { %v4053_v20 = vadd.f32 %v4032_v48, %v3539_v43  ;;  %v4006_v39 = vpop.f32.mrf.mxu0  ;;  %v4020_v45 = vpop.f32.mrf.mxu1  ;;  %v4054_v18 = vadd.f32 %v4046_v29, %v3588_v27 }
 0x747   :  { %v4055_v17 = vadd.f32 %v4006_v39, %v3443_v57  ;;  %v4056_v8 = vadd.f32 %v4020_v45, %v3492_v13 }
 0x748   :  { %6885 = vtanh.f32 %v4053_v20  ;;  %v4077_v13 = vmul.f32 0.5, %v4054_v18 }
 0x749   :  { %v6882_v33 = vpop.eup %6881  ;;  %v4060_v50 = vmul.f32 0.5, %v4055_v17  ;;  %v4068_v6 = vmul.f32 0.5, %v4056_v8 }
 0x74a   :  { %v6884_v59 = vpop.eup %6883  ;;  %v4063_v61 = vmul.f32 0.5, %v6882_v33 }
 0x74b   :  { %v4071_v28 = vmul.f32 0.5, %v6884_v59  ;;  %6887 = vtanh.f32 %v4060_v50 }
 0x74c   :  { %v4065_v5 = vadd.f32 0.5, %v4063_v61  ;;  %6889 = vtanh.f32 %v4068_v6 }
 0x74d   :  { %v4073_v53 = vadd.f32 0.5, %v4071_v28  ;;  %v4034_v26 = vpop.f32.mrf.mxu2  ;;  %v4048_v43 = vpop.f32.mrf.mxu3 }
 0x74e   :  { %v6886_v57 = vpop.eup %6885  ;;  %v4057_v48 = vadd.f32 %v4034_v26, %v3541_v2  ;;  %v4058_v20 = vadd.f32 %v4048_v43, %v3590_v11 }
 0x74f   :  { %v4085_v39 = vmul.f32 %v4073_v53, %v7964_v40  ;;  %v4087_v29 = vmul.f32 %v6886_v57, %v4065_v5 }
 0x750   :  { %6891 = vtanh.f32 %v4057_v48  ;;  %v4078_v45 = vmul.f32 0.5, %v4058_v20  ;;  %v8419_v20 = vld [vmem:[#allocation28_spill] sm:$0xff] }
 0x751   :  { %v6888_v17 = vpop.eup %6887  ;;  %v8019_v8 = vadd.f32 %v4087_v29, %v4085_v39  ;;  %6893 = vtanh.f32 %v4077_v13  ;;  %v3495_v39 = vadd.f32 %v8419_v20, %v7938_v15 }
 0x752   :  { %v6890_v56 = vpop.eup %6889  ;;  %v4064_v27 = vmul.f32 0.5, %v6888_v17  ;;  %6895 = vtanh.f32 %v4078_v45 }
 0x753   :  { %v4072_v33 = vmul.f32 0.5, %v6890_v56  ;;  %6897 = vtanh.f32 %v8019_v8 }
 0x754   :  { %v4066_v50 = vadd.f32 0.5, %v4064_v27 }
 0x755   :  { %v4074_v6 = vadd.f32 0.5, %v4072_v33 }
 0x756   :  { %v6892_v59 = vpop.eup %6891 }
 0x757   :  { %v4086_v61 = vmul.f32 %v4074_v6, %v7967_v23  ;;  %v4088_v18 = vmul.f32 %v6892_v59, %v4066_v50  ;;  %v6894_v28 = vpop.eup %6893  ;;  %v8418_v23 = vld [vmem:[#allocation27_spill] sm:$0xff]  ;;  %v8420_v50 = vld [vmem:[#allocation29_spill] sm:$0xff] }
 0x758   :  { %v6896_v1 = vpop.eup %6895  ;;  %v4081_v2 = vmul.f32 0.5, %v6894_v28  ;;  %v3446_v48 = vadd.f32 %v8418_v23, %v7936_v36  ;;  %v3544_v6 = vadd.f32 %v8420_v50, %v7948_v38  ;;  %v8421_v59 = vld [vmem:[#allocation31_spill] sm:$0xff] }
 0x759   :  { %v8023_v40 = vadd.f32 %v4088_v18, %v4086_v61  ;;  %v4082_v31 = vmul.f32 0.5, %v6896_v1  ;;  %v6898_v11 = vpop.eup %6897  ;;  %v3448_v61 = vadd.f32 %v8421_v59, %v7936_v36  ;;  %v8422_v18 = vld [vmem:[#allocation32_spill] sm:$0xff] }
 0x75a   :  { %v4083_v5 = vadd.f32 0.5, %v4081_v2  ;;  %v3497_v28 = vadd.f32 %v8422_v18, %v7938_v15 }
 0x75b   :  { %6899 = vtanh.f32 %v8023_v40  ;;  %v4084_v53 = vadd.f32 0.5, %v4082_v31 }
 0x75c   :  { %v4093_v43 = vmul.f32 %v6898_v11, %v4083_v5 }
 0x761   :  { %v6900_v26 = vpop.eup %6899 }
 0x762   :  { %v4094_v57 = vmul.f32 %v6900_v26, %v4084_v53 }
 0x764   :  { %v4095_v13 = vpack.c.bf16 %v4094_v57, %v4093_v43  ;;  %v8423_v43 = vld [vmem:[#allocation30_spill] sm:$0xff] }
 0x765   :  { %v3593_v57 = vadd.f32 %v8423_v43, %v8414_v25 }
 0x766   :  { %4112 = vmatmul.bf16.vlgmr.msra.gmra.mxu0 %v4095_v13  ;;  %4126 = vmatmul.bf16.vlgmr.msra.gmra.mxu1 %v4095_v13 }
 0x767   :  { %4140 = vmatmul.bf16.vlgmr.msra.gmra.mxu2 %v4095_v13  ;;  %4154 = vmatmul.bf16.vlgmr.msra.gmra.mxu3 %v4095_v13 }
 0x768   :  { %4322 = vmatpush.bf16.msra.mxu0 %v7627_v30  ;;  %4336 = vmatpush.bf16.msra.mxu1 %v7629_v47 }
 0x769   :  { %4350 = vmatpush.bf16.msra.mxu2 %v7631_v55  ;;  %4364 = vmatpush.bf16.msra.mxu3 %v7636_v9 }
 0x76c   :  { %4323 = vmatpush.bf16.msra.mxu0 %v7638_v24  ;;  %4337 = vmatpush.bf16.msra.mxu1 %v7640_v42 }
 0x76d   :  { %4351 = vmatpush.bf16.msra.mxu2 %v7643_v3  ;;  %4365 = vmatpush.bf16.msra.mxu3 %v7648_v52 }
 0x770   :  { %4324 = vmatpush.bf16.msra.mxu0 %v7650_v16  ;;  %4338 = vmatpush.bf16.msra.mxu1 %v7652_v21 }
 0x771   :  { %4352 = vmatpush.bf16.msra.mxu2 %v7655_v22  ;;  %4366 = vmatpush.bf16.msra.mxu3 %v7660_v54 }
 0x774   :  { %4325 = vmatpush.bf16.msra.mxu0 %v7662_v46  ;;  %4339 = vmatpush.bf16.msra.mxu1 %v7664_v10 }
 0x775   :  { %4353 = vmatpush.bf16.msra.mxu2 %v7667_v60  ;;  %4367 = vmatpush.bf16.msra.mxu3 %v7672_v51 }
 0x778   :  { %4326 = vmatpush.bf16.msra.mxu0 %v7675_v62  ;;  %4340 = vmatpush.bf16.msra.mxu1 %v7677_v12 }
 0x779   :  { %4354 = vmatpush.bf16.msra.mxu2 %v7679_v41  ;;  %4368 = vmatpush.bf16.msra.mxu3 %v7688_v49 }
 0x77c   :  { %4327 = vmatpush.bf16.msra.mxu0 %v7699_v34  ;;  %4341 = vmatpush.bf16.msra.mxu1 %v7701_v0 }
 0x77d   :  { %4355 = vmatpush.bf16.msra.mxu2 %v7706_v7  ;;  %4369 = vmatpush.bf16.msra.mxu3 %v7711_v35 }
 0x780   :  { %4328 = vmatpush.bf16.msra.mxu0 %v7714_v44  ;;  %4342 = vmatpush.bf16.msra.mxu1 %v7717_v37 }
 0x781   :  { %4356 = vmatpush.bf16.msra.mxu2 %v7722_v63  ;;  %4370 = vmatpush.bf16.msra.mxu3 %v7724_v14 }
 0x784   :  { %4329 = vmatpush.bf16.msra.mxu0 %v7726_v58  ;;  %4343 = vmatpush.bf16.msra.mxu1 %v7730_v4 }
 0x785   :  { %4357 = vmatpush.bf16.msra.mxu2 %v7733_v19  ;;  %4371 = vmatpush.bf16.msra.mxu3 %v7741_v32 }
 0x7e3   :  { %v4113_v29 = vpop.f32.mrf.mxu0  ;;  %v4127_v45 = vpop.f32.mrf.mxu1 }
 0x7e4   :  { %v4160_v17 = vadd.f32 %v4113_v29, %v3446_v48  ;;  %v4161_v56 = vadd.f32 %v4127_v45, %v3495_v39 }
 0x7e6   :  { %v4168_v27 = vmul.f32 0.5, %v4160_v17  ;;  %v4176_v33 = vmul.f32 0.5, %v4161_v56  ;;  %v8424_v17 = vld [vmem:[#allocation33_spill] sm:$0xff] }
 0x7e7   :  { %v3546_v56 = vadd.f32 %v8424_v17, %v7948_v38 }
 0x7e8   :  { %6901 = vtanh.f32 %v4168_v27  ;;  %v8425_v27 = vld [vmem:[#allocation34_spill] sm:$0xff] }
 0x7e9   :  { %6903 = vtanh.f32 %v4176_v33  ;;  %v3595_v33 = vadd.f32 %v8425_v27, %v8414_v25 }
 0x7ea   :  { %v4141_v1 = vpop.f32.mrf.mxu2  ;;  %v4155_v2 = vpop.f32.mrf.mxu3 }
 0x7eb   :  { %v4162_v31 = vadd.f32 %v4141_v1, %v3544_v6  ;;  %v4115_v11 = vpop.f32.mrf.mxu0  ;;  %v4129_v5 = vpop.f32.mrf.mxu1  ;;  %v4163_v29 = vadd.f32 %v4155_v2, %v3593_v57 }
 0x7ec   :  { %v4164_v53 = vadd.f32 %v4115_v11, %v3448_v61  ;;  %v4165_v26 = vadd.f32 %v4129_v5, %v3497_v28 }
 0x7ed   :  { %6905 = vtanh.f32 %v4162_v31  ;;  %v4186_v28 = vmul.f32 0.5, %v4163_v29 }
 0x7ee   :  { %v6902_v13 = vpop.eup %6901  ;;  %v4169_v23 = vmul.f32 0.5, %v4164_v53  ;;  %v4177_v48 = vmul.f32 0.5, %v4165_v26 }
 0x7ef   :  { %v6904_v20 = vpop.eup %6903  ;;  %v4172_v39 = vmul.f32 0.5, %v6902_v13 }
 0x7f0   :  { %v4180_v45 = vmul.f32 0.5, %v6904_v20  ;;  %6907 = vtanh.f32 %v4169_v23 }
 0x7f1   :  { %v4174_v50 = vadd.f32 0.5, %v4172_v39  ;;  %6909 = vtanh.f32 %v4177_v48 }
 0x7f2   :  { %v4182_v6 = vadd.f32 0.5, %v4180_v45  ;;  %v4143_v59 = vpop.f32.mrf.mxu2  ;;  %v4157_v61 = vpop.f32.mrf.mxu3 }
 0x7f3   :  { %v6906_v18 = vpop.eup %6905  ;;  %v4166_v1 = vadd.f32 %v4143_v59, %v3546_v56  ;;  %v4167_v31 = vadd.f32 %v4157_v61, %v3595_v33 }
 0x7f4   :  { %v4194_v11 = vmul.f32 %v4182_v6, %v8019_v8  ;;  %v4196_v2 = vmul.f32 %v6906_v18, %v4174_v50 }
 0x7f5   :  { %6911 = vtanh.f32 %v4166_v1  ;;  %v4187_v5 = vmul.f32 0.5, %v4167_v31  ;;  %v8427_v31 = vld [vmem:[#allocation36_spill] sm:$0xff] }
 0x7f6   :  { %v6908_v53 = vpop.eup %6907  ;;  %v8075_v26 = vadd.f32 %v4196_v2, %v4194_v11  ;;  %6913 = vtanh.f32 %v4186_v28  ;;  %v3500_v11 = vadd.f32 %v8427_v31, %v7938_v15 }
 0x7f7   :  { %v6910_v43 = vpop.eup %6909  ;;  %v4173_v57 = vmul.f32 0.5, %v6908_v53  ;;  %6915 = vtanh.f32 %v4187_v5 }
 0x7f8   :  { %v4181_v13 = vmul.f32 0.5, %v6910_v43  ;;  %6917 = vtanh.f32 %v8075_v26 }
 0x7f9   :  { %v4175_v23 = vadd.f32 0.5, %v4173_v57 }
 0x7fa   :  { %v4183_v48 = vadd.f32 0.5, %v4181_v13 }
 0x7fb   :  { %v6912_v20 = vpop.eup %6911 }
 0x7fc   :  { %v4195_v39 = vmul.f32 %v4183_v48, %v8023_v40  ;;  %v4197_v29 = vmul.f32 %v6912_v20, %v4175_v23  ;;  %v6914_v45 = vpop.eup %6913  ;;  %v8426_v40 = vld [vmem:[#allocation35_spill] sm:$0xff]  ;;  %v8428_v23 = vld [vmem:[#allocation37_spill] sm:$0xff] }
 0x7fd   :  { %v6916_v17 = vpop.eup %6915  ;;  %v4190_v56 = vmul.f32 0.5, %v6914_v45  ;;  %v3451_v1 = vadd.f32 %v8426_v40, %v7936_v36  ;;  %v3549_v48 = vadd.f32 %v8428_v23, %v7948_v38  ;;  %v8429_v20 = vld [vmem:[#allocation39_spill] sm:$0xff] }
 0x7fe   :  { %v8079_v8 = vadd.f32 %v4197_v29, %v4195_v39  ;;  %v4191_v27 = vmul.f32 0.5, %v6916_v17  ;;  %v6918_v33 = vpop.eup %6917  ;;  %v3453_v39 = vadd.f32 %v8429_v20, %v7936_v36  ;;  %v8430_v29 = vld [vmem:[#allocation40_spill] sm:$0xff] }
 0x7ff   :  { %v4192_v50 = vadd.f32 0.5, %v4190_v56  ;;  %v3502_v45 = vadd.f32 %v8430_v29, %v7938_v15 }
 0x800   :  { %6919 = vtanh.f32 %v8079_v8  ;;  %v4193_v6 = vadd.f32 0.5, %v4191_v27 }
 0x801   :  { %v4202_v61 = vmul.f32 %v6918_v33, %v4192_v50 }
 0x806   :  { %v6920_v59 = vpop.eup %6919 }
 0x807   :  { %v4203_v18 = vmul.f32 %v6920_v59, %v4193_v6 }
 0x809   :  { %v4204_v28 = vpack.c.bf16 %v4203_v18, %v4202_v61  ;;  %v8431_v61 = vld [vmem:[#allocation38_spill] sm:$0xff] }
 0x80a   :  { %v3598_v18 = vadd.f32 %v8431_v61, %v8414_v25 }
 0x80b   :  { %4221 = vmatmul.bf16.vlgmr.msrb.gmra.mxu0 %v4204_v28  ;;  %4235 = vmatmul.bf16.vlgmr.msrb.gmra.mxu1 %v4204_v28 }
 0x80c   :  { %4249 = vmatmul.bf16.vlgmr.msrb.gmra.mxu2 %v4204_v28  ;;  %4263 = vmatmul.bf16.vlgmr.msrb.gmra.mxu3 %v4204_v28 }
 0x80d   :  { %4431 = vmatpush.bf16.msrb.mxu0 %v7627_v30  ;;  %4445 = vmatpush.bf16.msrb.mxu1 %v7629_v47 }
 0x80e   :  { %4459 = vmatpush.bf16.msrb.mxu2 %v7631_v55  ;;  %4473 = vmatpush.bf16.msrb.mxu3 %v7636_v9 }
 0x811   :  { %4432 = vmatpush.bf16.msrb.mxu0 %v7638_v24  ;;  %4446 = vmatpush.bf16.msrb.mxu1 %v7640_v42 }
 0x812   :  { %4460 = vmatpush.bf16.msrb.mxu2 %v7643_v3  ;;  %4474 = vmatpush.bf16.msrb.mxu3 %v7648_v52 }
 0x815   :  { %4433 = vmatpush.bf16.msrb.mxu0 %v7650_v16  ;;  %4447 = vmatpush.bf16.msrb.mxu1 %v7652_v21 }
 0x816   :  { %4461 = vmatpush.bf16.msrb.mxu2 %v7655_v22  ;;  %4475 = vmatpush.bf16.msrb.mxu3 %v7660_v54 }
 0x819   :  { %4434 = vmatpush.bf16.msrb.mxu0 %v7662_v46  ;;  %4448 = vmatpush.bf16.msrb.mxu1 %v7664_v10 }
 0x81a   :  { %4462 = vmatpush.bf16.msrb.mxu2 %v7667_v60  ;;  %4476 = vmatpush.bf16.msrb.mxu3 %v7672_v51 }
 0x81d   :  { %4435 = vmatpush.bf16.msrb.mxu0 %v7675_v62  ;;  %4449 = vmatpush.bf16.msrb.mxu1 %v7677_v12 }
 0x81e   :  { %4463 = vmatpush.bf16.msrb.mxu2 %v7679_v41  ;;  %4477 = vmatpush.bf16.msrb.mxu3 %v7688_v49 }
 0x821   :  { %4436 = vmatpush.bf16.msrb.mxu0 %v7699_v34  ;;  %4450 = vmatpush.bf16.msrb.mxu1 %v7701_v0 }
 0x822   :  { %4464 = vmatpush.bf16.msrb.mxu2 %v7706_v7  ;;  %4478 = vmatpush.bf16.msrb.mxu3 %v7711_v35 }
 0x825   :  { %4437 = vmatpush.bf16.msrb.mxu0 %v7714_v44  ;;  %4451 = vmatpush.bf16.msrb.mxu1 %v7717_v37 }
 0x826   :  { %4465 = vmatpush.bf16.msrb.mxu2 %v7722_v63  ;;  %4479 = vmatpush.bf16.msrb.mxu3 %v7724_v14 }
 0x829   :  { %4438 = vmatpush.bf16.msrb.mxu0 %v7726_v58  ;;  %4452 = vmatpush.bf16.msrb.mxu1 %v7730_v4 }
 0x82a   :  { %4466 = vmatpush.bf16.msrb.mxu2 %v7733_v19  ;;  %4480 = vmatpush.bf16.msrb.mxu3 %v7741_v32 }
 0x888   :  { %v4222_v2 = vpop.f32.mrf.mxu0  ;;  %v4236_v5 = vpop.f32.mrf.mxu1 }
 0x889   :  { %v4269_v53 = vadd.f32 %v4222_v2, %v3451_v1  ;;  %v4270_v43 = vadd.f32 %v4236_v5, %v3500_v11 }
 0x88b   :  { %v4277_v57 = vmul.f32 0.5, %v4269_v53  ;;  %v4285_v13 = vmul.f32 0.5, %v4270_v43  ;;  %v8432_v53 = vld [vmem:[#allocation41_spill] sm:$0xff] }
 0x88c   :  { %v3551_v43 = vadd.f32 %v8432_v53, %v7948_v38 }
 0x88d   :  { %6921 = vtanh.f32 %v4277_v57  ;;  %v8433_v57 = vld [vmem:[#allocation42_spill] sm:$0xff] }
 0x88e   :  { %6923 = vtanh.f32 %v4285_v13  ;;  %v3600_v13 = vadd.f32 %v8433_v57, %v8414_v25 }
 0x88f   :  { %v4250_v17 = vpop.f32.mrf.mxu2  ;;  %v4264_v56 = vpop.f32.mrf.mxu3 }
 0x890   :  { %v4271_v27 = vadd.f32 %v4250_v17, %v3549_v48  ;;  %v4224_v33 = vpop.f32.mrf.mxu0  ;;  %v4238_v50 = vpop.f32.mrf.mxu1  ;;  %v4272_v2 = vadd.f32 %v4264_v56, %v3598_v18 }
 0x891   :  { %v4273_v6 = vadd.f32 %v4224_v33, %v3453_v39  ;;  %v4274_v59 = vadd.f32 %v4238_v50, %v3502_v45 }
 0x892   :  { %6925 = vtanh.f32 %v4271_v27  ;;  %v4295_v45 = vmul.f32 0.5, %v4272_v2 }
 0x893   :  { %v6922_v28 = vpop.eup %6921  ;;  %v4278_v40 = vmul.f32 0.5, %v4273_v6  ;;  %v4286_v1 = vmul.f32 0.5, %v4274_v59 }
 0x894   :  { %v6924_v31 = vpop.eup %6923  ;;  %v4281_v11 = vmul.f32 0.5, %v6922_v28 }
 0x895   :  { %v4289_v5 = vmul.f32 0.5, %v6924_v31  ;;  %6927 = vtanh.f32 %v4278_v40 }
 0x896   :  { %v4283_v23 = vadd.f32 0.5, %v4281_v11  ;;  %6929 = vtanh.f32 %v4286_v1 }
 0x897   :  { %v4291_v48 = vadd.f32 0.5, %v4289_v5  ;;  %v4252_v20 = vpop.f32.mrf.mxu2  ;;  %v4266_v39 = vpop.f32.mrf.mxu3 }
 0x898   :  { %v6926_v29 = vpop.eup %6925  ;;  %v4275_v17 = vadd.f32 %v4252_v20, %v3551_v43  ;;  %v4276_v27 = vadd.f32 %v4266_v39, %v3600_v13 }
 0x899   :  { %v4303_v33 = vmul.f32 %v4291_v48, %v8075_v26  ;;  %v4305_v56 = vmul.f32 %v6926_v29, %v4283_v23 }
 0x89a   :  { %6931 = vtanh.f32 %v4275_v17  ;;  %v4296_v50 = vmul.f32 0.5, %v4276_v27  ;;  %v8435_v27 = vld [vmem:[#allocation44_spill] sm:$0xff] }
 0x89b   :  { %v6928_v6 = vpop.eup %6927  ;;  %v8131_v59 = vadd.f32 %v4305_v56, %v4303_v33  ;;  %6933 = vtanh.f32 %v4295_v45  ;;  %v3505_v33 = vadd.f32 %v8435_v27, %v7938_v15 }
 0x89c   :  { %v6930_v61 = vpop.eup %6929  ;;  %v4282_v18 = vmul.f32 0.5, %v6928_v6  ;;  %6935 = vtanh.f32 %v4296_v50 }
 0x89d   :  { %v4290_v28 = vmul.f32 0.5, %v6930_v61  ;;  %6937 = vtanh.f32 %v8131_v59 }
 0x89e   :  { %v4284_v40 = vadd.f32 0.5, %v4282_v18 }
 0x89f   :  { %v4292_v1 = vadd.f32 0.5, %v4290_v28 }
 0x8a0   :  { %v6932_v31 = vpop.eup %6931 }
 0x8a1   :  { %v4304_v11 = vmul.f32 %v4292_v1, %v8079_v8  ;;  %v4306_v2 = vmul.f32 %v6932_v31, %v4284_v40  ;;  %v6934_v5 = vpop.eup %6933  ;;  %v8434_v8 = vld [vmem:[#allocation43_spill] sm:$0xff]  ;;  %v8436_v40 = vld [vmem:[#allocation45_spill] sm:$0xff] }
 0x8a2   :  { %v6936_v53 = vpop.eup %6935  ;;  %v4299_v43 = vmul.f32 0.5, %v6934_v5  ;;  %v3456_v17 = vadd.f32 %v8434_v8, %v7936_v36  ;;  %v3554_v1 = vadd.f32 %v8436_v40, %v7948_v38  ;;  %v8437_v31 = vld [vmem:[#allocation47_spill] sm:$0xff] }
 0x8a3   :  { %v8135_v26 = vadd.f32 %v4306_v2, %v4304_v11  ;;  %v4300_v57 = vmul.f32 0.5, %v6936_v53  ;;  %v6938_v13 = vpop.eup %6937  ;;  %v3458_v11 = vadd.f32 %v8437_v31, %v7936_v36  ;;  %v8438_v2 = vld [vmem:[#allocation48_spill] sm:$0xff] }
 0x8a4   :  { %v4301_v23 = vadd.f32 0.5, %v4299_v43  ;;  %v3507_v5 = vadd.f32 %v8438_v2, %v7938_v15 }
 0x8a5   :  { %6939 = vtanh.f32 %v8135_v26  ;;  %v4302_v48 = vadd.f32 0.5, %v4300_v57 }
 0x8a6   :  { %v4311_v39 = vmul.f32 %v6938_v13, %v4301_v23 }
 0x8ab   :  { %v6940_v20 = vpop.eup %6939 }
 0x8ac   :  { %v4312_v29 = vmul.f32 %v6940_v20, %v4302_v48 }
 0x8ae   :  { %v4313_v45 = vpack.c.bf16 %v4312_v29, %v4311_v39  ;;  %v8439_v39 = vld [vmem:[#allocation46_spill] sm:$0xff] }
 0x8af   :  { %v3603_v29 = vadd.f32 %v8439_v39, %v8414_v25 }
 0x8b0   :  { %4330 = vmatmul.bf16.vlgmr.msra.gmra.mxu0 %v4313_v45  ;;  %4344 = vmatmul.bf16.vlgmr.msra.gmra.mxu1 %v4313_v45 }
 0x8b1   :  { %4358 = vmatmul.bf16.vlgmr.msra.gmra.mxu2 %v4313_v45  ;;  %4372 = vmatmul.bf16.vlgmr.msra.gmra.mxu3 %v4313_v45 }
 0x8b2   :  { %4540 = vmatpush.bf16.msra.mxu0 %v7627_v30  ;;  %4554 = vmatpush.bf16.msra.mxu1 %v7629_v47 }
 0x8b3   :  { %4568 = vmatpush.bf16.msra.mxu2 %v7631_v55  ;;  %4582 = vmatpush.bf16.msra.mxu3 %v7636_v9 }
 0x8b6   :  { %4541 = vmatpush.bf16.msra.mxu0 %v7638_v24  ;;  %4555 = vmatpush.bf16.msra.mxu1 %v7640_v42 }
 0x8b7   :  { %4569 = vmatpush.bf16.msra.mxu2 %v7643_v3  ;;  %4583 = vmatpush.bf16.msra.mxu3 %v7648_v52 }
 0x8ba   :  { %4542 = vmatpush.bf16.msra.mxu0 %v7650_v16  ;;  %4556 = vmatpush.bf16.msra.mxu1 %v7652_v21 }
 0x8bb   :  { %4570 = vmatpush.bf16.msra.mxu2 %v7655_v22  ;;  %4584 = vmatpush.bf16.msra.mxu3 %v7660_v54 }
 0x8be   :  { %4543 = vmatpush.bf16.msra.mxu0 %v7662_v46  ;;  %4557 = vmatpush.bf16.msra.mxu1 %v7664_v10 }
 0x8bf   :  { %4571 = vmatpush.bf16.msra.mxu2 %v7667_v60  ;;  %4585 = vmatpush.bf16.msra.mxu3 %v7672_v51 }
 0x8c2   :  { %4544 = vmatpush.bf16.msra.mxu0 %v7675_v62  ;;  %4558 = vmatpush.bf16.msra.mxu1 %v7677_v12 }
 0x8c3   :  { %4572 = vmatpush.bf16.msra.mxu2 %v7679_v41  ;;  %4586 = vmatpush.bf16.msra.mxu3 %v7688_v49 }
 0x8c6   :  { %4545 = vmatpush.bf16.msra.mxu0 %v7699_v34  ;;  %4559 = vmatpush.bf16.msra.mxu1 %v7701_v0 }
 0x8c7   :  { %4573 = vmatpush.bf16.msra.mxu2 %v7706_v7  ;;  %4587 = vmatpush.bf16.msra.mxu3 %v7711_v35 }
 0x8ca   :  { %4546 = vmatpush.bf16.msra.mxu0 %v7714_v44  ;;  %4560 = vmatpush.bf16.msra.mxu1 %v7717_v37 }
 0x8cb   :  { %4574 = vmatpush.bf16.msra.mxu2 %v7722_v63  ;;  %4588 = vmatpush.bf16.msra.mxu3 %v7724_v14 }
 0x8ce   :  { %4547 = vmatpush.bf16.msra.mxu0 %v7726_v58  ;;  %4561 = vmatpush.bf16.msra.mxu1 %v7730_v4 }
 0x8cf   :  { %4575 = vmatpush.bf16.msra.mxu2 %v7733_v19  ;;  %4589 = vmatpush.bf16.msra.mxu3 %v7741_v32 }
 0x92d   :  { %v4331_v56 = vpop.f32.mrf.mxu0  ;;  %v4345_v50 = vpop.f32.mrf.mxu1 }
 0x92e   :  { %v4378_v6 = vadd.f32 %v4331_v56, %v3456_v17  ;;  %v4379_v61 = vadd.f32 %v4345_v50, %v3505_v33 }
 0x930   :  { %v4386_v18 = vmul.f32 0.5, %v4378_v6  ;;  %v4394_v28 = vmul.f32 0.5, %v4379_v61  ;;  %v8440_v6 = vld [vmem:[#allocation49_spill] sm:$0xff] }
 0x931   :  { %v3556_v61 = vadd.f32 %v8440_v6, %v7948_v38 }
 0x932   :  { %6941 = vtanh.f32 %v4386_v18  ;;  %v8441_v18 = vld [vmem:[#allocation50_spill] sm:$0xff] }
 0x933   :  { %6943 = vtanh.f32 %v4394_v28  ;;  %v3605_v28 = vadd.f32 %v8441_v18, %v8414_v25 }
 0x934   :  { %v4359_v53 = vpop.f32.mrf.mxu2  ;;  %v4373_v43 = vpop.f32.mrf.mxu3 }
 0x935   :  { %v4380_v57 = vadd.f32 %v4359_v53, %v3554_v1  ;;  %v4333_v13 = vpop.f32.mrf.mxu0  ;;  %v4347_v23 = vpop.f32.mrf.mxu1  ;;  %v4381_v56 = vadd.f32 %v4373_v43, %v3603_v29 }
 0x936   :  { %v4382_v48 = vadd.f32 %v4333_v13, %v3458_v11  ;;  %v4383_v20 = vadd.f32 %v4347_v23, %v3507_v5 }
 0x937   :  { %6945 = vtanh.f32 %v4380_v57  ;;  %v4404_v5 = vmul.f32 0.5, %v4381_v56 }
 0x938   :  { %v6942_v45 = vpop.eup %6941  ;;  %v4387_v8 = vmul.f32 0.5, %v4382_v48  ;;  %v4395_v17 = vmul.f32 0.5, %v4383_v20 }
 0x939   :  { %v6944_v27 = vpop.eup %6943  ;;  %v4390_v33 = vmul.f32 0.5, %v6942_v45 }
 0x93a   :  { %v4398_v50 = vmul.f32 0.5, %v6944_v27  ;;  %6947 = vtanh.f32 %v4387_v8 }
 0x93b   :  { %v4392_v40 = vadd.f32 0.5, %v4390_v33  ;;  %6949 = vtanh.f32 %v4395_v17 }
 0x93c   :  { %v4400_v1 = vadd.f32 0.5, %v4398_v50  ;;  %v4361_v31 = vpop.f32.mrf.mxu2  ;;  %v4375_v11 = vpop.f32.mrf.mxu3 }
 0x93d   :  { %v6946_v2 = vpop.eup %6945  ;;  %v4384_v53 = vadd.f32 %v4361_v31, %v3556_v61  ;;  %v4385_v57 = vadd.f32 %v4375_v11, %v3605_v28 }
 0x93e   :  { %v4412_v13 = vmul.f32 %v4400_v1, %v8131_v59  ;;  %v4414_v43 = vmul.f32 %v6946_v2, %v4392_v40 }
 0x93f   :  { %6951 = vtanh.f32 %v4384_v53  ;;  %v4405_v23 = vmul.f32 0.5, %v4385_v57  ;;  %v8449_v57 = vld [vmem:[#allocation58_spill] sm:$0xff] }
 0x940   :  { %v6948_v48 = vpop.eup %6947  ;;  %v8187_v20 = vadd.f32 %v4414_v43, %v4412_v13  ;;  %6953 = vtanh.f32 %v4404_v5  ;;  %v3610_v13 = vadd.f32 %v8449_v57, %v8414_v25 }
 0x941   :  { %v6950_v39 = vpop.eup %6949  ;;  %v4391_v29 = vmul.f32 0.5, %v6948_v48  ;;  %6955 = vtanh.f32 %v4405_v23 }
 0x942   :  { %v4399_v45 = vmul.f32 0.5, %v6950_v39  ;;  %6957 = vtanh.f32 %v8187_v20 }
 0x943   :  { %v4393_v8 = vadd.f32 0.5, %v4391_v29 }
 0x944   :  { %v4401_v17 = vadd.f32 0.5, %v4399_v45 }
 0x945   :  { %v6952_v27 = vpop.eup %6951 }
 0x946   :  { %v4413_v33 = vmul.f32 %v4401_v17, %v8135_v26  ;;  %v4415_v56 = vmul.f32 %v6952_v27, %v4393_v8  ;;  %v6954_v50 = vpop.eup %6953  ;;  %v8448_v26 = vld [vmem:[#allocation57_spill] sm:$0xff] }
 0x947   :  { %v6956_v6 = vpop.eup %6955  ;;  %v4408_v61 = vmul.f32 0.5, %v6954_v50  ;;  %v3561_v53 = vadd.f32 %v8448_v26, %v7948_v38  ;;  %v8455_v26 = vld [vmem:[#allocation62_spill] sm:$0xff] }
 0x948   :  { %v8191_v59 = vadd.f32 %v4415_v56, %v4413_v33  ;;  %v4409_v18 = vmul.f32 0.5, %v6956_v6  ;;  %v6958_v28 = vpop.eup %6957 }
 0x949   :  { %v4410_v40 = vadd.f32 0.5, %v4408_v61 }
 0x94a   :  { %6959 = vtanh.f32 %v8191_v59  ;;  %v4411_v1 = vadd.f32 0.5, %v4409_v18 }
 0x94b   :  { %v4420_v11 = vmul.f32 %v6958_v28, %v4410_v40 }
 0x950   :  { %v6960_v31 = vpop.eup %6959 }
 0x951   :  { %v4421_v2 = vmul.f32 %v6960_v31, %v4411_v1 }
 0x953   :  { %v4422_v5 = vpack.c.bf16 %v4421_v2, %v4420_v11 }
 0x955   :  { %4439 = vmatmul.bf16.vlgmr.msrb.gmra.mxu0 %v4422_v5  ;;  %4453 = vmatmul.bf16.vlgmr.msrb.gmra.mxu1 %v4422_v5 }
 0x956   :  { %4467 = vmatmul.bf16.vlgmr.msrb.gmra.mxu2 %v4422_v5  ;;  %4481 = vmatmul.bf16.vlgmr.msrb.gmra.mxu3 %v4422_v5 }
 0x957   :  { %4649 = vmatpush.bf16.msrb.mxu0 %v7627_v30  ;;  %4663 = vmatpush.bf16.msrb.mxu1 %v7629_v47  ;;  %v8442_v30 = vld [vmem:[#allocation51_spill] sm:$0xff] }
 0x958   :  { %4677 = vmatpush.bf16.msrb.mxu2 %v7631_v55  ;;  %4691 = vmatpush.bf16.msrb.mxu3 %v7636_v9  ;;  %v3461_v47 = vadd.f32 %v8442_v30, %v7936_v36  ;;  %v8443_v55 = vld [vmem:[#allocation52_spill] sm:$0xff] }
 0x959   :  { %v3510_v9 = vadd.f32 %v8443_v55, %v7938_v15 }
 0x95b   :  { %4650 = vmatpush.bf16.msrb.mxu0 %v7638_v24  ;;  %4664 = vmatpush.bf16.msrb.mxu1 %v7640_v42 }
 0x95c   :  { %4678 = vmatpush.bf16.msrb.mxu2 %v7643_v3  ;;  %4692 = vmatpush.bf16.msrb.mxu3 %v7648_v52 }
 0x95f   :  { %4651 = vmatpush.bf16.msrb.mxu0 %v7650_v16  ;;  %4665 = vmatpush.bf16.msrb.mxu1 %v7652_v21 }
 0x960   :  { %4679 = vmatpush.bf16.msrb.mxu2 %v7655_v22  ;;  %4693 = vmatpush.bf16.msrb.mxu3 %v7660_v54  ;;  %v8444_v22 = vld [vmem:[#allocation53_spill] sm:$0xff] }
 0x961   :  { %v3559_v54 = vadd.f32 %v8444_v22, %v7948_v38 }
 0x963   :  { %4652 = vmatpush.bf16.msrb.mxu0 %v7662_v46  ;;  %4666 = vmatpush.bf16.msrb.mxu1 %v7664_v10  ;;  %v8445_v46 = vld [vmem:[#allocation55_spill] sm:$0xff] }
 0x964   :  { %4680 = vmatpush.bf16.msrb.mxu2 %v7667_v60  ;;  %4694 = vmatpush.bf16.msrb.mxu3 %v7672_v51  ;;  %v3463_v10 = vadd.f32 %v8445_v46, %v7936_v36  ;;  %v8446_v60 = vld [vmem:[#allocation56_spill] sm:$0xff] }
 0x965   :  { %v3512_v51 = vadd.f32 %v8446_v60, %v7938_v15 }
 0x967   :  { %4653 = vmatpush.bf16.msrb.mxu0 %v7675_v62  ;;  %4667 = vmatpush.bf16.msrb.mxu1 %v7677_v12 }
 0x968   :  { %4681 = vmatpush.bf16.msrb.mxu2 %v7679_v41  ;;  %4695 = vmatpush.bf16.msrb.mxu3 %v7688_v49 }
 0x96b   :  { %4654 = vmatpush.bf16.msrb.mxu0 %v7699_v34  ;;  %4668 = vmatpush.bf16.msrb.mxu1 %v7701_v0 }
 0x96c   :  { %4682 = vmatpush.bf16.msrb.mxu2 %v7706_v7  ;;  %4696 = vmatpush.bf16.msrb.mxu3 %v7711_v35  ;;  %v8447_v35 = vld [vmem:[#allocation54_spill] sm:$0xff] }
 0x96f   :  { %4655 = vmatpush.bf16.msrb.mxu0 %v7714_v44  ;;  %4669 = vmatpush.bf16.msrb.mxu1 %v7717_v37  ;;  %v3608_v44 = vadd.f32 %v8447_v35, %v8414_v25  ;;  %v8454_v35 = vld [vmem:[#allocation64_spill] sm:$0xff] }
 0x970   :  { %4683 = vmatpush.bf16.msrb.mxu2 %v7722_v63  ;;  %4697 = vmatpush.bf16.msrb.mxu3 %v7724_v14 }
 0x973   :  { %4656 = vmatpush.bf16.msrb.mxu0 %v7726_v58  ;;  %4670 = vmatpush.bf16.msrb.mxu1 %v7730_v4 }
 0x974   :  { %4684 = vmatpush.bf16.msrb.mxu2 %v7733_v19  ;;  %4698 = vmatpush.bf16.msrb.mxu3 %v7741_v32 }
 0x9d2   :  { %v4440_v24 = vpop.f32.mrf.mxu0  ;;  %v4454_v42 = vpop.f32.mrf.mxu1 }
 0x9d3   :  { %v4487_v3 = vadd.f32 %v4440_v24, %v3461_v47  ;;  %v4488_v52 = vadd.f32 %v4454_v42, %v3510_v9 }
 0x9d5   :  { %v4495_v16 = vmul.f32 0.5, %v4487_v3  ;;  %v4503_v21 = vmul.f32 0.5, %v4488_v52 }
 0x9d7   :  { %6961 = vtanh.f32 %v4495_v16 }
 0x9d8   :  { %6963 = vtanh.f32 %v4503_v21 }
 0x9d9   :  { %v4468_v62 = vpop.f32.mrf.mxu2  ;;  %v4482_v12 = vpop.f32.mrf.mxu3 }
 0x9da   :  { %v4489_v41 = vadd.f32 %v4468_v62, %v3559_v54  ;;  %v4442_v49 = vpop.f32.mrf.mxu0  ;;  %v4456_v34 = vpop.f32.mrf.mxu1  ;;  %v4490_v19 = vadd.f32 %v4482_v12, %v3608_v44  ;;  %v8451_v54 = vld [vmem:[#allocation60_spill] sm:$0xff]  ;;  %v3517_v44 = vadd.f32 %v8454_v35, %v7938_v15 }
 0x9db   :  { %v4491_v0 = vadd.f32 %v4442_v49, %v3463_v10  ;;  %v4492_v7 = vadd.f32 %v4456_v34, %v3512_v51  ;;  %v3515_v46 = vadd.f32 %v8451_v54, %v7938_v15  ;;  %v8452_v49 = vld [vmem:[#allocation61_spill] sm:$0xff] }
 0x9dc   :  { %6965 = vtanh.f32 %v4489_v41  ;;  %v4513_v45 = vmul.f32 0.5, %v4490_v19  ;;  %v3564_v34 = vadd.f32 %v8452_v49, %v7948_v38 }
 0x9dd   :  { %v6962_v37 = vpop.eup %6961  ;;  %v4496_v63 = vmul.f32 0.5, %v4491_v0  ;;  %v4504_v14 = vmul.f32 0.5, %v4492_v7  ;;  %v8453_v0 = vld [vmem:[#allocation63_spill] sm:$0xff] }
 0x9de   :  { %v6964_v58 = vpop.eup %6963  ;;  %v4499_v4 = vmul.f32 0.5, %v6962_v37  ;;  %v3468_v7 = vadd.f32 %v8453_v0, %v7936_v36 }
 0x9df   :  { %v4507_v32 = vmul.f32 0.5, %v6964_v58  ;;  %6967 = vtanh.f32 %v4496_v63 }
 0x9e0   :  { %v4501_v43 = vadd.f32 0.5, %v4499_v4  ;;  %6969 = vtanh.f32 %v4504_v14 }
 0x9e1   :  { %v4509_v23 = vadd.f32 0.5, %v4507_v32  ;;  %v4470_v48 = vpop.f32.mrf.mxu2  ;;  %v4484_v39 = vpop.f32.mrf.mxu3 }
 0x9e2   :  { %v6966_v29 = vpop.eup %6965  ;;  %v4493_v8 = vadd.f32 %v4470_v48, %v3561_v53  ;;  %v4494_v17 = vadd.f32 %v4484_v39, %v3610_v13  ;;  %v3613_v53 = vadd.f32 %v8455_v26, %v8414_v25  ;;  %v8462_v26 = vld [vmem:[#allocation71_spill] sm:$0xff] }
 0x9e3   :  { %v4521_v27 = vmul.f32 %v4509_v23, %v8187_v20  ;;  %v4523_v33 = vmul.f32 %v6966_v29, %v4501_v43 }
 0x9e4   :  { %6971 = vtanh.f32 %v4493_v8  ;;  %v4514_v56 = vmul.f32 0.5, %v4494_v17  ;;  %v8457_v17 = vld [vmem:[#allocation66_spill] sm:$0xff] }
 0x9e5   :  { %v6968_v50 = vpop.eup %6967  ;;  %v8243_v6 = vadd.f32 %v4523_v33, %v4521_v27  ;;  %6973 = vtanh.f32 %v4513_v45  ;;  %v8456_v45 = vld [vmem:[#allocation65_spill] sm:$0xff]  ;;  %v3615_v27 = vadd.f32 %v8457_v17, %v8414_v25 }
 0x9e6   :  { %v6970_v61 = vpop.eup %6969  ;;  %v4500_v18 = vmul.f32 0.5, %v6968_v50  ;;  %6975 = vtanh.f32 %v4514_v56  ;;  %v3566_v8 = vadd.f32 %v8456_v45, %v7948_v38 }
 0x9e7   :  { %v4508_v28 = vmul.f32 0.5, %v6970_v61  ;;  %6977 = vtanh.f32 %v8243_v6 }
 0x9e8   :  { %v4502_v40 = vadd.f32 0.5, %v4500_v18 }
 0x9e9   :  { %v4510_v1 = vadd.f32 0.5, %v4508_v28 }
 0x9ea   :  { %v6972_v31 = vpop.eup %6971 }
 0x9eb   :  { %v4522_v11 = vmul.f32 %v4510_v1, %v8191_v59  ;;  %v4524_v2 = vmul.f32 %v6972_v31, %v4502_v40  ;;  %v6974_v5 = vpop.eup %6973  ;;  %v8450_v59 = vld [vmem:[#allocation59_spill] sm:$0xff] }
 0x9ec   :  { %v6976_v30 = vpop.eup %6975  ;;  %v4517_v47 = vmul.f32 0.5, %v6974_v5  ;;  %v3466_v22 = vadd.f32 %v8450_v59, %v7936_v36 }
 0x9ed   :  { %v8247_v20 = vadd.f32 %v4524_v2, %v4522_v11  ;;  %v4518_v55 = vmul.f32 0.5, %v6976_v30  ;;  %v6978_v9 = vpop.eup %6977 }
 0x9ee   :  { %v4519_v24 = vadd.f32 0.5, %v4517_v47 }
 0x9ef   :  { %6979 = vtanh.f32 %v8247_v20  ;;  %v4520_v42 = vadd.f32 0.5, %v4518_v55 }
 0x9f0   :  { %v4529_v52 = vmul.f32 %v6978_v9, %v4519_v24 }
 0x9f5   :  { %v6980_v3 = vpop.eup %6979 }
 0x9f6   :  { %v4530_v16 = vmul.f32 %v6980_v3, %v4520_v42 }
 0x9f8   :  { %v4531_v21 = vpack.c.bf16 %v4530_v16, %v4529_v52 }
 0x9fa   :  { %4548 = vmatmul.bf16.vlgmr.msra.gmra.mxu0 %v4531_v21  ;;  %4562 = vmatmul.bf16.vlgmr.msra.gmra.mxu1 %v4531_v21 }
 0x9fb   :  { %4576 = vmatmul.bf16.vlgmr.msra.gmra.mxu2 %v4531_v21  ;;  %4590 = vmatmul.bf16.vlgmr.msra.gmra.mxu3 %v4531_v21 }
 0xa77   :  { %v4549_v10 = vpop.f32.mrf.mxu0  ;;  %v4563_v60 = vpop.f32.mrf.mxu1 }
 0xa78   :  { %v4596_v51 = vadd.f32 %v4549_v10, %v3466_v22  ;;  %v4597_v62 = vadd.f32 %v4563_v60, %v3515_v46 }
 0xa7a   :  { %v4604_v12 = vmul.f32 0.5, %v4596_v51  ;;  %v4612_v41 = vmul.f32 0.5, %v4597_v62 }
 0xa7c   :  { %6981 = vtanh.f32 %v4604_v12 }
 0xa7d   :  { %6983 = vtanh.f32 %v4612_v41 }
 0xa7e   :  { %v4577_v37 = vpop.f32.mrf.mxu2  ;;  %v4591_v63 = vpop.f32.mrf.mxu3 }
 0xa7f   :  { %v4598_v14 = vadd.f32 %v4577_v37, %v3564_v34  ;;  %v4551_v58 = vpop.f32.mrf.mxu0  ;;  %v4565_v4 = vpop.f32.mrf.mxu1  ;;  %v4599_v39 = vadd.f32 %v4591_v63, %v3613_v53  ;;  %v8459_v34 = vld [vmem:[#allocation68_spill] sm:$0xff]  ;;  %v3473_v53 = vadd.f32 %v8462_v26, %v7936_v36 }
 0xa80   :  { %v4600_v19 = vadd.f32 %v4551_v58, %v3468_v7  ;;  %v4601_v32 = vadd.f32 %v4565_v4, %v3517_v44  ;;  %v3520_v0 = vadd.f32 %v8459_v34, %v7938_v15  ;;  %v8460_v58 = vld [vmem:[#allocation69_spill] sm:$0xff] }
 0xa81   :  { %6985 = vtanh.f32 %v4598_v14  ;;  %v4622_v28 = vmul.f32 0.5, %v4599_v39  ;;  %v3569_v4 = vadd.f32 %v8460_v58, %v7948_v38 }
 0xa82   :  { %v6982_v57 = vpop.eup %6981  ;;  %v4605_v13 = vmul.f32 0.5, %v4600_v19  ;;  %v4613_v43 = vmul.f32 0.5, %v4601_v32  ;;  %v8461_v19 = vld [vmem:[#allocation70_spill] sm:$0xff] }
 0xa83   :  { %v6984_v23 = vpop.eup %6983  ;;  %v4608_v48 = vmul.f32 0.5, %v6982_v57  ;;  %v3618_v32 = vadd.f32 %v8461_v19, %v8414_v25  ;;  %v8463_v57 = vld [vmem:[#allocation72_spill] sm:$0xff] }
 0xa84   :  { %v4616_v29 = vmul.f32 0.5, %v6984_v23  ;;  %6987 = vtanh.f32 %v4605_v13  ;;  %v3522_v13 = vadd.f32 %v8463_v57, %v7938_v15  ;;  %v8464_v15 = vld [vmem:[#allocation73_spill] sm:$0xff] }
 0xa85   :  { %v4610_v33 = vadd.f32 0.5, %v4608_v48  ;;  %6989 = vtanh.f32 %v4613_v43 }
 0xa86   :  { %v4618_v56 = vadd.f32 0.5, %v4616_v29  ;;  %v4579_v50 = vpop.f32.mrf.mxu2  ;;  %v4593_v61 = vpop.f32.mrf.mxu3 }
 0xa87   :  { %v6986_v18 = vpop.eup %6985  ;;  %v4602_v40 = vadd.f32 %v4579_v50, %v3566_v8  ;;  %v4603_v1 = vadd.f32 %v4593_v61, %v3615_v27 }
 0xa88   :  { %v4630_v31 = vmul.f32 %v4618_v56, %v8243_v6  ;;  %v4632_v11 = vmul.f32 %v6986_v18, %v4610_v33 }
 0xa89   :  { %6991 = vtanh.f32 %v4602_v40  ;;  %v4623_v2 = vmul.f32 0.5, %v4603_v1  ;;  %v8465_v40 = vld [vmem:[#allocation74_spill] sm:$0xff] }
 0xa8a   :  { %v6988_v5 = vpop.eup %6987  ;;  %v8267_v30 = vadd.f32 %v4632_v11, %v4630_v31  ;;  %6993 = vtanh.f32 %v4622_v28  ;;  %v3571_v28 = vadd.f32 %v8464_v15, %v7948_v38  ;;  %v3620_v1 = vadd.f32 %v8465_v40, %v8414_v25 }
 0xa8b   :  { %v6990_v47 = vpop.eup %6989  ;;  %v4609_v55 = vmul.f32 0.5, %v6988_v5  ;;  %6995 = vtanh.f32 %v4623_v2 }
 0xa8c   :  { %v4617_v9 = vmul.f32 0.5, %v6990_v47  ;;  %6997 = vtanh.f32 %v8267_v30 }
 0xa8d   :  { %v4611_v24 = vadd.f32 0.5, %v4609_v55 }
 0xa8e   :  { %v4619_v42 = vadd.f32 0.5, %v4617_v9 }
 0xa8f   :  { %v6992_v3 = vpop.eup %6991 }
 0xa90   :  { %v4631_v52 = vmul.f32 %v4619_v42, %v8247_v20  ;;  %v4633_v16 = vmul.f32 %v6992_v3, %v4611_v24  ;;  %v6994_v21 = vpop.eup %6993  ;;  %v8458_v20 = vld [vmem:[#allocation67_spill] sm:$0xff] }
 0xa91   :  { %v6996_v59 = vpop.eup %6995  ;;  %v4626_v22 = vmul.f32 0.5, %v6994_v21  ;;  %v3471_v49 = vadd.f32 %v8458_v20, %v7936_v36 }
 0xa92   :  { %v8271_v6 = vadd.f32 %v4633_v16, %v4631_v52  ;;  %v4627_v54 = vmul.f32 0.5, %v6996_v59  ;;  %v6998_v46 = vpop.eup %6997 }
 0xa93   :  { %v4628_v10 = vadd.f32 0.5, %v4626_v22 }
 0xa94   :  { %6999 = vtanh.f32 %v8271_v6  ;;  %v4629_v60 = vadd.f32 0.5, %v4627_v54 }
 0xa95   :  { %v4638_v62 = vmul.f32 %v6998_v46, %v4628_v10 }
 0xa9a   :  { %v7000_v51 = vpop.eup %6999 }
 0xa9b   :  { %v4639_v12 = vmul.f32 %v7000_v51, %v4629_v60 }
 0xa9d   :  { %v4640_v41 = vpack.c.bf16 %v4639_v12, %v4638_v62 }
 0xa9f   :  { %4657 = vmatmul.bf16.vlgmr.msrb.gmra.mxu0 %v4640_v41  ;;  %4671 = vmatmul.bf16.vlgmr.msrb.gmra.mxu1 %v4640_v41 }
 0xaa0   :  { %4685 = vmatmul.bf16.vlgmr.msrb.gmra.mxu2 %v4640_v41  ;;  %4699 = vmatmul.bf16.vlgmr.msrb.gmra.mxu3 %v4640_v41 }
 0xb1c   :  { %v4658_v7 = vpop.f32.mrf.mxu0  ;;  %v4672_v35 = vpop.f32.mrf.mxu1 }
 0xb1d   :  { %v4705_v44 = vadd.f32 %v4658_v7, %v3471_v49  ;;  %v4706_v37 = vadd.f32 %v4672_v35, %v3520_v0 }
 0xb1f   :  { %v4713_v63 = vmul.f32 0.5, %v4705_v44  ;;  %v4721_v14 = vmul.f32 0.5, %v4706_v37 }
 0xb21   :  { %7001 = vtanh.f32 %v4713_v63 }
 0xb22   :  { %7003 = vtanh.f32 %v4721_v14 }
 0xb23   :  { %v4686_v43 = vpop.f32.mrf.mxu2  ;;  %v4700_v23 = vpop.f32.mrf.mxu3 }
 0xb24   :  { %v4707_v48 = vadd.f32 %v4686_v43, %v3569_v4  ;;  %v4708_v39 = vadd.f32 %v4700_v23, %v3618_v32  ;;  %v4660_v29 = vpop.f32.mrf.mxu0  ;;  %v4674_v45 = vpop.f32.mrf.mxu1 }
 0xb25   :  { %v4709_v8 = vadd.f32 %v4660_v29, %v3473_v53  ;;  %v4710_v17 = vadd.f32 %v4674_v45, %v3522_v13 }
 0xb26   :  { %7005 = vtanh.f32 %v4707_v48  ;;  %v4731_v27 = vmul.f32 0.5, %v4708_v39 }
 0xb27   :  { %v7002_v33 = vpop.eup %7001  ;;  %v4714_v56 = vmul.f32 0.5, %v4709_v8  ;;  %v4722_v50 = vmul.f32 0.5, %v4710_v17 }
 0xb28   :  { %v7004_v61 = vpop.eup %7003  ;;  %v4717_v18 = vmul.f32 0.5, %v7002_v33  ;;  %7007 = vtanh.f32 %v4731_v27 }
 0xb29   :  { %v4725_v36 = vmul.f32 0.5, %v7004_v61  ;;  %7009 = vtanh.f32 %v4714_v56 }
 0xb2a   :  { %v4719_v31 = vadd.f32 0.5, %v4717_v18  ;;  %7011 = vtanh.f32 %v4722_v50 }
 0xb2b   :  { %v4727_v11 = vadd.f32 0.5, %v4725_v36  ;;  %v4688_v2 = vpop.f32.mrf.mxu2  ;;  %v4702_v5 = vpop.f32.mrf.mxu3 }
 0xb2c   :  { %v7006_v47 = vpop.eup %7005  ;;  %v4711_v55 = vadd.f32 %v4688_v2, %v3571_v28  ;;  %v4712_v9 = vadd.f32 %v4702_v5, %v3620_v1 }
 0xb2d   :  { %v4739_v24 = vmul.f32 %v4727_v11, %v8267_v30  ;;  %v4741_v42 = vmul.f32 %v7006_v47, %v4719_v31 }
 0xb2e   :  { %v7008_v3 = vpop.eup %7007  ;;  %7013 = vtanh.f32 %v4711_v55  ;;  %v4732_v52 = vmul.f32 0.5, %v4712_v9 }
 0xb2f   :  { %v7010_v16 = vpop.eup %7009  ;;  %v4743_v21 = vadd.f32 %v4741_v42, %v4739_v24  ;;  %v4735_v22 = vmul.f32 0.5, %v7008_v3 }
 0xb30   :  { %v7012_v38 = vpop.eup %7011  ;;  %v4718_v59 = vmul.f32 0.5, %v7010_v16  ;;  %7015 = vtanh.f32 %v4732_v52 }
 0xb31   :  { %7017 = vtanh.f32 %v4743_v21  ;;  %4757 = vst [vmem:[#allocation16 + $0x10] sm:$0xff] %v4743_v21  ;;  %v4726_v25 = vmul.f32 0.5, %v7012_v38  ;;  %v4737_v62 = vadd.f32 0.5, %v4735_v22 }
 0xb32   :  { %v4720_v54 = vadd.f32 0.5, %v4718_v59 }
 0xb33   :  { %v4728_v46 = vadd.f32 0.5, %v4726_v25 }
 0xb34   :  { %v7014_v10 = vpop.eup %7013 }
 0xb35   :  { %v4740_v30 = vmul.f32 %v4728_v46, %v8271_v6  ;;  %v4742_v60 = vmul.f32 %v7014_v10, %v4720_v54 }
 0xb36   :  { %v7016_v51 = vpop.eup %7015 }
 0xb37   :  { %v7018_v12 = vpop.eup %7017  ;;  %v4744_v41 = vadd.f32 %v4742_v60, %v4740_v30  ;;  %v4736_v34 = vmul.f32 0.5, %v7016_v51 }
 0xb38   :  { %v4747_v20 = vmul.f32 %v7018_v12, %v4737_v62 }
 0xb39   :  { %7019 = vtanh.f32 %v4744_v41  ;;  %4758 = vst [vmem:[#allocation16 + $0x18] sm:$0xff] %v4744_v41  ;;  %v4738_v7 = vadd.f32 0.5, %v4736_v34 }
 0xb3a   :  { %v4749_v49 = vpack.c.bf16 %v4747_v20, %v4747_v20  ;;  %4784 = dma.vmem_to_hbm [thread:$0]  %s4777_s13, 512, %s4779_s16, [#allocation17], %s7237_s17, %s7237_s17, %s7238_s1  }
 0xb3c   :  { %v4751_v0 = vunpack.c.l.bf16 %v4749_v49 }
 0xb3e   :  { %4754 = vst [vmem:[#allocation15 + $0x10] sm:$0xff] %v4751_v0 }
 0xb3f   :  { %v7020_v35 = vpop.eup %7019 }
 0xb40   :  { %v4748_v6 = vmul.f32 %v7020_v35, %v4738_v7 }
 0xb42   :  { %v4750_v44 = vpack.c.bf16 %v4748_v6, %v4748_v6 }
 0xb44   :  { %v4752_v37 = vunpack.c.l.bf16 %v4750_v44 }
 0xb46   :  { %4755 = vst [vmem:[#allocation15 + $0x18] sm:$0xff] %v4752_v37 }
 0xb47   :  { %4771 = dma.vmem_to_hbm [thread:$0]  %s4764_s18, 512, %s4766_s3, [#allocation6], %s7237_s17, %s7237_s17, %s7238_s1  }
 0xb48   :  { %7221 = dma.done.wait [#allocation6], 512  }
 0xb49   :  { %7222 = vsyncadd [#allocation6], 4294966784 }
 0xb4a   :  { %7223 = dma.done.wait [#allocation17], 512  }
 0xb4b   :  { %7224 = vsyncadd [#allocation17], 4294966784 }
 0xb4c   :  { %4793 = vsyncpa [#allocation5], 1 }
 0xb4d   :  { %4794 = vsyncpa [#allocation8], 1 }
 0xb4e   :  { %4795 = vsyncpa [#allocation11], 1 }
 0xb4f   :  { %4796 = vsyncpa [#allocation14], 1 }
 0xb50   :  { %4797 = vsyncpa [#allocation6], 1 }
 0xb51   :  { %4798 = vsyncpa [#allocation17], 1 }

</bundles_post_ra>
